<compile_context>
chip_gen: v7x
topology: tpu7x:2x2x1
jax: 0.10.0
libtpu: 0.0.40
codegen_flags: <defaults>
</compile_context>

<pallas_src>
import numpy as np

import jax
import jax.numpy as jnp
from jax.experimental import pallas as pl
from jax.experimental.pallas import tpu as pltpu


# -----------------------------------------------------------------------------
# Static network description
# -----------------------------------------------------------------------------
def _out_size(hin, k, s, p):
    return (hin + 2 * p - k) // s + 1


def build_layers(in_channels, encoder_channels, resolution, num_downscale,
                 max_channel_multiplier):
    """Static per-conv descriptors (k, stride, pad, slope, dims, skip flags)."""
    layers = []
    h = resolution
    cin = in_channels
    cout = in_channels
    for d in range(num_downscale):
        cout = encoder_channels * min(2 ** d, max_channel_multiplier)
        layers.append(dict(k=5, s=2, p=2, slope=0.1, cin=cin, cout=cout,
                           hin=h, save_skip=False, add_skip=False))
        h = _out_size(h, 5, 2, 2)
        cin = cout
        if d == 0:  # initial ResidualBlock(encoder_channels)
            layers.append(dict(k=3, s=1, p=1, slope=0.2, cin=cin, cout=cin,
                               hin=h, save_skip=True, add_skip=False))
            layers.append(dict(k=3, s=1, p=1, slope=0.2, cin=cin, cout=cin,
                               hin=h, save_skip=False, add_skip=True))
    # final ResidualBlock(out_channels)
    layers.append(dict(k=3, s=1, p=1, slope=0.2, cin=cin, cout=cin,
                       hin=h, save_skip=True, add_skip=False))
    layers.append(dict(k=3, s=1, p=1, slope=0.2, cin=cin, cout=cin,
                       hin=h, save_skip=False, add_skip=True))
    return layers, h, cout


# -----------------------------------------------------------------------------
# Weight folding (init-time, NumPy):  conv -> sum_dh (A[dh] @ X) @ B[dh]
# -----------------------------------------------------------------------------
def fold_conv_params(w, b, layer):
    """w: (k,k,Cin,Cout) HWIO, b: (Cout,).  Activation layout X[h, w*Cin+ci].

    out[oh, ow*Cout+co] = sum_{dh,dw,ci} Xpad[s*oh+dh, s*ow+dw, ci]*w[dh,dw,ci,co]
    A[dh] (OH, Hin): 0/1 row selection (stride + H zero-padding folded in).
    B[dh] (Win*Cin, OW*Cout): weights + W zero-padding folded in.
    """
    k, s, p = layer["k"], layer["s"], layer["p"]
    cin, cout, hin = layer["cin"], layer["cout"], layer["hin"]
    win = hin
    oh_n = _out_size(hin, k, s, p)
    ow_n = oh_n

    A = np.zeros((k, oh_n, hin), np.float32)
    for dh in range(k):
        for oh in range(oh_n):
            h = s * oh + dh - p
            if 0 <= h < hin:
                A[dh, oh, h] = 1.0

    B = np.zeros((k, win * cin, ow_n * cout), np.float32)
    for dh in range(k):
        for ow in range(ow_n):
            for dw in range(k):
                w_in = s * ow + dw - p
                if 0 <= w_in < win:
                    B[dh, w_in * cin:(w_in + 1) * cin,
                          ow * cout:(ow + 1) * cout] = w[dh, dw]

    brow = np.tile(np.asarray(b, np.float32), ow_n).reshape(1, ow_n * cout)
    return A, B, brow


def fold_dense_params(wd, spatial, channels, ae_channels):
    """Fold torch.nn.Flatten's NCHW ordering into the kernel's (H, W*C) layout."""
    out = np.zeros((spatial, spatial * channels, ae_channels), np.float32)
    for h in range(spatial):
        for w in range(spatial):
            for c in range(channels):
                out[h, w * channels + c, :] = wd[c * spatial * spatial
                                                 + h * spatial + w, :]
    return out


# -----------------------------------------------------------------------------
# Model factory: init / fused-kernel forward / pure-JAX reference
# -----------------------------------------------------------------------------
def make_amp_encoder(in_channels, encoder_channels, ae_channels, resolution,
                     num_downscale=5, max_channel_multiplier=8, eps=1e-6):
    layers, out_spatial, out_ch = build_layers(
        in_channels, encoder_channels, resolution, num_downscale,
        max_channel_multiplier)
    feature_size = out_spatial * out_spatial * out_ch
    n_conv = len(layers)

    # --------------------------------------------------------------- kernel
    def fused_kernel(*refs):
        # refs = (x, [A, B, bias_row] * n_conv, wd_fold, dense_bias, out)
        x_ref = refs[0]
        conv_refs = refs[1:1 + 3 * n_conv]
        wd_ref = refs[1 + 3 * n_conv]
        db_ref = refs[2 + 3 * n_conv]
        out_ref = refs[3 + 3 * n_conv]

        x = x_ref[0]                                     # (H, W*C) f32, 1 sample
        skip = None
        for li, lyr in enumerate(layers):
            a_ref = conv_refs[3 * li]
            b_ref = conv_refs[3 * li + 1]
            br_ref = conv_refs[3 * li + 2]
            if lyr["save_skip"]:
                skip = x
            xb = x.astype(jnp.bfloat16)                  # bf16 MXU operands
            acc = None
            for dh in range(lyr["k"]):                   # conv = sum over kernel rows
                rows = jnp.dot(a_ref[dh], xb,
                               preferred_element_type=jnp.float32)
                part = jnp.dot(rows.astype(jnp.bfloat16), b_ref[dh],
                               preferred_element_type=jnp.float32)
                acc = part if acc is None else acc + part
            acc = acc + br_ref[...]                      # bias (f32 epilogue)
            if lyr["add_skip"]:
                acc = acc + skip                         # residual add (f32)
            x = jnp.where(acc >= 0.0, acc, lyr["slope"] * acc)   # LeakyReLU

        # dense_norm (RMS over all features of the sample) + Linear
        ss = jnp.sum(x * x, axis=1, keepdims=True)       # (H, 1)
        ss = jnp.sum(ss, axis=0, keepdims=True)          # (1, 1)
        inv = jax.lax.rsqrt(ss / float(feature_size) + eps)
        xn = x * inv                                     # (H, W*C) f32
        out = db_ref[...]                                # (1, ae)
        for h in range(out_spatial):
            out = out + jnp.dot(xn[h:h + 1, :], wd_ref[h],
                                preferred_element_type=jnp.float32)
        out_ref[0] = out                                 # (1, ae) into (1,1,ae)

    def _const_index_map(ndim):
        return lambda b: (0,) * ndim

    # --------------------------------------------------------------- forward
    def forward(params, x_nchw):
        n = x_nchw.shape[0]
        wc = resolution * in_channels
        x = jnp.transpose(x_nchw.astype(jnp.float32), (0, 2, 3, 1))  # NHWC
        x = x.reshape(n, resolution, wc)                             # (N, H, W*C)

        inputs = [x]
        in_specs = [pl.BlockSpec((1, resolution, wc), lambda b: (b, 0, 0))]
        for fp in params["folded"]:
            for key in ("A", "B", "brow"):
                arr = fp[key]
                inputs.append(arr)
                in_specs.append(
                    pl.BlockSpec(arr.shape, _const_index_map(arr.ndim)))
        for arr in (params["wd_fold"], params["db_row"]):
            inputs.append(arr)
            in_specs.append(pl.BlockSpec(arr.shape, _const_index_map(arr.ndim)))

        out = pl.pallas_call(
            fused_kernel,
            out_shape=jax.ShapeDtypeStruct((n, 1, ae_channels), jnp.float32),
            grid=(n,),
            in_specs=in_specs,
            out_specs=pl.BlockSpec((1, 1, ae_channels), lambda b: (b, 0, 0)),
            compiler_params=pltpu.CompilerParams(
                dimension_semantics=("parallel",),        # v7x: 1 sample per core
                vmem_limit_bytes=40 * 1024 * 1024),
        )(*inputs)
        return out.reshape(n, ae_channels)

    # ------------------------------------------------------------------ init
    def init(key):
        keys = jax.random.split(key, n_conv + 1)
        layer_params, folded = [], []
        for lyr, k_i in zip(layers, keys[:-1]):
            fan_in = lyr["cin"] * lyr["k"] * lyr["k"]
            # TODO(synk): convolution_aware (numpy FFT/SVD) initializer replaced
            # by a deterministic scaled-normal init of identical shapes
            # (init-time only; forward semantics unaffected).
            w = jax.random.normal(
                k_i, (lyr["k"], lyr["k"], lyr["cin"], lyr["cout"]),
                jnp.float32) * np.sqrt(2.0 / fan_in)
            w = w.astype(jnp.bfloat16).astype(jnp.float32)  # model weights = bf16
            b = jnp.zeros((lyr["cout"],), jnp.float32)
            layer_params.append({"w": w, "b": b})
            A, B, brow = fold_conv_params(np.asarray(w), np.asarray(b), lyr)
            folded.append({"A": jnp.asarray(A, jnp.bfloat16),
                           "B": jnp.asarray(B, jnp.bfloat16),
                           "brow": jnp.asarray(brow, jnp.float32)})
        limit = float(np.sqrt(6.0 / (feature_size + ae_channels)))
        wd = jax.random.uniform(keys[-1], (feature_size, ae_channels),
                                jnp.float32, minval=-limit, maxval=limit)
        db = jnp.zeros((ae_channels,), jnp.float32)
        wd_fold = fold_dense_params(np.asarray(wd), out_spatial, out_ch,
                                    ae_channels)
        return {"layers": layer_params, "dense_w": wd, "dense_b": db,
                "folded": folded,
                "wd_fold": jnp.asarray(wd_fold, jnp.float32),
                "db_row": db.reshape(1, ae_channels)}

    # ------------------------------------------------------------- reference
    def reference(params, x_nchw):
        x = jnp.transpose(x_nchw.astype(jnp.float32), (0, 2, 3, 1))   # NHWC
        skip = None
        for lyr, lp in zip(layers, params["layers"]):
            if lyr["save_skip"]:
                skip = x
            y = jax.lax.conv_general_dilated(
                x, lp["w"], window_strides=(lyr["s"], lyr["s"]),
                padding=((lyr["p"], lyr["p"]), (lyr["p"], lyr["p"])),
                dimension_numbers=("NHWC", "HWIO", "NHWC"))
            y = y + lp["b"]
            if lyr["add_skip"]:
                y = y + skip
            x = jnp.where(y >= 0.0, y, lyr["slope"] * y)
        xf = jnp.transpose(x, (0, 3, 1, 2)).reshape(x.shape[0], -1)   # NCHW flatten
        scale = jnp.mean(xf * xf, axis=-1, keepdims=True) + eps
        xn = xf / jnp.sqrt(scale)
        return xn @ params["dense_w"] + params["dense_b"]

    return init, forward, reference


# -----------------------------------------------------------------------------
if __name__ == "__main__":
    IN_CH, ENC_CH, AE_CH, RES, NDOWN, MAXMUL = 3, 8, 32, 64, 5, 8
    BATCH = 2

    init_fn, forward_fn, reference_fn = make_amp_encoder(
        IN_CH, ENC_CH, AE_CH, RES, num_downscale=NDOWN,
        max_channel_multiplier=MAXMUL)

    key = jax.random.PRNGKey(0)
    k_params, k_input = jax.random.split(key)
    params = init_fn(k_params)
    x = jax.random.normal(k_input, (BATCH, IN_CH, RES, RES), jnp.float32)  # NCHW

    out = jax.block_until_ready(jax.jit(forward_fn)(params, x))
    assert out.shape == (BATCH, AE_CH), out.shape
    assert out.dtype == jnp.float32
    assert bool(jnp.all(jnp.isfinite(out)))

    # Correctness check vs. a pure-JAX (XLA) reference of the same module.
    # Tolerance covers only bf16 activation rounding inside the kernel.
    ref = jax.block_until_ready(jax.jit(reference_fn)(params, x))
    np.testing.assert_allclose(np.asarray(out), np.asarray(ref),
                               atol=5e-2, rtol=5e-2)

    print("KERNEL_OK")
</pallas_src>

<mosaic_0001>
module attributes {stable_mosaic.version = 11 : i64} {
  func.func @fused_kernel(%arg0: i32, %arg1: memref<1x64x192xf32, #tpu.memory_space<vmem>>, %arg2: memref<5x32x64xbf16, #tpu.memory_space<vmem>>, %arg3: memref<5x192x256xbf16, #tpu.memory_space<vmem>>, %arg4: memref<1x256xf32, #tpu.memory_space<vmem>>, %arg5: memref<3x32x32xbf16, #tpu.memory_space<vmem>>, %arg6: memref<3x256x256xbf16, #tpu.memory_space<vmem>>, %arg7: memref<1x256xf32, #tpu.memory_space<vmem>>, %arg8: memref<3x32x32xbf16, #tpu.memory_space<vmem>>, %arg9: memref<3x256x256xbf16, #tpu.memory_space<vmem>>, %arg10: memref<1x256xf32, #tpu.memory_space<vmem>>, %arg11: memref<5x16x32xbf16, #tpu.memory_space<vmem>>, %arg12: memref<5x256x256xbf16, #tpu.memory_space<vmem>>, %arg13: memref<1x256xf32, #tpu.memory_space<vmem>>, %arg14: memref<5x8x16xbf16, #tpu.memory_space<vmem>>, %arg15: memref<5x256x256xbf16, #tpu.memory_space<vmem>>, %arg16: memref<1x256xf32, #tpu.memory_space<vmem>>, %arg17: memref<5x4x8xbf16, #tpu.memory_space<vmem>>, %arg18: memref<5x256x256xbf16, #tpu.memory_space<vmem>>, %arg19: memref<1x256xf32, #tpu.memory_space<vmem>>, %arg20: memref<5x2x4xbf16, #tpu.memory_space<vmem>>, %arg21: memref<5x256x128xbf16, #tpu.memory_space<vmem>>, %arg22: memref<1x128xf32, #tpu.memory_space<vmem>>, %arg23: memref<3x2x2xbf16, #tpu.memory_space<vmem>>, %arg24: memref<3x128x128xbf16, #tpu.memory_space<vmem>>, %arg25: memref<1x128xf32, #tpu.memory_space<vmem>>, %arg26: memref<3x2x2xbf16, #tpu.memory_space<vmem>>, %arg27: memref<3x128x128xbf16, #tpu.memory_space<vmem>>, %arg28: memref<1x128xf32, #tpu.memory_space<vmem>>, %arg29: memref<2x128x32xf32, #tpu.memory_space<vmem>>, %arg30: memref<1x32xf32, #tpu.memory_space<vmem>>, %arg31: memref<1x1x32xf32, #tpu.memory_space<vmem>>) attributes {dimension_semantics = [#tpu.dimension_semantics<parallel>], iteration_bounds = array<i64: 2>, scalar_prefetch = 0 : i64, scratch_operands = 0 : i64, tpu.core_type = #tpu.core_type<tc>, window_params = [{transform_indices = @transform_0, window_bounds = array<i64: 1, 64, 192>}, {pipeline_mode = #tpu.pipeline_mode<synchronous>, transform_indices = @transform_1, window_bounds = array<i64: 5, 32, 64>}, {pipeline_mode = #tpu.pipeline_mode<synchronous>, transform_indices = @transform_2, window_bounds = array<i64: 5, 192, 256>}, {pipeline_mode = #tpu.pipeline_mode<synchronous>, transform_indices = @transform_3, window_bounds = array<i64: 1, 256>}, {pipeline_mode = #tpu.pipeline_mode<synchronous>, transform_indices = @transform_4, window_bounds = array<i64: 3, 32, 32>}, {pipeline_mode = #tpu.pipeline_mode<synchronous>, transform_indices = @transform_5, window_bounds = array<i64: 3, 256, 256>}, {pipeline_mode = #tpu.pipeline_mode<synchronous>, transform_indices = @transform_6, window_bounds = array<i64: 1, 256>}, {pipeline_mode = #tpu.pipeline_mode<synchronous>, transform_indices = @transform_7, window_bounds = array<i64: 3, 32, 32>}, {pipeline_mode = #tpu.pipeline_mode<synchronous>, transform_indices = @transform_8, window_bounds = array<i64: 3, 256, 256>}, {pipeline_mode = #tpu.pipeline_mode<synchronous>, transform_indices = @transform_9, window_bounds = array<i64: 1, 256>}, {pipeline_mode = #tpu.pipeline_mode<synchronous>, transform_indices = @transform_10, window_bounds = array<i64: 5, 16, 32>}, {pipeline_mode = #tpu.pipeline_mode<synchronous>, transform_indices = @transform_11, window_bounds = array<i64: 5, 256, 256>}, {pipeline_mode = #tpu.pipeline_mode<synchronous>, transform_indices = @transform_12, window_bounds = array<i64: 1, 256>}, {pipeline_mode = #tpu.pipeline_mode<synchronous>, transform_indices = @transform_13, window_bounds = array<i64: 5, 8, 16>}, {pipeline_mode = #tpu.pipeline_mode<synchronous>, transform_indices = @transform_14, window_bounds = array<i64: 5, 256, 256>}, {pipeline_mode = #tpu.pipeline_mode<synchronous>, transform_indices = @transform_15, window_bounds = array<i64: 1, 256>}, {pipeline_mode = #tpu.pipeline_mode<synchronous>, transform_indices = @transform_16, window_bounds = array<i64: 5, 4, 8>}, {pipeline_mode = #tpu.pipeline_mode<synchronous>, transform_indices = @transform_17, window_bounds = array<i64: 5, 256, 256>}, {pipeline_mode = #tpu.pipeline_mode<synchronous>, transform_indices = @transform_18, window_bounds = array<i64: 1, 256>}, {pipeline_mode = #tpu.pipeline_mode<synchronous>, transform_indices = @transform_19, window_bounds = array<i64: 5, 2, 4>}, {pipeline_mode = #tpu.pipeline_mode<synchronous>, transform_indices = @transform_20, window_bounds = array<i64: 5, 256, 128>}, {pipeline_mode = #tpu.pipeline_mode<synchronous>, transform_indices = @transform_21, window_bounds = array<i64: 1, 128>}, {pipeline_mode = #tpu.pipeline_mode<synchronous>, transform_indices = @transform_22, window_bounds = array<i64: 3, 2, 2>}, {pipeline_mode = #tpu.pipeline_mode<synchronous>, transform_indices = @transform_23, window_bounds = array<i64: 3, 128, 128>}, {pipeline_mode = #tpu.pipeline_mode<synchronous>, transform_indices = @transform_24, window_bounds = array<i64: 1, 128>}, {pipeline_mode = #tpu.pipeline_mode<synchronous>, transform_indices = @transform_25, window_bounds = array<i64: 3, 2, 2>}, {pipeline_mode = #tpu.pipeline_mode<synchronous>, transform_indices = @transform_26, window_bounds = array<i64: 3, 128, 128>}, {pipeline_mode = #tpu.pipeline_mode<synchronous>, transform_indices = @transform_27, window_bounds = array<i64: 1, 128>}, {pipeline_mode = #tpu.pipeline_mode<synchronous>, transform_indices = @transform_28, window_bounds = array<i64: 2, 128, 32>}, {pipeline_mode = #tpu.pipeline_mode<synchronous>, transform_indices = @transform_29, window_bounds = array<i64: 1, 32>}, {transform_indices = @transform_30, window_bounds = array<i64: 1, 1, 32>}]} {
    %c0 = arith.constant 0 : index
    %c0_0 = arith.constant 0 : index
    %c0_1 = arith.constant 0 : index
    %0 = vector.load %arg1[%c0, %c0_0, %c0_1] : memref<1x64x192xf32, #tpu.memory_space<vmem>>, vector<1x64x192xf32>
    %1 = vector.shape_cast %0 : vector<1x64x192xf32> to vector<64x192xf32>
    %2 = arith.truncf %1 : vector<64x192xf32> to vector<64x192xbf16>
    %c0_2 = arith.constant 0 : index
    %c0_3 = arith.constant 0 : index
    %c0_4 = arith.constant 0 : index
    %3 = vector.load %arg2[%c0_2, %c0_3, %c0_4] : memref<5x32x64xbf16, #tpu.memory_space<vmem>>, vector<1x32x64xbf16>
    %4 = vector.shape_cast %3 : vector<1x32x64xbf16> to vector<32x64xbf16>
    %cst = arith.constant dense<0.000000e+00> : vector<32x192xf32>
    %5 = tpu.matmul %4, %2, %cst {dimension_numbers = #tpu.dot_dimension_numbers<[1], [0], [0], [1], [0, 0, 1, 1], [], []>} : vector<32x64xbf16>, vector<64x192xbf16>, vector<32x192xf32> -> vector<32x192xf32>
    %6 = arith.truncf %5 : vector<32x192xf32> to vector<32x192xbf16>
    %c0_5 = arith.constant 0 : index
    %c0_6 = arith.constant 0 : index
    %c0_7 = arith.constant 0 : index
    %7 = vector.load %arg3[%c0_5, %c0_6, %c0_7] : memref<5x192x256xbf16, #tpu.memory_space<vmem>>, vector<1x192x256xbf16>
    %8 = vector.shape_cast %7 : vector<1x192x256xbf16> to vector<192x256xbf16>
    %cst_8 = arith.constant dense<0.000000e+00> : vector<32x256xf32>
    %9 = tpu.matmul %6, %8, %cst_8 {dimension_numbers = #tpu.dot_dimension_numbers<[1], [0], [0], [1], [0, 0, 1, 1], [], []>} : vector<32x192xbf16>, vector<192x256xbf16>, vector<32x256xf32> -> vector<32x256xf32>
    %c1 = arith.constant 1 : index
    %c0_9 = arith.constant 0 : index
    %c0_10 = arith.constant 0 : index
    %10 = vector.load %arg2[%c1, %c0_9, %c0_10] : memref<5x32x64xbf16, #tpu.memory_space<vmem>>, vector<1x32x64xbf16>
    %11 = vector.shape_cast %10 : vector<1x32x64xbf16> to vector<32x64xbf16>
    %cst_11 = arith.constant dense<0.000000e+00> : vector<32x192xf32>
    %12 = tpu.matmul %11, %2, %cst_11 {dimension_numbers = #tpu.dot_dimension_numbers<[1], [0], [0], [1], [0, 0, 1, 1], [], []>} : vector<32x64xbf16>, vector<64x192xbf16>, vector<32x192xf32> -> vector<32x192xf32>
    %13 = arith.truncf %12 : vector<32x192xf32> to vector<32x192xbf16>
    %c1_12 = arith.constant 1 : index
    %c0_13 = arith.constant 0 : index
    %c0_14 = arith.constant 0 : index
    %14 = vector.load %arg3[%c1_12, %c0_13, %c0_14] : memref<5x192x256xbf16, #tpu.memory_space<vmem>>, vector<1x192x256xbf16>
    %15 = vector.shape_cast %14 : vector<1x192x256xbf16> to vector<192x256xbf16>
    %cst_15 = arith.constant dense<0.000000e+00> : vector<32x256xf32>
    %16 = tpu.matmul %13, %15, %cst_15 {dimension_numbers = #tpu.dot_dimension_numbers<[1], [0], [0], [1], [0, 0, 1, 1], [], []>} : vector<32x192xbf16>, vector<192x256xbf16>, vector<32x256xf32> -> vector<32x256xf32>
    %17 = arith.addf %9, %16 : vector<32x256xf32>
    %c2 = arith.constant 2 : index
    %c0_16 = arith.constant 0 : index
    %c0_17 = arith.constant 0 : index
    %18 = vector.load %arg2[%c2, %c0_16, %c0_17] : memref<5x32x64xbf16, #tpu.memory_space<vmem>>, vector<1x32x64xbf16>
    %19 = vector.shape_cast %18 : vector<1x32x64xbf16> to vector<32x64xbf16>
    %cst_18 = arith.constant dense<0.000000e+00> : vector<32x192xf32>
    %20 = tpu.matmul %19, %2, %cst_18 {dimension_numbers = #tpu.dot_dimension_numbers<[1], [0], [0], [1], [0, 0, 1, 1], [], []>} : vector<32x64xbf16>, vector<64x192xbf16>, vector<32x192xf32> -> vector<32x192xf32>
    %21 = arith.truncf %20 : vector<32x192xf32> to vector<32x192xbf16>
    %c2_19 = arith.constant 2 : index
    %c0_20 = arith.constant 0 : index
    %c0_21 = arith.constant 0 : index
    %22 = vector.load %arg3[%c2_19, %c0_20, %c0_21] : memref<5x192x256xbf16, #tpu.memory_space<vmem>>, vector<1x192x256xbf16>
    %23 = vector.shape_cast %22 : vector<1x192x256xbf16> to vector<192x256xbf16>
    %cst_22 = arith.constant dense<0.000000e+00> : vector<32x256xf32>
    %24 = tpu.matmul %21, %23, %cst_22 {dimension_numbers = #tpu.dot_dimension_numbers<[1], [0], [0], [1], [0, 0, 1, 1], [], []>} : vector<32x192xbf16>, vector<192x256xbf16>, vector<32x256xf32> -> vector<32x256xf32>
    %25 = arith.addf %17, %24 : vector<32x256xf32>
    %c3 = arith.constant 3 : index
    %c0_23 = arith.constant 0 : index
    %c0_24 = arith.constant 0 : index
    %26 = vector.load %arg2[%c3, %c0_23, %c0_24] : memref<5x32x64xbf16, #tpu.memory_space<vmem>>, vector<1x32x64xbf16>
    %27 = vector.shape_cast %26 : vector<1x32x64xbf16> to vector<32x64xbf16>
    %cst_25 = arith.constant dense<0.000000e+00> : vector<32x192xf32>
    %28 = tpu.matmul %27, %2, %cst_25 {dimension_numbers = #tpu.dot_dimension_numbers<[1], [0], [0], [1], [0, 0, 1, 1], [], []>} : vector<32x64xbf16>, vector<64x192xbf16>, vector<32x192xf32> -> vector<32x192xf32>
    %29 = arith.truncf %28 : vector<32x192xf32> to vector<32x192xbf16>
    %c3_26 = arith.constant 3 : index
    %c0_27 = arith.constant 0 : index
    %c0_28 = arith.constant 0 : index
    %30 = vector.load %arg3[%c3_26, %c0_27, %c0_28] : memref<5x192x256xbf16, #tpu.memory_space<vmem>>, vector<1x192x256xbf16>
    %31 = vector.shape_cast %30 : vector<1x192x256xbf16> to vector<192x256xbf16>
    %cst_29 = arith.constant dense<0.000000e+00> : vector<32x256xf32>
    %32 = tpu.matmul %29, %31, %cst_29 {dimension_numbers = #tpu.dot_dimension_numbers<[1], [0], [0], [1], [0, 0, 1, 1], [], []>} : vector<32x192xbf16>, vector<192x256xbf16>, vector<32x256xf32> -> vector<32x256xf32>
    %33 = arith.addf %25, %32 : vector<32x256xf32>
    %c4 = arith.constant 4 : index
    %c0_30 = arith.constant 0 : index
    %c0_31 = arith.constant 0 : index
    %34 = vector.load %arg2[%c4, %c0_30, %c0_31] : memref<5x32x64xbf16, #tpu.memory_space<vmem>>, vector<1x32x64xbf16>
    %35 = vector.shape_cast %34 : vector<1x32x64xbf16> to vector<32x64xbf16>
    %cst_32 = arith.constant dense<0.000000e+00> : vector<32x192xf32>
    %36 = tpu.matmul %35, %2, %cst_32 {dimension_numbers = #tpu.dot_dimension_numbers<[1], [0], [0], [1], [0, 0, 1, 1], [], []>} : vector<32x64xbf16>, vector<64x192xbf16>, vector<32x192xf32> -> vector<32x192xf32>
    %37 = arith.truncf %36 : vector<32x192xf32> to vector<32x192xbf16>
    %c4_33 = arith.constant 4 : index
    %c0_34 = arith.constant 0 : index
    %c0_35 = arith.constant 0 : index
    %38 = vector.load %arg3[%c4_33, %c0_34, %c0_35] : memref<5x192x256xbf16, #tpu.memory_space<vmem>>, vector<1x192x256xbf16>
    %39 = vector.shape_cast %38 : vector<1x192x256xbf16> to vector<192x256xbf16>
    %cst_36 = arith.constant dense<0.000000e+00> : vector<32x256xf32>
    %40 = tpu.matmul %37, %39, %cst_36 {dimension_numbers = #tpu.dot_dimension_numbers<[1], [0], [0], [1], [0, 0, 1, 1], [], []>} : vector<32x192xbf16>, vector<192x256xbf16>, vector<32x256xf32> -> vector<32x256xf32>
    %41 = arith.addf %33, %40 : vector<32x256xf32>
    %c0_37 = arith.constant 0 : index
    %c0_38 = arith.constant 0 : index
    %42 = vector.load %arg4[%c0_37, %c0_38] : memref<1x256xf32, #tpu.memory_space<vmem>>, vector<1x256xf32>
    %43 = vector.broadcast %42 : vector<1x256xf32> to vector<32x256xf32>
    %44 = arith.addf %41, %43 : vector<32x256xf32>
    %cst_39 = arith.constant 0.000000e+00 : f32
    %45 = vector.broadcast %cst_39 : f32 to vector<32x256xf32>
    %46 = arith.cmpf oge, %44, %45 : vector<32x256xf32>
    %cst_40 = arith.constant 1.000000e-01 : f32
    %47 = vector.broadcast %cst_40 : f32 to vector<32x256xf32>
    %48 = arith.mulf %47, %44 : vector<32x256xf32>
    %49 = arith.select %46, %44, %48 : vector<32x256xi1>, vector<32x256xf32>
    %50 = arith.truncf %49 : vector<32x256xf32> to vector<32x256xbf16>
    %c0_41 = arith.constant 0 : index
    %c0_42 = arith.constant 0 : index
    %c0_43 = arith.constant 0 : index
    %51 = vector.load %arg5[%c0_41, %c0_42, %c0_43] : memref<3x32x32xbf16, #tpu.memory_space<vmem>>, vector<1x32x32xbf16>
    %52 = vector.shape_cast %51 : vector<1x32x32xbf16> to vector<32x32xbf16>
    %cst_44 = arith.constant dense<0.000000e+00> : vector<32x256xf32>
    %53 = tpu.matmul %52, %50, %cst_44 {dimension_numbers = #tpu.dot_dimension_numbers<[1], [0], [0], [1], [0, 0, 1, 1], [], []>} : vector<32x32xbf16>, vector<32x256xbf16>, vector<32x256xf32> -> vector<32x256xf32>
    %54 = arith.truncf %53 : vector<32x256xf32> to vector<32x256xbf16>
    %c0_45 = arith.constant 0 : index
    %c0_46 = arith.constant 0 : index
    %c0_47 = arith.constant 0 : index
    %55 = vector.load %arg6[%c0_45, %c0_46, %c0_47] : memref<3x256x256xbf16, #tpu.memory_space<vmem>>, vector<1x256x256xbf16>
    %56 = vector.shape_cast %55 : vector<1x256x256xbf16> to vector<256x256xbf16>
    %cst_48 = arith.constant dense<0.000000e+00> : vector<32x256xf32>
    %57 = tpu.matmul %54, %56, %cst_48 {dimension_numbers = #tpu.dot_dimension_numbers<[1], [0], [0], [1], [0, 0, 1, 1], [], []>} : vector<32x256xbf16>, vector<256x256xbf16>, vector<32x256xf32> -> vector<32x256xf32>
    %c1_49 = arith.constant 1 : index
    %c0_50 = arith.constant 0 : index
    %c0_51 = arith.constant 0 : index
    %58 = vector.load %arg5[%c1_49, %c0_50, %c0_51] : memref<3x32x32xbf16, #tpu.memory_space<vmem>>, vector<1x32x32xbf16>
    %59 = vector.shape_cast %58 : vector<1x32x32xbf16> to vector<32x32xbf16>
    %cst_52 = arith.constant dense<0.000000e+00> : vector<32x256xf32>
    %60 = tpu.matmul %59, %50, %cst_52 {dimension_numbers = #tpu.dot_dimension_numbers<[1], [0], [0], [1], [0, 0, 1, 1], [], []>} : vector<32x32xbf16>, vector<32x256xbf16>, vector<32x256xf32> -> vector<32x256xf32>
    %61 = arith.truncf %60 : vector<32x256xf32> to vector<32x256xbf16>
    %c1_53 = arith.constant 1 : index
    %c0_54 = arith.constant 0 : index
    %c0_55 = arith.constant 0 : index
    %62 = vector.load %arg6[%c1_53, %c0_54, %c0_55] : memref<3x256x256xbf16, #tpu.memory_space<vmem>>, vector<1x256x256xbf16>
    %63 = vector.shape_cast %62 : vector<1x256x256xbf16> to vector<256x256xbf16>
    %cst_56 = arith.constant dense<0.000000e+00> : vector<32x256xf32>
    %64 = tpu.matmul %61, %63, %cst_56 {dimension_numbers = #tpu.dot_dimension_numbers<[1], [0], [0], [1], [0, 0, 1, 1], [], []>} : vector<32x256xbf16>, vector<256x256xbf16>, vector<32x256xf32> -> vector<32x256xf32>
    %65 = arith.addf %57, %64 : vector<32x256xf32>
    %c2_57 = arith.constant 2 : index
    %c0_58 = arith.constant 0 : index
    %c0_59 = arith.constant 0 : index
    %66 = vector.load %arg5[%c2_57, %c0_58, %c0_59] : memref<3x32x32xbf16, #tpu.memory_space<vmem>>, vector<1x32x32xbf16>
    %67 = vector.shape_cast %66 : vector<1x32x32xbf16> to vector<32x32xbf16>
    %cst_60 = arith.constant dense<0.000000e+00> : vector<32x256xf32>
    %68 = tpu.matmul %67, %50, %cst_60 {dimension_numbers = #tpu.dot_dimension_numbers<[1], [0], [0], [1], [0, 0, 1, 1], [], []>} : vector<32x32xbf16>, vector<32x256xbf16>, vector<32x256xf32> -> vector<32x256xf32>
    %69 = arith.truncf %68 : vector<32x256xf32> to vector<32x256xbf16>
    %c2_61 = arith.constant 2 : index
    %c0_62 = arith.constant 0 : index
    %c0_63 = arith.constant 0 : index
    %70 = vector.load %arg6[%c2_61, %c0_62, %c0_63] : memref<3x256x256xbf16, #tpu.memory_space<vmem>>, vector<1x256x256xbf16>
    %71 = vector.shape_cast %70 : vector<1x256x256xbf16> to vector<256x256xbf16>
    %cst_64 = arith.constant dense<0.000000e+00> : vector<32x256xf32>
    %72 = tpu.matmul %69, %71, %cst_64 {dimension_numbers = #tpu.dot_dimension_numbers<[1], [0], [0], [1], [0, 0, 1, 1], [], []>} : vector<32x256xbf16>, vector<256x256xbf16>, vector<32x256xf32> -> vector<32x256xf32>
    %73 = arith.addf %65, %72 : vector<32x256xf32>
    %c0_65 = arith.constant 0 : index
    %c0_66 = arith.constant 0 : index
    %74 = vector.load %arg7[%c0_65, %c0_66] : memref<1x256xf32, #tpu.memory_space<vmem>>, vector<1x256xf32>
    %75 = vector.broadcast %74 : vector<1x256xf32> to vector<32x256xf32>
    %76 = arith.addf %73, %75 : vector<32x256xf32>
    %cst_67 = arith.constant 0.000000e+00 : f32
    %77 = vector.broadcast %cst_67 : f32 to vector<32x256xf32>
    %78 = arith.cmpf oge, %76, %77 : vector<32x256xf32>
    %cst_68 = arith.constant 2.000000e-01 : f32
    %79 = vector.broadcast %cst_68 : f32 to vector<32x256xf32>
    %80 = arith.mulf %79, %76 : vector<32x256xf32>
    %81 = arith.select %78, %76, %80 : vector<32x256xi1>, vector<32x256xf32>
    %82 = arith.truncf %81 : vector<32x256xf32> to vector<32x256xbf16>
    %c0_69 = arith.constant 0 : index
    %c0_70 = arith.constant 0 : index
    %c0_71 = arith.constant 0 : index
    %83 = vector.load %arg8[%c0_69, %c0_70, %c0_71] : memref<3x32x32xbf16, #tpu.memory_space<vmem>>, vector<1x32x32xbf16>
    %84 = vector.shape_cast %83 : vector<1x32x32xbf16> to vector<32x32xbf16>
    %cst_72 = arith.constant dense<0.000000e+00> : vector<32x256xf32>
    %85 = tpu.matmul %84, %82, %cst_72 {dimension_numbers = #tpu.dot_dimension_numbers<[1], [0], [0], [1], [0, 0, 1, 1], [], []>} : vector<32x32xbf16>, vector<32x256xbf16>, vector<32x256xf32> -> vector<32x256xf32>
    %86 = arith.truncf %85 : vector<32x256xf32> to vector<32x256xbf16>
    %c0_73 = arith.constant 0 : index
    %c0_74 = arith.constant 0 : index
    %c0_75 = arith.constant 0 : index
    %87 = vector.load %arg9[%c0_73, %c0_74, %c0_75] : memref<3x256x256xbf16, #tpu.memory_space<vmem>>, vector<1x256x256xbf16>
    %88 = vector.shape_cast %87 : vector<1x256x256xbf16> to vector<256x256xbf16>
    %cst_76 = arith.constant dense<0.000000e+00> : vector<32x256xf32>
    %89 = tpu.matmul %86, %88, %cst_76 {dimension_numbers = #tpu.dot_dimension_numbers<[1], [0], [0], [1], [0, 0, 1, 1], [], []>} : vector<32x256xbf16>, vector<256x256xbf16>, vector<32x256xf32> -> vector<32x256xf32>
    %c1_77 = arith.constant 1 : index
    %c0_78 = arith.constant 0 : index
    %c0_79 = arith.constant 0 : index
    %90 = vector.load %arg8[%c1_77, %c0_78, %c0_79] : memref<3x32x32xbf16, #tpu.memory_space<vmem>>, vector<1x32x32xbf16>
    %91 = vector.shape_cast %90 : vector<1x32x32xbf16> to vector<32x32xbf16>
    %cst_80 = arith.constant dense<0.000000e+00> : vector<32x256xf32>
    %92 = tpu.matmul %91, %82, %cst_80 {dimension_numbers = #tpu.dot_dimension_numbers<[1], [0], [0], [1], [0, 0, 1, 1], [], []>} : vector<32x32xbf16>, vector<32x256xbf16>, vector<32x256xf32> -> vector<32x256xf32>
    %93 = arith.truncf %92 : vector<32x256xf32> to vector<32x256xbf16>
    %c1_81 = arith.constant 1 : index
    %c0_82 = arith.constant 0 : index
    %c0_83 = arith.constant 0 : index
    %94 = vector.load %arg9[%c1_81, %c0_82, %c0_83] : memref<3x256x256xbf16, #tpu.memory_space<vmem>>, vector<1x256x256xbf16>
    %95 = vector.shape_cast %94 : vector<1x256x256xbf16> to vector<256x256xbf16>
    %cst_84 = arith.constant dense<0.000000e+00> : vector<32x256xf32>
    %96 = tpu.matmul %93, %95, %cst_84 {dimension_numbers = #tpu.dot_dimension_numbers<[1], [0], [0], [1], [0, 0, 1, 1], [], []>} : vector<32x256xbf16>, vector<256x256xbf16>, vector<32x256xf32> -> vector<32x256xf32>
    %97 = arith.addf %89, %96 : vector<32x256xf32>
    %c2_85 = arith.constant 2 : index
    %c0_86 = arith.constant 0 : index
    %c0_87 = arith.constant 0 : index
    %98 = vector.load %arg8[%c2_85, %c0_86, %c0_87] : memref<3x32x32xbf16, #tpu.memory_space<vmem>>, vector<1x32x32xbf16>
    %99 = vector.shape_cast %98 : vector<1x32x32xbf16> to vector<32x32xbf16>
    %cst_88 = arith.constant dense<0.000000e+00> : vector<32x256xf32>
    %100 = tpu.matmul %99, %82, %cst_88 {dimension_numbers = #tpu.dot_dimension_numbers<[1], [0], [0], [1], [0, 0, 1, 1], [], []>} : vector<32x32xbf16>, vector<32x256xbf16>, vector<32x256xf32> -> vector<32x256xf32>
    %101 = arith.truncf %100 : vector<32x256xf32> to vector<32x256xbf16>
    %c2_89 = arith.constant 2 : index
    %c0_90 = arith.constant 0 : index
    %c0_91 = arith.constant 0 : index
    %102 = vector.load %arg9[%c2_89, %c0_90, %c0_91] : memref<3x256x256xbf16, #tpu.memory_space<vmem>>, vector<1x256x256xbf16>
    %103 = vector.shape_cast %102 : vector<1x256x256xbf16> to vector<256x256xbf16>
    %cst_92 = arith.constant dense<0.000000e+00> : vector<32x256xf32>
    %104 = tpu.matmul %101, %103, %cst_92 {dimension_numbers = #tpu.dot_dimension_numbers<[1], [0], [0], [1], [0, 0, 1, 1], [], []>} : vector<32x256xbf16>, vector<256x256xbf16>, vector<32x256xf32> -> vector<32x256xf32>
    %105 = arith.addf %97, %104 : vector<32x256xf32>
    %c0_93 = arith.constant 0 : index
    %c0_94 = arith.constant 0 : index
    %106 = vector.load %arg10[%c0_93, %c0_94] : memref<1x256xf32, #tpu.memory_space<vmem>>, vector<1x256xf32>
    %107 = vector.broadcast %106 : vector<1x256xf32> to vector<32x256xf32>
    %108 = arith.addf %105, %107 : vector<32x256xf32>
    %109 = arith.addf %108, %49 : vector<32x256xf32>
    %cst_95 = arith.constant 0.000000e+00 : f32
    %110 = vector.broadcast %cst_95 : f32 to vector<32x256xf32>
    %111 = arith.cmpf oge, %109, %110 : vector<32x256xf32>
    %cst_96 = arith.constant 2.000000e-01 : f32
    %112 = vector.broadcast %cst_96 : f32 to vector<32x256xf32>
    %113 = arith.mulf %112, %109 : vector<32x256xf32>
    %114 = arith.select %111, %109, %113 : vector<32x256xi1>, vector<32x256xf32>
    %115 = arith.truncf %114 : vector<32x256xf32> to vector<32x256xbf16>
    %c0_97 = arith.constant 0 : index
    %c0_98 = arith.constant 0 : index
    %c0_99 = arith.constant 0 : index
    %116 = vector.load %arg11[%c0_97, %c0_98, %c0_99] : memref<5x16x32xbf16, #tpu.memory_space<vmem>>, vector<1x16x32xbf16>
    %117 = vector.shape_cast %116 : vector<1x16x32xbf16> to vector<16x32xbf16>
    %cst_100 = arith.constant dense<0.000000e+00> : vector<16x256xf32>
    %118 = tpu.matmul %117, %115, %cst_100 {dimension_numbers = #tpu.dot_dimension_numbers<[1], [0], [0], [1], [0, 0, 1, 1], [], []>} : vector<16x32xbf16>, vector<32x256xbf16>, vector<16x256xf32> -> vector<16x256xf32>
    %119 = arith.truncf %118 : vector<16x256xf32> to vector<16x256xbf16>
    %c0_101 = arith.constant 0 : index
    %c0_102 = arith.constant 0 : index
    %c0_103 = arith.constant 0 : index
    %120 = vector.load %arg12[%c0_101, %c0_102, %c0_103] : memref<5x256x256xbf16, #tpu.memory_space<vmem>>, vector<1x256x256xbf16>
    %121 = vector.shape_cast %120 : vector<1x256x256xbf16> to vector<256x256xbf16>
    %cst_104 = arith.constant dense<0.000000e+00> : vector<16x256xf32>
    %122 = tpu.matmul %119, %121, %cst_104 {dimension_numbers = #tpu.dot_dimension_numbers<[1], [0], [0], [1], [0, 0, 1, 1], [], []>} : vector<16x256xbf16>, vector<256x256xbf16>, vector<16x256xf32> -> vector<16x256xf32>
    %c1_105 = arith.constant 1 : index
    %c0_106 = arith.constant 0 : index
    %c0_107 = arith.constant 0 : index
    %123 = vector.load %arg11[%c1_105, %c0_106, %c0_107] : memref<5x16x32xbf16, #tpu.memory_space<vmem>>, vector<1x16x32xbf16>
    %124 = vector.shape_cast %123 : vector<1x16x32xbf16> to vector<16x32xbf16>
    %cst_108 = arith.constant dense<0.000000e+00> : vector<16x256xf32>
    %125 = tpu.matmul %124, %115, %cst_108 {dimension_numbers = #tpu.dot_dimension_numbers<[1], [0], [0], [1], [0, 0, 1, 1], [], []>} : vector<16x32xbf16>, vector<32x256xbf16>, vector<16x256xf32> -> vector<16x256xf32>
    %126 = arith.truncf %125 : vector<16x256xf32> to vector<16x256xbf16>
    %c1_109 = arith.constant 1 : index
    %c0_110 = arith.constant 0 : index
    %c0_111 = arith.constant 0 : index
    %127 = vector.load %arg12[%c1_109, %c0_110, %c0_111] : memref<5x256x256xbf16, #tpu.memory_space<vmem>>, vector<1x256x256xbf16>
    %128 = vector.shape_cast %127 : vector<1x256x256xbf16> to vector<256x256xbf16>
    %cst_112 = arith.constant dense<0.000000e+00> : vector<16x256xf32>
    %129 = tpu.matmul %126, %128, %cst_112 {dimension_numbers = #tpu.dot_dimension_numbers<[1], [0], [0], [1], [0, 0, 1, 1], [], []>} : vector<16x256xbf16>, vector<256x256xbf16>, vector<16x256xf32> -> vector<16x256xf32>
    %130 = arith.addf %122, %129 : vector<16x256xf32>
    %c2_113 = arith.constant 2 : index
    %c0_114 = arith.constant 0 : index
    %c0_115 = arith.constant 0 : index
    %131 = vector.load %arg11[%c2_113, %c0_114, %c0_115] : memref<5x16x32xbf16, #tpu.memory_space<vmem>>, vector<1x16x32xbf16>
    %132 = vector.shape_cast %131 : vector<1x16x32xbf16> to vector<16x32xbf16>
    %cst_116 = arith.constant dense<0.000000e+00> : vector<16x256xf32>
    %133 = tpu.matmul %132, %115, %cst_116 {dimension_numbers = #tpu.dot_dimension_numbers<[1], [0], [0], [1], [0, 0, 1, 1], [], []>} : vector<16x32xbf16>, vector<32x256xbf16>, vector<16x256xf32> -> vector<16x256xf32>
    %134 = arith.truncf %133 : vector<16x256xf32> to vector<16x256xbf16>
    %c2_117 = arith.constant 2 : index
    %c0_118 = arith.constant 0 : index
    %c0_119 = arith.constant 0 : index
    %135 = vector.load %arg12[%c2_117, %c0_118, %c0_119] : memref<5x256x256xbf16, #tpu.memory_space<vmem>>, vector<1x256x256xbf16>
    %136 = vector.shape_cast %135 : vector<1x256x256xbf16> to vector<256x256xbf16>
    %cst_120 = arith.constant dense<0.000000e+00> : vector<16x256xf32>
    %137 = tpu.matmul %134, %136, %cst_120 {dimension_numbers = #tpu.dot_dimension_numbers<[1], [0], [0], [1], [0, 0, 1, 1], [], []>} : vector<16x256xbf16>, vector<256x256xbf16>, vector<16x256xf32> -> vector<16x256xf32>
    %138 = arith.addf %130, %137 : vector<16x256xf32>
    %c3_121 = arith.constant 3 : index
    %c0_122 = arith.constant 0 : index
    %c0_123 = arith.constant 0 : index
    %139 = vector.load %arg11[%c3_121, %c0_122, %c0_123] : memref<5x16x32xbf16, #tpu.memory_space<vmem>>, vector<1x16x32xbf16>
    %140 = vector.shape_cast %139 : vector<1x16x32xbf16> to vector<16x32xbf16>
    %cst_124 = arith.constant dense<0.000000e+00> : vector<16x256xf32>
    %141 = tpu.matmul %140, %115, %cst_124 {dimension_numbers = #tpu.dot_dimension_numbers<[1], [0], [0], [1], [0, 0, 1, 1], [], []>} : vector<16x32xbf16>, vector<32x256xbf16>, vector<16x256xf32> -> vector<16x256xf32>
    %142 = arith.truncf %141 : vector<16x256xf32> to vector<16x256xbf16>
    %c3_125 = arith.constant 3 : index
    %c0_126 = arith.constant 0 : index
    %c0_127 = arith.constant 0 : index
    %143 = vector.load %arg12[%c3_125, %c0_126, %c0_127] : memref<5x256x256xbf16, #tpu.memory_space<vmem>>, vector<1x256x256xbf16>
    %144 = vector.shape_cast %143 : vector<1x256x256xbf16> to vector<256x256xbf16>
    %cst_128 = arith.constant dense<0.000000e+00> : vector<16x256xf32>
    %145 = tpu.matmul %142, %144, %cst_128 {dimension_numbers = #tpu.dot_dimension_numbers<[1], [0], [0], [1], [0, 0, 1, 1], [], []>} : vector<16x256xbf16>, vector<256x256xbf16>, vector<16x256xf32> -> vector<16x256xf32>
    %146 = arith.addf %138, %145 : vector<16x256xf32>
    %c4_129 = arith.constant 4 : index
    %c0_130 = arith.constant 0 : index
    %c0_131 = arith.constant 0 : index
    %147 = vector.load %arg11[%c4_129, %c0_130, %c0_131] : memref<5x16x32xbf16, #tpu.memory_space<vmem>>, vector<1x16x32xbf16>
    %148 = vector.shape_cast %147 : vector<1x16x32xbf16> to vector<16x32xbf16>
    %cst_132 = arith.constant dense<0.000000e+00> : vector<16x256xf32>
    %149 = tpu.matmul %148, %115, %cst_132 {dimension_numbers = #tpu.dot_dimension_numbers<[1], [0], [0], [1], [0, 0, 1, 1], [], []>} : vector<16x32xbf16>, vector<32x256xbf16>, vector<16x256xf32> -> vector<16x256xf32>
    %150 = arith.truncf %149 : vector<16x256xf32> to vector<16x256xbf16>
    %c4_133 = arith.constant 4 : index
    %c0_134 = arith.constant 0 : index
    %c0_135 = arith.constant 0 : index
    %151 = vector.load %arg12[%c4_133, %c0_134, %c0_135] : memref<5x256x256xbf16, #tpu.memory_space<vmem>>, vector<1x256x256xbf16>
    %152 = vector.shape_cast %151 : vector<1x256x256xbf16> to vector<256x256xbf16>
    %cst_136 = arith.constant dense<0.000000e+00> : vector<16x256xf32>
    %153 = tpu.matmul %150, %152, %cst_136 {dimension_numbers = #tpu.dot_dimension_numbers<[1], [0], [0], [1], [0, 0, 1, 1], [], []>} : vector<16x256xbf16>, vector<256x256xbf16>, vector<16x256xf32> -> vector<16x256xf32>
    %154 = arith.addf %146, %153 : vector<16x256xf32>
    %c0_137 = arith.constant 0 : index
    %c0_138 = arith.constant 0 : index
    %155 = vector.load %arg13[%c0_137, %c0_138] : memref<1x256xf32, #tpu.memory_space<vmem>>, vector<1x256xf32>
    %156 = vector.broadcast %155 : vector<1x256xf32> to vector<16x256xf32>
    %157 = arith.addf %154, %156 : vector<16x256xf32>
    %cst_139 = arith.constant 0.000000e+00 : f32
    %158 = vector.broadcast %cst_139 : f32 to vector<16x256xf32>
    %159 = arith.cmpf oge, %157, %158 : vector<16x256xf32>
    %cst_140 = arith.constant 1.000000e-01 : f32
    %160 = vector.broadcast %cst_140 : f32 to vector<16x256xf32>
    %161 = arith.mulf %160, %157 : vector<16x256xf32>
    %162 = arith.select %159, %157, %161 : vector<16x256xi1>, vector<16x256xf32>
    %163 = arith.truncf %162 : vector<16x256xf32> to vector<16x256xbf16>
    %c0_141 = arith.constant 0 : index
    %c0_142 = arith.constant 0 : index
    %c0_143 = arith.constant 0 : index
    %164 = vector.load %arg14[%c0_141, %c0_142, %c0_143] : memref<5x8x16xbf16, #tpu.memory_space<vmem>>, vector<1x8x16xbf16>
    %165 = vector.shape_cast %164 : vector<1x8x16xbf16> to vector<8x16xbf16>
    %cst_144 = arith.constant dense<0.000000e+00> : vector<8x256xf32>
    %166 = tpu.matmul %165, %163, %cst_144 {dimension_numbers = #tpu.dot_dimension_numbers<[1], [0], [0], [1], [0, 0, 1, 1], [], []>} : vector<8x16xbf16>, vector<16x256xbf16>, vector<8x256xf32> -> vector<8x256xf32>
    %167 = arith.truncf %166 : vector<8x256xf32> to vector<8x256xbf16>
    %c0_145 = arith.constant 0 : index
    %c0_146 = arith.constant 0 : index
    %c0_147 = arith.constant 0 : index
    %168 = vector.load %arg15[%c0_145, %c0_146, %c0_147] : memref<5x256x256xbf16, #tpu.memory_space<vmem>>, vector<1x256x256xbf16>
    %169 = vector.shape_cast %168 : vector<1x256x256xbf16> to vector<256x256xbf16>
    %cst_148 = arith.constant dense<0.000000e+00> : vector<8x256xf32>
    %170 = tpu.matmul %167, %169, %cst_148 {dimension_numbers = #tpu.dot_dimension_numbers<[1], [0], [0], [1], [0, 0, 1, 1], [], []>} : vector<8x256xbf16>, vector<256x256xbf16>, vector<8x256xf32> -> vector<8x256xf32>
    %c1_149 = arith.constant 1 : index
    %c0_150 = arith.constant 0 : index
    %c0_151 = arith.constant 0 : index
    %171 = vector.load %arg14[%c1_149, %c0_150, %c0_151] : memref<5x8x16xbf16, #tpu.memory_space<vmem>>, vector<1x8x16xbf16>
    %172 = vector.shape_cast %171 : vector<1x8x16xbf16> to vector<8x16xbf16>
    %cst_152 = arith.constant dense<0.000000e+00> : vector<8x256xf32>
    %173 = tpu.matmul %172, %163, %cst_152 {dimension_numbers = #tpu.dot_dimension_numbers<[1], [0], [0], [1], [0, 0, 1, 1], [], []>} : vector<8x16xbf16>, vector<16x256xbf16>, vector<8x256xf32> -> vector<8x256xf32>
    %174 = arith.truncf %173 : vector<8x256xf32> to vector<8x256xbf16>
    %c1_153 = arith.constant 1 : index
    %c0_154 = arith.constant 0 : index
    %c0_155 = arith.constant 0 : index
    %175 = vector.load %arg15[%c1_153, %c0_154, %c0_155] : memref<5x256x256xbf16, #tpu.memory_space<vmem>>, vector<1x256x256xbf16>
    %176 = vector.shape_cast %175 : vector<1x256x256xbf16> to vector<256x256xbf16>
    %cst_156 = arith.constant dense<0.000000e+00> : vector<8x256xf32>
    %177 = tpu.matmul %174, %176, %cst_156 {dimension_numbers = #tpu.dot_dimension_numbers<[1], [0], [0], [1], [0, 0, 1, 1], [], []>} : vector<8x256xbf16>, vector<256x256xbf16>, vector<8x256xf32> -> vector<8x256xf32>
    %178 = arith.addf %170, %177 : vector<8x256xf32>
    %c2_157 = arith.constant 2 : index
    %c0_158 = arith.constant 0 : index
    %c0_159 = arith.constant 0 : index
    %179 = vector.load %arg14[%c2_157, %c0_158, %c0_159] : memref<5x8x16xbf16, #tpu.memory_space<vmem>>, vector<1x8x16xbf16>
    %180 = vector.shape_cast %179 : vector<1x8x16xbf16> to vector<8x16xbf16>
    %cst_160 = arith.constant dense<0.000000e+00> : vector<8x256xf32>
    %181 = tpu.matmul %180, %163, %cst_160 {dimension_numbers = #tpu.dot_dimension_numbers<[1], [0], [0], [1], [0, 0, 1, 1], [], []>} : vector<8x16xbf16>, vector<16x256xbf16>, vector<8x256xf32> -> vector<8x256xf32>
    %182 = arith.truncf %181 : vector<8x256xf32> to vector<8x256xbf16>
    %c2_161 = arith.constant 2 : index
    %c0_162 = arith.constant 0 : index
    %c0_163 = arith.constant 0 : index
    %183 = vector.load %arg15[%c2_161, %c0_162, %c0_163] : memref<5x256x256xbf16, #tpu.memory_space<vmem>>, vector<1x256x256xbf16>
    %184 = vector.shape_cast %183 : vector<1x256x256xbf16> to vector<256x256xbf16>
    %cst_164 = arith.constant dense<0.000000e+00> : vector<8x256xf32>
    %185 = tpu.matmul %182, %184, %cst_164 {dimension_numbers = #tpu.dot_dimension_numbers<[1], [0], [0], [1], [0, 0, 1, 1], [], []>} : vector<8x256xbf16>, vector<256x256xbf16>, vector<8x256xf32> -> vector<8x256xf32>
    %186 = arith.addf %178, %185 : vector<8x256xf32>
    %c3_165 = arith.constant 3 : index
    %c0_166 = arith.constant 0 : index
    %c0_167 = arith.constant 0 : index
    %187 = vector.load %arg14[%c3_165, %c0_166, %c0_167] : memref<5x8x16xbf16, #tpu.memory_space<vmem>>, vector<1x8x16xbf16>
    %188 = vector.shape_cast %187 : vector<1x8x16xbf16> to vector<8x16xbf16>
    %cst_168 = arith.constant dense<0.000000e+00> : vector<8x256xf32>
    %189 = tpu.matmul %188, %163, %cst_168 {dimension_numbers = #tpu.dot_dimension_numbers<[1], [0], [0], [1], [0, 0, 1, 1], [], []>} : vector<8x16xbf16>, vector<16x256xbf16>, vector<8x256xf32> -> vector<8x256xf32>
    %190 = arith.truncf %189 : vector<8x256xf32> to vector<8x256xbf16>
    %c3_169 = arith.constant 3 : index
    %c0_170 = arith.constant 0 : index
    %c0_171 = arith.constant 0 : index
    %191 = vector.load %arg15[%c3_169, %c0_170, %c0_171] : memref<5x256x256xbf16, #tpu.memory_space<vmem>>, vector<1x256x256xbf16>
    %192 = vector.shape_cast %191 : vector<1x256x256xbf16> to vector<256x256xbf16>
    %cst_172 = arith.constant dense<0.000000e+00> : vector<8x256xf32>
    %193 = tpu.matmul %190, %192, %cst_172 {dimension_numbers = #tpu.dot_dimension_numbers<[1], [0], [0], [1], [0, 0, 1, 1], [], []>} : vector<8x256xbf16>, vector<256x256xbf16>, vector<8x256xf32> -> vector<8x256xf32>
    %194 = arith.addf %186, %193 : vector<8x256xf32>
    %c4_173 = arith.constant 4 : index
    %c0_174 = arith.constant 0 : index
    %c0_175 = arith.constant 0 : index
    %195 = vector.load %arg14[%c4_173, %c0_174, %c0_175] : memref<5x8x16xbf16, #tpu.memory_space<vmem>>, vector<1x8x16xbf16>
    %196 = vector.shape_cast %195 : vector<1x8x16xbf16> to vector<8x16xbf16>
    %cst_176 = arith.constant dense<0.000000e+00> : vector<8x256xf32>
    %197 = tpu.matmul %196, %163, %cst_176 {dimension_numbers = #tpu.dot_dimension_numbers<[1], [0], [0], [1], [0, 0, 1, 1], [], []>} : vector<8x16xbf16>, vector<16x256xbf16>, vector<8x256xf32> -> vector<8x256xf32>
    %198 = arith.truncf %197 : vector<8x256xf32> to vector<8x256xbf16>
    %c4_177 = arith.constant 4 : index
    %c0_178 = arith.constant 0 : index
    %c0_179 = arith.constant 0 : index
    %199 = vector.load %arg15[%c4_177, %c0_178, %c0_179] : memref<5x256x256xbf16, #tpu.memory_space<vmem>>, vector<1x256x256xbf16>
    %200 = vector.shape_cast %199 : vector<1x256x256xbf16> to vector<256x256xbf16>
    %cst_180 = arith.constant dense<0.000000e+00> : vector<8x256xf32>
    %201 = tpu.matmul %198, %200, %cst_180 {dimension_numbers = #tpu.dot_dimension_numbers<[1], [0], [0], [1], [0, 0, 1, 1], [], []>} : vector<8x256xbf16>, vector<256x256xbf16>, vector<8x256xf32> -> vector<8x256xf32>
    %202 = arith.addf %194, %201 : vector<8x256xf32>
    %c0_181 = arith.constant 0 : index
    %c0_182 = arith.constant 0 : index
    %203 = vector.load %arg16[%c0_181, %c0_182] : memref<1x256xf32, #tpu.memory_space<vmem>>, vector<1x256xf32>
    %204 = vector.broadcast %203 : vector<1x256xf32> to vector<8x256xf32>
    %205 = arith.addf %202, %204 : vector<8x256xf32>
    %cst_183 = arith.constant 0.000000e+00 : f32
    %206 = vector.broadcast %cst_183 : f32 to vector<8x256xf32>
    %207 = arith.cmpf oge, %205, %206 : vector<8x256xf32>
    %cst_184 = arith.constant 1.000000e-01 : f32
    %208 = vector.broadcast %cst_184 : f32 to vector<8x256xf32>
    %209 = arith.mulf %208, %205 : vector<8x256xf32>
    %210 = arith.select %207, %205, %209 : vector<8x256xi1>, vector<8x256xf32>
    %211 = arith.truncf %210 : vector<8x256xf32> to vector<8x256xbf16>
    %c0_185 = arith.constant 0 : index
    %c0_186 = arith.constant 0 : index
    %c0_187 = arith.constant 0 : index
    %212 = vector.load %arg17[%c0_185, %c0_186, %c0_187] : memref<5x4x8xbf16, #tpu.memory_space<vmem>>, vector<1x4x8xbf16>
    %213 = vector.shape_cast %212 : vector<1x4x8xbf16> to vector<4x8xbf16>
    %cst_188 = arith.constant dense<0.000000e+00> : vector<4x256xf32>
    %214 = tpu.matmul %213, %211, %cst_188 {dimension_numbers = #tpu.dot_dimension_numbers<[1], [0], [0], [1], [0, 0, 1, 1], [], []>} : vector<4x8xbf16>, vector<8x256xbf16>, vector<4x256xf32> -> vector<4x256xf32>
    %215 = arith.truncf %214 : vector<4x256xf32> to vector<4x256xbf16>
    %c0_189 = arith.constant 0 : index
    %c0_190 = arith.constant 0 : index
    %c0_191 = arith.constant 0 : index
    %216 = vector.load %arg18[%c0_189, %c0_190, %c0_191] : memref<5x256x256xbf16, #tpu.memory_space<vmem>>, vector<1x256x256xbf16>
    %217 = vector.shape_cast %216 : vector<1x256x256xbf16> to vector<256x256xbf16>
    %cst_192 = arith.constant dense<0.000000e+00> : vector<4x256xf32>
    %218 = tpu.matmul %215, %217, %cst_192 {dimension_numbers = #tpu.dot_dimension_numbers<[1], [0], [0], [1], [0, 0, 1, 1], [], []>} : vector<4x256xbf16>, vector<256x256xbf16>, vector<4x256xf32> -> vector<4x256xf32>
    %c1_193 = arith.constant 1 : index
    %c0_194 = arith.constant 0 : index
    %c0_195 = arith.constant 0 : index
    %219 = vector.load %arg17[%c1_193, %c0_194, %c0_195] : memref<5x4x8xbf16, #tpu.memory_space<vmem>>, vector<1x4x8xbf16>
    %220 = vector.shape_cast %219 : vector<1x4x8xbf16> to vector<4x8xbf16>
    %cst_196 = arith.constant dense<0.000000e+00> : vector<4x256xf32>
    %221 = tpu.matmul %220, %211, %cst_196 {dimension_numbers = #tpu.dot_dimension_numbers<[1], [0], [0], [1], [0, 0, 1, 1], [], []>} : vector<4x8xbf16>, vector<8x256xbf16>, vector<4x256xf32> -> vector<4x256xf32>
    %222 = arith.truncf %221 : vector<4x256xf32> to vector<4x256xbf16>
    %c1_197 = arith.constant 1 : index
    %c0_198 = arith.constant 0 : index
    %c0_199 = arith.constant 0 : index
    %223 = vector.load %arg18[%c1_197, %c0_198, %c0_199] : memref<5x256x256xbf16, #tpu.memory_space<vmem>>, vector<1x256x256xbf16>
    %224 = vector.shape_cast %223 : vector<1x256x256xbf16> to vector<256x256xbf16>
    %cst_200 = arith.constant dense<0.000000e+00> : vector<4x256xf32>
    %225 = tpu.matmul %222, %224, %cst_200 {dimension_numbers = #tpu.dot_dimension_numbers<[1], [0], [0], [1], [0, 0, 1, 1], [], []>} : vector<4x256xbf16>, vector<256x256xbf16>, vector<4x256xf32> -> vector<4x256xf32>
    %226 = arith.addf %218, %225 : vector<4x256xf32>
    %c2_201 = arith.constant 2 : index
    %c0_202 = arith.constant 0 : index
    %c0_203 = arith.constant 0 : index
    %227 = vector.load %arg17[%c2_201, %c0_202, %c0_203] : memref<5x4x8xbf16, #tpu.memory_space<vmem>>, vector<1x4x8xbf16>
    %228 = vector.shape_cast %227 : vector<1x4x8xbf16> to vector<4x8xbf16>
    %cst_204 = arith.constant dense<0.000000e+00> : vector<4x256xf32>
    %229 = tpu.matmul %228, %211, %cst_204 {dimension_numbers = #tpu.dot_dimension_numbers<[1], [0], [0], [1], [0, 0, 1, 1], [], []>} : vector<4x8xbf16>, vector<8x256xbf16>, vector<4x256xf32> -> vector<4x256xf32>
    %230 = arith.truncf %229 : vector<4x256xf32> to vector<4x256xbf16>
    %c2_205 = arith.constant 2 : index
    %c0_206 = arith.constant 0 : index
    %c0_207 = arith.constant 0 : index
    %231 = vector.load %arg18[%c2_205, %c0_206, %c0_207] : memref<5x256x256xbf16, #tpu.memory_space<vmem>>, vector<1x256x256xbf16>
    %232 = vector.shape_cast %231 : vector<1x256x256xbf16> to vector<256x256xbf16>
    %cst_208 = arith.constant dense<0.000000e+00> : vector<4x256xf32>
    %233 = tpu.matmul %230, %232, %cst_208 {dimension_numbers = #tpu.dot_dimension_numbers<[1], [0], [0], [1], [0, 0, 1, 1], [], []>} : vector<4x256xbf16>, vector<256x256xbf16>, vector<4x256xf32> -> vector<4x256xf32>
    %234 = arith.addf %226, %233 : vector<4x256xf32>
    %c3_209 = arith.constant 3 : index
    %c0_210 = arith.constant 0 : index
    %c0_211 = arith.constant 0 : index
    %235 = vector.load %arg17[%c3_209, %c0_210, %c0_211] : memref<5x4x8xbf16, #tpu.memory_space<vmem>>, vector<1x4x8xbf16>
    %236 = vector.shape_cast %235 : vector<1x4x8xbf16> to vector<4x8xbf16>
    %cst_212 = arith.constant dense<0.000000e+00> : vector<4x256xf32>
    %237 = tpu.matmul %236, %211, %cst_212 {dimension_numbers = #tpu.dot_dimension_numbers<[1], [0], [0], [1], [0, 0, 1, 1], [], []>} : vector<4x8xbf16>, vector<8x256xbf16>, vector<4x256xf32> -> vector<4x256xf32>
    %238 = arith.truncf %237 : vector<4x256xf32> to vector<4x256xbf16>
    %c3_213 = arith.constant 3 : index
    %c0_214 = arith.constant 0 : index
    %c0_215 = arith.constant 0 : index
    %239 = vector.load %arg18[%c3_213, %c0_214, %c0_215] : memref<5x256x256xbf16, #tpu.memory_space<vmem>>, vector<1x256x256xbf16>
    %240 = vector.shape_cast %239 : vector<1x256x256xbf16> to vector<256x256xbf16>
    %cst_216 = arith.constant dense<0.000000e+00> : vector<4x256xf32>
    %241 = tpu.matmul %238, %240, %cst_216 {dimension_numbers = #tpu.dot_dimension_numbers<[1], [0], [0], [1], [0, 0, 1, 1], [], []>} : vector<4x256xbf16>, vector<256x256xbf16>, vector<4x256xf32> -> vector<4x256xf32>
    %242 = arith.addf %234, %241 : vector<4x256xf32>
    %c4_217 = arith.constant 4 : index
    %c0_218 = arith.constant 0 : index
    %c0_219 = arith.constant 0 : index
    %243 = vector.load %arg17[%c4_217, %c0_218, %c0_219] : memref<5x4x8xbf16, #tpu.memory_space<vmem>>, vector<1x4x8xbf16>
    %244 = vector.shape_cast %243 : vector<1x4x8xbf16> to vector<4x8xbf16>
    %cst_220 = arith.constant dense<0.000000e+00> : vector<4x256xf32>
    %245 = tpu.matmul %244, %211, %cst_220 {dimension_numbers = #tpu.dot_dimension_numbers<[1], [0], [0], [1], [0, 0, 1, 1], [], []>} : vector<4x8xbf16>, vector<8x256xbf16>, vector<4x256xf32> -> vector<4x256xf32>
    %246 = arith.truncf %245 : vector<4x256xf32> to vector<4x256xbf16>
    %c4_221 = arith.constant 4 : index
    %c0_222 = arith.constant 0 : index
    %c0_223 = arith.constant 0 : index
    %247 = vector.load %arg18[%c4_221, %c0_222, %c0_223] : memref<5x256x256xbf16, #tpu.memory_space<vmem>>, vector<1x256x256xbf16>
    %248 = vector.shape_cast %247 : vector<1x256x256xbf16> to vector<256x256xbf16>
    %cst_224 = arith.constant dense<0.000000e+00> : vector<4x256xf32>
    %249 = tpu.matmul %246, %248, %cst_224 {dimension_numbers = #tpu.dot_dimension_numbers<[1], [0], [0], [1], [0, 0, 1, 1], [], []>} : vector<4x256xbf16>, vector<256x256xbf16>, vector<4x256xf32> -> vector<4x256xf32>
    %250 = arith.addf %242, %249 : vector<4x256xf32>
    %c0_225 = arith.constant 0 : index
    %c0_226 = arith.constant 0 : index
    %251 = vector.load %arg19[%c0_225, %c0_226] : memref<1x256xf32, #tpu.memory_space<vmem>>, vector<1x256xf32>
    %252 = vector.broadcast %251 : vector<1x256xf32> to vector<4x256xf32>
    %253 = arith.addf %250, %252 : vector<4x256xf32>
    %cst_227 = arith.constant 0.000000e+00 : f32
    %254 = vector.broadcast %cst_227 : f32 to vector<4x256xf32>
    %255 = arith.cmpf oge, %253, %254 : vector<4x256xf32>
    %cst_228 = arith.constant 1.000000e-01 : f32
    %256 = vector.broadcast %cst_228 : f32 to vector<4x256xf32>
    %257 = arith.mulf %256, %253 : vector<4x256xf32>
    %258 = arith.select %255, %253, %257 : vector<4x256xi1>, vector<4x256xf32>
    %259 = arith.truncf %258 : vector<4x256xf32> to vector<4x256xbf16>
    %c0_229 = arith.constant 0 : index
    %c0_230 = arith.constant 0 : index
    %c0_231 = arith.constant 0 : index
    %260 = vector.load %arg20[%c0_229, %c0_230, %c0_231] : memref<5x2x4xbf16, #tpu.memory_space<vmem>>, vector<1x2x4xbf16>
    %261 = vector.shape_cast %260 : vector<1x2x4xbf16> to vector<2x4xbf16>
    %cst_232 = arith.constant dense<0.000000e+00> : vector<2x256xf32>
    %262 = tpu.matmul %261, %259, %cst_232 {dimension_numbers = #tpu.dot_dimension_numbers<[1], [0], [0], [1], [0, 0, 1, 1], [], []>} : vector<2x4xbf16>, vector<4x256xbf16>, vector<2x256xf32> -> vector<2x256xf32>
    %263 = arith.truncf %262 : vector<2x256xf32> to vector<2x256xbf16>
    %c0_233 = arith.constant 0 : index
    %c0_234 = arith.constant 0 : index
    %c0_235 = arith.constant 0 : index
    %264 = vector.load %arg21[%c0_233, %c0_234, %c0_235] : memref<5x256x128xbf16, #tpu.memory_space<vmem>>, vector<1x256x128xbf16>
    %265 = vector.shape_cast %264 : vector<1x256x128xbf16> to vector<256x128xbf16>
    %cst_236 = arith.constant dense<0.000000e+00> : vector<2x128xf32>
    %266 = tpu.matmul %263, %265, %cst_236 {dimension_numbers = #tpu.dot_dimension_numbers<[1], [0], [0], [1], [0, 0, 1, 1], [], []>} : vector<2x256xbf16>, vector<256x128xbf16>, vector<2x128xf32> -> vector<2x128xf32>
    %c1_237 = arith.constant 1 : index
    %c0_238 = arith.constant 0 : index
    %c0_239 = arith.constant 0 : index
    %267 = vector.load %arg20[%c1_237, %c0_238, %c0_239] : memref<5x2x4xbf16, #tpu.memory_space<vmem>>, vector<1x2x4xbf16>
    %268 = vector.shape_cast %267 : vector<1x2x4xbf16> to vector<2x4xbf16>
    %cst_240 = arith.constant dense<0.000000e+00> : vector<2x256xf32>
    %269 = tpu.matmul %268, %259, %cst_240 {dimension_numbers = #tpu.dot_dimension_numbers<[1], [0], [0], [1], [0, 0, 1, 1], [], []>} : vector<2x4xbf16>, vector<4x256xbf16>, vector<2x256xf32> -> vector<2x256xf32>
    %270 = arith.truncf %269 : vector<2x256xf32> to vector<2x256xbf16>
    %c1_241 = arith.constant 1 : index
    %c0_242 = arith.constant 0 : index
    %c0_243 = arith.constant 0 : index
    %271 = vector.load %arg21[%c1_241, %c0_242, %c0_243] : memref<5x256x128xbf16, #tpu.memory_space<vmem>>, vector<1x256x128xbf16>
    %272 = vector.shape_cast %271 : vector<1x256x128xbf16> to vector<256x128xbf16>
    %cst_244 = arith.constant dense<0.000000e+00> : vector<2x128xf32>
    %273 = tpu.matmul %270, %272, %cst_244 {dimension_numbers = #tpu.dot_dimension_numbers<[1], [0], [0], [1], [0, 0, 1, 1], [], []>} : vector<2x256xbf16>, vector<256x128xbf16>, vector<2x128xf32> -> vector<2x128xf32>
    %274 = arith.addf %266, %273 : vector<2x128xf32>
    %c2_245 = arith.constant 2 : index
    %c0_246 = arith.constant 0 : index
    %c0_247 = arith.constant 0 : index
    %275 = vector.load %arg20[%c2_245, %c0_246, %c0_247] : memref<5x2x4xbf16, #tpu.memory_space<vmem>>, vector<1x2x4xbf16>
    %276 = vector.shape_cast %275 : vector<1x2x4xbf16> to vector<2x4xbf16>
    %cst_248 = arith.constant dense<0.000000e+00> : vector<2x256xf32>
    %277 = tpu.matmul %276, %259, %cst_248 {dimension_numbers = #tpu.dot_dimension_numbers<[1], [0], [0], [1], [0, 0, 1, 1], [], []>} : vector<2x4xbf16>, vector<4x256xbf16>, vector<2x256xf32> -> vector<2x256xf32>
    %278 = arith.truncf %277 : vector<2x256xf32> to vector<2x256xbf16>
    %c2_249 = arith.constant 2 : index
    %c0_250 = arith.constant 0 : index
    %c0_251 = arith.constant 0 : index
    %279 = vector.load %arg21[%c2_249, %c0_250, %c0_251] : memref<5x256x128xbf16, #tpu.memory_space<vmem>>, vector<1x256x128xbf16>
    %280 = vector.shape_cast %279 : vector<1x256x128xbf16> to vector<256x128xbf16>
    %cst_252 = arith.constant dense<0.000000e+00> : vector<2x128xf32>
    %281 = tpu.matmul %278, %280, %cst_252 {dimension_numbers = #tpu.dot_dimension_numbers<[1], [0], [0], [1], [0, 0, 1, 1], [], []>} : vector<2x256xbf16>, vector<256x128xbf16>, vector<2x128xf32> -> vector<2x128xf32>
    %282 = arith.addf %274, %281 : vector<2x128xf32>
    %c3_253 = arith.constant 3 : index
    %c0_254 = arith.constant 0 : index
    %c0_255 = arith.constant 0 : index
    %283 = vector.load %arg20[%c3_253, %c0_254, %c0_255] : memref<5x2x4xbf16, #tpu.memory_space<vmem>>, vector<1x2x4xbf16>
    %284 = vector.shape_cast %283 : vector<1x2x4xbf16> to vector<2x4xbf16>
    %cst_256 = arith.constant dense<0.000000e+00> : vector<2x256xf32>
    %285 = tpu.matmul %284, %259, %cst_256 {dimension_numbers = #tpu.dot_dimension_numbers<[1], [0], [0], [1], [0, 0, 1, 1], [], []>} : vector<2x4xbf16>, vector<4x256xbf16>, vector<2x256xf32> -> vector<2x256xf32>
    %286 = arith.truncf %285 : vector<2x256xf32> to vector<2x256xbf16>
    %c3_257 = arith.constant 3 : index
    %c0_258 = arith.constant 0 : index
    %c0_259 = arith.constant 0 : index
    %287 = vector.load %arg21[%c3_257, %c0_258, %c0_259] : memref<5x256x128xbf16, #tpu.memory_space<vmem>>, vector<1x256x128xbf16>
    %288 = vector.shape_cast %287 : vector<1x256x128xbf16> to vector<256x128xbf16>
    %cst_260 = arith.constant dense<0.000000e+00> : vector<2x128xf32>
    %289 = tpu.matmul %286, %288, %cst_260 {dimension_numbers = #tpu.dot_dimension_numbers<[1], [0], [0], [1], [0, 0, 1, 1], [], []>} : vector<2x256xbf16>, vector<256x128xbf16>, vector<2x128xf32> -> vector<2x128xf32>
    %290 = arith.addf %282, %289 : vector<2x128xf32>
    %c4_261 = arith.constant 4 : index
    %c0_262 = arith.constant 0 : index
    %c0_263 = arith.constant 0 : index
    %291 = vector.load %arg20[%c4_261, %c0_262, %c0_263] : memref<5x2x4xbf16, #tpu.memory_space<vmem>>, vector<1x2x4xbf16>
    %292 = vector.shape_cast %291 : vector<1x2x4xbf16> to vector<2x4xbf16>
    %cst_264 = arith.constant dense<0.000000e+00> : vector<2x256xf32>
    %293 = tpu.matmul %292, %259, %cst_264 {dimension_numbers = #tpu.dot_dimension_numbers<[1], [0], [0], [1], [0, 0, 1, 1], [], []>} : vector<2x4xbf16>, vector<4x256xbf16>, vector<2x256xf32> -> vector<2x256xf32>
    %294 = arith.truncf %293 : vector<2x256xf32> to vector<2x256xbf16>
    %c4_265 = arith.constant 4 : index
    %c0_266 = arith.constant 0 : index
    %c0_267 = arith.constant 0 : index
    %295 = vector.load %arg21[%c4_265, %c0_266, %c0_267] : memref<5x256x128xbf16, #tpu.memory_space<vmem>>, vector<1x256x128xbf16>
    %296 = vector.shape_cast %295 : vector<1x256x128xbf16> to vector<256x128xbf16>
    %cst_268 = arith.constant dense<0.000000e+00> : vector<2x128xf32>
    %297 = tpu.matmul %294, %296, %cst_268 {dimension_numbers = #tpu.dot_dimension_numbers<[1], [0], [0], [1], [0, 0, 1, 1], [], []>} : vector<2x256xbf16>, vector<256x128xbf16>, vector<2x128xf32> -> vector<2x128xf32>
    %298 = arith.addf %290, %297 : vector<2x128xf32>
    %c0_269 = arith.constant 0 : index
    %c0_270 = arith.constant 0 : index
    %299 = vector.load %arg22[%c0_269, %c0_270] : memref<1x128xf32, #tpu.memory_space<vmem>>, vector<1x128xf32>
    %300 = vector.broadcast %299 : vector<1x128xf32> to vector<2x128xf32>
    %301 = arith.addf %298, %300 : vector<2x128xf32>
    %cst_271 = arith.constant 0.000000e+00 : f32
    %302 = vector.broadcast %cst_271 : f32 to vector<2x128xf32>
    %303 = arith.cmpf oge, %301, %302 : vector<2x128xf32>
    %cst_272 = arith.constant 1.000000e-01 : f32
    %304 = vector.broadcast %cst_272 : f32 to vector<2x128xf32>
    %305 = arith.mulf %304, %301 : vector<2x128xf32>
    %306 = arith.select %303, %301, %305 : vector<2x128xi1>, vector<2x128xf32>
    %307 = arith.truncf %306 : vector<2x128xf32> to vector<2x128xbf16>
    %c0_273 = arith.constant 0 : index
    %c0_274 = arith.constant 0 : index
    %c0_275 = arith.constant 0 : index
    %308 = vector.load %arg23[%c0_273, %c0_274, %c0_275] : memref<3x2x2xbf16, #tpu.memory_space<vmem>>, vector<1x2x2xbf16>
    %309 = vector.shape_cast %308 : vector<1x2x2xbf16> to vector<2x2xbf16>
    %cst_276 = arith.constant dense<0.000000e+00> : vector<2x128xf32>
    %310 = tpu.matmul %309, %307, %cst_276 {dimension_numbers = #tpu.dot_dimension_numbers<[1], [0], [0], [1], [0, 0, 1, 1], [], []>} : vector<2x2xbf16>, vector<2x128xbf16>, vector<2x128xf32> -> vector<2x128xf32>
    %311 = arith.truncf %310 : vector<2x128xf32> to vector<2x128xbf16>
    %c0_277 = arith.constant 0 : index
    %c0_278 = arith.constant 0 : index
    %c0_279 = arith.constant 0 : index
    %312 = vector.load %arg24[%c0_277, %c0_278, %c0_279] : memref<3x128x128xbf16, #tpu.memory_space<vmem>>, vector<1x128x128xbf16>
    %313 = vector.shape_cast %312 : vector<1x128x128xbf16> to vector<128x128xbf16>
    %cst_280 = arith.constant dense<0.000000e+00> : vector<2x128xf32>
    %314 = tpu.matmul %311, %313, %cst_280 {dimension_numbers = #tpu.dot_dimension_numbers<[1], [0], [0], [1], [0, 0, 1, 1], [], []>} : vector<2x128xbf16>, vector<128x128xbf16>, vector<2x128xf32> -> vector<2x128xf32>
    %c1_281 = arith.constant 1 : index
    %c0_282 = arith.constant 0 : index
    %c0_283 = arith.constant 0 : index
    %315 = vector.load %arg23[%c1_281, %c0_282, %c0_283] : memref<3x2x2xbf16, #tpu.memory_space<vmem>>, vector<1x2x2xbf16>
    %316 = vector.shape_cast %315 : vector<1x2x2xbf16> to vector<2x2xbf16>
    %cst_284 = arith.constant dense<0.000000e+00> : vector<2x128xf32>
    %317 = tpu.matmul %316, %307, %cst_284 {dimension_numbers = #tpu.dot_dimension_numbers<[1], [0], [0], [1], [0, 0, 1, 1], [], []>} : vector<2x2xbf16>, vector<2x128xbf16>, vector<2x128xf32> -> vector<2x128xf32>
    %318 = arith.truncf %317 : vector<2x128xf32> to vector<2x128xbf16>
    %c1_285 = arith.constant 1 : index
    %c0_286 = arith.constant 0 : index
    %c0_287 = arith.constant 0 : index
    %319 = vector.load %arg24[%c1_285, %c0_286, %c0_287] : memref<3x128x128xbf16, #tpu.memory_space<vmem>>, vector<1x128x128xbf16>
    %320 = vector.shape_cast %319 : vector<1x128x128xbf16> to vector<128x128xbf16>
    %cst_288 = arith.constant dense<0.000000e+00> : vector<2x128xf32>
    %321 = tpu.matmul %318, %320, %cst_288 {dimension_numbers = #tpu.dot_dimension_numbers<[1], [0], [0], [1], [0, 0, 1, 1], [], []>} : vector<2x128xbf16>, vector<128x128xbf16>, vector<2x128xf32> -> vector<2x128xf32>
    %322 = arith.addf %314, %321 : vector<2x128xf32>
    %c2_289 = arith.constant 2 : index
    %c0_290 = arith.constant 0 : index
    %c0_291 = arith.constant 0 : index
    %323 = vector.load %arg23[%c2_289, %c0_290, %c0_291] : memref<3x2x2xbf16, #tpu.memory_space<vmem>>, vector<1x2x2xbf16>
    %324 = vector.shape_cast %323 : vector<1x2x2xbf16> to vector<2x2xbf16>
    %cst_292 = arith.constant dense<0.000000e+00> : vector<2x128xf32>
    %325 = tpu.matmul %324, %307, %cst_292 {dimension_numbers = #tpu.dot_dimension_numbers<[1], [0], [0], [1], [0, 0, 1, 1], [], []>} : vector<2x2xbf16>, vector<2x128xbf16>, vector<2x128xf32> -> vector<2x128xf32>
    %326 = arith.truncf %325 : vector<2x128xf32> to vector<2x128xbf16>
    %c2_293 = arith.constant 2 : index
    %c0_294 = arith.constant 0 : index
    %c0_295 = arith.constant 0 : index
    %327 = vector.load %arg24[%c2_293, %c0_294, %c0_295] : memref<3x128x128xbf16, #tpu.memory_space<vmem>>, vector<1x128x128xbf16>
    %328 = vector.shape_cast %327 : vector<1x128x128xbf16> to vector<128x128xbf16>
    %cst_296 = arith.constant dense<0.000000e+00> : vector<2x128xf32>
    %329 = tpu.matmul %326, %328, %cst_296 {dimension_numbers = #tpu.dot_dimension_numbers<[1], [0], [0], [1], [0, 0, 1, 1], [], []>} : vector<2x128xbf16>, vector<128x128xbf16>, vector<2x128xf32> -> vector<2x128xf32>
    %330 = arith.addf %322, %329 : vector<2x128xf32>
    %c0_297 = arith.constant 0 : index
    %c0_298 = arith.constant 0 : index
    %331 = vector.load %arg25[%c0_297, %c0_298] : memref<1x128xf32, #tpu.memory_space<vmem>>, vector<1x128xf32>
    %332 = vector.broadcast %331 : vector<1x128xf32> to vector<2x128xf32>
    %333 = arith.addf %330, %332 : vector<2x128xf32>
    %cst_299 = arith.constant 0.000000e+00 : f32
    %334 = vector.broadcast %cst_299 : f32 to vector<2x128xf32>
    %335 = arith.cmpf oge, %333, %334 : vector<2x128xf32>
    %cst_300 = arith.constant 2.000000e-01 : f32
    %336 = vector.broadcast %cst_300 : f32 to vector<2x128xf32>
    %337 = arith.mulf %336, %333 : vector<2x128xf32>
    %338 = arith.select %335, %333, %337 : vector<2x128xi1>, vector<2x128xf32>
    %339 = arith.truncf %338 : vector<2x128xf32> to vector<2x128xbf16>
    %c0_301 = arith.constant 0 : index
    %c0_302 = arith.constant 0 : index
    %c0_303 = arith.constant 0 : index
    %340 = vector.load %arg26[%c0_301, %c0_302, %c0_303] : memref<3x2x2xbf16, #tpu.memory_space<vmem>>, vector<1x2x2xbf16>
    %341 = vector.shape_cast %340 : vector<1x2x2xbf16> to vector<2x2xbf16>
    %cst_304 = arith.constant dense<0.000000e+00> : vector<2x128xf32>
    %342 = tpu.matmul %341, %339, %cst_304 {dimension_numbers = #tpu.dot_dimension_numbers<[1], [0], [0], [1], [0, 0, 1, 1], [], []>} : vector<2x2xbf16>, vector<2x128xbf16>, vector<2x128xf32> -> vector<2x128xf32>
    %343 = arith.truncf %342 : vector<2x128xf32> to vector<2x128xbf16>
    %c0_305 = arith.constant 0 : index
    %c0_306 = arith.constant 0 : index
    %c0_307 = arith.constant 0 : index
    %344 = vector.load %arg27[%c0_305, %c0_306, %c0_307] : memref<3x128x128xbf16, #tpu.memory_space<vmem>>, vector<1x128x128xbf16>
    %345 = vector.shape_cast %344 : vector<1x128x128xbf16> to vector<128x128xbf16>
    %cst_308 = arith.constant dense<0.000000e+00> : vector<2x128xf32>
    %346 = tpu.matmul %343, %345, %cst_308 {dimension_numbers = #tpu.dot_dimension_numbers<[1], [0], [0], [1], [0, 0, 1, 1], [], []>} : vector<2x128xbf16>, vector<128x128xbf16>, vector<2x128xf32> -> vector<2x128xf32>
    %c1_309 = arith.constant 1 : index
    %c0_310 = arith.constant 0 : index
    %c0_311 = arith.constant 0 : index
    %347 = vector.load %arg26[%c1_309, %c0_310, %c0_311] : memref<3x2x2xbf16, #tpu.memory_space<vmem>>, vector<1x2x2xbf16>
    %348 = vector.shape_cast %347 : vector<1x2x2xbf16> to vector<2x2xbf16>
    %cst_312 = arith.constant dense<0.000000e+00> : vector<2x128xf32>
    %349 = tpu.matmul %348, %339, %cst_312 {dimension_numbers = #tpu.dot_dimension_numbers<[1], [0], [0], [1], [0, 0, 1, 1], [], []>} : vector<2x2xbf16>, vector<2x128xbf16>, vector<2x128xf32> -> vector<2x128xf32>
    %350 = arith.truncf %349 : vector<2x128xf32> to vector<2x128xbf16>
    %c1_313 = arith.constant 1 : index
    %c0_314 = arith.constant 0 : index
    %c0_315 = arith.constant 0 : index
    %351 = vector.load %arg27[%c1_313, %c0_314, %c0_315] : memref<3x128x128xbf16, #tpu.memory_space<vmem>>, vector<1x128x128xbf16>
    %352 = vector.shape_cast %351 : vector<1x128x128xbf16> to vector<128x128xbf16>
    %cst_316 = arith.constant dense<0.000000e+00> : vector<2x128xf32>
    %353 = tpu.matmul %350, %352, %cst_316 {dimension_numbers = #tpu.dot_dimension_numbers<[1], [0], [0], [1], [0, 0, 1, 1], [], []>} : vector<2x128xbf16>, vector<128x128xbf16>, vector<2x128xf32> -> vector<2x128xf32>
    %354 = arith.addf %346, %353 : vector<2x128xf32>
    %c2_317 = arith.constant 2 : index
    %c0_318 = arith.constant 0 : index
    %c0_319 = arith.constant 0 : index
    %355 = vector.load %arg26[%c2_317, %c0_318, %c0_319] : memref<3x2x2xbf16, #tpu.memory_space<vmem>>, vector<1x2x2xbf16>
    %356 = vector.shape_cast %355 : vector<1x2x2xbf16> to vector<2x2xbf16>
    %cst_320 = arith.constant dense<0.000000e+00> : vector<2x128xf32>
    %357 = tpu.matmul %356, %339, %cst_320 {dimension_numbers = #tpu.dot_dimension_numbers<[1], [0], [0], [1], [0, 0, 1, 1], [], []>} : vector<2x2xbf16>, vector<2x128xbf16>, vector<2x128xf32> -> vector<2x128xf32>
    %358 = arith.truncf %357 : vector<2x128xf32> to vector<2x128xbf16>
    %c2_321 = arith.constant 2 : index
    %c0_322 = arith.constant 0 : index
    %c0_323 = arith.constant 0 : index
    %359 = vector.load %arg27[%c2_321, %c0_322, %c0_323] : memref<3x128x128xbf16, #tpu.memory_space<vmem>>, vector<1x128x128xbf16>
    %360 = vector.shape_cast %359 : vector<1x128x128xbf16> to vector<128x128xbf16>
    %cst_324 = arith.constant dense<0.000000e+00> : vector<2x128xf32>
    %361 = tpu.matmul %358, %360, %cst_324 {dimension_numbers = #tpu.dot_dimension_numbers<[1], [0], [0], [1], [0, 0, 1, 1], [], []>} : vector<2x128xbf16>, vector<128x128xbf16>, vector<2x128xf32> -> vector<2x128xf32>
    %362 = arith.addf %354, %361 : vector<2x128xf32>
    %c0_325 = arith.constant 0 : index
    %c0_326 = arith.constant 0 : index
    %363 = vector.load %arg28[%c0_325, %c0_326] : memref<1x128xf32, #tpu.memory_space<vmem>>, vector<1x128xf32>
    %364 = vector.broadcast %363 : vector<1x128xf32> to vector<2x128xf32>
    %365 = arith.addf %362, %364 : vector<2x128xf32>
    %366 = arith.addf %365, %306 : vector<2x128xf32>
    %cst_327 = arith.constant 0.000000e+00 : f32
    %367 = vector.broadcast %cst_327 : f32 to vector<2x128xf32>
    %368 = arith.cmpf oge, %366, %367 : vector<2x128xf32>
    %cst_328 = arith.constant 2.000000e-01 : f32
    %369 = vector.broadcast %cst_328 : f32 to vector<2x128xf32>
    %370 = arith.mulf %369, %366 : vector<2x128xf32>
    %371 = arith.select %368, %366, %370 : vector<2x128xi1>, vector<2x128xf32>
    %372 = arith.mulf %371, %371 : vector<2x128xf32>
    %cst_329 = arith.constant dense<0.000000e+00> : vector<2xf32>
    %373 = vector.multi_reduction <add>, %372, %cst_329 [1] : vector<2x128xf32> to vector<2xf32>
    %374 = vector.shape_cast %373 : vector<2xf32> to vector<2x1xf32>
    %cst_330 = arith.constant dense<0.000000e+00> : vector<1xf32>
    %375 = vector.multi_reduction <add>, %374, %cst_330 [0] : vector<2x1xf32> to vector<1xf32>
    %376 = vector.shape_cast %375 : vector<1xf32> to vector<1x1xf32>
    %cst_331 = arith.constant 2.560000e+02 : f32
    %377 = vector.broadcast %cst_331 : f32 to vector<1x1xf32>
    %378 = arith.divf %376, %377 : vector<1x1xf32>
    %cst_332 = arith.constant 9.99999997E-7 : f32
    %379 = vector.broadcast %cst_332 : f32 to vector<1x1xf32>
    %380 = arith.addf %378, %379 : vector<1x1xf32>
    %381 = math.rsqrt %380 : vector<1x1xf32>
    %382 = vector.broadcast %381 : vector<1x1xf32> to vector<2x128xf32>
    %383 = arith.mulf %371, %382 : vector<2x128xf32>
    %c0_333 = arith.constant 0 : index
    %c0_334 = arith.constant 0 : index
    %384 = vector.load %arg30[%c0_333, %c0_334] : memref<1x32xf32, #tpu.memory_space<vmem>>, vector<1x32xf32>
    %385 = vector.extract_strided_slice %383 {offsets = [0, 0], sizes = [1, 128], strides = [1, 1]} : vector<2x128xf32> to vector<1x128xf32>
    %c0_335 = arith.constant 0 : index
    %c0_336 = arith.constant 0 : index
    %c0_337 = arith.constant 0 : index
    %386 = vector.load %arg29[%c0_335, %c0_336, %c0_337] : memref<2x128x32xf32, #tpu.memory_space<vmem>>, vector<1x128x32xf32>
    %387 = vector.shape_cast %386 : vector<1x128x32xf32> to vector<128x32xf32>
    %cst_338 = arith.constant dense<0.000000e+00> : vector<1x32xf32>
    %388 = tpu.matmul %385, %387, %cst_338 {dimension_numbers = #tpu.dot_dimension_numbers<[1], [0], [0], [1], [0, 0, 1, 1], [], []>} : vector<1x128xf32>, vector<128x32xf32>, vector<1x32xf32> -> vector<1x32xf32>
    %389 = arith.addf %384, %388 : vector<1x32xf32>
    %390 = vector.extract_strided_slice %383 {offsets = [1, 0], sizes = [1, 128], strides = [1, 1]} : vector<2x128xf32> to vector<1x128xf32>
    %c1_339 = arith.constant 1 : index
    %c0_340 = arith.constant 0 : index
    %c0_341 = arith.constant 0 : index
    %391 = vector.load %arg29[%c1_339, %c0_340, %c0_341] : memref<2x128x32xf32, #tpu.memory_space<vmem>>, vector<1x128x32xf32>
    %392 = vector.shape_cast %391 : vector<1x128x32xf32> to vector<128x32xf32>
    %cst_342 = arith.constant dense<0.000000e+00> : vector<1x32xf32>
    %393 = tpu.matmul %390, %392, %cst_342 {dimension_numbers = #tpu.dot_dimension_numbers<[1], [0], [0], [1], [0, 0, 1, 1], [], []>} : vector<1x128xf32>, vector<128x32xf32>, vector<1x32xf32> -> vector<1x32xf32>
    %394 = arith.addf %389, %393 : vector<1x32xf32>
    %c0_343 = arith.constant 0 : index
    %c0_344 = arith.constant 0 : index
    %c0_345 = arith.constant 0 : index
    %395 = vector.load %arg31[%c0_343, %c0_344, %c0_345] : memref<1x1x32xf32, #tpu.memory_space<vmem>>, vector<1x1x32xf32>
    %396 = vector.shape_cast %395 : vector<1x1x32xf32> to vector<1x32xf32>
    %397 = vector.shape_cast %394 : vector<1x32xf32> to vector<1x1x32xf32>
    tpu.vector_store %arg31[%c0_343, %c0_344, %c0_345], %397 {strides = array<i32>} : memref<1x1x32xf32, #tpu.memory_space<vmem>>, vector<1x1x32xf32>,
    return
  }
  func.func @transform_0(%arg0: i32) -> (i32, i32, i32) {
    %c0_i32 = arith.constant 0 : i32
    %c0_i32_0 = arith.constant 0 : i32
    %c0_i32_1 = arith.constant 0 : i32
    return %arg0, %c0_i32, %c0_i32_0 : i32, i32, i32
  }
  func.func @transform_1(%arg0: i32) -> (i32, i32, i32) {
    %c0_i32 = arith.constant 0 : i32
    %c0_i32_0 = arith.constant 0 : i32
    %c0_i32_1 = arith.constant 0 : i32
    %c0_i32_2 = arith.constant 0 : i32
    return %c0_i32, %c0_i32_0, %c0_i32_1 : i32, i32, i32
  }
  func.func @transform_2(%arg0: i32) -> (i32, i32, i32) {
    %c0_i32 = arith.constant 0 : i32
    %c0_i32_0 = arith.constant 0 : i32
    %c0_i32_1 = arith.constant 0 : i32
    %c0_i32_2 = arith.constant 0 : i32
    return %c0_i32, %c0_i32_0, %c0_i32_1 : i32, i32, i32
  }
  func.func @transform_3(%arg0: i32) -> (i32, i32) {
    %c0_i32 = arith.constant 0 : i32
    %c0_i32_0 = arith.constant 0 : i32
    %c0_i32_1 = arith.constant 0 : i32
    return %c0_i32, %c0_i32_0 : i32, i32
  }
  func.func @transform_4(%arg0: i32) -> (i32, i32, i32) {
    %c0_i32 = arith.constant 0 : i32
    %c0_i32_0 = arith.constant 0 : i32
    %c0_i32_1 = arith.constant 0 : i32
    %c0_i32_2 = arith.constant 0 : i32
    return %c0_i32, %c0_i32_0, %c0_i32_1 : i32, i32, i32
  }
  func.func @transform_5(%arg0: i32) -> (i32, i32, i32) {
    %c0_i32 = arith.constant 0 : i32
    %c0_i32_0 = arith.constant 0 : i32
    %c0_i32_1 = arith.constant 0 : i32
    %c0_i32_2 = arith.constant 0 : i32
    return %c0_i32, %c0_i32_0, %c0_i32_1 : i32, i32, i32
  }
  func.func @transform_6(%arg0: i32) -> (i32, i32) {
    %c0_i32 = arith.constant 0 : i32
    %c0_i32_0 = arith.constant 0 : i32
    %c0_i32_1 = arith.constant 0 : i32
    return %c0_i32, %c0_i32_0 : i32, i32
  }
  func.func @transform_7(%arg0: i32) -> (i32, i32, i32) {
    %c0_i32 = arith.constant 0 : i32
    %c0_i32_0 = arith.constant 0 : i32
    %c0_i32_1 = arith.constant 0 : i32
    %c0_i32_2 = arith.constant 0 : i32
    return %c0_i32, %c0_i32_0, %c0_i32_1 : i32, i32, i32
  }
  func.func @transform_8(%arg0: i32) -> (i32, i32, i32) {
    %c0_i32 = arith.constant 0 : i32
    %c0_i32_0 = arith.constant 0 : i32
    %c0_i32_1 = arith.constant 0 : i32
    %c0_i32_2 = arith.constant 0 : i32
    return %c0_i32, %c0_i32_0, %c0_i32_1 : i32, i32, i32
  }
  func.func @transform_9(%arg0: i32) -> (i32, i32) {
    %c0_i32 = arith.constant 0 : i32
    %c0_i32_0 = arith.constant 0 : i32
    %c0_i32_1 = arith.constant 0 : i32
    return %c0_i32, %c0_i32_0 : i32, i32
  }
  func.func @transform_10(%arg0: i32) -> (i32, i32, i32) {
    %c0_i32 = arith.constant 0 : i32
    %c0_i32_0 = arith.constant 0 : i32
    %c0_i32_1 = arith.constant 0 : i32
    %c0_i32_2 = arith.constant 0 : i32
    return %c0_i32, %c0_i32_0, %c0_i32_1 : i32, i32, i32
  }
  func.func @transform_11(%arg0: i32) -> (i32, i32, i32) {
    %c0_i32 = arith.constant 0 : i32
    %c0_i32_0 = arith.constant 0 : i32
    %c0_i32_1 = arith.constant 0 : i32
    %c0_i32_2 = arith.constant 0 : i32
    return %c0_i32, %c0_i32_0, %c0_i32_1 : i32, i32, i32
  }
  func.func @transform_12(%arg0: i32) -> (i32, i32) {
    %c0_i32 = arith.constant 0 : i32
    %c0_i32_0 = arith.constant 0 : i32
    %c0_i32_1 = arith.constant 0 : i32
    return %c0_i32, %c0_i32_0 : i32, i32
  }
  func.func @transform_13(%arg0: i32) -> (i32, i32, i32) {
    %c0_i32 = arith.constant 0 : i32
    %c0_i32_0 = arith.constant 0 : i32
    %c0_i32_1 = arith.constant 0 : i32
    %c0_i32_2 = arith.constant 0 : i32
    return %c0_i32, %c0_i32_0, %c0_i32_1 : i32, i32, i32
  }
  func.func @transform_14(%arg0: i32) -> (i32, i32, i32) {
    %c0_i32 = arith.constant 0 : i32
    %c0_i32_0 = arith.constant 0 : i32
    %c0_i32_1 = arith.constant 0 : i32
    %c0_i32_2 = arith.constant 0 : i32
    return %c0_i32, %c0_i32_0, %c0_i32_1 : i32, i32, i32
  }
  func.func @transform_15(%arg0: i32) -> (i32, i32) {
    %c0_i32 = arith.constant 0 : i32
    %c0_i32_0 = arith.constant 0 : i32
    %c0_i32_1 = arith.constant 0 : i32
    return %c0_i32, %c0_i32_0 : i32, i32
  }
  func.func @transform_16(%arg0: i32) -> (i32, i32, i32) {
    %c0_i32 = arith.constant 0 : i32
    %c0_i32_0 = arith.constant 0 : i32
    %c0_i32_1 = arith.constant 0 : i32
    %c0_i32_2 = arith.constant 0 : i32
    return %c0_i32, %c0_i32_0, %c0_i32_1 : i32, i32, i32
  }
  func.func @transform_17(%arg0: i32) -> (i32, i32, i32) {
    %c0_i32 = arith.constant 0 : i32
    %c0_i32_0 = arith.constant 0 : i32
    %c0_i32_1 = arith.constant 0 : i32
    %c0_i32_2 = arith.constant 0 : i32
    return %c0_i32, %c0_i32_0, %c0_i32_1 : i32, i32, i32
  }
  func.func @transform_18(%arg0: i32) -> (i32, i32) {
    %c0_i32 = arith.constant 0 : i32
    %c0_i32_0 = arith.constant 0 : i32
    %c0_i32_1 = arith.constant 0 : i32
    return %c0_i32, %c0_i32_0 : i32, i32
  }
  func.func @transform_19(%arg0: i32) -> (i32, i32, i32) {
    %c0_i32 = arith.constant 0 : i32
    %c0_i32_0 = arith.constant 0 : i32
    %c0_i32_1 = arith.constant 0 : i32
    %c0_i32_2 = arith.constant 0 : i32
    return %c0_i32, %c0_i32_0, %c0_i32_1 : i32, i32, i32
  }
  func.func @transform_20(%arg0: i32) -> (i32, i32, i32) {
    %c0_i32 = arith.constant 0 : i32
    %c0_i32_0 = arith.constant 0 : i32
    %c0_i32_1 = arith.constant 0 : i32
    %c0_i32_2 = arith.constant 0 : i32
    return %c0_i32, %c0_i32_0, %c0_i32_1 : i32, i32, i32
  }
  func.func @transform_21(%arg0: i32) -> (i32, i32) {
    %c0_i32 = arith.constant 0 : i32
    %c0_i32_0 = arith.constant 0 : i32
    %c0_i32_1 = arith.constant 0 : i32
    return %c0_i32, %c0_i32_0 : i32, i32
  }
  func.func @transform_22(%arg0: i32) -> (i32, i32, i32) {
    %c0_i32 = arith.constant 0 : i32
    %c0_i32_0 = arith.constant 0 : i32
    %c0_i32_1 = arith.constant 0 : i32
    %c0_i32_2 = arith.constant 0 : i32
    return %c0_i32, %c0_i32_0, %c0_i32_1 : i32, i32, i32
  }
  func.func @transform_23(%arg0: i32) -> (i32, i32, i32) {
    %c0_i32 = arith.constant 0 : i32
    %c0_i32_0 = arith.constant 0 : i32
    %c0_i32_1 = arith.constant 0 : i32
    %c0_i32_2 = arith.constant 0 : i32
    return %c0_i32, %c0_i32_0, %c0_i32_1 : i32, i32, i32
  }
  func.func @transform_24(%arg0: i32) -> (i32, i32) {
    %c0_i32 = arith.constant 0 : i32
    %c0_i32_0 = arith.constant 0 : i32
    %c0_i32_1 = arith.constant 0 : i32
    return %c0_i32, %c0_i32_0 : i32, i32
  }
  func.func @transform_25(%arg0: i32) -> (i32, i32, i32) {
    %c0_i32 = arith.constant 0 : i32
    %c0_i32_0 = arith.constant 0 : i32
    %c0_i32_1 = arith.constant 0 : i32
    %c0_i32_2 = arith.constant 0 : i32
    return %c0_i32, %c0_i32_0, %c0_i32_1 : i32, i32, i32
  }
  func.func @transform_26(%arg0: i32) -> (i32, i32, i32) {
    %c0_i32 = arith.constant 0 : i32
    %c0_i32_0 = arith.constant 0 : i32
    %c0_i32_1 = arith.constant 0 : i32
    %c0_i32_2 = arith.constant 0 : i32
    return %c0_i32, %c0_i32_0, %c0_i32_1 : i32, i32, i32
  }
  func.func @transform_27(%arg0: i32) -> (i32, i32) {
    %c0_i32 = arith.constant 0 : i32
    %c0_i32_0 = arith.constant 0 : i32
    %c0_i32_1 = arith.constant 0 : i32
    return %c0_i32, %c0_i32_0 : i32, i32
  }
  func.func @transform_28(%arg0: i32) -> (i32, i32, i32) {
    %c0_i32 = arith.constant 0 : i32
    %c0_i32_0 = arith.constant 0 : i32
    %c0_i32_1 = arith.constant 0 : i32
    %c0_i32_2 = arith.constant 0 : i32
    return %c0_i32, %c0_i32_0, %c0_i32_1 : i32, i32, i32
  }
  func.func @transform_29(%arg0: i32) -> (i32, i32) {
    %c0_i32 = arith.constant 0 : i32
    %c0_i32_0 = arith.constant 0 : i32
    %c0_i32_1 = arith.constant 0 : i32
    return %c0_i32, %c0_i32_0 : i32, i32
  }
  func.func @transform_30(%arg0: i32) -> (i32, i32, i32) {
    %c0_i32 = arith.constant 0 : i32
    %c0_i32_0 = arith.constant 0 : i32
    %c0_i32_1 = arith.constant 0 : i32
    return %arg0, %c0_i32, %c0_i32_0 : i32, i32, i32
  }
}

</mosaic_0001>

<bundles_post_ra>
// kernel: forward.1
= control target key start
LH: loop header
LB: loop body
LE: loop exit
PB: predicated region body
PF: predicated region fallthrough
CT: control target
= control target key end

     0   :  { %s15644_s6 = smov 1   ;;  %s15645_s10 = smov 2   ;;  %s17253_s0 = inlined_call_operand.smem [shape: u32[31], index: -1, kind: input, shape index: {}] }
   0x1   :  { %s15708_s5 = sld [smem:[%s17253_s0]]   ;;  %s15646_s14 = smov 3  }
   0x2   :  { %s15713_s9 = sld [smem:[%s17253_s0 + %s15644_s6]]   ;;  %s15647_s18 = smov 4  }
   0x3   :  { %s15718_s13 = sld [smem:[%s17253_s0 + %s15645_s10]]   ;;  %s15648_s22 = smov 5  }
   0x4   :  { %s15723_s17 = sld [smem:[%s17253_s0 + %s15646_s14]]   ;;  %s15649_s26 = smov 6  }
   0x5   :  { %s15728_s21 = sld [smem:[%s17253_s0 + %s15647_s18]]   ;;  %s15650_s30 = smov 7  }
   0x6   :  { %s15733_s25 = sld [smem:[%s17253_s0 + %s15648_s22]]   ;;  %s15651_s4 = smov 8  }
   0x7   :  { %17290 = sst [smem:[#allocation40_spill]] %s15708_s5  ;;  %s15652_s10 = smov 9  }
   0x8   :  { %17291 = sst [smem:[#allocation41_spill]] %s15713_s9  ;;  %s15653_s15 = smov 10  }
   0x9   :  { %s15738_s29 = sld [smem:[%s17253_s0 + %s15649_s26]]   ;;  %s15654_s20 = smov 11  }
   0xa   :  { %17292 = sst [smem:[#allocation42_spill]] %s15723_s17  ;;  %s15655_s26 = smov 12  }
   0xb   :  { %s15743_s3 = sld [smem:[%s17253_s0 + %s15650_s30]]   ;;  %s15656_s1 = smov 13  }
   0xc   :  { %s15748_s8 = sld [smem:[%s17253_s0 + %s15651_s4]]   ;;  %s15657_s7 = smov 14  }
   0xd   :  { %s15753_s14 = sld [smem:[%s17253_s0 + %s15652_s10]]   ;;  %s15659_s22 = smov 16  }
   0xe   :  { %s15758_s19 = sld [smem:[%s17253_s0 + %s15653_s15]]   ;;  %s15658_s15 = smov 15  }
   0xf   :  { %17293 = sst [smem:[#allocation43_spill]] %s15738_s29  ;;  %s15660_s28 = smov 17  }
  0x10   :  { %s15763_s24 = sld [smem:[%s17253_s0 + %s15654_s20]]  }
  0x11   :  { %17294 = sst [smem:[#allocation44_spill]] %s15743_s3 }
  0x12   :  { %s15768_s30 = sld [smem:[%s17253_s0 + %s15655_s26]]  }
  0x13   :  { %s15773_s6 = sld [smem:[%s17253_s0 + %s15656_s1]]  }
  0x14   :  { %s15778_s12 = sld [smem:[%s17253_s0 + %s15657_s7]]   ;;  %s15661_s7 = smov 18  }
  0x15   :  { %s15783_s20 = sld [smem:[%s17253_s0 + %s15658_s15]]   ;;  %s15662_s15 = smov 19  }
  0x16   :  { %17295 = sst [smem:[#allocation45_spill]] %s15763_s24 }
  0x17   :  { %s15788_s27 = sld [smem:[%s17253_s0 + %s15659_s22]]   ;;  %s15663_s22 = smov 20  }
  0x18   :  { %s15793_s4 = sld [smem:[%s17253_s0 + %s15660_s28]]   ;;  %s15664_s28 = smov 21  }
  0x19   :  { %s15798_s24 = sld [smem:[%s17253_s0 + %s15661_s7]]   ;;  %s15665_s7 = smov 22  }
  0x1a   :  { %17296 = sst [smem:[#allocation46_spill]] %s15778_s12 }
  0x1b   :  { %s15803_s29 = sld [smem:[%s17253_s0 + %s15662_s15]]   ;;  %s15666_s15 = smov 23  }
  0x1c   :  { %s15813_s17 = sld [smem:[%s17253_s0 + %s15664_s28]]   ;;  %s15668_s28 = smov 25  }
  0x1d   :  { %17297 = sst [smem:[#allocation47_spill]] %s15788_s27 }
  0x1e   :  { %17298 = sst [smem:[#allocation48_spill]] %s15793_s4 }
  0x1f   :  { %17299 = sst [smem:[#allocation49_spill]] %s15798_s24 }
  0x20   :  { %s15808_s27 = sld [smem:[%s17253_s0 + %s15663_s22]]   ;;  %s15667_s22 = smov 24  }
  0x21   :  { %17300 = sst [smem:[#allocation50_spill]] %s15803_s29 }
  0x22   :  { %17301 = sst [smem:[#allocation51_spill]] %s15813_s17 }
  0x23   :  { %s15818_s9 = sld [smem:[%s17253_s0 + %s15665_s7]]   ;;  %s15669_s7 = smov 26  }
  0x24   :  { %s15823_s29 = sld [smem:[%s17253_s0 + %s15666_s15]]   ;;  %s15670_s15 = smov 27  }
  0x25   :  { %s15828_s5 = sld [smem:[%s17253_s0 + %s15667_s22]]   ;;  %s15671_s22 = smov 28  }
  0x26   :  { %s15833_s17 = sld [smem:[%s17253_s0 + %s15668_s28]]   ;;  %s15672_s28 = smov 29  }
  0x27   :  { %s15848_s24 = sld [smem:[%s17253_s0 + %s15671_s22]]  }
  0x29   :  { %17302 = sst [smem:[#allocation52_spill]] %s15818_s9 }
  0x2a   :  { %17303 = sst [smem:[#allocation53_spill]] %s15823_s29 }
  0x2b   :  { %17304 = sst [smem:[#allocation54_spill]] %s15828_s5 }
  0x2c   :  { %17305 = sst [smem:[#allocation55_spill]] %s15833_s17 }
  0x2d   :  { %s15838_s9 = sld [smem:[%s17253_s0 + %s15669_s7]]   ;;  %s15673_s7 = smov 30  }
  0x2e   :  { %s15843_s29 = sld [smem:[%s17253_s0 + %s15670_s15]]  }
  0x2f   :  { %s15853_s17 = sld [smem:[%s17253_s0 + %s15672_s28]]  }
  0x33   :  { %17306 = sst [smem:[#allocation56_spill]] %s15838_s9 }
  0x34   :  { %s15858_s9 = sld [smem:[%s17253_s0 + %s15673_s7]]  }
  0x35   :  { %66 = vsyncpa [#allocation3], 0 }
  0x36   :  { %67 = vsyncpa [#allocation6], 0 }
  0x37   :  { %68 = vsyncpa [#allocation9], 0 }
  0x38   :  { %69 = vsyncpa [#allocation12], 0 }
  0x39   :  { %70 = vsyncpa [#allocation15], 0 }
  0x3a   :  { %71 = vsyncpa [#allocation18], 0 }
  0x3b   :  { %72 = vsyncpa [#allocation21], 0 }
  0x3c   :  { %73 = vsyncpa [#allocation24], 0 }
  0x3d   :  { %74 = vsyncpa [#allocation27], 0 }
  0x3e   :  { %75 = vsyncpa [#allocation4], 0 }
  0x3f   :  { %77 = vsyncpa [#allocation4 + $0x1], 0  ;;  %s15860_s15 = smov 0   ;;  %s15862_s16 = smov 0  }
  0x40   :  { %s15864_s18 = smov 0   ;;  %s15866_s22 = smov 0  }
  0x41 LB: > { %s17307_s5 = sld [smem:[#allocation54_spill]]  ;;  %s17308_s4 = sld [smem:[#allocation48_spill]]  ;;  %s15642_s22 = sphi %s15866_s22, %s17364_s22   ;;  %s15638_s18 = sphi %s15864_s18, %s17366_s18   ;;  %s15634_s16 = sphi %s15862_s16, %s17368_s16   ;;  %s15630_s15 = sphi %s15860_s15, %s17367_s15  }
  0x42   : > { %s17309_s12 = sld [smem:[#allocation46_spill]]  ;;  %s17310_s3 = sld [smem:[#allocation44_spill]] }
  0x43   : > { %17311 = sst [smem:[#allocation57_spill]] %s15630_s15  ;;  %s15881_s0 = sadd.s32 4294967295, %s15642_s22  }
  0x44   : > { %17312 = sst [smem:[#allocation58_spill]] %s15638_s18  ;;  %s11610_s23 = sadd.s32 4294967294, %s15642_s22  }
  0x45   : > { %17313 = sst [smem:[#allocation59_spill]] %s15642_s22  ;;  %s15885_s26 = sadd.s32 1, %s15642_s22  }
  0x46   : > { %17314 = sst [smem:[#allocation60_spill]] %s15885_s26  ;;  %s725_s28 = sadd.s32 1, %s15638_s18 }
  0x47   : > { %s722_s1 = ssub.s32 %s15642_s22, %s15885_s26  ;;  %p735_p0 = scmp.ne.s32.totalorder %s15638_s18, %s15634_s16 }
  0x48   : > { %p723_p1 = scmp.eq.s32.totalorder %s722_s1, 0  ;;  %p736_p2 = scmp.eq.s32.totalorder %s15881_s0, 1 }
  0x49   : > { %p741_p3 = scmp.ne.s32.totalorder %s15634_s16, %s15630_s15  ;;  %p742_p4 = scmp.eq.s32.totalorder %s11610_s23, 1 }
  0x4a   : > { %s15896_s2 = scalar_select %p723_p1, %s15638_s18, %s725_s28  }
  0x4b   : > { %p15898_p5 = por %p736_p2, %p735_p0  ;;  %p15902_p6 = por %p742_p4, %p741_p3 }
  0x4c   : > { %17315 = sst [smem:[#allocation61_spill]] %s15896_s2  ;;  %p11611_p7 = scmp.ge.s32.totalorder %s15642_s22, 1 }
  0x4d   : > { %s17316_s7 = scalar_select %p15898_p5, 1, 0 }
  0x4e   : > { %s17317_s10 = scalar_select %p15902_p6, 1, 0 }
  0x4f   : > { %p749_p8 = scmp.lt.s32.totalorder %s15642_s22, 3  ;;  %p17269_p9 = scmp.eq.s32.totalorder %s15881_s0, 0 }
  0x50   : > { %17318 = sst [smem:[#allocation62_spill]] %s17317_s10  ;;  %s15674_s23 = smov [#allocation5]  }
  0x51   : > { %p15909_p10 = pnand %p11611_p7, %p749_p8  ;;  %s780_s28 = sshll.u32 %s15674_s23, 4  ;;  %s15915_s28 = int_to_ptr.vmem [resolvable:$true] %s780_s28 }
  0x52   : > { %s15675_s2 = smov [#allocation8]   ;;  %s15676_s26 = smov [#allocation11]  }
  0x53   : > { %s17319_s11 = scalar_select %p15909_p10, 1, 0 }
  0x54   : > { %p13545_p11 = pneg %p15909_p10  ;;  %s809_s18 = sshll.u32 %s15675_s2, 4  ;;  %s15923_s18 = int_to_ptr.vmem [resolvable:$true] %s809_s18 }
  0x55   : > { %s15925_s10 = sshll.u32 %s15676_s26, 4  ;;  %s15068_s15 = scalar_lea.hbm %s15728_s21, 768  ;;  %s837_s10 = int_to_ptr.vmem [resolvable:$true] %s15925_s10 }
  0x56   : > { %p15919_p12 = pnand %p17269_p9, %p13545_p11  ;;  %p15069_p13 = scmp.ne.s32.totalorder %s15728_s21, %s15068_s15 }
  0x57   : > { %p15075_p3 = scmp.lt.u32.totalorder %s15068_s15, %s15728_s21 }
  0x58   : > { %p15931_p0 = pneg %p15919_p12 }
  0x5a   : > { %p15071_p1 = pnand %p15931_p0, %p15069_p13 }
  0x5c   : > { %p15072_p2 = pneg %p15071_p1 }
  0x5e   : > { %p15077_p4 = pnand %p15075_p3, %p15072_p2 }
  0x60   : > { %15080 = shalt.err (!%p15077_p4)
}
  0x61   : > { %s15081_s26 = scalar_lea.vmem %s15915_s28, 768  ;;  %p15089_p9 = scmp.lt.s32.totalorder %s15915_s28, %s15915_s28 }
  0x62   : > { %p15082_p7 = scmp.ne.s32.totalorder %s15915_s28, %s15081_s26  ;;  %p15090_p6 = scmp.lt.s32.totalorder %s15081_s26, %s15081_s26 }
  0x64   : > { %p15084_p8 = pnand %p15082_p7, %p15931_p0  ;;  %p15091_p5 = por %p15090_p6, %p15089_p9 }
  0x66   : > { %p15085_p11 = pneg %p15084_p8 }
  0x68   : > { %p15092_p10 = pnand %p15091_p5, %p15085_p11 }
  0x6a   : > { %15095 = shalt.err (!%p15092_p10)
}
  0x6b   : > { %s17273_s2 = smov 64   ;;  %s17275_s15 = smov 4  }
  0x6c   : > { %13551 = dma.hbm_to_vmem [thread:$0]  (!%p15919_p12), %s15728_s21, 768, %s15915_s28, [#allocation6], %s17273_s2, %s17273_s2, %s17275_s15  }
  0x6d   : > { %s15096_s22 = scalar_lea.hbm %s17310_s3, 768 }
  0x6e   : > { %p15097_p13 = scmp.ne.s32.totalorder %s17310_s3, %s15096_s22  ;;  %p15103_p9 = scmp.lt.u32.totalorder %s15096_s22, %s17310_s3 }
  0x70   : > { %p15099_p6 = pnand %p15097_p13, %p15931_p0 }
  0x72   : > { %p15100_p5 = pneg %p15099_p6 }
  0x74   : > { %p15105_p10 = pnand %p15103_p9, %p15100_p5 }
  0x76   : > { %15108 = shalt.err (!%p15105_p10)
}
  0x77   : > { %s15109_s26 = scalar_lea.vmem %s15923_s18, 768  ;;  %p15117_p4 = scmp.lt.s32.totalorder %s15923_s18, %s15923_s18 }
  0x78   : > { %p15110_p1 = scmp.ne.s32.totalorder %s15923_s18, %s15109_s26  ;;  %p15118_p7 = scmp.lt.s32.totalorder %s15109_s26, %s15109_s26 }
  0x7a   : > { %p15112_p2 = pnand %p15110_p1, %p15931_p0  ;;  %p15119_p8 = por %p15118_p7, %p15117_p4 }
  0x7c   : > { %p15113_p3 = pneg %p15112_p2 }
  0x7e   : > { %p15120_p11 = pnand %p15119_p8, %p15113_p3 }
  0x80   : > { %15123 = shalt.err (!%p15120_p11)
}
  0x81   : > { %13557 = dma.hbm_to_vmem [thread:$0]  (!%p15919_p12), %s17310_s3, 768, %s15923_s18, [#allocation9], %s17273_s2, %s17273_s2, %s17275_s15  }
  0x82   : > { %s15124_s22 = scalar_lea.hbm %s15753_s14, 32 }
  0x83   : > { %p15125_p13 = scmp.ne.s32.totalorder %s15753_s14, %s15124_s22  ;;  %p15131_p9 = scmp.lt.u32.totalorder %s15124_s22, %s15753_s14 }
  0x85   : > { %p15127_p6 = pnand %p15125_p13, %p15931_p0 }
  0x87   : > { %p15128_p5 = pneg %p15127_p6 }
  0x89   : > { %p15133_p10 = pnand %p15131_p9, %p15128_p5 }
  0x8b   : > { %15136 = shalt.err (!%p15133_p10)
}
  0x8c   : > { %s15137_s28 = scalar_lea.vmem %s837_s10, 32  ;;  %p15145_p4 = scmp.lt.s32.totalorder %s837_s10, %s837_s10 }
  0x8d   : > { %p15138_p1 = scmp.ne.s32.totalorder %s837_s10, %s15137_s28  ;;  %p15146_p7 = scmp.lt.s32.totalorder %s15137_s28, %s15137_s28 }
  0x8f   : > { %p15140_p2 = pnand %p15138_p1, %p15931_p0  ;;  %p15147_p8 = por %p15146_p7, %p15145_p4 }
  0x91   : > { %p15141_p3 = pneg %p15140_p2 }
  0x93   : > { %p15148_p11 = pnand %p15147_p8, %p15141_p3 }
  0x95   : > { %15151 = shalt.err (!%p15148_p11)
}
  0x96   : > { %13563 = dma.hbm_to_vmem [thread:$0]  (!%p15919_p12), %s15753_s14, 32, %s837_s10, [#allocation12]  }
  0x97   : > { %s15679_s18 = smov [#allocation14]   ;;  %s15152_s22 = scalar_lea.hbm %s15768_s30, 32 }
  0x98   : > { %s863_s26 = sshll.u32 %s15679_s18, 4  ;;  %p15153_p13 = scmp.ne.s32.totalorder %s15768_s30, %s15152_s22  ;;  %s864_s26 = int_to_ptr.vmem [resolvable:$true] %s863_s26 }
  0x99   : > { %p15159_p9 = scmp.lt.u32.totalorder %s15152_s22, %s15768_s30 }
  0x9a   : > { %p15155_p6 = pnand %p15153_p13, %p15931_p0 }
  0x9c   : > { %p15156_p5 = pneg %p15155_p6 }
  0x9e   : > { %p15161_p10 = pnand %p15159_p9, %p15156_p5 }
  0xa0   : > { %15164 = shalt.err (!%p15161_p10)
}
  0xa1   : > { %s15165_s28 = scalar_lea.vmem %s864_s26, 32  ;;  %p15173_p4 = scmp.lt.s32.totalorder %s864_s26, %s864_s26 }
  0xa2   : > { %p15166_p1 = scmp.ne.s32.totalorder %s864_s26, %s15165_s28  ;;  %p15174_p7 = scmp.lt.s32.totalorder %s15165_s28, %s15165_s28 }
  0xa4   : > { %p15168_p2 = pnand %p15166_p1, %p15931_p0  ;;  %p15175_p8 = por %p15174_p7, %p15173_p4 }
  0xa6   : > { %p15169_p3 = pneg %p15168_p2 }
  0xa8   : > { %p15176_p11 = pnand %p15175_p8, %p15169_p3 }
  0xaa   : > { %15179 = shalt.err (!%p15176_p11)
}
  0xab   : > { %13569 = dma.hbm_to_vmem [thread:$0]  (!%p15919_p12), %s15768_s30, 32, %s864_s26, [#allocation15]  }
  0xac   : > { %s15680_s10 = smov [#allocation17]   ;;  %s15681_s22 = smov [#allocation20]  }
  0xad   : > { %s886_s18 = sshll.u32 %s15680_s10, 4  ;;  %s913_s2 = sshll.u32 %s15681_s22, 4  ;;  %s887_s18 = int_to_ptr.vmem [resolvable:$true] %s886_s18  ;;  %s15990_s2 = int_to_ptr.vmem [resolvable:$true] %s913_s2 }
  0xae   : > { %s15180_s15 = scalar_lea.hbm %s17309_s12, 20480 }
  0xaf   : > { %p15181_p13 = scmp.ne.s32.totalorder %s17309_s12, %s15180_s15  ;;  %p15187_p9 = scmp.lt.u32.totalorder %s15180_s15, %s17309_s12 }
  0xb1   : > { %p15183_p6 = pnand %p15181_p13, %p15931_p0 }
  0xb3   : > { %p15184_p5 = pneg %p15183_p6 }
  0xb5   : > { %p15189_p10 = pnand %p15187_p9, %p15184_p5 }
  0xb7   : > { %15192 = shalt.err (!%p15189_p10)
}
  0xb8   : > { %s15193_s28 = scalar_lea.vmem %s887_s18, 20480  ;;  %p15201_p4 = scmp.lt.s32.totalorder %s887_s18, %s887_s18 }
  0xb9   : > { %p15194_p1 = scmp.ne.s32.totalorder %s887_s18, %s15193_s28  ;;  %p15202_p7 = scmp.lt.s32.totalorder %s15193_s28, %s15193_s28 }
  0xbb   : > { %p15196_p2 = pnand %p15194_p1, %p15931_p0  ;;  %p15203_p8 = por %p15202_p7, %p15201_p4 }
  0xbd   : > { %p15197_p3 = pneg %p15196_p2 }
  0xbf   : > { %p15204_p11 = pnand %p15203_p8, %p15197_p3 }
  0xc1   : > { %15207 = shalt.err (!%p15204_p11)
}
  0xc2   : > { %s17279_s26 = smov 128   ;;  %s17281_s15 = smov 8  }
  0xc3   : > { %13575 = dma.hbm_to_vmem [thread:$0]  (!%p15919_p12), %s17309_s12, 20480, %s887_s18, [#allocation18], %s17279_s26, %s17279_s26, %s17281_s15  }
  0xc4   : > { %s15208_s10 = scalar_lea.hbm %s17308_s4, 20480 }
  0xc5   : > { %p15209_p13 = scmp.ne.s32.totalorder %s17308_s4, %s15208_s10  ;;  %p15215_p9 = scmp.lt.u32.totalorder %s15208_s10, %s17308_s4 }
  0xc7   : > { %p15211_p6 = pnand %p15209_p13, %p15931_p0 }
  0xc9   : > { %p15212_p5 = pneg %p15211_p6 }
  0xcb   : > { %p15217_p10 = pnand %p15215_p9, %p15212_p5 }
  0xcd   : > { %15220 = shalt.err (!%p15217_p10)
}
  0xce   : > { %s15221_s22 = scalar_lea.vmem %s15990_s2, 20480  ;;  %p15229_p4 = scmp.lt.s32.totalorder %s15990_s2, %s15990_s2 }
  0xcf   : > { %p15222_p1 = scmp.ne.s32.totalorder %s15990_s2, %s15221_s22  ;;  %p15230_p7 = scmp.lt.s32.totalorder %s15221_s22, %s15221_s22 }
  0xd1   : > { %p15224_p2 = pnand %p15222_p1, %p15931_p0  ;;  %p15231_p8 = por %p15230_p7, %p15229_p4 }
  0xd3   : > { %p15225_p3 = pneg %p15224_p2 }
  0xd5   : > { %p15232_p11 = pnand %p15231_p8, %p15225_p3 }
  0xd7   : > { %15235 = shalt.err (!%p15232_p11)
}
  0xd8   : > { %13581 = dma.hbm_to_vmem [thread:$0]  (!%p15919_p12), %s17308_s4, 20480, %s15990_s2, [#allocation21], %s17279_s26, %s17279_s26, %s17281_s15  }
  0xd9   : > { %s15684_s18 = smov [#allocation23]   ;;  %s15685_s10 = smov [#allocation26]  }
  0xda   : > { %s940_s28 = sshll.u32 %s15684_s18, 4  ;;  %s971_s3 = sshll.u32 %s15685_s10, 4  ;;  %s941_s28 = int_to_ptr.vmem [resolvable:$true] %s940_s28  ;;  %s16023_s3 = int_to_ptr.vmem [resolvable:$true] %s971_s3 }
  0xdb   : > { %s15236_s22 = scalar_lea.hbm %s15808_s27, 10240 }
  0xdc   : > { %p15237_p13 = scmp.ne.s32.totalorder %s15808_s27, %s15236_s22  ;;  %p15243_p9 = scmp.lt.u32.totalorder %s15236_s22, %s15808_s27 }
  0xde   : > { %p15239_p6 = pnand %p15237_p13, %p15931_p0 }
  0xe0   : > { %p15240_p5 = pneg %p15239_p6 }
  0xe2   : > { %p15245_p10 = pnand %p15243_p9, %p15240_p5 }
  0xe4   : > { %15248 = shalt.err (!%p15245_p10)
}
  0xe5   : > { %s15249_s12 = scalar_lea.vmem %s941_s28, 10240  ;;  %p15257_p4 = scmp.lt.s32.totalorder %s941_s28, %s941_s28 }
  0xe6   : > { %p15250_p1 = scmp.ne.s32.totalorder %s941_s28, %s15249_s12  ;;  %p15258_p7 = scmp.lt.s32.totalorder %s15249_s12, %s15249_s12 }
  0xe8   : > { %p15252_p2 = pnand %p15250_p1, %p15931_p0  ;;  %p15259_p8 = por %p15258_p7, %p15257_p4 }
  0xea   : > { %p15253_p3 = pneg %p15252_p2 }
  0xec   : > { %p15260_p11 = pnand %p15259_p8, %p15253_p3 }
  0xee   : > { %15263 = shalt.err (!%p15260_p11)
}
  0xef   : > { %s17322_s2 = smov 4   ;;  %s17323_s18 = smov 64  }
  0xf0   : > { %13587 = dma.hbm_to_vmem [thread:$0]  (!%p15919_p12), %s15808_s27, 10240, %s941_s28, [#allocation24], %s17323_s18, %s17323_s18, %s17322_s2  }
  0xf1   : > { %s15264_s10 = scalar_lea.hbm %s17307_s5, 16 }
  0xf2   : > { %p15265_p13 = scmp.ne.s32.totalorder %s17307_s5, %s15264_s10  ;;  %p15271_p9 = scmp.lt.u32.totalorder %s15264_s10, %s17307_s5 }
  0xf4   : > { %p15267_p6 = pnand %p15265_p13, %p15931_p0 }
  0xf6   : > { %p15268_p5 = pneg %p15267_p6 }
  0xf8   : > { %p15273_p10 = pnand %p15271_p9, %p15268_p5 }
  0xfa   : > { %15276 = shalt.err (!%p15273_p10)
}
  0xfb   : > { %s15277_s12 = scalar_lea.vmem %s16023_s3, 16  ;;  %s15284_s22 = scalar_lea.vmem %s16023_s3, 32 }
  0xfc   : > { %p15278_p1 = scmp.ne.s32.totalorder %s16023_s3, %s15277_s12  ;;  %p15285_p4 = scmp.lt.s32.totalorder %s16023_s3, %s16023_s3 }
  0xfd   : > { %p15286_p7 = scmp.lt.s32.totalorder %s15284_s22, %s15277_s12 }
  0xfe   : > { %p15280_p2 = pnand %p15278_p1, %p15931_p0 }
  0xff   : > { %p15287_p8 = por %p15286_p7, %p15285_p4 }
 0x100   : > { %p15281_p3 = pneg %p15280_p2 }
 0x102   : > { %p15288_p11 = pnand %p15287_p8, %p15281_p3 }
 0x104   : > { %15291 = shalt.err (!%p15288_p11)
}
 0x105   : > { %13593 = dma.hbm_to_vmem [thread:$0]  (!%p15919_p12), %s17307_s5, 16, %s16023_s3, [#allocation27]  }
 0x106   : > { %s15686_s28 = smov [#allocation2]   ;;  %s15687_s26 = smov [#allocation7]  }
 0x107   : > { %s764_s10 = sshll.u32 %s15686_s28, 4  ;;  %s793_s15 = sshll.u32 %s15687_s26, 4  ;;  %s765_s10 = int_to_ptr.vmem [resolvable:$true] %s764_s10  ;;  %s16054_s15 = int_to_ptr.vmem [resolvable:$true] %s793_s15 }
 0x108   : > { %s15292_s12 = scalar_lea.hbm %s15718_s13, 15360 }
 0x109   : > { %p15293_p13 = scmp.ne.s32.totalorder %s15718_s13, %s15292_s12  ;;  %p15299_p9 = scmp.lt.u32.totalorder %s15292_s12, %s15718_s13 }
 0x10b   : > { %p15295_p6 = pnand %p15293_p13, %p15931_p0 }
 0x10d   : > { %p15296_p5 = pneg %p15295_p6 }
 0x10f   : > { %p15301_p10 = pnand %p15299_p9, %p15296_p5 }
 0x111   : > { %15304 = shalt.err (!%p15301_p10)
}
 0x112   : > { %s15305_s22 = scalar_lea.vmem %s765_s10, 15360  ;;  %p15313_p4 = scmp.lt.s32.totalorder %s765_s10, %s765_s10 }
 0x113   : > { %p15306_p1 = scmp.ne.s32.totalorder %s765_s10, %s15305_s22  ;;  %p15314_p7 = scmp.lt.s32.totalorder %s15305_s22, %s15305_s22 }
 0x115   : > { %p15308_p2 = pnand %p15306_p1, %p15931_p0  ;;  %p15315_p8 = por %p15314_p7, %p15313_p4 }
 0x117   : > { %p15309_p3 = pneg %p15308_p2 }
 0x119   : > { %p15316_p11 = pnand %p15315_p8, %p15309_p3 }
 0x11b   : > { %15319 = shalt.err (!%p15316_p11)
}
 0x11c   : > { %s17324_s3 = smov 8   ;;  %s17325_s26 = smov 128  }
 0x11d   : > { %13548 = dma.hbm_to_vmem [thread:$0]  (!%p15919_p12), %s15718_s13, 15360, %s765_s10, [#allocation3], %s17325_s26, %s17325_s26, %s17324_s3  }
 0x11e   : > { %s15320_s28 = scalar_lea.hbm %s15733_s25, 12288 }
 0x11f   : > { %p15321_p13 = scmp.ne.s32.totalorder %s15733_s25, %s15320_s28  ;;  %p15327_p9 = scmp.lt.u32.totalorder %s15320_s28, %s15733_s25 }
 0x121   : > { %p15323_p6 = pnand %p15321_p13, %p15931_p0 }
 0x123   : > { %p15324_p5 = pneg %p15323_p6 }
 0x125   : > { %p15329_p10 = pnand %p15327_p9, %p15324_p5 }
 0x127   : > { %15332 = shalt.err (!%p15329_p10)
}
 0x128   : > { %s15333_s12 = scalar_lea.vmem %s16054_s15, 12288  ;;  %p15341_p4 = scmp.lt.s32.totalorder %s16054_s15, %s16054_s15 }
 0x129   : > { %p15334_p1 = scmp.ne.s32.totalorder %s16054_s15, %s15333_s12  ;;  %p15342_p7 = scmp.lt.s32.totalorder %s15333_s12, %s15333_s12 }
 0x12b   : > { %p15336_p2 = pnand %p15334_p1, %p15931_p0  ;;  %p15343_p8 = por %p15342_p7, %p15341_p4 }
 0x12d   : > { %p15337_p3 = pneg %p15336_p2 }
 0x12f   : > { %p15344_p11 = pnand %p15343_p8, %p15337_p3 }
 0x131   : > { %15347 = shalt.err (!%p15344_p11)
}
 0x132   : > { %13554 = dma.hbm_to_vmem [thread:$0]  (!%p15919_p12), %s15733_s25, 12288, %s16054_s15, [#allocation6], %s17325_s26, %s17325_s26, %s17324_s3  }
 0x133   : > { %s15688_s10 = smov [#allocation10]   ;;  %s15689_s28 = smov [#allocation13]  }
 0x134   : > { %s822_s22 = sshll.u32 %s15688_s10, 4  ;;  %s846_s4 = sshll.u32 %s15689_s28, 4  ;;  %s823_s22 = int_to_ptr.vmem [resolvable:$true] %s822_s22  ;;  %s16087_s4 = int_to_ptr.vmem [resolvable:$true] %s846_s4 }
 0x135   : > { %s15348_s12 = scalar_lea.hbm %s15748_s8, 12288 }
 0x136   : > { %p15349_p13 = scmp.ne.s32.totalorder %s15748_s8, %s15348_s12  ;;  %p15355_p9 = scmp.lt.u32.totalorder %s15348_s12, %s15748_s8 }
 0x138   : > { %p15351_p6 = pnand %p15349_p13, %p15931_p0 }
 0x13a   : > { %p15352_p5 = pneg %p15351_p6 }
 0x13c   : > { %p15357_p10 = pnand %p15355_p9, %p15352_p5 }
 0x13e   : > { %15360 = shalt.err (!%p15357_p10)
}
 0x13f   : > { %s15361_s5 = scalar_lea.vmem %s823_s22, 12288  ;;  %p15369_p4 = scmp.lt.s32.totalorder %s823_s22, %s823_s22 }
 0x140   : > { %p15362_p1 = scmp.ne.s32.totalorder %s823_s22, %s15361_s5  ;;  %p15370_p7 = scmp.lt.s32.totalorder %s15361_s5, %s15361_s5 }
 0x142   : > { %p15364_p2 = pnand %p15362_p1, %p15931_p0  ;;  %p15371_p8 = por %p15370_p7, %p15369_p4 }
 0x144   : > { %p15365_p3 = pneg %p15364_p2 }
 0x146   : > { %p15372_p11 = pnand %p15371_p8, %p15365_p3 }
 0x148   : > { %15375 = shalt.err (!%p15372_p11)
}
 0x149   : > { %13560 = dma.hbm_to_vmem [thread:$0]  (!%p15919_p12), %s15748_s8, 12288, %s823_s22, [#allocation9], %s17325_s26, %s17325_s26, %s17324_s3  }
 0x14a   : > { %s15376_s15 = scalar_lea.hbm %s15758_s19, 640 }
 0x14b   : > { %p15377_p13 = scmp.ne.s32.totalorder %s15758_s19, %s15376_s15  ;;  %p15383_p9 = scmp.lt.u32.totalorder %s15376_s15, %s15758_s19 }
 0x14d   : > { %p15379_p6 = pnand %p15377_p13, %p15931_p0 }
 0x14f   : > { %p15380_p5 = pneg %p15379_p6 }
 0x151   : > { %p15385_p10 = pnand %p15383_p9, %p15380_p5 }
 0x153   : > { %15388 = shalt.err (!%p15385_p10)
}
 0x154   : > { %s15389_s5 = scalar_lea.vmem %s16087_s4, 640  ;;  %p15397_p4 = scmp.lt.s32.totalorder %s16087_s4, %s16087_s4 }
 0x155   : > { %p15390_p1 = scmp.ne.s32.totalorder %s16087_s4, %s15389_s5  ;;  %p15398_p7 = scmp.lt.s32.totalorder %s15389_s5, %s15389_s5 }
 0x157   : > { %p15392_p2 = pnand %p15390_p1, %p15931_p0  ;;  %p15399_p8 = por %p15398_p7, %p15397_p4 }
 0x159   : > { %p15393_p3 = pneg %p15392_p2 }
 0x15b   : > { %p15400_p11 = pnand %p15399_p8, %p15393_p3 }
 0x15d   : > { %15403 = shalt.err (!%p15400_p11)
}
 0x15e   : > { %13566 = dma.hbm_to_vmem [thread:$0]  (!%p15919_p12), %s15758_s19, 640, %s16087_s4, [#allocation12], %s17323_s18, %s17323_s18, %s17322_s2  }
 0x15f   : > { %s15690_s3 = smov [#allocation16]   ;;  %s15691_s10 = smov [#allocation19]  }
 0x160   : > { %s873_s26 = sshll.u32 %s15690_s3, 4  ;;  %s900_s22 = sshll.u32 %s15691_s10, 4  ;;  %s874_s26 = int_to_ptr.vmem [resolvable:$true] %s873_s26  ;;  %s16120_s22 = int_to_ptr.vmem [resolvable:$true] %s900_s22 }
 0x161   : > { %s15404_s28 = scalar_lea.hbm %s15773_s6, 320 }
 0x162   : > { %p15405_p13 = scmp.ne.s32.totalorder %s15773_s6, %s15404_s28  ;;  %p15411_p9 = scmp.lt.u32.totalorder %s15404_s28, %s15773_s6 }
 0x164   : > { %p15407_p6 = pnand %p15405_p13, %p15931_p0 }
 0x166   : > { %p15408_p5 = pneg %p15407_p6 }
 0x168   : > { %p15413_p10 = pnand %p15411_p9, %p15408_p5 }
 0x16a   : > { %15416 = shalt.err (!%p15413_p10)
}
 0x16b   : > { %s15417_s12 = scalar_lea.vmem %s874_s26, 320  ;;  %p15425_p4 = scmp.lt.s32.totalorder %s874_s26, %s874_s26 }
 0x16c   : > { %p15418_p1 = scmp.ne.s32.totalorder %s874_s26, %s15417_s12  ;;  %p15426_p7 = scmp.lt.s32.totalorder %s15417_s12, %s15417_s12 }
 0x16e   : > { %p15420_p2 = pnand %p15418_p1, %p15931_p0  ;;  %p15427_p8 = por %p15426_p7, %p15425_p4 }
 0x170   : > { %p15421_p3 = pneg %p15420_p2 }
 0x172   : > { %p15428_p11 = pnand %p15427_p8, %p15421_p3 }
 0x174   : > { %15431 = shalt.err (!%p15428_p11)
}
 0x175   : > { %13572 = dma.hbm_to_vmem [thread:$0]  (!%p15919_p12), %s15773_s6, 320, %s874_s26, [#allocation15], %s17323_s18, %s17323_s18, %s17322_s2  }
 0x176   : > { %s15432_s4 = scalar_lea.hbm %s15783_s20, 32 }
 0x177   : > { %p15433_p13 = scmp.ne.s32.totalorder %s15783_s20, %s15432_s4  ;;  %p15439_p9 = scmp.lt.u32.totalorder %s15432_s4, %s15783_s20 }
 0x179   : > { %p15435_p6 = pnand %p15433_p13, %p15931_p0 }
 0x17b   : > { %p15436_p5 = pneg %p15435_p6 }
 0x17d   : > { %p15441_p10 = pnand %p15439_p9, %p15436_p5 }
 0x17f   : > { %15444 = shalt.err (!%p15441_p10)
}
 0x180   : > { %s15445_s15 = scalar_lea.vmem %s16120_s22, 32  ;;  %p15453_p4 = scmp.lt.s32.totalorder %s16120_s22, %s16120_s22 }
 0x181   : > { %p15446_p1 = scmp.ne.s32.totalorder %s16120_s22, %s15445_s15  ;;  %p15454_p7 = scmp.lt.s32.totalorder %s15445_s15, %s15445_s15 }
 0x183   : > { %p15448_p2 = pnand %p15446_p1, %p15931_p0  ;;  %p15455_p8 = por %p15454_p7, %p15453_p4 }
 0x185   : > { %p15449_p3 = pneg %p15448_p2 }
 0x187   : > { %p15456_p11 = pnand %p15455_p8, %p15449_p3 }
 0x189   : > { %15459 = shalt.err (!%p15456_p11)
}
 0x18a   : > { %s17326_s2 = sld [smem:[#allocation49_spill]]  ;;  %s15692_s18 = smov [#allocation22]  }
 0x18b   : > { %13578 = dma.hbm_to_vmem [thread:$0]  (!%p15919_p12), %s15783_s20, 32, %s16120_s22, [#allocation18]  }
 0x18c   : > { %s927_s5 = sshll.u32 %s15692_s18, 4  ;;  %s15693_s3 = smov [#allocation25]   ;;  %s928_s5 = int_to_ptr.vmem [resolvable:$true] %s927_s5 }
 0x18d   : > { %s954_s26 = sshll.u32 %s15693_s3, 4  ;;  %s16150_s26 = int_to_ptr.vmem [resolvable:$true] %s954_s26 }
 0x190   : > { %s15460_s10 = scalar_lea.hbm %s17326_s2, 32 }
 0x191   : > { %p15461_p13 = scmp.ne.s32.totalorder %s17326_s2, %s15460_s10  ;;  %p15467_p9 = scmp.lt.u32.totalorder %s15460_s10, %s17326_s2 }
 0x193   : > { %p15463_p6 = pnand %p15461_p13, %p15931_p0 }
 0x195   : > { %p15464_p5 = pneg %p15463_p6 }
 0x197   : > { %p15469_p10 = pnand %p15467_p9, %p15464_p5 }
 0x199   : > { %15472 = shalt.err (!%p15469_p10)
}
 0x19a   : > { %s15473_s28 = scalar_lea.vmem %s928_s5, 32  ;;  %p15481_p4 = scmp.lt.s32.totalorder %s928_s5, %s928_s5 }
 0x19b   : > { %p15474_p1 = scmp.ne.s32.totalorder %s928_s5, %s15473_s28  ;;  %p15482_p7 = scmp.lt.s32.totalorder %s15473_s28, %s15473_s28 }
 0x19d   : > { %p15476_p2 = pnand %p15474_p1, %p15931_p0  ;;  %p15483_p8 = por %p15482_p7, %p15481_p4 }
 0x19f   : > { %p15477_p3 = pneg %p15476_p2 }
 0x1a1   : > { %p15484_p11 = pnand %p15483_p8, %p15477_p3 }
 0x1a3   : > { %15487 = shalt.err (!%p15484_p11)
}
 0x1a4   : > { %s17327_s22 = sld [smem:[#allocation51_spill]] }
 0x1a5   : > { %13584 = dma.hbm_to_vmem [thread:$0]  (!%p15919_p12), %s17326_s2, 32, %s928_s5, [#allocation21]  }
 0x1aa   : > { %s17328_s12 = smov %s17327_s22  ;;  %s15488_s4 = scalar_lea.hbm %s17327_s22, 16 }
 0x1ab   : > { %p15489_p13 = scmp.ne.s32.totalorder %s17328_s12, %s15488_s4  ;;  %p15495_p9 = scmp.lt.u32.totalorder %s15488_s4, %s17328_s12 }
 0x1ad   : > { %p15491_p6 = pnand %p15489_p13, %p15931_p0 }
 0x1af   : > { %p15492_p5 = pneg %p15491_p6 }
 0x1b1   : > { %p15497_p10 = pnand %p15495_p9, %p15492_p5 }
 0x1b3   : > { %15500 = shalt.err (!%p15497_p10)
}
 0x1b4   : > { %s15501_s15 = scalar_lea.vmem %s16150_s26, 16  ;;  %s15508_s18 = scalar_lea.vmem %s16150_s26, 32 }
 0x1b5   : > { %p15502_p1 = scmp.ne.s32.totalorder %s16150_s26, %s15501_s15  ;;  %p15509_p4 = scmp.lt.s32.totalorder %s16150_s26, %s16150_s26 }
 0x1b6   : > { %p15510_p7 = scmp.lt.s32.totalorder %s15508_s18, %s15501_s15 }
 0x1b7   : > { %p15504_p2 = pnand %p15502_p1, %p15931_p0 }
 0x1b8   : > { %p15511_p8 = por %p15510_p7, %p15509_p4 }
 0x1b9   : > { %p15505_p3 = pneg %p15504_p2 }
 0x1bb   : > { %p15512_p11 = pnand %p15511_p8, %p15505_p3 }
 0x1bd   : > { %15515 = shalt.err (!%p15512_p11)
}
 0x1be   : > { %13590 = dma.hbm_to_vmem [thread:$0]  (!%p15919_p12), %s17328_s12, 16, %s16150_s26, [#allocation24]  }
 0x1bf   : > { %s15694_s5 = smov [#allocation28]   ;;  %s15516_s10 = scalar_lea.hbm %s15843_s29, 16 }
 0x1c0   : > { %s988_s3 = sshll.u32 %s15694_s5, 4  ;;  %p15517_p13 = scmp.ne.s32.totalorder %s15843_s29, %s15516_s10  ;;  %s989_s3 = int_to_ptr.vmem [resolvable:$true] %s988_s3 }
 0x1c1   : > { %p15523_p9 = scmp.lt.u32.totalorder %s15516_s10, %s15843_s29 }
 0x1c2   : > { %p15519_p6 = pnand %p15517_p13, %p15931_p0 }
 0x1c4   : > { %p15520_p5 = pneg %p15519_p6 }
 0x1c6   : > { %p15525_p10 = pnand %p15523_p9, %p15520_p5 }
 0x1c8   : > { %15528 = shalt.err (!%p15525_p10)
}
 0x1c9   : > { %s15529_s28 = scalar_lea.vmem %s989_s3, 16  ;;  %s15536_s22 = scalar_lea.vmem %s989_s3, 32 }
 0x1ca   : > { %p15530_p1 = scmp.ne.s32.totalorder %s989_s3, %s15529_s28  ;;  %p15537_p4 = scmp.lt.s32.totalorder %s989_s3, %s989_s3 }
 0x1cb   : > { %p15538_p7 = scmp.lt.s32.totalorder %s15536_s22, %s15529_s28 }
 0x1cc   : > { %p15532_p2 = pnand %p15530_p1, %p15931_p0 }
 0x1cd   : > { %p15539_p8 = por %p15538_p7, %p15537_p4 }
 0x1ce   : > { %p15533_p3 = pneg %p15532_p2 }
 0x1d0   : > { %p15540_p11 = pnand %p15539_p8, %p15533_p3 }
 0x1d2   : > { %15543 = shalt.err (!%p15540_p11)
}
 0x1d3   : > { %13596 = dma.hbm_to_vmem [thread:$0]  (!%p15919_p12), %s15843_s29, 16, %s989_s3, [#allocation27]  }
 0x1d4   : > { %p17329_p13 = scmp.ne.s32.totalorder %s17319_s11, 0 }
 0x1d5   : > { %p17330_p6 = scmp.eq.s32.totalorder (!%p17329_p13), %s15881_s0, 0 }
 0x1d6   : > { %1015 = sbr.rel (%p17329_p13) target bundleno = 7952 (0x1f10), region = 140 }
 0x1dd   : > { %15589 = dma.done.wait (%p17330_p6), [#allocation3], 15360   ;;  %p17331_p5 = pmov %p17330_p6 }
 0x1df   : > { %15591 = vsyncadd (%p17331_p5), [#allocation3], 4294951936  ;;  %p17332_p0 = pmov %p17331_p5 }
 0x1e1   : > { %15593 = dma.done.wait (%p17332_p0), [#allocation6], 13056   ;;  %p17333_p9 = pmov %p17332_p0 }
 0x1e2   : > { %p17334_p10 = pmov %p17332_p0 }
 0x1e3   : > { %15595 = vsyncadd (%p17333_p9), [#allocation6], 4294954240 }
 0x1e4   : > { %15597 = dma.done.wait (%p17334_p10), [#allocation9], 13056   ;;  %p17335_p12 = pmov %p17332_p0 }
 0x1e5   : > { %p17336_p1 = pmov %p17332_p0 }
 0x1e6   : > { %15599 = vsyncadd (%p17335_p12), [#allocation9], 4294954240 }
 0x1e7   : > { %15601 = dma.done.wait (%p17336_p1), [#allocation12], 672   ;;  %p17337_p2 = pmov %p17332_p0 }
 0x1e8   : > { %p17338_p3 = pmov %p17332_p0 }
 0x1e9   : > { %15603 = vsyncadd (%p17337_p2), [#allocation12], 4294966624 }
 0x1ea   : > { %15605 = dma.done.wait (%p17338_p3), [#allocation15], 352   ;;  %p17339_p4 = pmov %p17332_p0 }
 0x1eb   : > { %p17340_p7 = pmov %p17332_p0 }
 0x1ec   : > { %15607 = vsyncadd (%p17339_p4), [#allocation15], 4294966944 }
 0x1ed   : > { %15609 = dma.done.wait (%p17340_p7), [#allocation18], 20512   ;;  %p17341_p8 = pmov %p17332_p0 }
 0x1ee   : > { %p17342_p11 = pmov %p17332_p0 }
 0x1ef   : > { %15611 = vsyncadd (%p17341_p8), [#allocation18], 4294946784 }
 0x1f0   : > { %15613 = dma.done.wait (%p17342_p11), [#allocation21], 20512   ;;  %p17343_p13 = pmov %p17332_p0 }
 0x1f1   : > { %p17344_p6 = pmov %p17332_p0 }
 0x1f2   : > { %15615 = vsyncadd (%p17343_p13), [#allocation21], 4294946784 }
 0x1f3   : > { %15617 = dma.done.wait (%p17344_p6), [#allocation24], 10256   ;;  %p17345_p5 = pmov %p17332_p0 }
 0x1f5   : > { %15619 = vsyncadd (%p17345_p5), [#allocation24], 4294957040 }
 0x1f6   : > { %15621 = dma.done.wait (%p17332_p0), [#allocation27], 32   ;;  %p17346_p9 = pmov %p17332_p0 }
 0x1f7   : > { %s17347_s11 = sld [smem:[#allocation40_spill]]  ;;  %p1156_p10 = scmp.lt.s32.totalorder %s15881_s0, 1  ;;  %v15695_v0 = vmov 0   ;;  %vm1200_vm0 = vcmask 523264   ;;  %v13732_v29 = vld [vmem:[#allocation2 + $0xc4] ss:$8 sps:$4 sm:$0xff]  }
 0x1f8   : > { %15623 = vsyncadd (%p17346_p9), [#allocation27], 4294967264  ;;  %1239 = vmatprep.mubr.bf16.mxu0 %v15695_v0  ;;  %1802 = vmatprep.mubr.bf16.mxu1 %v15695_v0  ;;  %s17348_s4 = sld [smem:[#allocation41_spill]]  ;;  %v13730_v32 = vld [vmem:[#allocation2 + $0xc0] ss:$8 sps:$4 sm:$0xff]   ;;  %s17349_s15 = sld [smem:[#allocation42_spill]] }
 0x1f9   : > { %s1157_s1 = scalar_select %p1156_p10, %s15881_s0, 1  ;;  %v13735_v33 = vld [vmem:[#allocation2 + $0xd4] ss:$8 sps:$4 sm:$0xff]   ;;  %v13733_v34 = vld [vmem:[#allocation2 + $0xd0] ss:$8 sps:$4 sm:$0xff]   ;;  %vm2681_vm9 = vcmask 261120  }
 0x1fa   : > { %v13738_v35 = vld [vmem:[#allocation2 + $0xe4] ss:$8 sps:$4 sm:$0xff]   ;;  %v13736_v38 = vld [vmem:[#allocation2 + $0xe0] ss:$8 sps:$4 sm:$0xff]   ;;  %v13742_v39 = vld [vmem:[#allocation2 + $0xf4] ss:$8 sps:$4 sm:$0xff]  }
 0x1fb   : > { %s12907_s23 = sshll.u32 %s1157_s1, 7  ;;  %v13740_v40 = vld [vmem:[#allocation2 + $0xf0] ss:$8 sps:$4 sm:$0xff]   ;;  %v13745_v41 = vld [vmem:[#allocation2 + $0x104] ss:$8 sps:$4 sm:$0xff]   ;;  %s17350_s18 = sld [smem:[#allocation43_spill]] }
 0x1fc   : > { %v13743_v43 = vld [vmem:[#allocation2 + $0x100] ss:$8 sps:$4 sm:$0xff]   ;;  %v13749_v44 = vld [vmem:[#allocation2 + $0x114] ss:$8 sps:$4 sm:$0xff]   ;;  %v13747_v45 = vld [vmem:[#allocation2 + $0x110] ss:$8 sps:$4 sm:$0xff]  }
 0x1fd   : > { %s16231_s26 = scalar_lea.vmem %s17347_s11, %s12907_s23  ;;  %v13752_v46 = vld [vmem:[#allocation2 + $0x124] ss:$8 sps:$4 sm:$0xff]   ;;  %v13750_v47 = vld [vmem:[#allocation2 + $0x120] ss:$8 sps:$4 sm:$0xff]   ;;  %v13756_v49 = vld [vmem:[#allocation2 + $0x134] ss:$8 sps:$4 sm:$0xff]  }
 0x1fe   : > { %v1163_v1 = vld [vmem:[%s16231_s26 + $0x8] sm:$0xff]  ;;  %v1165_v2 = vld [vmem:[%s16231_s26 + $0x18] sm:$0xff]  ;;  %v1162_v3 = vld [vmem:[%s16231_s26] sm:$0xff]  ;;  %s17351_s5 = sld [smem:[#allocation45_spill]]  ;;  %s17352_s3 = sld [smem:[#allocation47_spill]] }
 0x1ff   : > { %v16236_v4 = vpack.c.bf16 %v1165_v2, %v1163_v1  ;;  %v1164_v5 = vld [vmem:[%s16231_s26 + $0x10] sm:$0xff]  ;;  %v1167_v6 = vld [vmem:[%s16231_s26 + $0x28] sm:$0xff]  ;;  %v1169_v7 = vld [vmem:[%s16231_s26 + $0x38] sm:$0xff]  ;;  %s17353_s10 = sld [smem:[#allocation50_spill]]  ;;  %s17354_s28 = sld [smem:[#allocation53_spill]] }
 0x200   : > { %v16241_v8 = vpack.c.bf16 %v1164_v5, %v1162_v3  ;;  %v16243_v9 = vpack.c.bf16 %v1169_v7, %v1167_v6  ;;  %v1166_v10 = vld [vmem:[%s16231_s26 + $0x20] sm:$0xff]  ;;  %v1168_v11 = vld [vmem:[%s16231_s26 + $0x30] sm:$0xff]  ;;  %v1171_v12 = vld [vmem:[%s16231_s26 + $0x48] sm:$0xff]  ;;  %s17355_s22 = sld [smem:[#allocation52_spill]]  ;;  %s17357_s1 = sld [smem:[#allocation56_spill]] }
 0x201   : > { %1207 = vmatprep.subr.bf16.mxu0 %v16236_v4  ;;  %v1173_v13 = vld [vmem:[%s16231_s26 + $0x58] sm:$0xff]  ;;  %1770 = vmatprep.subr.bf16.mxu1 %v16236_v4  ;;  %v16252_v14 = vpack.c.bf16 %v1168_v11, %v1166_v10  ;;  %v1170_v15 = vld [vmem:[%s16231_s26 + $0x40] sm:$0xff]  ;;  %v1172_v16 = vld [vmem:[%s16231_s26 + $0x50] sm:$0xff]  ;;  %s17358_s23 = sld [smem:[#allocation55_spill]]  ;;  %p17359_p1 = scmp.ne.s32.totalorder %s17316_s7, 0 }
 0x202   : > { %1208 = vmatpush1.bf16.msra.mxu0 %v16241_v8  ;;  %1771 = vmatpush1.bf16.msra.mxu1 %v16241_v8  ;;  %v16258_v17 = vpack.c.bf16 %v1173_v13, %v1171_v12  ;;  %v1175_v18 = vld [vmem:[%s16231_s26 + $0x68] sm:$0xff]  ;;  %v1177_v19 = vld [vmem:[%s16231_s26 + $0x78] sm:$0xff]  ;;  %v16264_v20 = vpack.c.bf16 %v1172_v16, %v1170_v15  ;;  %v1174_v21 = vld [vmem:[%s16231_s26 + $0x60] sm:$0xff] }
 0x203   : > { %1209 = vmatprep.subr.bf16.mxu0 %v16243_v9  ;;  %1772 = vmatprep.subr.bf16.mxu1 %v16243_v9  ;;  %v16269_v22 = vpack.c.bf16 %v1177_v19, %v1175_v18  ;;  %v1176_v23 = vld [vmem:[%s16231_s26 + $0x70] sm:$0xff]  ;;  %v13723_v25 = vld [vmem:[%s17348_s4] sm:$0xff]   ;;  %v13724_v27 = vld [vmem:[%s17348_s4 + $0x8] sm:$0xff]   ;;  %s1154_s26 = sand.u32 1, %s15634_s16  }
 0x204   : > { %v16274_v24 = vpack.c.bf16 %v1176_v23, %v1174_v21  ;;  %v13727_v26 = vld [vmem:[%s17348_s4 + $0x20] sm:$0xff]   ;;  %v13728_v28 = vld [vmem:[%s17348_s4 + $0x28] sm:$0xff]   ;;  %v13725_v30 = vld [vmem:[%s17348_s4 + $0x10] sm:$0xff]   ;;  %s11349_s2 = scalar_lea.sflag [#allocation4], %s1154_s26 }
 0x205   : > { %v13729_v31 = vld [vmem:[%s17348_s4 + $0x30] sm:$0xff]   ;;  %v13726_v36 = vld [vmem:[%s17348_s4 + $0x18] sm:$0xff]   ;;  %v13746_v42 = vld [vmem:[%s17348_s4 + $0x40] sm:$0xff]  }
 0x206   : > { %1210 = vmatpush1.bf16.msra.mxu0 %v16252_v14  ;;  %1773 = vmatpush1.bf16.msra.mxu1 %v16252_v14  ;;  %v13739_v37 = vld [vmem:[%s17348_s4 + $0x38] sm:$0xff]   ;;  %v13753_v48 = vld [vmem:[%s17348_s4 + $0x48] sm:$0xff]   ;;  %s17356_s11 = smov %s17355_s22 }
 0x207   : > { %1211 = vmatprep.subr.bf16.mxu0 %v16258_v17  ;;  %1774 = vmatprep.subr.bf16.mxu1 %v16258_v17  ;;  %v13754_v50 = vld [vmem:[#allocation2 + $0x130] ss:$8 sps:$4 sm:$0xff]   ;;  %v13757_v51 = vld [vmem:[#allocation2 + $0x140] ss:$8 sps:$4 sm:$0xff]   ;;  %v13759_v52 = vld [vmem:[#allocation2 + $0x144] ss:$8 sps:$4 sm:$0xff]  }
 0x208   : > { %v13762_v53 = vld [vmem:[#allocation2 + $0x154] ss:$8 sps:$4 sm:$0xff]   ;;  %v13760_v54 = vld [vmem:[#allocation2 + $0x150] ss:$8 sps:$4 sm:$0xff]   ;;  %v13763_v55 = vld [vmem:[#allocation2 + $0x160] ss:$8 sps:$4 sm:$0xff]  }
 0x209   : > { %v13765_v56 = vld [vmem:[#allocation2 + $0x164] ss:$8 sps:$4 sm:$0xff]   ;;  %v13768_v57 = vld [vmem:[#allocation2 + $0x174] ss:$8 sps:$4 sm:$0xff]   ;;  %v13766_v58 = vld [vmem:[#allocation2 + $0x170] ss:$8 sps:$4 sm:$0xff]  }
 0x20a   : > { %1212 = vmatpush1.bf16.msra.mxu0 %v16264_v20  ;;  %1775 = vmatpush1.bf16.msra.mxu1 %v16264_v20  ;;  %v13771_v59 = vld [vmem:[#allocation2 + $0x4] ss:$8 sps:$4 sm:$0xff]   ;;  %v13769_v21 = vld [vmem:[#allocation2] ss:$8 sps:$4 sm:$0xff]  }
 0x20b   : > { %1213 = vmatprep.subr.bf16.mxu0 %v16269_v22  ;;  %1776 = vmatprep.subr.bf16.mxu1 %v16269_v22 }
 0x20e   : > { %1214 = vmatpush1.bf16.msra.mxu0 %v16274_v24  ;;  %1777 = vmatpush1.bf16.msra.mxu1 %v16274_v24 }
 0x20f   : > { %1309 = vmatprep.subr.bf16.mxu0 %v16236_v4  ;;  %2060 = vmatprep.subr.bf16.mxu1 %v16236_v4 }
 0x211   : > { %11652 = vmatmul.mubr.msk.bf16.vlgmr.msra.gmra.mrb[0].mxu0 %vm1200_vm0, %v13723_v25  ;;  %11720 = vmatmul.mubr.msk.bf16.vlgmr.msra.gmra.mrb[0].mxu1 %vm1200_vm0, %v13727_v26 }
 0x212   : > { %1310 = vmatpush1.bf16.msra.mxu0 %v16241_v8  ;;  %1249 = vmatprep.mubr.bf16.mxu0 %v15695_v0 }
 0x213   : > { %1311 = vmatprep.subr.bf16.mxu0 %v16243_v9  ;;  %2061 = vmatpush1.bf16.msra.mxu1 %v16241_v8 }
 0x214   : > { %2062 = vmatprep.subr.bf16.mxu1 %v16243_v9  ;;  %1812 = vmatprep.mubr.bf16.mxu1 %v15695_v0 }
 0x216   : > { %1312 = vmatpush1.bf16.msra.mxu0 %v16252_v14 }
 0x217   : > { %1313 = vmatprep.subr.bf16.mxu0 %v16258_v17  ;;  %2063 = vmatpush1.bf16.msra.mxu1 %v16252_v14 }
 0x218   : > { %2064 = vmatprep.subr.bf16.mxu1 %v16258_v17 }
 0x219   : > { %11653 = vmatmul.mubr.msk.bf16.gmra.mrb[4].mxu0 %vm1200_vm0, %v13724_v27  ;;  %11721 = vmatmul.mubr.msk.bf16.gmra.mrb[4].mxu1 %vm1200_vm0, %v13728_v28 }
 0x21a   : > { %1314 = vmatpush1.bf16.msra.mxu0 %v16264_v20  ;;  %1341 = vmatprep.mubr.bf16.mxu0 %v15695_v0 }
 0x21b   : > { %1315 = vmatprep.subr.bf16.mxu0 %v16269_v22  ;;  %2065 = vmatpush1.bf16.msra.mxu1 %v16264_v20 }
 0x21c   : > { %2066 = vmatprep.subr.bf16.mxu1 %v16269_v22  ;;  %2092 = vmatprep.mubr.bf16.mxu1 %v15695_v0 }
 0x21e   : > { %1316 = vmatpush1.bf16.msra.mxu0 %v16274_v24 }
 0x21f   : > { %2067 = vmatpush1.bf16.msra.mxu1 %v16274_v24  ;;  %1517 = vmatprep.subr.bf16.mxu0 %v13732_v29  ;;  %v13772_v29 = vld [vmem:[#allocation2 + $0x10] ss:$8 sps:$4 sm:$0xff]  }
 0x220   : > { %2350 = vmatprep.subr.bf16.mxu1 %v16236_v4 }
 0x221   : > { %11660 = vmatmul.mubr.msk.bf16.vlgmr.msra.gmra.mrb[8].mxu0 %vm1200_vm0, %v13725_v30  ;;  %v13777_v30 = vld [vmem:[#allocation2 + $0x24] ss:$8 sps:$4 sm:$0xff]  }
 0x222   : > { %1351 = vmatprep.mubr.bf16.mxu0 %v15695_v0  ;;  %11754 = vmatmul.mubr.msk.bf16.vlgmr.msra.gmra.mrb[8].mxu1 %vm1200_vm0, %v13729_v31 }
 0x223   : > { %1518 = vmatpush1.bf16.msra.mxu0 %v13730_v32  ;;  %2351 = vmatpush1.bf16.msra.mxu1 %v16241_v8 }
 0x224   : > { %1519 = vmatprep.subr.bf16.mxu0 %v13735_v33  ;;  %2352 = vmatprep.subr.bf16.mxu1 %v16243_v9 }
 0x225   : > { %2102 = vmatprep.mubr.bf16.mxu1 %v15695_v0 }
 0x227   : > { %1520 = vmatpush1.bf16.msra.mxu0 %v13733_v34  ;;  %2353 = vmatpush1.bf16.msra.mxu1 %v16252_v14 }
 0x228   : > { %1521 = vmatprep.subr.bf16.mxu0 %v13738_v35  ;;  %2354 = vmatprep.subr.bf16.mxu1 %v16258_v17 }
 0x229   : > { %11661 = vmatmul.mubr.msk.bf16.gmra.mrb[12].mxu0 %vm1200_vm0, %v13726_v36 }
 0x22a   : > { %11755 = vmatmul.mubr.msk.bf16.gmra.mrb[12].mxu1 %vm1200_vm0, %v13739_v37  ;;  %v13775_v37 = vld [vmem:[#allocation2 + $0x20] ss:$8 sps:$4 sm:$0xff]  }
 0x22b   : > { %1522 = vmatpush1.bf16.msra.mxu0 %v13736_v38  ;;  %2355 = vmatpush1.bf16.msra.mxu1 %v16264_v20  ;;  %v13780_v38 = vld [vmem:[#allocation2 + $0x34] ss:$8 sps:$4 sm:$0xff]  }
 0x22c   : > { %1523 = vmatprep.subr.bf16.mxu0 %v13742_v39  ;;  %2356 = vmatprep.subr.bf16.mxu1 %v16269_v22  ;;  %v13774_v22 = vld [vmem:[#allocation2 + $0x14] ss:$8 sps:$4 sm:$0xff]  }
 0x22d   : > { %2382 = vmatprep.mubr.bf16.mxu1 %v15695_v0 }
 0x22f   : > { %1524 = vmatpush1.bf16.msra.mxu0 %v13740_v40  ;;  %2357 = vmatpush1.bf16.msra.mxu1 %v16274_v24 }
 0x230   : > { %1525 = vmatprep.subr.bf16.mxu0 %v13745_v41 }
 0x232   : > { %11788 = vmatmul.mubr.msk.bf16.vlgmr.msra.gmra.mrb[16].mxu1 %vm1200_vm0, %v13746_v42 }
 0x233   : > { %1526 = vmatpush1.bf16.msra.mxu0 %v13743_v43  ;;  %2392 = vmatprep.mubr.bf16.mxu1 %v15695_v0  ;;  %v13778_v43 = vld [vmem:[#allocation2 + $0x30] ss:$8 sps:$4 sm:$0xff]  }
 0x234   : > { %1527 = vmatprep.subr.bf16.mxu0 %v13749_v44  ;;  %v13783_v44 = vld [vmem:[#allocation2 + $0x44] ss:$8 sps:$4 sm:$0xff]  }
 0x237   : > { %1528 = vmatpush1.bf16.msra.mxu0 %v13747_v45 }
 0x238   : > { %1529 = vmatprep.subr.bf16.mxu0 %v13752_v46 }
 0x23a   : > { %11789 = vmatmul.mubr.msk.bf16.gmra.mrb[20].mxu1 %vm1200_vm0, %v13753_v48  ;;  %v13786_v48 = vld [vmem:[#allocation2 + $0x54] ss:$8 sps:$4 sm:$0xff]  }
 0x23b   : > { %1530 = vmatpush1.bf16.msra.mxu0 %v13750_v47  ;;  %2720 = vmatprep.mubr.bf16.mxu1 %v15695_v0  ;;  %v13781_v47 = vld [vmem:[#allocation2 + $0x40] ss:$8 sps:$4 sm:$0xff]  }
 0x23c   : > { %1531 = vmatprep.subr.bf16.mxu0 %v13756_v49  ;;  %v13784_v49 = vld [vmem:[#allocation2 + $0x50] ss:$8 sps:$4 sm:$0xff]  }
 0x23f   : > { %1532 = vmatpush1.bf16.msra.mxu0 %v13754_v50  ;;  %v13789_v50 = vld [vmem:[#allocation2 + $0x64] ss:$8 sps:$4 sm:$0xff]  }
 0x240   : > { %1533 = vmatprep.subr.bf16.mxu0 %v13759_v52  ;;  %v13792_v52 = vld [vmem:[#allocation2 + $0x74] ss:$8 sps:$4 sm:$0xff]  }
 0x243   : > { %1534 = vmatpush1.bf16.msra.mxu0 %v13757_v51  ;;  %v13787_v51 = vld [vmem:[#allocation2 + $0x60] ss:$8 sps:$4 sm:$0xff]  }
 0x244   : > { %1535 = vmatprep.subr.bf16.mxu0 %v13762_v53  ;;  %v13790_v53 = vld [vmem:[#allocation2 + $0x70] ss:$8 sps:$4 sm:$0xff]  }
 0x247   : > { %1536 = vmatpush1.bf16.msra.mxu0 %v13760_v54  ;;  %v13795_v54 = vld [vmem:[#allocation2 + $0x84] ss:$8 sps:$4 sm:$0xff]  }
 0x248   : > { %1537 = vmatprep.subr.bf16.mxu0 %v13765_v56  ;;  %v13798_v56 = vld [vmem:[#allocation2 + $0x94] ss:$8 sps:$4 sm:$0xff]  }
 0x24b   : > { %1538 = vmatpush1.bf16.msra.mxu0 %v13763_v55  ;;  %v13793_v55 = vld [vmem:[#allocation2 + $0x80] ss:$8 sps:$4 sm:$0xff]  }
 0x24c   : > { %1539 = vmatprep.subr.bf16.mxu0 %v13768_v57  ;;  %v13796_v57 = vld [vmem:[#allocation2 + $0x90] ss:$8 sps:$4 sm:$0xff]  }
 0x24f   : > { %1540 = vmatpush1.bf16.msra.mxu0 %v13766_v58  ;;  %v13801_v58 = vld [vmem:[#allocation2 + $0xa4] ss:$8 sps:$4 sm:$0xff]  }
 0x250   : > { %1696 = vmatprep.subr.bf16.mxu0 %v13771_v59  ;;  %v13799_v59 = vld [vmem:[#allocation2 + $0xa0] ss:$8 sps:$4 sm:$0xff]  }
 0x2e4   : > { %v16334_v60 = vpop.f32.mrb[0].mxu0  ;;  %v16336_v61 = vpop.f32.mrb[0].mxu1 }
 0x2e5   : > { %v1243_v62 = vpop.f32.mrb[1].mxu0  ;;  %v16338_v63 = vpop.f32.mrb[1].mxu1 }
 0x2e6   : > { %v16340_v1 = vpop.f32.mrb[2].mxu0  ;;  %v16342_v2 = vpop.f32.mrb[2].mxu1 }
 0x2e7   : > { %v1260_v3 = vpack.c.bf16 %v16340_v1, %v16334_v60  ;;  %v1247_v4 = vpop.f32.mrb[3].mxu0  ;;  %v1823_v5 = vpack.c.bf16 %v16342_v2, %v16336_v61  ;;  %v16348_v6 = vpop.f32.mrb[3].mxu1  ;;  %v13853_v61 = vld [vmem:[#allocation2 + $0x280] ss:$8 sps:$4 sm:$0xff]   ;;  %v13858_v2 = vld [vmem:[#allocation2 + $0x294] ss:$8 sps:$4 sm:$0xff]  }
 0x2e8   : > { %v1261_v7 = vpack.c.bf16 %v1247_v4, %v1243_v62  ;;  %v1824_v8 = vpack.c.bf16 %v16348_v6, %v16338_v63  ;;  %v13804_v62 = vld [vmem:[#allocation2 + $0xb4] ss:$8 sps:$4 sm:$0xff]   ;;  %v13802_v4 = vld [vmem:[#allocation2 + $0xb0] ss:$8 sps:$4 sm:$0xff]  }
 0x2ec   : > { %v16352_v9 = vpop.f32.mrb[4].mxu0  ;;  %v16364_v23 = vpop.f32.mrb[4].mxu1 }
 0x2ed   : > { %v16354_v10 = vpop.f32.mrb[5].mxu0  ;;  %v16366_v24 = vpop.f32.mrb[5].mxu1 }
 0x2ee   : > { %v16356_v11 = vpop.f32.mrb[6].mxu0  ;;  %v16369_v25 = vpop.f32.mrb[6].mxu1 }
 0x2ef   : > { %v1262_v12 = vpack.c.bf16 %v16356_v11, %v16352_v9  ;;  %v16360_v13 = vpop.f32.mrb[7].mxu0  ;;  %v1825_v26 = vpack.c.bf16 %v16369_v25, %v16364_v23  ;;  %v16373_v27 = vpop.f32.mrb[7].mxu1  ;;  %v13822_v9 = vld [vmem:[#allocation2 + $0x1d4] ss:$8 sps:$4 sm:$0xff]   ;;  %v13862_v23 = vld [vmem:[#allocation2 + $0x2b0] ss:$8 sps:$4 sm:$0xff]  }
 0x2f0   : > { %v1263_v14 = vpack.c.bf16 %v16360_v13, %v16354_v10  ;;  %v1826_v31 = vpack.c.bf16 %v16373_v27, %v16366_v24  ;;  %v13814_v13 = vld [vmem:[#allocation2 + $0x1b0] ss:$8 sps:$4 sm:$0xff]   ;;  %v13861_v24 = vld [vmem:[#allocation2 + $0x2a4] ss:$8 sps:$4 sm:$0xff]   ;;  %v13859_v27 = vld [vmem:[#allocation2 + $0x2a0] ss:$8 sps:$4 sm:$0xff]  }
 0x2f1   : > { %v13867_v25 = vld [vmem:[#allocation2 + $0x2c4] ss:$8 sps:$4 sm:$0xff]  }
 0x2f4   : > { %v1343_v15 = vpop.f32.mrb[8].mxu0 }
 0x2f5   : > { %v1345_v16 = vpop.f32.mrb[9].mxu0  ;;  %v16377_v39 = vpop.f32.mrb[8].mxu1 }
 0x2f6   : > { %v1347_v17 = vpop.f32.mrb[10].mxu0  ;;  %v16379_v40 = vpop.f32.mrb[9].mxu1 }
 0x2f7   : > { %v1362_v18 = vpack.c.bf16 %v1347_v17, %v1343_v15  ;;  %v1349_v19 = vpop.f32.mrb[11].mxu0  ;;  %v16382_v41 = vpop.f32.mrb[10].mxu1  ;;  %v13810_v17 = vld [vmem:[#allocation2 + $0x194] ss:$8 sps:$4 sm:$0xff]  }
 0x2f8   : > { %v1363_v20 = vpack.c.bf16 %v1349_v19, %v1345_v16  ;;  %v2113_v42 = vpack.c.bf16 %v16382_v41, %v16377_v39  ;;  %v16387_v45 = vpop.f32.mrb[11].mxu1  ;;  %v13805_v16 = vld [vmem:[#allocation2 + $0x180] ss:$8 sps:$4 sm:$0xff]   ;;  %v13894_v41 = vld [vmem:[#allocation2 + $0x354] ss:$8 sps:$4 sm:$0xff]  }
 0x2f9   : > { %v2114_v46 = vpack.c.bf16 %v16387_v45, %v16379_v40  ;;  %v13870_v40 = vld [vmem:[#allocation2 + $0x2d4] ss:$8 sps:$4 sm:$0xff]   ;;  %v13868_v45 = vld [vmem:[#allocation2 + $0x2d0] ss:$8 sps:$4 sm:$0xff]   ;;  %v13889_v39 = vld [vmem:[#allocation2 + $0x340] ss:$8 sps:$4 sm:$0xff]  }
 0x2fa   : > { %11686 = vmatprep.mubr.msk.bf16.mxu0 %vm1200_vm0, %v1363_v20 }
 0x2fb   : > { %1550 = vmatmul.mubr.bf16.vlgmr.msra.gmra.mrb[16].mxu0 %v1362_v18 }
 0x2fc   : > { %1697 = vmatpush1.bf16.msra.mxu0 %v13769_v21  ;;  %v1353_v28 = vpop.f32.mrb[12].mxu0 }
 0x2fd   : > { %v1355_v32 = vpop.f32.mrb[13].mxu0  ;;  %1698 = vmatprep.subr.bf16.mxu0 %v13774_v22  ;;  %v16391_v15 = vpop.f32.mrb[12].mxu1 }
 0x2fe   : > { %v1357_v33 = vpop.f32.mrb[14].mxu0  ;;  %v16393_v18 = vpop.f32.mrb[13].mxu1 }
 0x2ff   : > { %v1364_v34 = vpack.c.bf16 %v1357_v33, %v1353_v28  ;;  %v1359_v35 = vpop.f32.mrb[15].mxu0  ;;  %v16395_v19 = vpop.f32.mrb[14].mxu1  ;;  %v13808_v28 = vld [vmem:[#allocation2 + $0x190] ss:$8 sps:$4 sm:$0xff]  }
 0x300   : > { %v1365_v36 = vpack.c.bf16 %v1359_v35, %v1355_v32  ;;  %1699 = vmatpush1.bf16.msra.mxu0 %v13772_v29  ;;  %v2115_v20 = vpack.c.bf16 %v16395_v19, %v16391_v15  ;;  %v16399_v21 = vpop.f32.mrb[15].mxu1  ;;  %v13813_v29 = vld [vmem:[#allocation2 + $0x1a4] ss:$8 sps:$4 sm:$0xff]   ;;  %v13816_v32 = vld [vmem:[#allocation2 + $0x1b4] ss:$8 sps:$4 sm:$0xff]  }
 0x301   : > { %1700 = vmatprep.subr.bf16.mxu0 %v13777_v30  ;;  %v2116_v22 = vpack.c.bf16 %v16399_v21, %v16393_v18  ;;  %v13811_v30 = vld [vmem:[#allocation2 + $0x1a0] ss:$8 sps:$4 sm:$0xff]   ;;  %v13897_v18 = vld [vmem:[#allocation2 + $0x364] ss:$8 sps:$4 sm:$0xff]   ;;  %v13900_v15 = vld [vmem:[#allocation2 + $0x374] ss:$8 sps:$4 sm:$0xff]  }
 0x302   : > { %11687 = vmatprep.mubr.msk.bf16.mxu0 %vm1200_vm0, %v1365_v36  ;;  %v13817_v35 = vld [vmem:[#allocation2 + $0x1c0] ss:$8 sps:$4 sm:$0xff]   ;;  %v13820_v36 = vld [vmem:[#allocation2 + $0x1d0] ss:$8 sps:$4 sm:$0xff]  }
 0x303   : > { %1560 = vmatmul.mubr.bf16.gmra.mrb[20].mxu0 %v1364_v34  ;;  %v13895_v21 = vld [vmem:[#allocation2 + $0x360] ss:$8 sps:$4 sm:$0xff]   ;;  %v13898_v19 = vld [vmem:[#allocation2 + $0x370] ss:$8 sps:$4 sm:$0xff]  }
 0x304   : > { %1701 = vmatpush1.bf16.msra.mxu0 %v13775_v37  ;;  %11712 = vmatprep.mubr.msk.bf16.mxu0 %vm1200_vm0, %v1261_v7  ;;  %v13807_v7 = vld [vmem:[#allocation2 + $0x184] ss:$8 sps:$4 sm:$0xff]  }
 0x305   : > { %1702 = vmatprep.subr.bf16.mxu0 %v13780_v38  ;;  %v16410_v33 = vpop.f32.mrb[16].mxu1  ;;  %v13825_v38 = vld [vmem:[#allocation2 + $0x1e4] ss:$8 sps:$4 sm:$0xff]  }
 0x306   : > { %v16412_v60 = vpop.f32.mrb[17].mxu1 }
 0x307   : > { %v16414_v1 = vpop.f32.mrb[18].mxu1 }
 0x308   : > { %1703 = vmatpush1.bf16.msra.mxu0 %v13778_v43  ;;  %v16421_v10 = vpop.f32.mrb[19].mxu1  ;;  %v13823_v43 = vld [vmem:[#allocation2 + $0x1e0] ss:$8 sps:$4 sm:$0xff]  }
 0x309   : > { %1704 = vmatprep.subr.bf16.mxu0 %v13783_v44  ;;  %v2404_v34 = vpack.c.bf16 %v16421_v10, %v16412_v60  ;;  %v13828_v44 = vld [vmem:[#allocation2 + $0x1f4] ss:$8 sps:$4 sm:$0xff]   ;;  %v13904_v10 = vld [vmem:[#allocation2 + $0x390] ss:$8 sps:$4 sm:$0xff]  }
 0x30a   : > { %v13906_v60 = vld [vmem:[#allocation2 + $0x394] ss:$8 sps:$4 sm:$0xff]  }
 0x30c   : > { %1705 = vmatpush1.bf16.msra.mxu0 %v13781_v47  ;;  %v13826_v47 = vld [vmem:[#allocation2 + $0x1f0] ss:$8 sps:$4 sm:$0xff]  }
 0x30d   : > { %1706 = vmatprep.subr.bf16.mxu0 %v13786_v48  ;;  %v16429_v11 = vpop.f32.mrb[20].mxu1  ;;  %v13831_v48 = vld [vmem:[#allocation2 + $0x204] ss:$8 sps:$4 sm:$0xff]  }
 0x310   : > { %1707 = vmatpush1.bf16.msra.mxu0 %v13784_v49  ;;  %v13829_v49 = vld [vmem:[#allocation2 + $0x200] ss:$8 sps:$4 sm:$0xff]  }
 0x311   : > { %1708 = vmatprep.subr.bf16.mxu0 %v13789_v50  ;;  %v13834_v50 = vld [vmem:[#allocation2 + $0x214] ss:$8 sps:$4 sm:$0xff]  }
 0x314   : > { %1709 = vmatpush1.bf16.msra.mxu0 %v13787_v51  ;;  %v13832_v51 = vld [vmem:[#allocation2 + $0x210] ss:$8 sps:$4 sm:$0xff]  }
 0x315   : > { %1710 = vmatprep.subr.bf16.mxu0 %v13792_v52  ;;  %v13837_v52 = vld [vmem:[#allocation2 + $0x224] ss:$8 sps:$4 sm:$0xff]  }
 0x318   : > { %1711 = vmatpush1.bf16.msra.mxu0 %v13790_v53  ;;  %v13835_v53 = vld [vmem:[#allocation2 + $0x220] ss:$8 sps:$4 sm:$0xff]  }
 0x319   : > { %1712 = vmatprep.subr.bf16.mxu0 %v13795_v54  ;;  %v13840_v54 = vld [vmem:[#allocation2 + $0x234] ss:$8 sps:$4 sm:$0xff]  }
 0x31c   : > { %1713 = vmatpush1.bf16.msra.mxu0 %v13793_v55  ;;  %v13838_v55 = vld [vmem:[#allocation2 + $0x230] ss:$8 sps:$4 sm:$0xff]  }
 0x31d   : > { %1714 = vmatprep.subr.bf16.mxu0 %v13798_v56  ;;  %v13843_v56 = vld [vmem:[#allocation2 + $0x244] ss:$8 sps:$4 sm:$0xff]  }
 0x320   : > { %1715 = vmatpush1.bf16.msra.mxu0 %v13796_v57  ;;  %v13841_v57 = vld [vmem:[#allocation2 + $0x240] ss:$8 sps:$4 sm:$0xff]  }
 0x321   : > { %1716 = vmatprep.subr.bf16.mxu0 %v13801_v58  ;;  %v13846_v58 = vld [vmem:[#allocation2 + $0x254] ss:$8 sps:$4 sm:$0xff]  }
 0x324   : > { %1717 = vmatpush1.bf16.msra.mxu0 %v13799_v59  ;;  %v13844_v59 = vld [vmem:[#allocation2 + $0x250] ss:$8 sps:$4 sm:$0xff]  }
 0x325   : > { %1718 = vmatprep.subr.bf16.mxu0 %v13804_v62  ;;  %v13849_v62 = vld [vmem:[#allocation2 + $0x264] ss:$8 sps:$4 sm:$0xff]  }
 0x328   : > { %1719 = vmatpush1.bf16.msra.mxu0 %v13802_v4  ;;  %v13847_v4 = vld [vmem:[#allocation2 + $0x260] ss:$8 sps:$4 sm:$0xff]  }
 0x329   : > { %1978 = vmatprep.subr.bf16.mxu0 %v13807_v7  ;;  %v13852_v7 = vld [vmem:[#allocation2 + $0x274] ss:$8 sps:$4 sm:$0xff]  }
 0x32b   : > { %1729 = vmatmul.mubr.bf16.vlgmr.msra.gmra.mrb[16].mxu0 %v1260_v3  ;;  %v2403_v3 = vpack.c.bf16 %v16414_v1, %v16410_v33 }
 0x32c   : > { %11713 = vmatprep.mubr.msk.bf16.mxu0 %vm1200_vm0, %v1263_v14  ;;  %1979 = vmatpush1.bf16.msra.mxu0 %v13805_v16  ;;  %v13819_v14 = vld [vmem:[#allocation2 + $0x1c4] ss:$8 sps:$4 sm:$0xff]   ;;  %v13850_v16 = vld [vmem:[#allocation2 + $0x270] ss:$8 sps:$4 sm:$0xff]  }
 0x32d   : > { %1980 = vmatprep.subr.bf16.mxu0 %v13810_v17  ;;  %v13855_v17 = vld [vmem:[#allocation2 + $0x284] ss:$8 sps:$4 sm:$0xff]  }
 0x330   : > { %1981 = vmatpush1.bf16.msra.mxu0 %v13808_v28  ;;  %v13871_v28 = vld [vmem:[#allocation2 + $0x2e0] ss:$8 sps:$4 sm:$0xff]  }
 0x331   : > { %1982 = vmatprep.subr.bf16.mxu0 %v13813_v29  ;;  %v13876_v29 = vld [vmem:[#allocation2 + $0x2f4] ss:$8 sps:$4 sm:$0xff]  }
 0x333   : > { %1739 = vmatmul.mubr.bf16.gmra.mrb[20].mxu0 %v1262_v12  ;;  %v16431_v12 = vpop.f32.mrb[21].mxu1 }
 0x334   : > { %1983 = vmatpush1.bf16.msra.mxu0 %v13811_v30  ;;  %11746 = vmatprep.mubr.msk.bf16.mxu0 %vm1200_vm0, %v1824_v8  ;;  %v16433_v37 = vpop.f32.mrb[22].mxu1  ;;  %v13874_v30 = vld [vmem:[#allocation2 + $0x2f0] ss:$8 sps:$4 sm:$0xff]  }
 0x335   : > { %1984 = vmatprep.subr.bf16.mxu0 %v13816_v32  ;;  %v2405_v63 = vpack.c.bf16 %v16433_v37, %v16429_v11  ;;  %v16437_v6 = vpop.f32.mrb[23].mxu1  ;;  %v13879_v32 = vld [vmem:[#allocation2 + $0x304] ss:$8 sps:$4 sm:$0xff]  }
 0x336   : > { %v2406_v8 = vpack.c.bf16 %v16437_v6, %v16431_v12 }
 0x338   : > { %1985 = vmatpush1.bf16.msra.mxu0 %v13814_v13  ;;  %v13877_v13 = vld [vmem:[#allocation2 + $0x300] ss:$8 sps:$4 sm:$0xff]  }
 0x339   : > { %1986 = vmatprep.subr.bf16.mxu0 %v13819_v14  ;;  %v13882_v14 = vld [vmem:[#allocation2 + $0x314] ss:$8 sps:$4 sm:$0xff]  }
 0x33c   : > { %1987 = vmatpush1.bf16.msra.mxu0 %v13817_v35  ;;  %v13880_v35 = vld [vmem:[#allocation2 + $0x310] ss:$8 sps:$4 sm:$0xff]  }
 0x33d   : > { %1988 = vmatprep.subr.bf16.mxu0 %v13822_v9  ;;  %v13885_v9 = vld [vmem:[#allocation2 + $0x324] ss:$8 sps:$4 sm:$0xff]  }
 0x340   : > { %1989 = vmatpush1.bf16.msra.mxu0 %v13820_v36  ;;  %v13883_v36 = vld [vmem:[#allocation2 + $0x320] ss:$8 sps:$4 sm:$0xff]  }
 0x341   : > { %1990 = vmatprep.subr.bf16.mxu0 %v13825_v38  ;;  %v13888_v38 = vld [vmem:[#allocation2 + $0x334] ss:$8 sps:$4 sm:$0xff]  }
 0x344   : > { %1991 = vmatpush1.bf16.msra.mxu0 %v13823_v43  ;;  %v13886_v43 = vld [vmem:[#allocation2 + $0x330] ss:$8 sps:$4 sm:$0xff]  }
 0x345   : > { %1992 = vmatprep.subr.bf16.mxu0 %v13828_v44  ;;  %v13891_v44 = vld [vmem:[#allocation2 + $0x344] ss:$8 sps:$4 sm:$0xff]  }
 0x348   : > { %1993 = vmatpush1.bf16.msra.mxu0 %v13826_v47  ;;  %v13907_v47 = vld [vmem:[#allocation2 + $0x3a0] ss:$8 sps:$4 sm:$0xff]  }
 0x349   : > { %1994 = vmatprep.subr.bf16.mxu0 %v13831_v48  ;;  %v13912_v48 = vld [vmem:[#allocation2 + $0x3b4] ss:$8 sps:$4 sm:$0xff]  }
 0x34c   : > { %1995 = vmatpush1.bf16.msra.mxu0 %v13829_v49  ;;  %v13910_v49 = vld [vmem:[#allocation2 + $0x3b0] ss:$8 sps:$4 sm:$0xff]  }
 0x34d   : > { %1996 = vmatprep.subr.bf16.mxu0 %v13834_v50  ;;  %v2621_v50 = vlaneseq }
 0x350   : > { %1997 = vmatpush1.bf16.msra.mxu0 %v13832_v51  ;;  %v2622_v51 = vshrl.u32 %v2621_v50, 7  ;;  %v13943_v50 = vld [vmem:[#allocation7 + $0x184] ss:$8 sps:$4 sm:$0xff]  }
 0x351   : > { %1998 = vmatprep.subr.bf16.mxu0 %v13837_v52 }
 0x352   : > { %v16480_v52 = vsub.s32 0, %v2622_v51 }
 0x354   : > { %1999 = vmatpush1.bf16.msra.mxu0 %v13835_v53  ;;  %v2619_v53 = vld [vmem:[%s17349_s15] sm:$0x3]  ;;  %s12904_s15 = sshll.u32 %s15881_s0, 4  ;;  %s15699_s0 = smov [#allocation29]  }
 0x355   : > { %2000 = vmatprep.subr.bf16.mxu0 %v13840_v54  ;;  %v16483_v54 = vsub.s32 1, %v2622_v51  ;;  %v2624_v33 = vrot.slane %v2619_v53, %v16480_v52  ;;  %v13941_v51 = vld [vmem:[#allocation7 + $0x180] ss:$8 sps:$4 sm:$0xff]   ;;  %s15548_s4 = sshll.u32 %s15699_s0, 4  ;;  %s15549_s4 = int_to_ptr.vmem [resolvable:$false] %s15548_s4 }
 0x357   : > { %v2628_v1 = vrot.slane %v2619_v53, %v16483_v54  ;;  %v13946_v53 = vld [vmem:[#allocation7 + $0x194] ss:$8 sps:$4 sm:$0xff]  }
 0x358   : > { %2001 = vmatpush1.bf16.msra.mxu0 %v13838_v55 }
 0x359   : > { %2268 = vmatprep.subr.bf16.mxu0 %v13843_v56 }
 0x35b   : > { %2011 = vmatmul.mubr.bf16.vlgmr.msra.gmra.mrb[16].mxu0 %v1823_v5  ;;  %v13856_v5 = vld [vmem:[#allocation2 + $0x290] ss:$8 sps:$4 sm:$0xff]  }
 0x35c   : > { %2269 = vmatpush1.bf16.msra.mxu0 %v13841_v57  ;;  %11747 = vmatprep.mubr.msk.bf16.mxu0 %vm1200_vm0, %v1826_v31  ;;  %v13864_v31 = vld [vmem:[#allocation2 + $0x2b4] ss:$8 sps:$4 sm:$0xff]  }
 0x35d   : > { %2270 = vmatprep.subr.bf16.mxu0 %v13846_v58 }
 0x360   : > { %2271 = vmatpush1.bf16.msra.mxu0 %v13844_v59 }
 0x361   : > { %2272 = vmatprep.subr.bf16.mxu0 %v13849_v62 }
 0x363   : > { %2021 = vmatmul.mubr.bf16.gmra.mrb[20].mxu0 %v1825_v26  ;;  %v13865_v26 = vld [vmem:[#allocation2 + $0x2c0] ss:$8 sps:$4 sm:$0xff]  }
 0x364   : > { %2273 = vmatpush1.bf16.msra.mxu0 %v13847_v4  ;;  %11780 = vmatprep.mubr.msk.bf16.mxu0 %vm1200_vm0, %v2114_v46  ;;  %v13873_v46 = vld [vmem:[#allocation2 + $0x2e4] ss:$8 sps:$4 sm:$0xff]  }
 0x365   : > { %2274 = vmatprep.subr.bf16.mxu0 %v13852_v7 }
 0x368   : > { %2275 = vmatpush1.bf16.msra.mxu0 %v13850_v16 }
 0x369   : > { %2276 = vmatprep.subr.bf16.mxu0 %v13855_v17 }
 0x36c   : > { %2277 = vmatpush1.bf16.msra.mxu0 %v13853_v61 }
 0x36d   : > { %2278 = vmatprep.subr.bf16.mxu0 %v13858_v2 }
 0x370   : > { %2279 = vmatpush1.bf16.msra.mxu0 %v13856_v5 }
 0x371   : > { %2280 = vmatprep.subr.bf16.mxu0 %v13861_v24 }
 0x374   : > { %2281 = vmatpush1.bf16.msra.mxu0 %v13859_v27 }
 0x375   : > { %2282 = vmatprep.subr.bf16.mxu0 %v13864_v31 }
 0x378   : > { %2283 = vmatpush1.bf16.msra.mxu0 %v13862_v23 }
 0x379   : > { %2284 = vmatprep.subr.bf16.mxu0 %v13867_v25 }
 0x37c   : > { %2285 = vmatpush1.bf16.msra.mxu0 %v13865_v26 }
 0x37d   : > { %2286 = vmatprep.subr.bf16.mxu0 %v13870_v40 }
 0x380   : > { %2287 = vmatpush1.bf16.msra.mxu0 %v13868_v45 }
 0x381   : > { %2288 = vmatprep.subr.bf16.mxu0 %v13873_v46 }
 0x384   : > { %2289 = vmatpush1.bf16.msra.mxu0 %v13871_v28 }
 0x385   : > { %2290 = vmatprep.subr.bf16.mxu0 %v13876_v29 }
 0x388   : > { %2291 = vmatpush1.bf16.msra.mxu0 %v13874_v30 }
 0x389   : > { %2558 = vmatprep.subr.bf16.mxu0 %v13879_v32 }
 0x38b   : > { %2301 = vmatmul.mubr.bf16.vlgmr.msra.gmra.mrb[16].mxu0 %v2113_v42  ;;  %v13892_v42 = vld [vmem:[#allocation2 + $0x350] ss:$8 sps:$4 sm:$0xff]  }
 0x38c   : > { %2559 = vmatpush1.bf16.msra.mxu0 %v13877_v13  ;;  %11781 = vmatprep.mubr.msk.bf16.mxu0 %vm1200_vm0, %v2116_v22  ;;  %v13901_v22 = vld [vmem:[#allocation2 + $0x380] ss:$8 sps:$4 sm:$0xff]  }
 0x38d   : > { %2560 = vmatprep.subr.bf16.mxu0 %v13882_v14 }
 0x390   : > { %2561 = vmatpush1.bf16.msra.mxu0 %v13880_v35 }
 0x391   : > { %2562 = vmatprep.subr.bf16.mxu0 %v13885_v9  ;;  %v13913_v9 = vld [vmem:[#allocation5] sm:$0xff]  }
 0x393   : > { %2311 = vmatmul.mubr.bf16.gmra.mrb[20].mxu0 %v2115_v20  ;;  %v13903_v20 = vld [vmem:[#allocation2 + $0x384] ss:$8 sps:$4 sm:$0xff]  }
 0x394   : > { %2563 = vmatpush1.bf16.msra.mxu0 %v13883_v36  ;;  %11814 = vmatprep.mubr.msk.bf16.mxu0 %vm1200_vm0, %v2404_v34  ;;  %v13909_v34 = vld [vmem:[#allocation2 + $0x3a4] ss:$8 sps:$4 sm:$0xff]   ;;  %v13919_v36 = vld [vmem:[#allocation7 + $0x104] ss:$8 sps:$4 sm:$0xff]  }
 0x395   : > { %2564 = vmatprep.subr.bf16.mxu0 %v13888_v38  ;;  %v13914_v38 = vld [vmem:[#allocation5 + $0x8] sm:$0xff]  }
 0x398   : > { %2565 = vmatpush1.bf16.msra.mxu0 %v13886_v43  ;;  %v13915_v43 = vld [vmem:[#allocation5 + $0x10] sm:$0xff]  }
 0x399   : > { %2566 = vmatprep.subr.bf16.mxu0 %v13891_v44  ;;  %v13917_v44 = vld [vmem:[#allocation7 + $0x100] ss:$8 sps:$4 sm:$0xff]  }
 0x39c   : > { %2567 = vmatpush1.bf16.msra.mxu0 %v13889_v39  ;;  %v13922_v39 = vld [vmem:[#allocation7 + $0x114] ss:$8 sps:$4 sm:$0xff]  }
 0x39d   : > { %2568 = vmatprep.subr.bf16.mxu0 %v13894_v41  ;;  %v13920_v41 = vld [vmem:[#allocation7 + $0x110] ss:$8 sps:$4 sm:$0xff]  }
 0x3a0   : > { %2569 = vmatpush1.bf16.msra.mxu0 %v13892_v42  ;;  %v13925_v42 = vld [vmem:[#allocation7 + $0x124] ss:$8 sps:$4 sm:$0xff]  }
 0x3a1   : > { %2570 = vmatprep.subr.bf16.mxu0 %v13897_v18  ;;  %v13916_v18 = vld [vmem:[#allocation5 + $0x18] sm:$0xff]  }
 0x3a4   : > { %2571 = vmatpush1.bf16.msra.mxu0 %v13895_v21  ;;  %v13923_v21 = vld [vmem:[#allocation7 + $0x120] ss:$8 sps:$4 sm:$0xff]  }
 0x3a5   : > { %2572 = vmatprep.subr.bf16.mxu0 %v13900_v15  ;;  %v13928_v15 = vld [vmem:[#allocation7 + $0x134] ss:$8 sps:$4 sm:$0xff]  }
 0x3a8   : > { %2573 = vmatpush1.bf16.msra.mxu0 %v13898_v19  ;;  %v13926_v19 = vld [vmem:[#allocation7 + $0x130] ss:$8 sps:$4 sm:$0xff]  }
 0x3a9   : > { %2574 = vmatprep.subr.bf16.mxu0 %v13903_v20  ;;  %v13931_v20 = vld [vmem:[#allocation7 + $0x144] ss:$8 sps:$4 sm:$0xff]  }
 0x3ac   : > { %2575 = vmatpush1.bf16.msra.mxu0 %v13901_v22  ;;  %v13929_v22 = vld [vmem:[#allocation7 + $0x140] ss:$8 sps:$4 sm:$0xff]  }
 0x3ad   : > { %2576 = vmatprep.subr.bf16.mxu0 %v13906_v60  ;;  %v13934_v60 = vld [vmem:[#allocation7 + $0x154] ss:$8 sps:$4 sm:$0xff]  }
 0x3b0   : > { %2577 = vmatpush1.bf16.msra.mxu0 %v13904_v10  ;;  %v13932_v10 = vld [vmem:[#allocation7 + $0x150] ss:$8 sps:$4 sm:$0xff]  }
 0x3b1   : > { %2578 = vmatprep.subr.bf16.mxu0 %v13909_v34  ;;  %v13937_v34 = vld [vmem:[#allocation7 + $0x164] ss:$8 sps:$4 sm:$0xff]  }
 0x3b4   : > { %2579 = vmatpush1.bf16.msra.mxu0 %v13907_v47  ;;  %v13935_v47 = vld [vmem:[#allocation7 + $0x160] ss:$8 sps:$4 sm:$0xff]  }
 0x3b5   : > { %2580 = vmatprep.subr.bf16.mxu0 %v13912_v48  ;;  %v13940_v48 = vld [vmem:[#allocation7 + $0x174] ss:$8 sps:$4 sm:$0xff]  }
 0x3b8   : > { %2581 = vmatpush1.bf16.msra.mxu0 %v13910_v49  ;;  %v13938_v49 = vld [vmem:[#allocation7 + $0x170] ss:$8 sps:$4 sm:$0xff]  }
 0x3bb   : > { %2591 = vmatmul.mubr.bf16.vlgmr.msra.gmra.mrb[16].mxu0 %v2403_v3 }
 0x3bc   : > { %11815 = vmatprep.mubr.msk.bf16.mxu0 %vm1200_vm0, %v2406_v8 }
 0x3c3   : > { %2601 = vmatmul.mubr.bf16.gmra.mrb[20].mxu0 %v2405_v63 }
 0x3c4   : > { %3746 = vmatprep.mubr.bf16.mxu0 %v15695_v0 }
 0x48e   : > { %v2592_v3 = vpop.f32.mrb[16].mxu0 }
 0x48f   : > { %v2631_v12 = vadd.f32 %v2624_v33, %v2592_v3  ;;  %v2594_v6 = vpop.f32.mrb[17].mxu0  ;;  %v13947_v3 = vld [vmem:[#allocation7 + $0x1a0] ss:$8 sps:$4 sm:$0xff]  }
 0x490   : > { %v2632_v8 = vadd.f32 %v2628_v1, %v2594_v6  ;;  %v2596_v55 = vpop.f32.mrb[18].mxu0  ;;  %v13950_v6 = vld [vmem:[#allocation7 + $0x1b0] ss:$8 sps:$4 sm:$0xff]  }
 0x491   : > { %v2633_v11 = vadd.f32 %v2624_v33, %v2596_v55  ;;  %v2598_v37 = vpop.f32.mrb[19].mxu0  ;;  %v2647_v57 = vmul.f32 0.1, %v2631_v12  ;;  %vm2639_vm3 = vcmp.ge.f32.partialorder %v2631_v12, 0.0  ;;  %v13955_v55 = vld [vmem:[#allocation7 + $0x1c4] ss:$8 sps:$4 sm:$0xff]  }
 0x492   : > { %v2648_v63 = vmul.f32 0.1, %v2632_v8  ;;  %v2634_v56 = vadd.f32 %v2628_v1, %v2598_v37  ;;  %vm2640_vm1 = vcmp.ge.f32.partialorder %v2632_v8, 0.0  ;;  %v13956_v37 = vld [vmem:[#allocation7 + $0x1d0] ss:$8 sps:$4 sm:$0xff]  }
 0x493   : > { %vm2641_vm2 = vcmp.ge.f32.partialorder %v2633_v11, 0.0  ;;  %v2649_v58 = vmul.f32 0.1, %v2633_v11  ;;  %v16493_v17 = vsel %vm2639_vm3, %v2631_v12, %v2647_v57  ;;  %v13952_v12 = vld [vmem:[#allocation7 + $0x1b4] ss:$8 sps:$4 sm:$0xff]  }
 0x494   : > { %vm2642_vm4 = vcmp.ge.f32.partialorder %v2634_v56, 0.0  ;;  %v2650_v59 = vmul.f32 0.1, %v2634_v56  ;;  %v16489_v7 = vsel %vm2640_vm1, %v2632_v8, %v2648_v63  ;;  %v13953_v8 = vld [vmem:[#allocation7 + $0x1c0] ss:$8 sps:$4 sm:$0xff]  }
 0x495   : > { %v16487_v62 = vsel %vm2641_vm2, %v2633_v11, %v2649_v58  ;;  %v13958_v11 = vld [vmem:[#allocation7 + $0x1d4] ss:$8 sps:$4 sm:$0xff]   ;;  %v13959_v63 = vld [vmem:[#allocation7 + $0x1e0] ss:$8 sps:$4 sm:$0xff]   ;;  %v13962_v58 = vld [vmem:[#allocation7 + $0x1f0] ss:$8 sps:$4 sm:$0xff]  }
 0x496   : > { %v2602_v4 = vpop.f32.mrb[20].mxu0  ;;  %v16491_v16 = vsel %vm2642_vm4, %v2634_v56, %v2650_v59  ;;  %v16501_v24 = vpack.c.bf16 %v16487_v62, %v16493_v17  ;;  %v13961_v56 = vld [vmem:[#allocation7 + $0x1e4] ss:$8 sps:$4 sm:$0xff]   ;;  %v13964_v57 = vld [vmem:[#allocation7 + $0x1f4] ss:$8 sps:$4 sm:$0xff]  }
 0x497   : > { %v2635_v61 = vadd.f32 %v2624_v33, %v2602_v4  ;;  %v2604_v2 = vpop.f32.mrb[21].mxu0  ;;  %v16497_v5 = vpack.c.bf16 %v16491_v16, %v16489_v7  ;;  %v13967_v59 = vld [vmem:[#allocation7 + $0x4] ss:$8 sps:$4 sm:$0xff]  }
 0x498   : > { %v2636_v27 = vadd.f32 %v2628_v1, %v2604_v2  ;;  %v2606_v31 = vpop.f32.mrb[22].mxu0 }
 0x499   : > { %v2637_v23 = vadd.f32 %v2624_v33, %v2606_v31  ;;  %v2608_v25 = vpop.f32.mrb[23].mxu0  ;;  %2688 = vmatprep.subr.bf16.mxu1 %v16497_v5  ;;  %v2651_v45 = vmul.f32 0.1, %v2635_v61  ;;  %vm2643_vm7 = vcmp.ge.f32.partialorder %v2635_v61, 0.0  ;;  %v13944_v33 = vld [vmem:[#allocation7 + $0x190] ss:$8 sps:$4 sm:$0xff]  }
 0x49a   : > { %v2652_v26 = vmul.f32 0.1, %v2636_v27  ;;  %v2638_v40 = vadd.f32 %v2628_v1, %v2608_v25  ;;  %2689 = vmatpush1.bf16.msra.mxu1 %v16501_v24  ;;  %vm2644_vm5 = vcmp.ge.f32.partialorder %v2636_v27, 0.0  ;;  %v13949_v1 = vld [vmem:[#allocation7 + $0x1a4] ss:$8 sps:$4 sm:$0xff]  }
 0x49b   : > { %vm2645_vm6 = vcmp.ge.f32.partialorder %v2637_v23, 0.0  ;;  %v2653_v46 = vmul.f32 0.1, %v2637_v23  ;;  %v16511_v13 = vsel %vm2643_vm7, %v2635_v61, %v2651_v45 }
 0x49c   : > { %vm2646_vm8 = vcmp.ge.f32.partialorder %v2638_v40, 0.0  ;;  %v2654_v28 = vmul.f32 0.1, %v2638_v40  ;;  %v16507_v30 = vsel %vm2644_vm5, %v2636_v27, %v2652_v26 }
 0x49d   : > { %v16505_v29 = vsel %vm2645_vm6, %v2637_v23, %v2653_v46 }
 0x49e   : > { %v16509_v32 = vsel %vm2646_vm8, %v2638_v40, %v2654_v28  ;;  %v16519_v35 = vpack.c.bf16 %v16505_v29, %v16511_v13 }
 0x49f   : > { %v16515_v14 = vpack.c.bf16 %v16509_v32, %v16507_v30 }
 0x4a1   : > { %2690 = vmatprep.subr.bf16.mxu1 %v16515_v14 }
 0x4a2   : > { %2691 = vmatpush1.bf16.msra.mxu1 %v16519_v35 }
 0x4a3   : > { %2798 = vmatprep.subr.bf16.mxu1 %v16497_v5 }
 0x4a5   : > { %11818 = vmatmul.mubr.msk.bf16.vlgmr.msra.gmra.mrb[24].mxu1 %vm2681_vm9, %v13913_v9 }
 0x4a6   : > { %2799 = vmatpush1.bf16.msra.mxu1 %v16501_v24  ;;  %2730 = vmatprep.mubr.bf16.mxu1 %v15695_v0 }
 0x4a7   : > { %2800 = vmatprep.subr.bf16.mxu1 %v16515_v14 }
 0x4aa   : > { %2801 = vmatpush1.bf16.msra.mxu1 %v16519_v35 }
 0x4ab   : > { %3048 = vmatprep.subr.bf16.mxu1 %v13919_v36 }
 0x4ad   : > { %11819 = vmatmul.mubr.msk.bf16.gmra.mrb[28].mxu1 %vm2681_vm9, %v13914_v38 }
 0x4ae   : > { %2830 = vmatprep.mubr.bf16.mxu1 %v15695_v0 }
 0x4b5   : > { %11822 = vmatmul.mubr.msk.bf16.vlgmr.msra.gmra.mrb[32].mxu1 %vm2681_vm9, %v13915_v43 }
 0x4b6   : > { %2840 = vmatprep.mubr.bf16.mxu1 %v15695_v0  ;;  %3049 = vmatpush1.bf16.msra.mxu1 %v13917_v44 }
 0x4b7   : > { %3050 = vmatprep.subr.bf16.mxu1 %v13922_v39 }
 0x4ba   : > { %3051 = vmatpush1.bf16.msra.mxu1 %v13920_v41  ;;  %v13965_v41 = vld [vmem:[#allocation7] ss:$8 sps:$4 sm:$0xff]  }
 0x4bb   : > { %3052 = vmatprep.subr.bf16.mxu1 %v13925_v42  ;;  %v13970_v42 = vld [vmem:[#allocation7 + $0x14] ss:$8 sps:$4 sm:$0xff]  }
 0x4bd   : > { %11823 = vmatmul.mubr.msk.bf16.gmra.mrb[36].mxu1 %vm2681_vm9, %v13916_v18 }
 0x4be   : > { %3053 = vmatpush1.bf16.msra.mxu1 %v13923_v21  ;;  %v13968_v21 = vld [vmem:[#allocation7 + $0x10] ss:$8 sps:$4 sm:$0xff]  }
 0x4bf   : > { %3054 = vmatprep.subr.bf16.mxu1 %v13928_v15 }
 0x4c2   : > { %3055 = vmatpush1.bf16.msra.mxu1 %v13926_v19  ;;  %v13973_v19 = vld [vmem:[#allocation7 + $0x24] ss:$8 sps:$4 sm:$0xff]  }
 0x4c3   : > { %3056 = vmatprep.subr.bf16.mxu1 %v13931_v20 }
 0x4c6   : > { %3057 = vmatpush1.bf16.msra.mxu1 %v13929_v22 }
 0x4c7   : > { %3058 = vmatprep.subr.bf16.mxu1 %v13934_v60 }
 0x4ca   : > { %3059 = vmatpush1.bf16.msra.mxu1 %v13932_v10 }
 0x4cb   : > { %3060 = vmatprep.subr.bf16.mxu1 %v13937_v34  ;;  %v13971_v34 = vld [vmem:[#allocation7 + $0x20] ss:$8 sps:$4 sm:$0xff]  }
 0x4ce   : > { %3061 = vmatpush1.bf16.msra.mxu1 %v13935_v47  ;;  %v13976_v47 = vld [vmem:[#allocation7 + $0x34] ss:$8 sps:$4 sm:$0xff]  }
 0x4cf   : > { %3062 = vmatprep.subr.bf16.mxu1 %v13940_v48  ;;  %v13974_v48 = vld [vmem:[#allocation7 + $0x30] ss:$8 sps:$4 sm:$0xff]  }
 0x4d2   : > { %3063 = vmatpush1.bf16.msra.mxu1 %v13938_v49  ;;  %v13979_v49 = vld [vmem:[#allocation7 + $0x44] ss:$8 sps:$4 sm:$0xff]  }
 0x4d3   : > { %3064 = vmatprep.subr.bf16.mxu1 %v13943_v50  ;;  %v13977_v50 = vld [vmem:[#allocation7 + $0x40] ss:$8 sps:$4 sm:$0xff]  }
 0x4d6   : > { %3065 = vmatpush1.bf16.msra.mxu1 %v13941_v51  ;;  %v13982_v51 = vld [vmem:[#allocation7 + $0x54] ss:$8 sps:$4 sm:$0xff]  }
 0x4d7   : > { %3066 = vmatprep.subr.bf16.mxu1 %v13946_v53  ;;  %v13980_v53 = vld [vmem:[#allocation7 + $0x50] ss:$8 sps:$4 sm:$0xff]  }
 0x4da   : > { %3067 = vmatpush1.bf16.msra.mxu1 %v13944_v33  ;;  %v13985_v33 = vld [vmem:[#allocation7 + $0x64] ss:$8 sps:$4 sm:$0xff]  }
 0x4db   : > { %3068 = vmatprep.subr.bf16.mxu1 %v13949_v1  ;;  %v13983_v1 = vld [vmem:[#allocation7 + $0x60] ss:$8 sps:$4 sm:$0xff]  }
 0x4de   : > { %3069 = vmatpush1.bf16.msra.mxu1 %v13947_v3  ;;  %v13988_v3 = vld [vmem:[#allocation7 + $0x74] ss:$8 sps:$4 sm:$0xff]  }
 0x4df   : > { %3070 = vmatprep.subr.bf16.mxu1 %v13952_v12  ;;  %v13986_v12 = vld [vmem:[#allocation7 + $0x70] ss:$8 sps:$4 sm:$0xff]  }
 0x4e2   : > { %3071 = vmatpush1.bf16.msra.mxu1 %v13950_v6  ;;  %v13991_v6 = vld [vmem:[#allocation7 + $0x84] ss:$8 sps:$4 sm:$0xff]  }
 0x4e3   : > { %3072 = vmatprep.subr.bf16.mxu1 %v13955_v55  ;;  %v13994_v55 = vld [vmem:[#allocation7 + $0x94] ss:$8 sps:$4 sm:$0xff]  }
 0x4e6   : > { %3073 = vmatpush1.bf16.msra.mxu1 %v13953_v8  ;;  %v13989_v8 = vld [vmem:[#allocation7 + $0x80] ss:$8 sps:$4 sm:$0xff]  }
 0x4e7   : > { %3074 = vmatprep.subr.bf16.mxu1 %v13958_v11  ;;  %v13992_v11 = vld [vmem:[#allocation7 + $0x90] ss:$8 sps:$4 sm:$0xff]  }
 0x4ea   : > { %3075 = vmatpush1.bf16.msra.mxu1 %v13956_v37  ;;  %v13997_v37 = vld [vmem:[#allocation7 + $0xa4] ss:$8 sps:$4 sm:$0xff]  }
 0x4eb   : > { %3076 = vmatprep.subr.bf16.mxu1 %v13961_v56  ;;  %v14000_v56 = vld [vmem:[#allocation7 + $0xb4] ss:$8 sps:$4 sm:$0xff]  }
 0x4ee   : > { %3077 = vmatpush1.bf16.msra.mxu1 %v13959_v63  ;;  %v13995_v63 = vld [vmem:[#allocation7 + $0xa0] ss:$8 sps:$4 sm:$0xff]  }
 0x4ef   : > { %3078 = vmatprep.subr.bf16.mxu1 %v13964_v57  ;;  %v13998_v57 = vld [vmem:[#allocation7 + $0xb0] ss:$8 sps:$4 sm:$0xff]  }
 0x4f2   : > { %3079 = vmatpush1.bf16.msra.mxu1 %v13962_v58  ;;  %v14003_v58 = vld [vmem:[#allocation7 + $0xc4] ss:$8 sps:$4 sm:$0xff]  }
 0x4f3   : > { %3261 = vmatprep.subr.bf16.mxu1 %v13967_v59  ;;  %v14001_v59 = vld [vmem:[#allocation7 + $0xc0] ss:$8 sps:$4 sm:$0xff]  }
 0x578   : > { %v16534_v4 = vpop.f32.mrb[24].mxu1 }
 0x579   : > { %v2724_v61 = vpop.f32.mrb[25].mxu1 }
 0x57a   : > { %v16536_v2 = vpop.f32.mrb[26].mxu1 }
 0x57b   : > { %v2741_v27 = vpack.c.bf16 %v16536_v2, %v16534_v4  ;;  %v2728_v31 = vpop.f32.mrb[27].mxu1  ;;  %v14015_v4 = vld [vmem:[#allocation7 + $0x200] ss:$8 sps:$4 sm:$0xff]   ;;  %v14020_v2 = vld [vmem:[#allocation7 + $0x214] ss:$8 sps:$4 sm:$0xff]  }
 0x57c   : > { %v2742_v23 = vpack.c.bf16 %v2728_v31, %v2724_v61  ;;  %v14006_v61 = vld [vmem:[#allocation7 + $0xd4] ss:$8 sps:$4 sm:$0xff]   ;;  %v14004_v31 = vld [vmem:[#allocation7 + $0xd0] ss:$8 sps:$4 sm:$0xff]  }
 0x580   : > { %v16540_v25 = vpop.f32.mrb[28].mxu1 }
 0x581   : > { %v16542_v26 = vpop.f32.mrb[29].mxu1 }
 0x582   : > { %v16544_v40 = vpop.f32.mrb[30].mxu1 }
 0x583   : > { %v2743_v45 = vpack.c.bf16 %v16544_v40, %v16540_v25  ;;  %v16548_v46 = vpop.f32.mrb[31].mxu1  ;;  %v14024_v25 = vld [vmem:[#allocation7 + $0x230] ss:$8 sps:$4 sm:$0xff]   ;;  %v14029_v40 = vld [vmem:[#allocation7 + $0x244] ss:$8 sps:$4 sm:$0xff]  }
 0x584   : > { %v2744_v28 = vpack.c.bf16 %v16548_v46, %v16542_v26  ;;  %v14026_v26 = vld [vmem:[#allocation7 + $0x234] ss:$8 sps:$4 sm:$0xff]  }
 0x585   : > { %v14032_v46 = vld [vmem:[#allocation7 + $0x254] ss:$8 sps:$4 sm:$0xff]  }
 0x588   : > { %v2832_v9 = vpop.f32.mrb[32].mxu1 }
 0x589   : > { %v2834_v36 = vpop.f32.mrb[33].mxu1 }
 0x58a   : > { %v2836_v38 = vpop.f32.mrb[34].mxu1 }
 0x58b   : > { %v2851_v43 = vpack.c.bf16 %v2836_v38, %v2832_v9  ;;  %v2838_v44 = vpop.f32.mrb[35].mxu1  ;;  %v14007_v9 = vld [vmem:[#allocation7 + $0xe0] ss:$8 sps:$4 sm:$0xff]   ;;  %v14010_v38 = vld [vmem:[#allocation7 + $0xf0] ss:$8 sps:$4 sm:$0xff]  }
 0x58c   : > { %v2852_v39 = vpack.c.bf16 %v2838_v44, %v2834_v36  ;;  %v14012_v36 = vld [vmem:[#allocation7 + $0xf4] ss:$8 sps:$4 sm:$0xff]   ;;  %v14035_v44 = vld [vmem:[#allocation7 + $0x264] ss:$8 sps:$4 sm:$0xff]  }
 0x58e   : > { %3080 = vmatprep.mubr.bf16.mxu1 %v2852_v39  ;;  %v14033_v39 = vld [vmem:[#allocation7 + $0x260] ss:$8 sps:$4 sm:$0xff]  }
 0x58f   : > { %3081 = vmatmul.mubr.bf16.vlgmr.msra.gmra.mrb[40].mxu1 %v2851_v43  ;;  %v14017_v43 = vld [vmem:[#allocation7 + $0x204] ss:$8 sps:$4 sm:$0xff]  }
 0x590   : > { %3262 = vmatpush1.bf16.msra.mxu1 %v13965_v41  ;;  %v2842_v18 = vpop.f32.mrb[36].mxu1  ;;  %v14038_v41 = vld [vmem:[#allocation7 + $0x274] ss:$8 sps:$4 sm:$0xff]  }
 0x591   : > { %v2844_v15 = vpop.f32.mrb[37].mxu1  ;;  %3263 = vmatprep.subr.bf16.mxu1 %v13970_v42  ;;  %v14036_v42 = vld [vmem:[#allocation7 + $0x270] ss:$8 sps:$4 sm:$0xff]  }
 0x592   : > { %v2846_v20 = vpop.f32.mrb[38].mxu1 }
 0x593   : > { %v2853_v22 = vpack.c.bf16 %v2846_v20, %v2842_v18  ;;  %v2848_v60 = vpop.f32.mrb[39].mxu1  ;;  %v14041_v18 = vld [vmem:[#allocation7 + $0x284] ss:$8 sps:$4 sm:$0xff]  }
 0x594   : > { %v2854_v10 = vpack.c.bf16 %v2848_v60, %v2844_v15  ;;  %3264 = vmatpush1.bf16.msra.mxu1 %v13968_v21  ;;  %v14039_v21 = vld [vmem:[#allocation7 + $0x280] ss:$8 sps:$4 sm:$0xff]   ;;  %v14044_v15 = vld [vmem:[#allocation7 + $0x294] ss:$8 sps:$4 sm:$0xff]   ;;  %v14047_v20 = vld [vmem:[#allocation7 + $0x2a4] ss:$8 sps:$4 sm:$0xff]  }
 0x595   : > { %3265 = vmatprep.subr.bf16.mxu1 %v13973_v19  ;;  %v14042_v19 = vld [vmem:[#allocation7 + $0x290] ss:$8 sps:$4 sm:$0xff]   ;;  %v14050_v60 = vld [vmem:[#allocation7 + $0x2b4] ss:$8 sps:$4 sm:$0xff]  }
 0x596   : > { %3090 = vmatprep.mubr.bf16.mxu1 %v2854_v10  ;;  %v14048_v10 = vld [vmem:[#allocation7 + $0x2b0] ss:$8 sps:$4 sm:$0xff]  }
 0x597   : > { %3091 = vmatmul.mubr.bf16.gmra.mrb[44].mxu1 %v2853_v22  ;;  %v14045_v22 = vld [vmem:[#allocation7 + $0x2a0] ss:$8 sps:$4 sm:$0xff]  }
 0x598   : > { %3266 = vmatpush1.bf16.msra.mxu1 %v13971_v34  ;;  %3293 = vmatprep.mubr.bf16.mxu1 %v2742_v23  ;;  %v14009_v23 = vld [vmem:[#allocation7 + $0xe4] ss:$8 sps:$4 sm:$0xff]  }
 0x599   : > { %3267 = vmatprep.subr.bf16.mxu1 %v13976_v47  ;;  %v14053_v34 = vld [vmem:[#allocation7 + $0x2c4] ss:$8 sps:$4 sm:$0xff]   ;;  %v14051_v47 = vld [vmem:[#allocation7 + $0x2c0] ss:$8 sps:$4 sm:$0xff]  }
 0x59c   : > { %3268 = vmatpush1.bf16.msra.mxu1 %v13974_v48  ;;  %v14056_v48 = vld [vmem:[#allocation7 + $0x2d4] ss:$8 sps:$4 sm:$0xff]  }
 0x59d   : > { %3269 = vmatprep.subr.bf16.mxu1 %v13979_v49  ;;  %v14054_v49 = vld [vmem:[#allocation7 + $0x2d0] ss:$8 sps:$4 sm:$0xff]  }
 0x5a0   : > { %3270 = vmatpush1.bf16.msra.mxu1 %v13977_v50  ;;  %v14059_v50 = vld [vmem:[#allocation7 + $0x2e4] ss:$8 sps:$4 sm:$0xff]  }
 0x5a1   : > { %3271 = vmatprep.subr.bf16.mxu1 %v13982_v51  ;;  %v14057_v51 = vld [vmem:[#allocation7 + $0x2e0] ss:$8 sps:$4 sm:$0xff]  }
 0x5a4   : > { %3272 = vmatpush1.bf16.msra.mxu1 %v13980_v53  ;;  %v14062_v53 = vld [vmem:[#allocation7 + $0x2f4] ss:$8 sps:$4 sm:$0xff]  }
 0x5a5   : > { %3273 = vmatprep.subr.bf16.mxu1 %v13985_v33  ;;  %v14060_v33 = vld [vmem:[#allocation7 + $0x2f0] ss:$8 sps:$4 sm:$0xff]  }
 0x5a8   : > { %3274 = vmatpush1.bf16.msra.mxu1 %v13983_v1 }
 0x5a9   : > { %3275 = vmatprep.subr.bf16.mxu1 %v13988_v3 }
 0x5ac   : > { %3276 = vmatpush1.bf16.msra.mxu1 %v13986_v12 }
 0x5ad   : > { %3277 = vmatprep.subr.bf16.mxu1 %v13991_v6 }
 0x5b0   : > { %3278 = vmatpush1.bf16.msra.mxu1 %v13989_v8 }
 0x5b1   : > { %3279 = vmatprep.subr.bf16.mxu1 %v13994_v55 }
 0x5b4   : > { %3280 = vmatpush1.bf16.msra.mxu1 %v13992_v11 }
 0x5b5   : > { %3281 = vmatprep.subr.bf16.mxu1 %v13997_v37 }
 0x5b8   : > { %3282 = vmatpush1.bf16.msra.mxu1 %v13995_v63 }
 0x5b9   : > { %3283 = vmatprep.subr.bf16.mxu1 %v14000_v56 }
 0x5bc   : > { %3284 = vmatpush1.bf16.msra.mxu1 %v13998_v57 }
 0x5bd   : > { %3285 = vmatprep.subr.bf16.mxu1 %v14003_v58 }
 0x5c0   : > { %3286 = vmatpush1.bf16.msra.mxu1 %v14001_v59  ;;  %v3646_v59 = vld [vmem:[%s17350_s18] sm:$0x3]  ;;  %s1155_s18 = scalar_lea.vmem [#allocation29], %s1154_s26 }
 0x5c1   : > { %3287 = vmatprep.subr.bf16.mxu1 %v14006_v61  ;;  %v3651_v61 = vrot.slane %v3646_v59, %v16480_v52 }
 0x5c4   : > { %3288 = vmatpush1.bf16.msra.mxu1 %v14004_v31  ;;  %v3655_v31 = vrot.slane %v3646_v59, %v16483_v54  ;;  %v14083_v59 = vld [vmem:[#allocation10 + $0x144] ss:$8 sps:$4 sm:$0xff]  }
 0x5c5   : > { %3289 = vmatprep.subr.bf16.mxu1 %v14009_v23 }
 0x5c8   : > { %3290 = vmatpush1.bf16.msra.mxu1 %v14007_v9 }
 0x5c9   : > { %3291 = vmatprep.subr.bf16.mxu1 %v14012_v36 }
 0x5cc   : > { %3292 = vmatpush1.bf16.msra.mxu1 %v14010_v38 }
 0x5cd   : > { %3335 = vmatprep.subr.bf16.mxu1 %v16497_v5  ;;  %v14013_v5 = vld [vmem:[#allocation5 + $0x20] sm:$0xff]  }
 0x5cf   : > { %3294 = vmatmul.mubr.bf16.vlgmr.msra.gmra.mrb[40].mxu1 %v2741_v27  ;;  %v14014_v27 = vld [vmem:[#allocation5 + $0x28] sm:$0xff]  }
 0x5d0   : > { %3303 = vmatprep.mubr.bf16.mxu1 %v2744_v28  ;;  %3336 = vmatpush1.bf16.msra.mxu1 %v16501_v24  ;;  %v14018_v24 = vld [vmem:[#allocation7 + $0x210] ss:$8 sps:$4 sm:$0xff]  }
 0x5d1   : > { %3337 = vmatprep.subr.bf16.mxu1 %v16515_v14  ;;  %v14023_v14 = vld [vmem:[#allocation7 + $0x224] ss:$8 sps:$4 sm:$0xff]   ;;  %v14030_v28 = vld [vmem:[#allocation7 + $0x250] ss:$8 sps:$4 sm:$0xff]  }
 0x5d4   : > { %3338 = vmatpush1.bf16.msra.mxu1 %v16519_v35  ;;  %v14021_v35 = vld [vmem:[#allocation7 + $0x220] ss:$8 sps:$4 sm:$0xff]  }
 0x5d5   : > { %3585 = vmatprep.subr.bf16.mxu1 %v14017_v43 }
 0x5d7   : > { %3304 = vmatmul.mubr.bf16.gmra.mrb[44].mxu1 %v2743_v45  ;;  %v14027_v45 = vld [vmem:[#allocation7 + $0x240] ss:$8 sps:$4 sm:$0xff]  }
 0x5d8   : > { %3367 = vmatprep.mubr.bf16.mxu1 %v15695_v0 }
 0x5df   : > { %11890 = vmatmul.mubr.msk.bf16.vlgmr.msra.gmra.mrb[48].mxu1 %vm2681_vm9, %v14013_v5 }
 0x5e0   : > { %3377 = vmatprep.mubr.bf16.mxu1 %v15695_v0  ;;  %3586 = vmatpush1.bf16.msra.mxu1 %v14015_v4 }
 0x5e1   : > { %3587 = vmatprep.subr.bf16.mxu1 %v14020_v2 }
 0x5e4   : > { %3588 = vmatpush1.bf16.msra.mxu1 %v14018_v24 }
 0x5e5   : > { %3589 = vmatprep.subr.bf16.mxu1 %v14023_v14 }
 0x5e7   : > { %11891 = vmatmul.mubr.msk.bf16.gmra.mrb[52].mxu1 %vm2681_vm9, %v14014_v27 }
 0x5e8   : > { %3590 = vmatpush1.bf16.msra.mxu1 %v14021_v35 }
 0x5e9   : > { %3591 = vmatprep.subr.bf16.mxu1 %v14026_v26 }
 0x5ec   : > { %3592 = vmatpush1.bf16.msra.mxu1 %v14024_v25 }
 0x5ed   : > { %3593 = vmatprep.subr.bf16.mxu1 %v14029_v40 }
 0x5f0   : > { %3594 = vmatpush1.bf16.msra.mxu1 %v14027_v45 }
 0x5f1   : > { %3595 = vmatprep.subr.bf16.mxu1 %v14032_v46 }
 0x5f4   : > { %3596 = vmatpush1.bf16.msra.mxu1 %v14030_v28 }
 0x5f5   : > { %3597 = vmatprep.subr.bf16.mxu1 %v14035_v44 }
 0x5f8   : > { %3598 = vmatpush1.bf16.msra.mxu1 %v14033_v39 }
 0x5f9   : > { %3599 = vmatprep.subr.bf16.mxu1 %v14038_v41 }
 0x5fc   : > { %3600 = vmatpush1.bf16.msra.mxu1 %v14036_v42 }
 0x5fd   : > { %3601 = vmatprep.subr.bf16.mxu1 %v14041_v18 }
 0x600   : > { %3602 = vmatpush1.bf16.msra.mxu1 %v14039_v21 }
 0x601   : > { %3603 = vmatprep.subr.bf16.mxu1 %v14044_v15 }
 0x604   : > { %3604 = vmatpush1.bf16.msra.mxu1 %v14042_v19 }
 0x605   : > { %3605 = vmatprep.subr.bf16.mxu1 %v14047_v20 }
 0x608   : > { %3606 = vmatpush1.bf16.msra.mxu1 %v14045_v22 }
 0x609   : > { %3607 = vmatprep.subr.bf16.mxu1 %v14050_v60 }
 0x60c   : > { %3608 = vmatpush1.bf16.msra.mxu1 %v14048_v10 }
 0x60d   : > { %3609 = vmatprep.subr.bf16.mxu1 %v14053_v34 }
 0x610   : > { %3610 = vmatpush1.bf16.msra.mxu1 %v14051_v47 }
 0x611   : > { %3611 = vmatprep.subr.bf16.mxu1 %v14056_v48 }
 0x614   : > { %3612 = vmatpush1.bf16.msra.mxu1 %v14054_v49 }
 0x615   : > { %3613 = vmatprep.subr.bf16.mxu1 %v14059_v50 }
 0x618   : > { %3614 = vmatpush1.bf16.msra.mxu1 %v14057_v51 }
 0x619   : > { %3615 = vmatprep.subr.bf16.mxu1 %v14062_v53  ;;  %v14063_v53 = vld [vmem:[#allocation8] sm:$0xff]  }
 0x61c   : > { %3616 = vmatpush1.bf16.msra.mxu1 %v14060_v33  ;;  %v14067_v33 = vld [vmem:[#allocation8 + $0x20] sm:$0xff]  }
 0x6b2   : > { %v3369_v1 = vpop.f32.mrb[48].mxu1 }
 0x6b3   : > { %v3371_v3 = vpop.f32.mrb[49].mxu1 }
 0x6b4   : > { %v3373_v12 = vpop.f32.mrb[50].mxu1 }
 0x6b5   : > { %v3388_v6 = vpack.c.bf16 %v3373_v12, %v3369_v1  ;;  %v3375_v8 = vpop.f32.mrb[51].mxu1  ;;  %v14071_v1 = vld [vmem:[#allocation10 + $0x104] ss:$8 sps:$4 sm:$0xff]   ;;  %v14068_v12 = vld [vmem:[#allocation8 + $0x28] sm:$0xff]  }
 0x6b6   : > { %v3389_v55 = vpack.c.bf16 %v3375_v8, %v3371_v3  ;;  %v14064_v3 = vld [vmem:[#allocation8 + $0x8] sm:$0xff]   ;;  %v14069_v8 = vld [vmem:[#allocation10 + $0x100] ss:$8 sps:$4 sm:$0xff]  }
 0x6b8   : > { %3617 = vmatprep.mubr.bf16.mxu1 %v3389_v55  ;;  %v14074_v55 = vld [vmem:[#allocation10 + $0x114] ss:$8 sps:$4 sm:$0xff]  }
 0x6b9   : > { %3618 = vmatmul.mubr.bf16.vlgmr.msra.gmra.mrb[40].mxu1 %v3388_v6  ;;  %v14065_v6 = vld [vmem:[#allocation8 + $0x10] sm:$0xff]  }
 0x6ba   : > { %v3379_v11 = vpop.f32.mrb[52].mxu1 }
 0x6bb   : > { %v3381_v37 = vpop.f32.mrb[53].mxu1 }
 0x6bc   : > { %v3383_v63 = vpop.f32.mrb[54].mxu1 }
 0x6bd   : > { %v3390_v56 = vpack.c.bf16 %v3383_v63, %v3379_v11  ;;  %v3385_v57 = vpop.f32.mrb[55].mxu1  ;;  %v14072_v11 = vld [vmem:[#allocation10 + $0x110] ss:$8 sps:$4 sm:$0xff]   ;;  %v14066_v63 = vld [vmem:[#allocation8 + $0x18] sm:$0xff]  }
 0x6be   : > { %v3391_v58 = vpack.c.bf16 %v3385_v57, %v3381_v37  ;;  %v14077_v37 = vld [vmem:[#allocation10 + $0x124] ss:$8 sps:$4 sm:$0xff]   ;;  %v14080_v57 = vld [vmem:[#allocation10 + $0x134] ss:$8 sps:$4 sm:$0xff]  }
 0x6c0   : > { %3627 = vmatprep.mubr.bf16.mxu1 %v3391_v58  ;;  %v14078_v58 = vld [vmem:[#allocation10 + $0x130] ss:$8 sps:$4 sm:$0xff]  }
 0x6c1   : > { %3628 = vmatmul.mubr.bf16.gmra.mrb[44].mxu1 %v3390_v56  ;;  %v14075_v56 = vld [vmem:[#allocation10 + $0x120] ss:$8 sps:$4 sm:$0xff]  }
 0x6c2   : > { %4393 = vmatprep.mubr.bf16.mxu1 %v15695_v0 }
 0x78c   : > { %v3619_v23 = vpop.f32.mrb[40].mxu1 }
 0x78d   : > { %v3658_v9 = vadd.f32 %v3651_v61, %v3619_v23  ;;  %v3621_v36 = vpop.f32.mrb[41].mxu1  ;;  %v14084_v23 = vld [vmem:[#allocation10 + $0x150] ss:$8 sps:$4 sm:$0xff]  }
 0x78e   : > { %v3659_v38 = vadd.f32 %v3655_v31, %v3621_v36  ;;  %v3623_v43 = vpop.f32.mrb[42].mxu1  ;;  %v14087_v36 = vld [vmem:[#allocation10 + $0x160] ss:$8 sps:$4 sm:$0xff]  }
 0x78f   : > { %v3674_v5 = vmul.f32 0.2, %v3658_v9  ;;  %v3660_v4 = vadd.f32 %v3651_v61, %v3623_v43  ;;  %v3625_v2 = vpop.f32.mrb[43].mxu1  ;;  %vm3666_vm10 = vcmp.ge.f32.partialorder %v3658_v9, 0.0  ;;  %v14090_v43 = vld [vmem:[#allocation10 + $0x170] ss:$8 sps:$4 sm:$0xff]  }
 0x790   : > { %v3675_v24 = vmul.f32 0.2, %v3659_v38  ;;  %v3661_v14 = vadd.f32 %v3655_v31, %v3625_v2  ;;  %vm3667_vm11 = vcmp.ge.f32.partialorder %v3659_v38, 0.0  ;;  %v14098_v2 = vld [vmem:[#allocation10 + $0x194] ss:$8 sps:$4 sm:$0xff]  }
 0x791   : > { %vm3668_vm12 = vcmp.ge.f32.partialorder %v3660_v4, 0.0  ;;  %v3676_v27 = vmul.f32 0.2, %v3660_v4  ;;  %v3682_v26 = vsel %vm3666_vm10, %v3658_v9, %v3674_v5  ;;  %v14089_v9 = vld [vmem:[#allocation10 + $0x164] ss:$8 sps:$4 sm:$0xff]  }
 0x792   : > { %vm3669_vm13 = vcmp.ge.f32.partialorder %v3661_v14, 0.0  ;;  %v3677_v35 = vmul.f32 0.2, %v3661_v14  ;;  %v3683_v46 = vsel %vm3667_vm11, %v3659_v38, %v3675_v24  ;;  %v14092_v38 = vld [vmem:[#allocation10 + $0x174] ss:$8 sps:$4 sm:$0xff]  }
 0x793   : > { %v3684_v25 = vsel %vm3668_vm12, %v3660_v4, %v3676_v27  ;;  %v14095_v5 = vld [vmem:[#allocation10 + $0x184] ss:$8 sps:$4 sm:$0xff]   ;;  %v14093_v4 = vld [vmem:[#allocation10 + $0x180] ss:$8 sps:$4 sm:$0xff]   ;;  %v14096_v24 = vld [vmem:[#allocation10 + $0x190] ss:$8 sps:$4 sm:$0xff]  }
 0x794   : > { %v3690_v40 = vpack.c.bf16 %v3684_v25, %v3682_v26  ;;  %v3629_v45 = vpop.f32.mrb[44].mxu1  ;;  %v3685_v28 = vsel %vm3669_vm13, %v3661_v14, %v3677_v35  ;;  %v14101_v14 = vld [vmem:[#allocation10 + $0x1a4] ss:$8 sps:$4 sm:$0xff]   ;;  %v14099_v27 = vld [vmem:[#allocation10 + $0x1a0] ss:$8 sps:$4 sm:$0xff]  }
 0x795   : > { %v3662_v44 = vadd.f32 %v3651_v61, %v3629_v45  ;;  %v3631_v39 = vpop.f32.mrb[45].mxu1  ;;  %v3691_v41 = vpack.c.bf16 %v3685_v28, %v3683_v46  ;;  %v14104_v35 = vld [vmem:[#allocation10 + $0x1b4] ss:$8 sps:$4 sm:$0xff]   ;;  %v14102_v26 = vld [vmem:[#allocation10 + $0x1b0] ss:$8 sps:$4 sm:$0xff]  }
 0x796   : > { %v3663_v42 = vadd.f32 %v3655_v31, %v3631_v39  ;;  %v3633_v18 = vpop.f32.mrb[46].mxu1  ;;  %v14105_v25 = vld [vmem:[#allocation10 + $0x1c0] ss:$8 sps:$4 sm:$0xff]   ;;  %v14110_v45 = vld [vmem:[#allocation10 + $0x1d4] ss:$8 sps:$4 sm:$0xff]  }
 0x797   : > { %v3678_v21 = vmul.f32 0.2, %v3662_v44  ;;  %v3664_v15 = vadd.f32 %v3651_v61, %v3633_v18  ;;  %v3635_v19 = vpop.f32.mrb[47].mxu1  ;;  %3714 = vmatprep.subr.bf16.mxu0 %v3691_v41  ;;  %4361 = vmatprep.subr.bf16.mxu1 %v3691_v41  ;;  %vm3670_vm14 = vcmp.ge.f32.partialorder %v3662_v44, 0.0  ;;  %v14081_v61 = vld [vmem:[#allocation10 + $0x140] ss:$8 sps:$4 sm:$0xff]  }
 0x798   : > { %v3679_v20 = vmul.f32 0.2, %v3663_v42  ;;  %v3665_v22 = vadd.f32 %v3655_v31, %v3635_v19  ;;  %3715 = vmatpush1.bf16.msra.mxu0 %v3690_v40  ;;  %4362 = vmatpush1.bf16.msra.mxu1 %v3690_v40  ;;  %vm3671_vm15 = vcmp.ge.f32.partialorder %v3663_v42, 0.0  ;;  %v14086_v31 = vld [vmem:[#allocation10 + $0x154] ss:$8 sps:$4 sm:$0xff]  }
 0x799   : > { %vm3672_vm0 = vcmp.ge.f32.partialorder %v3664_v15, 0.0  ;;  %v3680_v60 = vmul.f32 0.2, %v3664_v15  ;;  %v3686_v34 = vsel %vm3670_vm14, %v3662_v44, %v3678_v21  ;;  %v14108_v46 = vld [vmem:[#allocation10 + $0x1d0] ss:$8 sps:$4 sm:$0xff]   ;;  %vm6229_vm14 = vcmask 130048  }
 0x79a   : > { %vm3673_vm1 = vcmp.ge.f32.partialorder %v3665_v22, 0.0  ;;  %v3681_v10 = vmul.f32 0.2, %v3665_v22  ;;  %v3687_v49 = vsel %vm3671_vm15, %v3663_v42, %v3679_v20  ;;  %v14111_v28 = vld [vmem:[#allocation10 + $0x1e0] ss:$8 sps:$4 sm:$0xff]  }
 0x79b   : > { %v3688_v47 = vsel %vm3672_vm0, %v3664_v15, %v3680_v60  ;;  %v14113_v44 = vld [vmem:[#allocation10 + $0x1e4] ss:$8 sps:$4 sm:$0xff]   ;;  %v14116_v39 = vld [vmem:[#allocation10 + $0x1f4] ss:$8 sps:$4 sm:$0xff]  }
 0x79c   : > { %v3692_v48 = vpack.c.bf16 %v3688_v47, %v3686_v34  ;;  %v3689_v50 = vsel %vm3673_vm1, %v3665_v22, %v3681_v10  ;;  %v14119_v42 = vld [vmem:[#allocation10 + $0x4] ss:$8 sps:$4 sm:$0xff]   ;;  %vm7670_vm1 = vcmask 1043456  }
 0x79d   : > { %v3693_v51 = vpack.c.bf16 %v3689_v50, %v3687_v49 }
 0x79f   : > { %3716 = vmatprep.subr.bf16.mxu0 %v3693_v51  ;;  %4363 = vmatprep.subr.bf16.mxu1 %v3693_v51 }
 0x7a0   : > { %3717 = vmatpush1.bf16.msra.mxu0 %v3692_v48  ;;  %4364 = vmatpush1.bf16.msra.mxu1 %v3692_v48 }
 0x7a1   : > { %3824 = vmatprep.subr.bf16.mxu0 %v3691_v41  ;;  %v14114_v41 = vld [vmem:[#allocation10 + $0x1f0] ss:$8 sps:$4 sm:$0xff]  }
 0x7a3   : > { %11926 = vmatmul.mubr.msk.bf16.vlgmr.msra.gmra.mrb[24].mxu0 %vm2681_vm9, %v14063_v53  ;;  %11998 = vmatmul.mubr.msk.bf16.vlgmr.msra.gmra.mrb[56].mxu1 %vm2681_vm9, %v14067_v33 }
 0x7a4   : > { %3825 = vmatpush1.bf16.msra.mxu0 %v3690_v40  ;;  %3756 = vmatprep.mubr.bf16.mxu0 %v15695_v0  ;;  %v14107_v40 = vld [vmem:[#allocation10 + $0x1c4] ss:$8 sps:$4 sm:$0xff]  }
 0x7a5   : > { %3826 = vmatprep.subr.bf16.mxu0 %v3693_v51  ;;  %4403 = vmatprep.mubr.bf16.mxu1 %v15695_v0 }
 0x7a8   : > { %3827 = vmatpush1.bf16.msra.mxu0 %v3692_v48 }
 0x7a9   : > { %4074 = vmatprep.subr.bf16.mxu0 %v14071_v1 }
 0x7ab   : > { %11927 = vmatmul.mubr.msk.bf16.gmra.mrb[28].mxu0 %vm2681_vm9, %v14064_v3  ;;  %11999 = vmatmul.mubr.msk.bf16.gmra.mrb[60].mxu1 %vm2681_vm9, %v14068_v12 }
 0x7ac   : > { %3856 = vmatprep.mubr.bf16.mxu0 %v15695_v0  ;;  %4770 = vmatprep.mubr.bf16.mxu1 %v15695_v0 }
 0x7b3   : > { %11930 = vmatmul.mubr.msk.bf16.vlgmr.msra.gmra.mrb[32].mxu0 %vm2681_vm9, %v14065_v6 }
 0x7b4   : > { %3866 = vmatprep.mubr.bf16.mxu0 %v15695_v0  ;;  %4075 = vmatpush1.bf16.msra.mxu0 %v14069_v8 }
 0x7b5   : > { %4076 = vmatprep.subr.bf16.mxu0 %v14074_v55 }
 0x7b8   : > { %4077 = vmatpush1.bf16.msra.mxu0 %v14072_v11 }
 0x7b9   : > { %4078 = vmatprep.subr.bf16.mxu0 %v14077_v37 }
 0x7bb   : > { %11931 = vmatmul.mubr.msk.bf16.gmra.mrb[36].mxu0 %vm2681_vm9, %v14066_v63  ;;  %v14117_v63 = vld [vmem:[#allocation10] ss:$8 sps:$4 sm:$0xff]  }
 0x7bc   : > { %4079 = vmatpush1.bf16.msra.mxu0 %v14075_v56 }
 0x7bd   : > { %4080 = vmatprep.subr.bf16.mxu0 %v14080_v57  ;;  %v14122_v57 = vld [vmem:[#allocation10 + $0x14] ss:$8 sps:$4 sm:$0xff]  }
 0x7c0   : > { %4081 = vmatpush1.bf16.msra.mxu0 %v14078_v58 }
 0x7c1   : > { %4082 = vmatprep.subr.bf16.mxu0 %v14083_v59 }
 0x7c4   : > { %4083 = vmatpush1.bf16.msra.mxu0 %v14081_v61 }
 0x7c5   : > { %4084 = vmatprep.subr.bf16.mxu0 %v14086_v31 }
 0x7c8   : > { %4085 = vmatpush1.bf16.msra.mxu0 %v14084_v23 }
 0x7c9   : > { %4086 = vmatprep.subr.bf16.mxu0 %v14089_v9  ;;  %v14120_v9 = vld [vmem:[#allocation10 + $0x10] ss:$8 sps:$4 sm:$0xff]  }
 0x7cc   : > { %4087 = vmatpush1.bf16.msra.mxu0 %v14087_v36 }
 0x7cd   : > { %4088 = vmatprep.subr.bf16.mxu0 %v14092_v38 }
 0x7d0   : > { %4089 = vmatpush1.bf16.msra.mxu0 %v14090_v43  ;;  %v14125_v43 = vld [vmem:[#allocation10 + $0x24] ss:$8 sps:$4 sm:$0xff]  }
 0x7d1   : > { %4090 = vmatprep.subr.bf16.mxu0 %v14095_v5 }
 0x7d4   : > { %4091 = vmatpush1.bf16.msra.mxu0 %v14093_v4 }
 0x7d5   : > { %4092 = vmatprep.subr.bf16.mxu0 %v14098_v2 }
 0x7d8   : > { %4093 = vmatpush1.bf16.msra.mxu0 %v14096_v24 }
 0x7d9   : > { %4094 = vmatprep.subr.bf16.mxu0 %v14101_v14  ;;  %v14123_v14 = vld [vmem:[#allocation10 + $0x20] ss:$8 sps:$4 sm:$0xff]  }
 0x7dc   : > { %4095 = vmatpush1.bf16.msra.mxu0 %v14099_v27  ;;  %v14128_v27 = vld [vmem:[#allocation10 + $0x34] ss:$8 sps:$4 sm:$0xff]  }
 0x7dd   : > { %4096 = vmatprep.subr.bf16.mxu0 %v14104_v35  ;;  %v14126_v35 = vld [vmem:[#allocation10 + $0x30] ss:$8 sps:$4 sm:$0xff]  }
 0x7e0   : > { %4097 = vmatpush1.bf16.msra.mxu0 %v14102_v26  ;;  %v14131_v26 = vld [vmem:[#allocation10 + $0x44] ss:$8 sps:$4 sm:$0xff]  }
 0x7e1   : > { %4098 = vmatprep.subr.bf16.mxu0 %v14107_v40  ;;  %v14134_v40 = vld [vmem:[#allocation10 + $0x54] ss:$8 sps:$4 sm:$0xff]  }
 0x7e4   : > { %4099 = vmatpush1.bf16.msra.mxu0 %v14105_v25  ;;  %v14129_v25 = vld [vmem:[#allocation10 + $0x40] ss:$8 sps:$4 sm:$0xff]  }
 0x7e5   : > { %4100 = vmatprep.subr.bf16.mxu0 %v14110_v45  ;;  %v14132_v45 = vld [vmem:[#allocation10 + $0x50] ss:$8 sps:$4 sm:$0xff]  }
 0x7e8   : > { %4101 = vmatpush1.bf16.msra.mxu0 %v14108_v46  ;;  %v14137_v46 = vld [vmem:[#allocation10 + $0x64] ss:$8 sps:$4 sm:$0xff]  }
 0x7e9   : > { %4102 = vmatprep.subr.bf16.mxu0 %v14113_v44  ;;  %v14140_v44 = vld [vmem:[#allocation10 + $0x74] ss:$8 sps:$4 sm:$0xff]  }
 0x7ec   : > { %4103 = vmatpush1.bf16.msra.mxu0 %v14111_v28  ;;  %v14135_v28 = vld [vmem:[#allocation10 + $0x60] ss:$8 sps:$4 sm:$0xff]  }
 0x7ed   : > { %4104 = vmatprep.subr.bf16.mxu0 %v14116_v39  ;;  %v14138_v39 = vld [vmem:[#allocation10 + $0x70] ss:$8 sps:$4 sm:$0xff]  }
 0x7f0   : > { %4105 = vmatpush1.bf16.msra.mxu0 %v14114_v41  ;;  %v14143_v41 = vld [vmem:[#allocation10 + $0x84] ss:$8 sps:$4 sm:$0xff]  }
 0x7f1   : > { %4287 = vmatprep.subr.bf16.mxu0 %v14119_v42  ;;  %v14141_v42 = vld [vmem:[#allocation10 + $0x80] ss:$8 sps:$4 sm:$0xff]  }
 0x876   : > { %v16584_v18 = vpop.f32.mrb[24].mxu0  ;;  %v16602_v50 = vpop.f32.mrb[56].mxu1 }
 0x877   : > { %v3750_v21 = vpop.f32.mrb[25].mxu0  ;;  %v16604_v51 = vpop.f32.mrb[57].mxu1 }
 0x878   : > { %v16586_v15 = vpop.f32.mrb[26].mxu0  ;;  %v16606_v53 = vpop.f32.mrb[58].mxu1 }
 0x879   : > { %v3767_v19 = vpack.c.bf16 %v16586_v15, %v16584_v18  ;;  %v3754_v20 = vpop.f32.mrb[27].mxu0  ;;  %v4414_v33 = vpack.c.bf16 %v16606_v53, %v16602_v50  ;;  %v16610_v1 = vpop.f32.mrb[59].mxu1  ;;  %v14179_v18 = vld [vmem:[#allocation10 + $0x244] ss:$8 sps:$4 sm:$0xff]   ;;  %v14177_v15 = vld [vmem:[#allocation10 + $0x240] ss:$8 sps:$4 sm:$0xff]  }
 0x87a   : > { %v3768_v22 = vpack.c.bf16 %v3754_v20, %v3750_v21  ;;  %v4415_v12 = vpack.c.bf16 %v16610_v1, %v16604_v51  ;;  %v14146_v21 = vld [vmem:[#allocation10 + $0x94] ss:$8 sps:$4 sm:$0xff]   ;;  %v14144_v20 = vld [vmem:[#allocation10 + $0x90] ss:$8 sps:$4 sm:$0xff]   ;;  %v14189_v51 = vld [vmem:[#allocation10 + $0x280] ss:$8 sps:$4 sm:$0xff]  }
 0x87b   : > { %v14194_v1 = vld [vmem:[#allocation10 + $0x294] ss:$8 sps:$4 sm:$0xff]  }
 0x87e   : > { %v16590_v60 = vpop.f32.mrb[28].mxu0  ;;  %v16614_v56 = vpop.f32.mrb[60].mxu1 }
 0x87f   : > { %v16592_v10 = vpop.f32.mrb[29].mxu0  ;;  %v16616_v58 = vpop.f32.mrb[61].mxu1 }
 0x880   : > { %v16594_v34 = vpop.f32.mrb[30].mxu0  ;;  %v16618_v59 = vpop.f32.mrb[62].mxu1 }
 0x881   : > { %v3769_v47 = vpack.c.bf16 %v16594_v34, %v16590_v60  ;;  %v16598_v48 = vpop.f32.mrb[31].mxu0  ;;  %v4416_v61 = vpack.c.bf16 %v16618_v59, %v16614_v56  ;;  %v16622_v31 = vpop.f32.mrb[63].mxu1  ;;  %v14188_v60 = vld [vmem:[#allocation10 + $0x274] ss:$8 sps:$4 sm:$0xff]   ;;  %v14186_v34 = vld [vmem:[#allocation10 + $0x270] ss:$8 sps:$4 sm:$0xff]  }
 0x882   : > { %v3770_v49 = vpack.c.bf16 %v16598_v48, %v16592_v10  ;;  %v4417_v36 = vpack.c.bf16 %v16622_v31, %v16616_v58  ;;  %v14180_v10 = vld [vmem:[#allocation10 + $0x250] ss:$8 sps:$4 sm:$0xff]   ;;  %v14185_v48 = vld [vmem:[#allocation10 + $0x264] ss:$8 sps:$4 sm:$0xff]  }
 0x886   : > { %v3858_v3 = vpop.f32.mrb[32].mxu0 }
 0x887   : > { %v3860_v6 = vpop.f32.mrb[33].mxu0 }
 0x888   : > { %v3862_v8 = vpop.f32.mrb[34].mxu0 }
 0x889   : > { %v3877_v55 = vpack.c.bf16 %v3862_v8, %v3858_v3  ;;  %v3864_v11 = vpop.f32.mrb[35].mxu0  ;;  %v14147_v3 = vld [vmem:[#allocation10 + $0xa0] ss:$8 sps:$4 sm:$0xff]   ;;  %v14150_v8 = vld [vmem:[#allocation10 + $0xb0] ss:$8 sps:$4 sm:$0xff]  }
 0x88a   : > { %v3878_v37 = vpack.c.bf16 %v3864_v11, %v3860_v6  ;;  %v14152_v6 = vld [vmem:[#allocation10 + $0xb4] ss:$8 sps:$4 sm:$0xff]   ;;  %v14153_v11 = vld [vmem:[#allocation10 + $0xc0] ss:$8 sps:$4 sm:$0xff]  }
 0x88c   : > { %4106 = vmatprep.mubr.bf16.mxu0 %v3878_v37  ;;  %v14158_v37 = vld [vmem:[#allocation10 + $0xd4] ss:$8 sps:$4 sm:$0xff]  }
 0x88d   : > { %4107 = vmatmul.mubr.bf16.vlgmr.msra.gmra.mrb[40].mxu0 %v3877_v55  ;;  %v14155_v55 = vld [vmem:[#allocation10 + $0xc4] ss:$8 sps:$4 sm:$0xff]  }
 0x88e   : > { %4288 = vmatpush1.bf16.msra.mxu0 %v14117_v63  ;;  %v3868_v23 = vpop.f32.mrb[36].mxu0  ;;  %v14156_v63 = vld [vmem:[#allocation10 + $0xd0] ss:$8 sps:$4 sm:$0xff]  }
 0x88f   : > { %v3870_v38 = vpop.f32.mrb[37].mxu0  ;;  %4289 = vmatprep.subr.bf16.mxu0 %v14122_v57  ;;  %v14161_v57 = vld [vmem:[#allocation10 + $0xe4] ss:$8 sps:$4 sm:$0xff]  }
 0x890   : > { %v3872_v5 = vpop.f32.mrb[38].mxu0 }
 0x891   : > { %v3879_v4 = vpack.c.bf16 %v3872_v5, %v3868_v23  ;;  %v3874_v2 = vpop.f32.mrb[39].mxu0  ;;  %v14159_v23 = vld [vmem:[#allocation10 + $0xe0] ss:$8 sps:$4 sm:$0xff]  }
 0x892   : > { %v3880_v24 = vpack.c.bf16 %v3874_v2, %v3870_v38  ;;  %4290 = vmatpush1.bf16.msra.mxu0 %v14120_v9  ;;  %v14164_v9 = vld [vmem:[#allocation10 + $0xf4] ss:$8 sps:$4 sm:$0xff]   ;;  %v14162_v38 = vld [vmem:[#allocation10 + $0xf0] ss:$8 sps:$4 sm:$0xff]   ;;  %v14165_v5 = vld [vmem:[#allocation10 + $0x200] ss:$8 sps:$4 sm:$0xff]  }
 0x893   : > { %4291 = vmatprep.subr.bf16.mxu0 %v14125_v43  ;;  %v14167_v43 = vld [vmem:[#allocation10 + $0x204] ss:$8 sps:$4 sm:$0xff]   ;;  %v14168_v2 = vld [vmem:[#allocation10 + $0x210] ss:$8 sps:$4 sm:$0xff]  }
 0x894   : > { %4116 = vmatprep.mubr.bf16.mxu0 %v3880_v24  ;;  %v14173_v24 = vld [vmem:[#allocation10 + $0x224] ss:$8 sps:$4 sm:$0xff]  }
 0x895   : > { %4117 = vmatmul.mubr.bf16.gmra.mrb[44].mxu0 %v3879_v4  ;;  %v14170_v4 = vld [vmem:[#allocation10 + $0x214] ss:$8 sps:$4 sm:$0xff]  }
 0x896   : > { %4292 = vmatpush1.bf16.msra.mxu0 %v14123_v14  ;;  %4319 = vmatprep.mubr.bf16.mxu0 %v3768_v22  ;;  %v14149_v22 = vld [vmem:[#allocation10 + $0xa4] ss:$8 sps:$4 sm:$0xff]   ;;  %v14171_v14 = vld [vmem:[#allocation10 + $0x220] ss:$8 sps:$4 sm:$0xff]  }
 0x897   : > { %4293 = vmatprep.subr.bf16.mxu0 %v14128_v27  ;;  %v14176_v27 = vld [vmem:[#allocation10 + $0x234] ss:$8 sps:$4 sm:$0xff]  }
 0x89a   : > { %4294 = vmatpush1.bf16.msra.mxu0 %v14126_v35  ;;  %v14174_v35 = vld [vmem:[#allocation10 + $0x230] ss:$8 sps:$4 sm:$0xff]  }
 0x89b   : > { %4295 = vmatprep.subr.bf16.mxu0 %v14131_v26  ;;  %v14197_v26 = vld [vmem:[#allocation10 + $0x2a4] ss:$8 sps:$4 sm:$0xff]  }
 0x89e   : > { %4296 = vmatpush1.bf16.msra.mxu0 %v14129_v25  ;;  %v14195_v25 = vld [vmem:[#allocation10 + $0x2a0] ss:$8 sps:$4 sm:$0xff]  }
 0x89f   : > { %4297 = vmatprep.subr.bf16.mxu0 %v14134_v40  ;;  %v14200_v40 = vld [vmem:[#allocation10 + $0x2b4] ss:$8 sps:$4 sm:$0xff]  }
 0x8a2   : > { %4298 = vmatpush1.bf16.msra.mxu0 %v14132_v45  ;;  %v14198_v45 = vld [vmem:[#allocation10 + $0x2b0] ss:$8 sps:$4 sm:$0xff]  }
 0x8a3   : > { %4299 = vmatprep.subr.bf16.mxu0 %v14137_v46  ;;  %v14203_v46 = vld [vmem:[#allocation10 + $0x2c4] ss:$8 sps:$4 sm:$0xff]  }
 0x8a6   : > { %4300 = vmatpush1.bf16.msra.mxu0 %v14135_v28  ;;  %v14201_v28 = vld [vmem:[#allocation10 + $0x2c0] ss:$8 sps:$4 sm:$0xff]  }
 0x8a7   : > { %4301 = vmatprep.subr.bf16.mxu0 %v14140_v44  ;;  %v14206_v44 = vld [vmem:[#allocation10 + $0x2d4] ss:$8 sps:$4 sm:$0xff]  }
 0x8aa   : > { %4302 = vmatpush1.bf16.msra.mxu0 %v14138_v39  ;;  %v14204_v39 = vld [vmem:[#allocation10 + $0x2d0] ss:$8 sps:$4 sm:$0xff]  }
 0x8ab   : > { %4303 = vmatprep.subr.bf16.mxu0 %v14143_v41  ;;  %v14209_v41 = vld [vmem:[#allocation10 + $0x2e4] ss:$8 sps:$4 sm:$0xff]  }
 0x8ae   : > { %4304 = vmatpush1.bf16.msra.mxu0 %v14141_v42  ;;  %v14207_v42 = vld [vmem:[#allocation10 + $0x2e0] ss:$8 sps:$4 sm:$0xff]  }
 0x8af   : > { %4305 = vmatprep.subr.bf16.mxu0 %v14146_v21  ;;  %v14212_v21 = vld [vmem:[#allocation10 + $0x2f4] ss:$8 sps:$4 sm:$0xff]  }
 0x8b2   : > { %4306 = vmatpush1.bf16.msra.mxu0 %v14144_v20  ;;  %v14210_v20 = vld [vmem:[#allocation10 + $0x2f0] ss:$8 sps:$4 sm:$0xff]  }
 0x8b3   : > { %4307 = vmatprep.subr.bf16.mxu0 %v14149_v22  ;;  %v4672_v22 = vld [vmem:[#allocation11] sm:$0x3] }
 0x8b6   : > { %4308 = vmatpush1.bf16.msra.mxu0 %v14147_v3  ;;  %v4677_v3 = vrot.slane %v4672_v22, %v16480_v52 }
 0x8b7   : > { %4309 = vmatprep.subr.bf16.mxu0 %v14152_v6  ;;  %v4681_v6 = vrot.slane %v4672_v22, %v16483_v54  ;;  %v14231_v22 = vld [vmem:[%s17351_s5 + $0x150] ss:$8 sps:$4 sm:$0xff]  }
 0x8ba   : > { %4310 = vmatpush1.bf16.msra.mxu0 %v14150_v8 }
 0x8bb   : > { %4311 = vmatprep.subr.bf16.mxu0 %v14155_v55 }
 0x8be   : > { %4312 = vmatpush1.bf16.msra.mxu0 %v14153_v11 }
 0x8bf   : > { %4313 = vmatprep.subr.bf16.mxu0 %v14158_v37 }
 0x8c2   : > { %4314 = vmatpush1.bf16.msra.mxu0 %v14156_v63 }
 0x8c3   : > { %4315 = vmatprep.subr.bf16.mxu0 %v14161_v57 }
 0x8c6   : > { %4316 = vmatpush1.bf16.msra.mxu0 %v14159_v23 }
 0x8c7   : > { %4317 = vmatprep.subr.bf16.mxu0 %v14164_v9 }
 0x8ca   : > { %4318 = vmatpush1.bf16.msra.mxu0 %v14162_v38 }
 0x8cb   : > { %4611 = vmatprep.subr.bf16.mxu0 %v14167_v43 }
 0x8cd   : > { %4320 = vmatmul.mubr.bf16.vlgmr.msra.gmra.mrb[40].mxu0 %v3767_v19  ;;  %v14182_v19 = vld [vmem:[#allocation10 + $0x254] ss:$8 sps:$4 sm:$0xff]  }
 0x8ce   : > { %4329 = vmatprep.mubr.bf16.mxu0 %v3770_v49  ;;  %4612 = vmatpush1.bf16.msra.mxu0 %v14165_v5  ;;  %v14183_v49 = vld [vmem:[#allocation10 + $0x260] ss:$8 sps:$4 sm:$0xff]  }
 0x8cf   : > { %4613 = vmatprep.subr.bf16.mxu0 %v14170_v4 }
 0x8d2   : > { %4614 = vmatpush1.bf16.msra.mxu0 %v14168_v2 }
 0x8d3   : > { %4615 = vmatprep.subr.bf16.mxu0 %v14173_v24 }
 0x8d5   : > { %4330 = vmatmul.mubr.bf16.gmra.mrb[44].mxu0 %v3769_v47  ;;  %v14191_v47 = vld [vmem:[#allocation10 + $0x284] ss:$8 sps:$4 sm:$0xff]  }
 0x8d6   : > { %4616 = vmatpush1.bf16.msra.mxu0 %v14171_v14  ;;  %4643 = vmatprep.mubr.bf16.mxu0 %v4415_v12  ;;  %v14192_v12 = vld [vmem:[#allocation10 + $0x290] ss:$8 sps:$4 sm:$0xff]  }
 0x8d7   : > { %4617 = vmatprep.subr.bf16.mxu0 %v14176_v27 }
 0x8da   : > { %4618 = vmatpush1.bf16.msra.mxu0 %v14174_v35 }
 0x8db   : > { %4619 = vmatprep.subr.bf16.mxu0 %v14179_v18 }
 0x8de   : > { %4620 = vmatpush1.bf16.msra.mxu0 %v14177_v15 }
 0x8df   : > { %4621 = vmatprep.subr.bf16.mxu0 %v14182_v19 }
 0x8e2   : > { %4622 = vmatpush1.bf16.msra.mxu0 %v14180_v10 }
 0x8e3   : > { %4623 = vmatprep.subr.bf16.mxu0 %v14185_v48 }
 0x8e6   : > { %4624 = vmatpush1.bf16.msra.mxu0 %v14183_v49 }
 0x8e7   : > { %4625 = vmatprep.subr.bf16.mxu0 %v14188_v60 }
 0x8ea   : > { %4626 = vmatpush1.bf16.msra.mxu0 %v14186_v34 }
 0x8eb   : > { %4627 = vmatprep.subr.bf16.mxu0 %v14191_v47 }
 0x8ee   : > { %4628 = vmatpush1.bf16.msra.mxu0 %v14189_v51 }
 0x8ef   : > { %4629 = vmatprep.subr.bf16.mxu0 %v14194_v1 }
 0x8f2   : > { %4630 = vmatpush1.bf16.msra.mxu0 %v14192_v12  ;;  %v14214_v12 = vld [vmem:[#allocation13 + $0x18] sm:$0xff]  }
 0x8f3   : > { %4631 = vmatprep.subr.bf16.mxu0 %v14197_v26  ;;  %v14218_v26 = vld [vmem:[%s17351_s5 + $0x104] ss:$8 sps:$4 sm:$0xff]  }
 0x8f6   : > { %4632 = vmatpush1.bf16.msra.mxu0 %v14195_v25  ;;  %v14215_v25 = vld [vmem:[#allocation13 + $0x8] sm:$0xff]  }
 0x8f7   : > { %4633 = vmatprep.subr.bf16.mxu0 %v14200_v40  ;;  %v14216_v40 = vld [vmem:[%s17351_s5 + $0x100] ss:$8 sps:$4 sm:$0xff]  }
 0x8fa   : > { %4634 = vmatpush1.bf16.msra.mxu0 %v14198_v45  ;;  %v14221_v45 = vld [vmem:[%s17351_s5 + $0x114] ss:$8 sps:$4 sm:$0xff]  }
 0x8fb   : > { %4635 = vmatprep.subr.bf16.mxu0 %v14203_v46  ;;  %v14219_v46 = vld [vmem:[%s17351_s5 + $0x110] ss:$8 sps:$4 sm:$0xff]  }
 0x8fe   : > { %4636 = vmatpush1.bf16.msra.mxu0 %v14201_v28  ;;  %v14224_v28 = vld [vmem:[%s17351_s5 + $0x124] ss:$8 sps:$4 sm:$0xff]  }
 0x8ff   : > { %4637 = vmatprep.subr.bf16.mxu0 %v14206_v44  ;;  %v14222_v44 = vld [vmem:[%s17351_s5 + $0x120] ss:$8 sps:$4 sm:$0xff]  }
 0x902   : > { %4638 = vmatpush1.bf16.msra.mxu0 %v14204_v39  ;;  %v14227_v39 = vld [vmem:[%s17351_s5 + $0x134] ss:$8 sps:$4 sm:$0xff]  }
 0x903   : > { %4639 = vmatprep.subr.bf16.mxu0 %v14209_v41  ;;  %v14225_v41 = vld [vmem:[%s17351_s5 + $0x130] ss:$8 sps:$4 sm:$0xff]  }
 0x906   : > { %4640 = vmatpush1.bf16.msra.mxu0 %v14207_v42  ;;  %v14230_v42 = vld [vmem:[%s17351_s5 + $0x144] ss:$8 sps:$4 sm:$0xff]  }
 0x907   : > { %4641 = vmatprep.subr.bf16.mxu0 %v14212_v21  ;;  %v14228_v21 = vld [vmem:[%s17351_s5 + $0x140] ss:$8 sps:$4 sm:$0xff]  }
 0x90a   : > { %4642 = vmatpush1.bf16.msra.mxu0 %v14210_v20  ;;  %v14233_v20 = vld [vmem:[%s17351_s5 + $0x154] ss:$8 sps:$4 sm:$0xff]  }
 0x90d   : > { %4644 = vmatmul.mubr.bf16.vlgmr.msra.gmra.mrb[40].mxu0 %v4414_v33 }
 0x90e   : > { %4653 = vmatprep.mubr.bf16.mxu0 %v4417_v36 }
 0x915   : > { %4654 = vmatmul.mubr.bf16.gmra.mrb[44].mxu0 %v4416_v61 }
 0x916   : > { %5649 = vmatprep.mubr.bf16.mxu0 %v15695_v0 }
 0x9e0   : > { %v4645_v8 = vpop.f32.mrb[40].mxu0 }
 0x9e1   : > { %v4684_v55 = vadd.f32 %v4677_v3, %v4645_v8  ;;  %v4647_v11 = vpop.f32.mrb[41].mxu0  ;;  %v14239_v8 = vld [vmem:[%s17351_s5 + $0x174] ss:$8 sps:$4 sm:$0xff]  }
 0x9e2   : > { %v4685_v50 = vadd.f32 %v4681_v6, %v4647_v11  ;;  %v4649_v53 = vpop.f32.mrb[42].mxu0  ;;  %v14242_v11 = vld [vmem:[%s17351_s5 + $0x184] ss:$8 sps:$4 sm:$0xff]  }
 0x9e3   : > { %v4692_v33 = vadd.f32 %v4684_v55, %v16493_v17  ;;  %v4686_v58 = vadd.f32 %v4677_v3, %v4649_v53  ;;  %v4651_v31 = vpop.f32.mrb[43].mxu0  ;;  %v14237_v55 = vld [vmem:[%s17351_s5 + $0x170] ss:$8 sps:$4 sm:$0xff]   ;;  %v14245_v53 = vld [vmem:[%s17351_s5 + $0x194] ss:$8 sps:$4 sm:$0xff]  }
 0x9e4   : > { %v4693_v36 = vadd.f32 %v4685_v50, %v16489_v7  ;;  %v4687_v56 = vadd.f32 %v4681_v6, %v4651_v31  ;;  %v14240_v50 = vld [vmem:[%s17351_s5 + $0x180] ss:$8 sps:$4 sm:$0xff]  }
 0x9e5   : > { %v4708_v59 = vmul.f32 0.2, %v4692_v33  ;;  %v4694_v61 = vadd.f32 %v4686_v58, %v16487_v62  ;;  %vm4700_vm2 = vcmp.ge.f32.partialorder %v4692_v33, 0.0  ;;  %v14248_v58 = vld [vmem:[%s17351_s5 + $0x1a4] ss:$8 sps:$4 sm:$0xff]  }
 0x9e6   : > { %v4709_v37 = vmul.f32 0.2, %v4693_v36  ;;  %v4695_v63 = vadd.f32 %v4687_v56, %v16491_v16  ;;  %vm4701_vm3 = vcmp.ge.f32.partialorder %v4693_v36, 0.0  ;;  %v14246_v31 = vld [vmem:[%s17351_s5 + $0x1a0] ss:$8 sps:$4 sm:$0xff]  }
 0x9e7   : > { %vm4702_vm4 = vcmp.ge.f32.partialorder %v4694_v61, 0.0  ;;  %v4710_v57 = vmul.f32 0.2, %v4694_v61  ;;  %v4716_v38 = vsel %vm4700_vm2, %v4692_v33, %v4708_v59  ;;  %v14243_v33 = vld [vmem:[%s17351_s5 + $0x190] ss:$8 sps:$4 sm:$0xff]   ;;  %vm7666_vm2 = vcmask 64512  }
 0x9e8   : > { %vm4703_vm5 = vcmp.ge.f32.partialorder %v4695_v63, 0.0  ;;  %v4711_v23 = vmul.f32 0.2, %v4695_v63  ;;  %v4655_v9 = vpop.f32.mrb[44].mxu0  ;;  %v4717_v4 = vsel %vm4701_vm3, %v4693_v36, %v4709_v37  ;;  %v14251_v36 = vld [vmem:[%s17351_s5 + $0x1b4] ss:$8 sps:$4 sm:$0xff]  }
 0x9e9   : > { %v4718_v17 = vsel %vm4702_vm4, %v4694_v61, %v4710_v57  ;;  %v4688_v43 = vadd.f32 %v4677_v3, %v4655_v9  ;;  %v4657_v5 = vpop.f32.mrb[45].mxu0  ;;  %v14249_v56 = vld [vmem:[%s17351_s5 + $0x1b0] ss:$8 sps:$4 sm:$0xff]   ;;  %v14254_v59 = vld [vmem:[%s17351_s5 + $0x1c4] ss:$8 sps:$4 sm:$0xff]  }
 0x9ea   : > { %v16654_v7 = vpack.c.bf16 %v4718_v17, %v4716_v38  ;;  %v4719_v2 = vsel %vm4703_vm5, %v4695_v63, %v4711_v23  ;;  %v4689_v24 = vadd.f32 %v4681_v6, %v4657_v5  ;;  %v4659_v62 = vpop.f32.mrb[46].mxu0  ;;  %v14252_v61 = vld [vmem:[%s17351_s5 + $0x1c0] ss:$8 sps:$4 sm:$0xff]   ;;  %v14257_v37 = vld [vmem:[%s17351_s5 + $0x1d4] ss:$8 sps:$4 sm:$0xff]   ;;  %vm9114_vm5 = vcmask 1041408  }
 0x9eb   : > { %v16656_v14 = vpack.c.bf16 %v4719_v2, %v4717_v4  ;;  %v4696_v16 = vadd.f32 %v4688_v43, %v16511_v13  ;;  %v4690_v27 = vadd.f32 %v4677_v3, %v4659_v62  ;;  %v4661_v35 = vpop.f32.mrb[47].mxu0  ;;  %v14236_v3 = vld [vmem:[%s17351_s5 + $0x164] ss:$8 sps:$4 sm:$0xff]   ;;  %v14255_v63 = vld [vmem:[%s17351_s5 + $0x1d0] ss:$8 sps:$4 sm:$0xff]  }
 0x9ec   : > { %v4697_v18 = vadd.f32 %v4689_v24, %v16507_v30  ;;  %v4691_v15 = vadd.f32 %v4681_v6, %v4661_v35  ;;  %v14234_v6 = vld [vmem:[%s17351_s5 + $0x160] ss:$8 sps:$4 sm:$0xff]   ;;  %v14260_v23 = vld [vmem:[%s17351_s5 + $0x1e4] ss:$8 sps:$4 sm:$0xff]   ;;  %v14263_v9 = vld [vmem:[%s17351_s5 + $0x1f4] ss:$8 sps:$4 sm:$0xff]  }
 0x9ed   : > { %v4712_v19 = vmul.f32 0.2, %v4696_v16  ;;  %v4698_v10 = vadd.f32 %v4690_v27, %v16505_v29  ;;  %4738 = vmatprep.subr.bf16.mxu1 %v16656_v14  ;;  %5617 = vmatprep.subr.bf16.mxu0 %v16656_v14  ;;  %vm4704_vm6 = vcmp.ge.f32.partialorder %v4696_v16, 0.0  ;;  %v14258_v57 = vld [vmem:[%s17351_s5 + $0x1e0] ss:$8 sps:$4 sm:$0xff]  }
 0x9ee   : > { %v4713_v48 = vmul.f32 0.2, %v4697_v18  ;;  %v4699_v49 = vadd.f32 %v4691_v15, %v16509_v32  ;;  %4739 = vmatpush1.bf16.msra.mxu1 %v16654_v7  ;;  %5618 = vmatpush1.bf16.msra.mxu0 %v16654_v7  ;;  %vm4705_vm7 = vcmp.ge.f32.partialorder %v4697_v18, 0.0  ;;  %v14213_v32 = vld [vmem:[#allocation13] sm:$0xff]   ;;  %v14261_v38 = vld [vmem:[%s17351_s5 + $0x1f0] ss:$8 sps:$4 sm:$0xff]  }
 0x9ef   : > { %vm4706_vm8 = vcmp.ge.f32.partialorder %v4698_v10, 0.0  ;;  %v4714_v13 = vmul.f32 0.2, %v4698_v10  ;;  %v4720_v60 = vsel %vm4704_vm6, %v4696_v16, %v4712_v19  ;;  %v14266_v17 = vld [vmem:[%s17351_s5 + $0x4] ss:$8 sps:$4 sm:$0xff]   ;;  %vm9110_vm6 = vcmask 31744  }
 0x9f0   : > { %vm4707_vm10 = vcmp.ge.f32.partialorder %v4699_v49, 0.0  ;;  %v4715_v30 = vmul.f32 0.2, %v4699_v49  ;;  %v4721_v29 = vsel %vm4705_vm7, %v4697_v18, %v4713_v48  ;;  %v14313_v43 = vld [vmem:[#allocation13 + $0x20] sm:$0xff]   ;;  %vm15697_vm7 = vmmov 0  }
 0x9f1   : > { %v4722_v34 = vsel %vm4706_vm8, %v4698_v10, %v4714_v13  ;;  %v14264_v48 = vld [vmem:[%s17351_s5] ss:$8 sps:$4 sm:$0xff]   ;;  %v14267_v13 = vld [vmem:[%s17351_s5 + $0x10] ss:$8 sps:$4 sm:$0xff]  }
 0x9f2   : > { %v16666_v47 = vpack.c.bf16 %v4722_v34, %v4720_v60  ;;  %v4723_v51 = vsel %vm4707_vm10, %v4699_v49, %v4715_v30  ;;  %v14269_v49 = vld [vmem:[%s17351_s5 + $0x14] ss:$8 sps:$4 sm:$0xff]   ;;  %v14272_v30 = vld [vmem:[%s17351_s5 + $0x24] ss:$8 sps:$4 sm:$0xff]   ;;  %v14270_v60 = vld [vmem:[%s17351_s5 + $0x20] ss:$8 sps:$4 sm:$0xff]  }
 0x9f3   : > { %v16668_v1 = vpack.c.bf16 %v4723_v51, %v4721_v29  ;;  %v14275_v34 = vld [vmem:[%s17351_s5 + $0x34] ss:$8 sps:$4 sm:$0xff]   ;;  %v14273_v29 = vld [vmem:[%s17351_s5 + $0x30] ss:$8 sps:$4 sm:$0xff]   ;;  %v14278_v51 = vld [vmem:[%s17351_s5 + $0x44] ss:$8 sps:$4 sm:$0xff]  }
 0x9f4   : > { %vm10220_vm10 = vcmask 1040384  }
 0x9f5   : > { %4740 = vmatprep.subr.bf16.mxu1 %v16668_v1  ;;  %5619 = vmatprep.subr.bf16.mxu0 %v16668_v1 }
 0x9f6   : > { %4741 = vmatpush1.bf16.msra.mxu1 %v16666_v47  ;;  %5620 = vmatpush1.bf16.msra.mxu0 %v16666_v47 }
 0x9f7   : > { %4826 = vmatprep.subr.bf16.mxu1 %v16656_v14  ;;  %5913 = vmatprep.subr.bf16.mxu0 %v16656_v14 }
 0x9f9   : > { %12033 = vmatmul.mubr.msk.bf16.vlgmr.msra.gmra.mrb[64].mxu1 %vm2681_vm9, %v14213_v32  ;;  %12199 = vmatmul.mubr.msk.bf16.vlgmr.msra.gmra.mrb[48].mxu0 %vm2681_vm9, %v14214_v12  ;;  %v14276_v32 = vld [vmem:[%s17351_s5 + $0x40] ss:$8 sps:$4 sm:$0xff]   ;;  %v14281_v12 = vld [vmem:[%s17351_s5 + $0x54] ss:$8 sps:$4 sm:$0xff]  }
 0x9fa   : > { %4827 = vmatpush1.bf16.msra.mxu1 %v16654_v7  ;;  %5914 = vmatpush1.bf16.msra.mxu0 %v16654_v7 }
 0x9fb   : > { %4828 = vmatprep.subr.bf16.mxu1 %v16668_v1  ;;  %5915 = vmatprep.subr.bf16.mxu0 %v16668_v1 }
 0x9fc   : > { %4858 = vmatprep.mubr.bf16.mxu1 %v15695_v0  ;;  %5945 = vmatprep.mubr.bf16.mxu0 %v15695_v0 }
 0x9fe   : > { %4829 = vmatpush1.bf16.msra.mxu1 %v16666_v47  ;;  %5916 = vmatpush1.bf16.msra.mxu0 %v16666_v47 }
 0x9ff   : > { %5064 = vmatprep.subr.bf16.mxu1 %v14218_v26  ;;  %v14279_v26 = vld [vmem:[%s17351_s5 + $0x50] ss:$8 sps:$4 sm:$0xff]  }
 0xa01   : > { %12035 = vmatmul.mubr.msk.bf16.vlgmr.msra.gmra.mrb[68].mxu1 %vm2681_vm9, %v14215_v25  ;;  %12265 = vmatmul.mubr.msk.bf16.vlgmr.msra.gmra.mrb[52].mxu0 %vm2681_vm9, %v14313_v43  ;;  %v14284_v25 = vld [vmem:[%s17351_s5 + $0x64] ss:$8 sps:$4 sm:$0xff]  }
 0xa02   : > { %5065 = vmatpush1.bf16.msra.mxu1 %v14216_v40  ;;  %6265 = vmatprep.mubr.bf16.mxu0 %v15695_v0  ;;  %v14282_v40 = vld [vmem:[%s17351_s5 + $0x60] ss:$8 sps:$4 sm:$0xff]   ;;  %v14340_v43 = vld [vmem:[%s17351_s5 + $0x284] ss:$8 sps:$4 sm:$0xff]  }
 0xa03   : > { %5066 = vmatprep.subr.bf16.mxu1 %v14221_v45  ;;  %v14287_v45 = vld [vmem:[%s17351_s5 + $0x74] ss:$8 sps:$4 sm:$0xff]  }
 0xa06   : > { %5067 = vmatpush1.bf16.msra.mxu1 %v14219_v46  ;;  %v14285_v46 = vld [vmem:[%s17351_s5 + $0x70] ss:$8 sps:$4 sm:$0xff]  }
 0xa07   : > { %5068 = vmatprep.subr.bf16.mxu1 %v14224_v28  ;;  %v14290_v28 = vld [vmem:[%s17351_s5 + $0x84] ss:$8 sps:$4 sm:$0xff]  }
 0xa0a   : > { %5069 = vmatpush1.bf16.msra.mxu1 %v14222_v44  ;;  %v14288_v44 = vld [vmem:[%s17351_s5 + $0x80] ss:$8 sps:$4 sm:$0xff]  }
 0xa0b   : > { %5070 = vmatprep.subr.bf16.mxu1 %v14227_v39  ;;  %v14293_v39 = vld [vmem:[%s17351_s5 + $0x94] ss:$8 sps:$4 sm:$0xff]  }
 0xa0e   : > { %5071 = vmatpush1.bf16.msra.mxu1 %v14225_v41  ;;  %v14291_v41 = vld [vmem:[%s17351_s5 + $0x90] ss:$8 sps:$4 sm:$0xff]  }
 0xa0f   : > { %5072 = vmatprep.subr.bf16.mxu1 %v14230_v42  ;;  %v14296_v42 = vld [vmem:[%s17351_s5 + $0xa4] ss:$8 sps:$4 sm:$0xff]  }
 0xa12   : > { %5073 = vmatpush1.bf16.msra.mxu1 %v14228_v21  ;;  %v14294_v21 = vld [vmem:[%s17351_s5 + $0xa0] ss:$8 sps:$4 sm:$0xff]  }
 0xa13   : > { %5074 = vmatprep.subr.bf16.mxu1 %v14233_v20  ;;  %v14299_v20 = vld [vmem:[%s17351_s5 + $0xb4] ss:$8 sps:$4 sm:$0xff]  }
 0xa16   : > { %5075 = vmatpush1.bf16.msra.mxu1 %v14231_v22  ;;  %v14297_v22 = vld [vmem:[%s17351_s5 + $0xb0] ss:$8 sps:$4 sm:$0xff]  }
 0xa17   : > { %5076 = vmatprep.subr.bf16.mxu1 %v14236_v3  ;;  %v14302_v3 = vld [vmem:[%s17351_s5 + $0xc4] ss:$8 sps:$4 sm:$0xff]  }
 0xa1a   : > { %5077 = vmatpush1.bf16.msra.mxu1 %v14234_v6  ;;  %v14300_v6 = vld [vmem:[%s17351_s5 + $0xc0] ss:$8 sps:$4 sm:$0xff]  }
 0xa1b   : > { %5078 = vmatprep.subr.bf16.mxu1 %v14239_v8  ;;  %v14305_v8 = vld [vmem:[%s17351_s5 + $0xd4] ss:$8 sps:$4 sm:$0xff]  }
 0xa1e   : > { %5079 = vmatpush1.bf16.msra.mxu1 %v14237_v55  ;;  %v14303_v55 = vld [vmem:[%s17351_s5 + $0xd0] ss:$8 sps:$4 sm:$0xff]  }
 0xa1f   : > { %5080 = vmatprep.subr.bf16.mxu1 %v14242_v11  ;;  %v14308_v11 = vld [vmem:[%s17351_s5 + $0xe4] ss:$8 sps:$4 sm:$0xff]  }
 0xa22   : > { %5081 = vmatpush1.bf16.msra.mxu1 %v14240_v50  ;;  %v14306_v50 = vld [vmem:[%s17351_s5 + $0xe0] ss:$8 sps:$4 sm:$0xff]  }
 0xa23   : > { %5082 = vmatprep.subr.bf16.mxu1 %v14245_v53  ;;  %v14311_v53 = vld [vmem:[%s17351_s5 + $0xf4] ss:$8 sps:$4 sm:$0xff]  }
 0xa26   : > { %5083 = vmatpush1.bf16.msra.mxu1 %v14243_v33  ;;  %v14309_v33 = vld [vmem:[%s17351_s5 + $0xf0] ss:$8 sps:$4 sm:$0xff]  }
 0xa27   : > { %5084 = vmatprep.subr.bf16.mxu1 %v14248_v58  ;;  %v14316_v58 = vld [vmem:[%s17351_s5 + $0x204] ss:$8 sps:$4 sm:$0xff]  }
 0xa2a   : > { %5085 = vmatpush1.bf16.msra.mxu1 %v14246_v31  ;;  %v14312_v31 = vld [vmem:[#allocation13 + $0x10] sm:$0xff]  }
 0xa2b   : > { %5086 = vmatprep.subr.bf16.mxu1 %v14251_v36  ;;  %v14314_v36 = vld [vmem:[%s17351_s5 + $0x200] ss:$8 sps:$4 sm:$0xff]  }
 0xa2e   : > { %5087 = vmatpush1.bf16.msra.mxu1 %v14249_v56  ;;  %v14322_v56 = vld [vmem:[%s17351_s5 + $0x224] ss:$8 sps:$4 sm:$0xff]  }
 0xa2f   : > { %5088 = vmatprep.subr.bf16.mxu1 %v14254_v59  ;;  %v14325_v59 = vld [vmem:[%s17351_s5 + $0x234] ss:$8 sps:$4 sm:$0xff]  }
 0xa32   : > { %5089 = vmatpush1.bf16.msra.mxu1 %v14252_v61  ;;  %v14328_v61 = vld [vmem:[%s17351_s5 + $0x244] ss:$8 sps:$4 sm:$0xff]  }
 0xa33   : > { %5090 = vmatprep.subr.bf16.mxu1 %v14257_v37  ;;  %v14326_v37 = vld [vmem:[%s17351_s5 + $0x240] ss:$8 sps:$4 sm:$0xff]  }
 0xa36   : > { %5091 = vmatpush1.bf16.msra.mxu1 %v14255_v63  ;;  %v14331_v63 = vld [vmem:[%s17351_s5 + $0x254] ss:$8 sps:$4 sm:$0xff]  }
 0xa37   : > { %5092 = vmatprep.subr.bf16.mxu1 %v14260_v23  ;;  %v14334_v23 = vld [vmem:[%s17351_s5 + $0x264] ss:$8 sps:$4 sm:$0xff]  }
 0xa3a   : > { %5093 = vmatpush1.bf16.msra.mxu1 %v14258_v57  ;;  %v14329_v57 = vld [vmem:[%s17351_s5 + $0x250] ss:$8 sps:$4 sm:$0xff]  }
 0xa3b   : > { %5094 = vmatprep.subr.bf16.mxu1 %v14263_v9  ;;  %v14332_v9 = vld [vmem:[%s17351_s5 + $0x260] ss:$8 sps:$4 sm:$0xff]  }
 0xa3e   : > { %5095 = vmatpush1.bf16.msra.mxu1 %v14261_v38  ;;  %v14337_v38 = vld [vmem:[%s17351_s5 + $0x274] ss:$8 sps:$4 sm:$0xff]  }
 0xa3f   : > { %5267 = vmatprep.subr.bf16.mxu1 %v14266_v17  ;;  %v14335_v17 = vld [vmem:[%s17351_s5 + $0x270] ss:$8 sps:$4 sm:$0xff]  }
 0xacc   : > { %v16722_v5 = vpop.f32.mrb[64].mxu1 }
 0xacd   : > { %v4774_v4 = vpop.f32.mrb[65].mxu1 }
 0xace   : > { %v16724_v2 = vpop.f32.mrb[66].mxu1 }
 0xacf   : > { %v4781_v24 = vpack.c.bf16 %v16724_v2, %v16722_v5  ;;  %v4778_v62 = vpop.f32.mrb[67].mxu1  ;;  %v14338_v5 = vld [vmem:[%s17351_s5 + $0x280] ss:$8 sps:$4 sm:$0xff]   ;;  %v14341_v2 = vld [vmem:[%s17351_s5 + $0x290] ss:$8 sps:$4 sm:$0xff]  }
 0xad0   : > { %v4782_v16 = vpack.c.bf16 %v4778_v62, %v4774_v4  ;;  %v14343_v4 = vld [vmem:[%s17351_s5 + $0x294] ss:$8 sps:$4 sm:$0xff]   ;;  %v14344_v62 = vld [vmem:[%s17351_s5 + $0x2a0] ss:$8 sps:$4 sm:$0xff]  }
 0xad4   : > { %v4860_v27 = vpop.f32.mrb[68].mxu1 }
 0xad5   : > { %v4862_v35 = vpop.f32.mrb[69].mxu1 }
 0xad6   : > { %v4864_v18 = vpop.f32.mrb[70].mxu1 }
 0xad7   : > { %v4869_v15 = vpack.c.bf16 %v4864_v18, %v4860_v27  ;;  %v4866_v19 = vpop.f32.mrb[71].mxu1  ;;  %v14347_v27 = vld [vmem:[%s17351_s5 + $0x2b0] ss:$8 sps:$4 sm:$0xff]   ;;  %v14350_v18 = vld [vmem:[%s17351_s5 + $0x2c0] ss:$8 sps:$4 sm:$0xff]  }
 0xad8   : > { %v4870_v10 = vpack.c.bf16 %v4866_v19, %v4862_v35  ;;  %v14352_v35 = vld [vmem:[%s17351_s5 + $0x2c4] ss:$8 sps:$4 sm:$0xff]   ;;  %v14353_v19 = vld [vmem:[%s17351_s5 + $0x2d0] ss:$8 sps:$4 sm:$0xff]  }
 0xada   : > { %5096 = vmatprep.mubr.bf16.mxu1 %v4870_v10  ;;  %v14358_v10 = vld [vmem:[%s17351_s5 + $0x2e4] ss:$8 sps:$4 sm:$0xff]  }
 0xadb   : > { %5097 = vmatmul.mubr.bf16.vlgmr.msra.gmra.mrb[72].mxu1 %v4869_v15  ;;  %v14355_v15 = vld [vmem:[%s17351_s5 + $0x2d4] ss:$8 sps:$4 sm:$0xff]  }
 0xadc   : > { %5268 = vmatpush1.bf16.msra.mxu1 %v14264_v48  ;;  %5299 = vmatprep.mubr.bf16.mxu1 %v4782_v16  ;;  %v14349_v16 = vld [vmem:[%s17351_s5 + $0x2b4] ss:$8 sps:$4 sm:$0xff]   ;;  %v14356_v48 = vld [vmem:[%s17351_s5 + $0x2e0] ss:$8 sps:$4 sm:$0xff]  }
 0xadd   : > { %5269 = vmatprep.subr.bf16.mxu1 %v14269_v49  ;;  %v14361_v49 = vld [vmem:[%s17351_s5 + $0x2f4] ss:$8 sps:$4 sm:$0xff]  }
 0xae0   : > { %5270 = vmatpush1.bf16.msra.mxu1 %v14267_v13  ;;  %v14359_v13 = vld [vmem:[%s17351_s5 + $0x2f0] ss:$8 sps:$4 sm:$0xff]  }
 0xae1   : > { %5271 = vmatprep.subr.bf16.mxu1 %v14272_v30  ;;  %v14364_v30 = vld [vmem:[%s17351_s5 + $0x304] ss:$8 sps:$4 sm:$0xff]  }
 0xae4   : > { %5272 = vmatpush1.bf16.msra.mxu1 %v14270_v60  ;;  %v16801_v60 = vpop.f32.mrb[48].mxu0 }
 0xae5   : > { %5273 = vmatprep.subr.bf16.mxu1 %v14275_v34  ;;  %v5653_v34 = vpop.f32.mrb[49].mxu0 }
 0xae8   : > { %5274 = vmatpush1.bf16.msra.mxu1 %v14273_v29  ;;  %v16803_v29 = vpop.f32.mrb[50].mxu0 }
 0xae9   : > { %5275 = vmatprep.subr.bf16.mxu1 %v14278_v51  ;;  %v5660_v51 = vpack.c.bf16 %v16803_v29, %v16801_v60  ;;  %v14430_v60 = vld [vmem:[%s17351_s5 + $0x464] ss:$8 sps:$4 sm:$0xff]   ;;  %v14433_v29 = vld [vmem:[%s17351_s5 + $0x474] ss:$8 sps:$4 sm:$0xff]  }
 0xaec   : > { %5276 = vmatpush1.bf16.msra.mxu1 %v14276_v32  ;;  %v5657_v32 = vpop.f32.mrb[51].mxu0 }
 0xaed   : > { %5277 = vmatprep.subr.bf16.mxu1 %v14281_v12  ;;  %v5661_v12 = vpack.c.bf16 %v5657_v32, %v5653_v34  ;;  %v14428_v34 = vld [vmem:[%s17351_s5 + $0x460] ss:$8 sps:$4 sm:$0xff]   ;;  %v14436_v32 = vld [vmem:[%s17351_s5 + $0x484] ss:$8 sps:$4 sm:$0xff]  }
 0xaf0   : > { %5278 = vmatpush1.bf16.msra.mxu1 %v14279_v26  ;;  %v16807_v26 = vpop.f32.mrb[52].mxu0 }
 0xaf1   : > { %5279 = vmatprep.subr.bf16.mxu1 %v14284_v25  ;;  %v16809_v25 = vpop.f32.mrb[53].mxu0 }
 0xaf4   : > { %5280 = vmatpush1.bf16.msra.mxu1 %v14282_v40  ;;  %v16811_v40 = vpop.f32.mrb[54].mxu0 }
 0xaf5   : > { %5281 = vmatprep.subr.bf16.mxu1 %v14287_v45  ;;  %v5956_v45 = vpack.c.bf16 %v16811_v40, %v16807_v26 }
 0xaf8   : > { %5282 = vmatpush1.bf16.msra.mxu1 %v14285_v46  ;;  %v16815_v46 = vpop.f32.mrb[55].mxu0 }
 0xaf9   : > { %5283 = vmatprep.subr.bf16.mxu1 %v14290_v28 }
 0xafc   : > { %5284 = vmatpush1.bf16.msra.mxu1 %v14288_v44  ;;  %v5957_v44 = vpack.c.bf16 %v16815_v46, %v16809_v25  ;;  %v14439_v25 = vld [vmem:[%s17351_s5 + $0x494] ss:$8 sps:$4 sm:$0xff]   ;;  %v14437_v46 = vld [vmem:[%s17351_s5 + $0x490] ss:$8 sps:$4 sm:$0xff]  }
 0xafd   : > { %5285 = vmatprep.subr.bf16.mxu1 %v14293_v39 }
 0xb00   : > { %5286 = vmatpush1.bf16.msra.mxu1 %v14291_v41 }
 0xb01   : > { %5287 = vmatprep.subr.bf16.mxu1 %v14296_v42 }
 0xb04   : > { %5288 = vmatpush1.bf16.msra.mxu1 %v14294_v21 }
 0xb05   : > { %5289 = vmatprep.subr.bf16.mxu1 %v14299_v20 }
 0xb08   : > { %5290 = vmatpush1.bf16.msra.mxu1 %v14297_v22  ;;  %v14362_v22 = vld [vmem:[%s17351_s5 + $0x300] ss:$8 sps:$4 sm:$0xff]  }
 0xb09   : > { %5291 = vmatprep.subr.bf16.mxu1 %v14302_v3  ;;  %v14367_v3 = vld [vmem:[%s17351_s5 + $0x314] ss:$8 sps:$4 sm:$0xff]  }
 0xb0c   : > { %5292 = vmatpush1.bf16.msra.mxu1 %v14300_v6  ;;  %v14365_v6 = vld [vmem:[%s17351_s5 + $0x310] ss:$8 sps:$4 sm:$0xff]  }
 0xb0d   : > { %5293 = vmatprep.subr.bf16.mxu1 %v14305_v8  ;;  %v14370_v8 = vld [vmem:[%s17351_s5 + $0x324] ss:$8 sps:$4 sm:$0xff]  }
 0xb10   : > { %5294 = vmatpush1.bf16.msra.mxu1 %v14303_v55  ;;  %v14368_v55 = vld [vmem:[%s17351_s5 + $0x320] ss:$8 sps:$4 sm:$0xff]  }
 0xb11   : > { %5295 = vmatprep.subr.bf16.mxu1 %v14308_v11  ;;  %v14373_v11 = vld [vmem:[%s17351_s5 + $0x334] ss:$8 sps:$4 sm:$0xff]  }
 0xb14   : > { %5296 = vmatpush1.bf16.msra.mxu1 %v14306_v50  ;;  %v14371_v50 = vld [vmem:[%s17351_s5 + $0x330] ss:$8 sps:$4 sm:$0xff]  }
 0xb15   : > { %5297 = vmatprep.subr.bf16.mxu1 %v14311_v53  ;;  %v14376_v53 = vld [vmem:[%s17351_s5 + $0x344] ss:$8 sps:$4 sm:$0xff]  }
 0xb18   : > { %5298 = vmatpush1.bf16.msra.mxu1 %v14309_v33  ;;  %v14374_v33 = vld [vmem:[%s17351_s5 + $0x340] ss:$8 sps:$4 sm:$0xff]  }
 0xb19   : > { %5321 = vmatprep.subr.bf16.mxu1 %v16656_v14  ;;  %v14319_v14 = vld [vmem:[%s17351_s5 + $0x214] ss:$8 sps:$4 sm:$0xff]  }
 0xb1b   : > { %5300 = vmatmul.mubr.bf16.vlgmr.msra.gmra.mrb[72].mxu1 %v4781_v24  ;;  %v14346_v24 = vld [vmem:[%s17351_s5 + $0x2a4] ss:$8 sps:$4 sm:$0xff]  }
 0xb1c   : > { %5322 = vmatpush1.bf16.msra.mxu1 %v16654_v7  ;;  %5353 = vmatprep.mubr.bf16.mxu1 %v15695_v0  ;;  %v14317_v7 = vld [vmem:[%s17351_s5 + $0x210] ss:$8 sps:$4 sm:$0xff]  }
 0xb1d   : > { %5323 = vmatprep.subr.bf16.mxu1 %v16668_v1  ;;  %v14320_v1 = vld [vmem:[%s17351_s5 + $0x220] ss:$8 sps:$4 sm:$0xff]  }
 0xb20   : > { %5324 = vmatpush1.bf16.msra.mxu1 %v16666_v47  ;;  %v14323_v47 = vld [vmem:[%s17351_s5 + $0x230] ss:$8 sps:$4 sm:$0xff]  }
 0xb21   : > { %5559 = vmatprep.subr.bf16.mxu1 %v14316_v58  ;;  %v14379_v58 = vld [vmem:[%s17351_s5 + $0x354] ss:$8 sps:$4 sm:$0xff]  }
 0xb23   : > { %12133 = vmatmul.mubr.msk.bf16.vlgmr.msra.gmra.mrb[76].mxu1 %vm2681_vm9, %v14312_v31  ;;  %v14377_v31 = vld [vmem:[%s17351_s5 + $0x350] ss:$8 sps:$4 sm:$0xff]  }
 0xb24   : > { %5560 = vmatpush1.bf16.msra.mxu1 %v14314_v36  ;;  %v14382_v36 = vld [vmem:[%s17351_s5 + $0x364] ss:$8 sps:$4 sm:$0xff]  }
 0xb25   : > { %5561 = vmatprep.subr.bf16.mxu1 %v14319_v14  ;;  %v14380_v14 = vld [vmem:[%s17351_s5 + $0x360] ss:$8 sps:$4 sm:$0xff]  }
 0xb28   : > { %5562 = vmatpush1.bf16.msra.mxu1 %v14317_v7  ;;  %v14385_v7 = vld [vmem:[%s17351_s5 + $0x374] ss:$8 sps:$4 sm:$0xff]  }
 0xb29   : > { %5563 = vmatprep.subr.bf16.mxu1 %v14322_v56  ;;  %v14383_v56 = vld [vmem:[%s17351_s5 + $0x370] ss:$8 sps:$4 sm:$0xff]  }
 0xb2c   : > { %5564 = vmatpush1.bf16.msra.mxu1 %v14320_v1  ;;  %v14388_v1 = vld [vmem:[%s17351_s5 + $0x384] ss:$8 sps:$4 sm:$0xff]  }
 0xb2d   : > { %5565 = vmatprep.subr.bf16.mxu1 %v14325_v59  ;;  %v14386_v59 = vld [vmem:[%s17351_s5 + $0x380] ss:$8 sps:$4 sm:$0xff]  }
 0xb30   : > { %5566 = vmatpush1.bf16.msra.mxu1 %v14323_v47  ;;  %v14391_v47 = vld [vmem:[%s17351_s5 + $0x394] ss:$8 sps:$4 sm:$0xff]  }
 0xb31   : > { %5567 = vmatprep.subr.bf16.mxu1 %v14328_v61  ;;  %v14389_v61 = vld [vmem:[%s17351_s5 + $0x390] ss:$8 sps:$4 sm:$0xff]  }
 0xb34   : > { %5568 = vmatpush1.bf16.msra.mxu1 %v14326_v37  ;;  %v14394_v37 = vld [vmem:[%s17351_s5 + $0x3a4] ss:$8 sps:$4 sm:$0xff]  }
 0xb35   : > { %5569 = vmatprep.subr.bf16.mxu1 %v14331_v63  ;;  %v14392_v63 = vld [vmem:[%s17351_s5 + $0x3a0] ss:$8 sps:$4 sm:$0xff]  }
 0xb38   : > { %5570 = vmatpush1.bf16.msra.mxu1 %v14329_v57  ;;  %v14397_v57 = vld [vmem:[%s17351_s5 + $0x3b4] ss:$8 sps:$4 sm:$0xff]  }
 0xb39   : > { %5571 = vmatprep.subr.bf16.mxu1 %v14334_v23  ;;  %v14395_v23 = vld [vmem:[%s17351_s5 + $0x3b0] ss:$8 sps:$4 sm:$0xff]  }
 0xb3c   : > { %5572 = vmatpush1.bf16.msra.mxu1 %v14332_v9  ;;  %v14400_v9 = vld [vmem:[%s17351_s5 + $0x3c4] ss:$8 sps:$4 sm:$0xff]  }
 0xb3d   : > { %5573 = vmatprep.subr.bf16.mxu1 %v14337_v38  ;;  %v14398_v38 = vld [vmem:[%s17351_s5 + $0x3c0] ss:$8 sps:$4 sm:$0xff]  }
 0xb40   : > { %5574 = vmatpush1.bf16.msra.mxu1 %v14335_v17  ;;  %v14403_v17 = vld [vmem:[%s17351_s5 + $0x3d4] ss:$8 sps:$4 sm:$0xff]  }
 0xb41   : > { %5575 = vmatprep.subr.bf16.mxu1 %v14340_v43  ;;  %v14401_v43 = vld [vmem:[%s17351_s5 + $0x3d0] ss:$8 sps:$4 sm:$0xff]  }
 0xb44   : > { %5576 = vmatpush1.bf16.msra.mxu1 %v14338_v5  ;;  %v14406_v5 = vld [vmem:[%s17351_s5 + $0x3e4] ss:$8 sps:$4 sm:$0xff]  }
 0xb45   : > { %5577 = vmatprep.subr.bf16.mxu1 %v14343_v4  ;;  %v14404_v4 = vld [vmem:[%s17351_s5 + $0x3e0] ss:$8 sps:$4 sm:$0xff]  }
 0xb48   : > { %5578 = vmatpush1.bf16.msra.mxu1 %v14341_v2  ;;  %v14409_v2 = vld [vmem:[%s17351_s5 + $0x3f4] ss:$8 sps:$4 sm:$0xff]  }
 0xb49   : > { %5579 = vmatprep.subr.bf16.mxu1 %v14346_v24  ;;  %v14407_v24 = vld [vmem:[%s17351_s5 + $0x3f0] ss:$8 sps:$4 sm:$0xff]  }
 0xb4c   : > { %5580 = vmatpush1.bf16.msra.mxu1 %v14344_v62  ;;  %v14412_v62 = vld [vmem:[%s17351_s5 + $0x404] ss:$8 sps:$4 sm:$0xff]  }
 0xb4d   : > { %5581 = vmatprep.subr.bf16.mxu1 %v14349_v16  ;;  %v14410_v16 = vld [vmem:[%s17351_s5 + $0x400] ss:$8 sps:$4 sm:$0xff]  }
 0xb50   : > { %5582 = vmatpush1.bf16.msra.mxu1 %v14347_v27  ;;  %v14415_v27 = vld [vmem:[%s17351_s5 + $0x414] ss:$8 sps:$4 sm:$0xff]  }
 0xb51   : > { %5583 = vmatprep.subr.bf16.mxu1 %v14352_v35  ;;  %v14413_v35 = vld [vmem:[%s17351_s5 + $0x410] ss:$8 sps:$4 sm:$0xff]  }
 0xb54   : > { %5584 = vmatpush1.bf16.msra.mxu1 %v14350_v18  ;;  %v14418_v18 = vld [vmem:[%s17351_s5 + $0x424] ss:$8 sps:$4 sm:$0xff]  }
 0xb55   : > { %5585 = vmatprep.subr.bf16.mxu1 %v14355_v15  ;;  %v14416_v15 = vld [vmem:[%s17351_s5 + $0x420] ss:$8 sps:$4 sm:$0xff]  }
 0xb58   : > { %5586 = vmatpush1.bf16.msra.mxu1 %v14353_v19  ;;  %v14421_v19 = vld [vmem:[%s17351_s5 + $0x434] ss:$8 sps:$4 sm:$0xff]  }
 0xb59   : > { %5587 = vmatprep.subr.bf16.mxu1 %v14358_v10  ;;  %v14419_v10 = vld [vmem:[%s17351_s5 + $0x430] ss:$8 sps:$4 sm:$0xff]  }
 0xb5c   : > { %5588 = vmatpush1.bf16.msra.mxu1 %v14356_v48  ;;  %v14424_v48 = vld [vmem:[%s17351_s5 + $0x444] ss:$8 sps:$4 sm:$0xff]  }
 0xb5d   : > { %5589 = vmatprep.subr.bf16.mxu1 %v14361_v49  ;;  %v14422_v49 = vld [vmem:[%s17351_s5 + $0x440] ss:$8 sps:$4 sm:$0xff]  }
 0xb60   : > { %5590 = vmatpush1.bf16.msra.mxu1 %v14359_v13  ;;  %v14427_v13 = vld [vmem:[%s17351_s5 + $0x454] ss:$8 sps:$4 sm:$0xff]  }
 0xb61   : > { %5855 = vmatprep.subr.bf16.mxu1 %v14364_v30  ;;  %v14425_v30 = vld [vmem:[%s17351_s5 + $0x450] ss:$8 sps:$4 sm:$0xff]  }
 0xbf6   : > { %v5355_v28 = vpop.f32.mrb[76].mxu1 }
 0xbf7   : > { %v5357_v39 = vpop.f32.mrb[77].mxu1 }
 0xbf8   : > { %v5359_v41 = vpop.f32.mrb[78].mxu1 }
 0xbf9   : > { %v5364_v42 = vpack.c.bf16 %v5359_v41, %v5355_v28  ;;  %v5361_v21 = vpop.f32.mrb[79].mxu1  ;;  %v14442_v28 = vld [vmem:[%s17351_s5 + $0x4a4] ss:$8 sps:$4 sm:$0xff]   ;;  %v14443_v41 = vld [vmem:[%s17351_s5 + $0x4b0] ss:$8 sps:$4 sm:$0xff]  }
 0xbfa   : > { %v5365_v20 = vpack.c.bf16 %v5361_v21, %v5357_v39  ;;  %v14445_v39 = vld [vmem:[%s17351_s5 + $0x4b4] ss:$8 sps:$4 sm:$0xff]   ;;  %v14446_v21 = vld [vmem:[%s17351_s5 + $0x4c0] ss:$8 sps:$4 sm:$0xff]  }
 0xbfc   : > { %5591 = vmatprep.mubr.bf16.mxu1 %v5365_v20  ;;  %v14451_v20 = vld [vmem:[%s17351_s5 + $0x4d4] ss:$8 sps:$4 sm:$0xff]  }
 0xbfd   : > { %5592 = vmatmul.mubr.bf16.vlgmr.msra.gmra.mrb[72].mxu1 %v5364_v42  ;;  %v14448_v42 = vld [vmem:[%s17351_s5 + $0x4c4] ss:$8 sps:$4 sm:$0xff]  }
 0xbfe   : > { %5856 = vmatpush1.bf16.msra.mxu1 %v14362_v22  ;;  %5887 = vmatprep.mubr.bf16.mxu1 %v5661_v12  ;;  %v14434_v12 = vld [vmem:[%s17351_s5 + $0x480] ss:$8 sps:$4 sm:$0xff]   ;;  %v14449_v22 = vld [vmem:[%s17351_s5 + $0x4d0] ss:$8 sps:$4 sm:$0xff]  }
 0xbff   : > { %5857 = vmatprep.subr.bf16.mxu1 %v14367_v3  ;;  %v14454_v3 = vld [vmem:[%s17351_s5 + $0x4e4] ss:$8 sps:$4 sm:$0xff]  }
 0xc02   : > { %5858 = vmatpush1.bf16.msra.mxu1 %v14365_v6  ;;  %v14452_v6 = vld [vmem:[%s17351_s5 + $0x4e0] ss:$8 sps:$4 sm:$0xff]  }
 0xc03   : > { %5859 = vmatprep.subr.bf16.mxu1 %v14370_v8  ;;  %v14457_v8 = vld [vmem:[%s17351_s5 + $0x4f4] ss:$8 sps:$4 sm:$0xff]  }
 0xc06   : > { %5860 = vmatpush1.bf16.msra.mxu1 %v14368_v55  ;;  %v14455_v55 = vld [vmem:[%s17351_s5 + $0x4f0] ss:$8 sps:$4 sm:$0xff]  }
 0xc07   : > { %5861 = vmatprep.subr.bf16.mxu1 %v14373_v11  ;;  %v6198_v11 = vld [vmem:[#allocation14] sm:$0x3] }
 0xc0a   : > { %5862 = vmatpush1.bf16.msra.mxu1 %v14371_v50  ;;  %v6203_v50 = vrot.slane %v6198_v11, %v16480_v52 }
 0xc0b   : > { %5863 = vmatprep.subr.bf16.mxu1 %v14376_v53  ;;  %v6207_v53 = vrot.slane %v6198_v11, %v16483_v54 }
 0xc0e   : > { %5864 = vmatpush1.bf16.msra.mxu1 %v14374_v33 }
 0xc0f   : > { %5865 = vmatprep.subr.bf16.mxu1 %v14379_v58 }
 0xc12   : > { %5866 = vmatpush1.bf16.msra.mxu1 %v14377_v31 }
 0xc13   : > { %5867 = vmatprep.subr.bf16.mxu1 %v14382_v36 }
 0xc16   : > { %5868 = vmatpush1.bf16.msra.mxu1 %v14380_v14 }
 0xc17   : > { %5869 = vmatprep.subr.bf16.mxu1 %v14385_v7 }
 0xc1a   : > { %5870 = vmatpush1.bf16.msra.mxu1 %v14383_v56 }
 0xc1b   : > { %5871 = vmatprep.subr.bf16.mxu1 %v14388_v1 }
 0xc1e   : > { %5872 = vmatpush1.bf16.msra.mxu1 %v14386_v59 }
 0xc1f   : > { %5873 = vmatprep.subr.bf16.mxu1 %v14391_v47 }
 0xc22   : > { %5874 = vmatpush1.bf16.msra.mxu1 %v14389_v61 }
 0xc23   : > { %5875 = vmatprep.subr.bf16.mxu1 %v14394_v37 }
 0xc26   : > { %5876 = vmatpush1.bf16.msra.mxu1 %v14392_v63 }
 0xc27   : > { %5877 = vmatprep.subr.bf16.mxu1 %v14397_v57 }
 0xc2a   : > { %5878 = vmatpush1.bf16.msra.mxu1 %v14395_v23 }
 0xc2b   : > { %5879 = vmatprep.subr.bf16.mxu1 %v14400_v9  ;;  %v6228_v9 = vld [vmem:[#allocation16] sm:$0xf] }
 0xc2e   : > { %5880 = vmatpush1.bf16.msra.mxu1 %v14398_v38  ;;  %v14460_v38 = vld [vmem:[#allocation17 + $0x104] ss:$8 sps:$4 sm:$0xff]  }
 0xc2f   : > { %5881 = vmatprep.subr.bf16.mxu1 %v14403_v17  ;;  %v6309_v17 = vld [vmem:[#allocation16 + $0x4] sm:$0xf] }
 0xc32   : > { %5882 = vmatpush1.bf16.msra.mxu1 %v14401_v43  ;;  %v14458_v43 = vld [vmem:[#allocation17 + $0x100] ss:$8 sps:$4 sm:$0xff]  }
 0xc33   : > { %5883 = vmatprep.subr.bf16.mxu1 %v14406_v5  ;;  %v14463_v5 = vld [vmem:[#allocation17 + $0x114] ss:$8 sps:$4 sm:$0xff]  }
 0xc36   : > { %5884 = vmatpush1.bf16.msra.mxu1 %v14404_v4  ;;  %v14461_v4 = vld [vmem:[#allocation17 + $0x110] ss:$8 sps:$4 sm:$0xff]  }
 0xc37   : > { %5885 = vmatprep.subr.bf16.mxu1 %v14409_v2  ;;  %v14466_v2 = vld [vmem:[#allocation17 + $0x124] ss:$8 sps:$4 sm:$0xff]  }
 0xc3a   : > { %5886 = vmatpush1.bf16.msra.mxu1 %v14407_v24  ;;  %v14464_v24 = vld [vmem:[#allocation17 + $0x120] ss:$8 sps:$4 sm:$0xff]  }
 0xc3b   : > { %6151 = vmatprep.subr.bf16.mxu1 %v14412_v62  ;;  %v14469_v62 = vld [vmem:[#allocation17 + $0x134] ss:$8 sps:$4 sm:$0xff]  }
 0xc3d   : > { %5888 = vmatmul.mubr.bf16.vlgmr.msra.gmra.mrb[72].mxu1 %v5660_v51  ;;  %v14431_v51 = vld [vmem:[%s17351_s5 + $0x470] ss:$8 sps:$4 sm:$0xff]  }
 0xc3e   : > { %6152 = vmatpush1.bf16.msra.mxu1 %v14410_v16  ;;  %6183 = vmatprep.mubr.bf16.mxu1 %v5957_v44  ;;  %v14440_v44 = vld [vmem:[%s17351_s5 + $0x4a0] ss:$8 sps:$4 sm:$0xff]   ;;  %v14467_v16 = vld [vmem:[#allocation17 + $0x130] ss:$8 sps:$4 sm:$0xff]   ;;  %s15550_s5 = scalar_lea.vmem %s15549_s4, 32 }
 0xc3f   : > { %6153 = vmatprep.subr.bf16.mxu1 %v14415_v27  ;;  %v14472_v27 = vld [vmem:[#allocation17 + $0x144] ss:$8 sps:$4 sm:$0xff]  }
 0xc42   : > { %6154 = vmatpush1.bf16.msra.mxu1 %v14413_v35  ;;  %v14470_v35 = vld [vmem:[#allocation17 + $0x140] ss:$8 sps:$4 sm:$0xff]  }
 0xc43   : > { %6155 = vmatprep.subr.bf16.mxu1 %v14418_v18  ;;  %v14475_v18 = vld [vmem:[#allocation17 + $0x154] ss:$8 sps:$4 sm:$0xff]  }
 0xc46   : > { %6156 = vmatpush1.bf16.msra.mxu1 %v14416_v15  ;;  %v14473_v15 = vld [vmem:[#allocation17 + $0x150] ss:$8 sps:$4 sm:$0xff]  }
 0xc47   : > { %6157 = vmatprep.subr.bf16.mxu1 %v14421_v19  ;;  %v14478_v19 = vld [vmem:[#allocation17 + $0x164] ss:$8 sps:$4 sm:$0xff]  }
 0xc4a   : > { %6158 = vmatpush1.bf16.msra.mxu1 %v14419_v10  ;;  %v14476_v10 = vld [vmem:[#allocation17 + $0x160] ss:$8 sps:$4 sm:$0xff]  }
 0xc4b   : > { %6159 = vmatprep.subr.bf16.mxu1 %v14424_v48  ;;  %v14481_v48 = vld [vmem:[#allocation17 + $0x174] ss:$8 sps:$4 sm:$0xff]  }
 0xc4e   : > { %6160 = vmatpush1.bf16.msra.mxu1 %v14422_v49  ;;  %v14479_v49 = vld [vmem:[#allocation17 + $0x170] ss:$8 sps:$4 sm:$0xff]  }
 0xc4f   : > { %6161 = vmatprep.subr.bf16.mxu1 %v14427_v13  ;;  %v14484_v13 = vld [vmem:[#allocation17 + $0x184] ss:$8 sps:$4 sm:$0xff]  }
 0xc52   : > { %6162 = vmatpush1.bf16.msra.mxu1 %v14425_v30  ;;  %v14482_v30 = vld [vmem:[#allocation17 + $0x180] ss:$8 sps:$4 sm:$0xff]  }
 0xc53   : > { %6163 = vmatprep.subr.bf16.mxu1 %v14430_v60  ;;  %v14487_v60 = vld [vmem:[#allocation17 + $0x194] ss:$8 sps:$4 sm:$0xff]  }
 0xc56   : > { %6164 = vmatpush1.bf16.msra.mxu1 %v14428_v34  ;;  %v14485_v34 = vld [vmem:[#allocation17 + $0x190] ss:$8 sps:$4 sm:$0xff]  }
 0xc57   : > { %6165 = vmatprep.subr.bf16.mxu1 %v14433_v29  ;;  %v14490_v29 = vld [vmem:[#allocation17 + $0x1a4] ss:$8 sps:$4 sm:$0xff]  }
 0xc5a   : > { %6166 = vmatpush1.bf16.msra.mxu1 %v14431_v51  ;;  %v14488_v51 = vld [vmem:[#allocation17 + $0x1a0] ss:$8 sps:$4 sm:$0xff]  }
 0xc5b   : > { %6167 = vmatprep.subr.bf16.mxu1 %v14436_v32  ;;  %v14493_v32 = vld [vmem:[#allocation17 + $0x1b4] ss:$8 sps:$4 sm:$0xff]  }
 0xc5e   : > { %6168 = vmatpush1.bf16.msra.mxu1 %v14434_v12  ;;  %v14491_v12 = vld [vmem:[#allocation17 + $0x1b0] ss:$8 sps:$4 sm:$0xff]  }
 0xc5f   : > { %6169 = vmatprep.subr.bf16.mxu1 %v14439_v25  ;;  %v14496_v25 = vld [vmem:[#allocation17 + $0x1c4] ss:$8 sps:$4 sm:$0xff]  }
 0xc62   : > { %6170 = vmatpush1.bf16.msra.mxu1 %v14437_v46  ;;  %v14494_v46 = vld [vmem:[#allocation17 + $0x1c0] ss:$8 sps:$4 sm:$0xff]  }
 0xc63   : > { %6171 = vmatprep.subr.bf16.mxu1 %v14442_v28  ;;  %v14499_v28 = vld [vmem:[#allocation17 + $0x1d4] ss:$8 sps:$4 sm:$0xff]  }
 0xc66   : > { %6172 = vmatpush1.bf16.msra.mxu1 %v14440_v44  ;;  %v14497_v44 = vld [vmem:[#allocation17 + $0x1d0] ss:$8 sps:$4 sm:$0xff]  }
 0xc67   : > { %6173 = vmatprep.subr.bf16.mxu1 %v14445_v39  ;;  %v14502_v39 = vld [vmem:[#allocation17 + $0x1e4] ss:$8 sps:$4 sm:$0xff]  }
 0xc6a   : > { %6174 = vmatpush1.bf16.msra.mxu1 %v14443_v41  ;;  %v14500_v41 = vld [vmem:[#allocation17 + $0x1e0] ss:$8 sps:$4 sm:$0xff]  }
 0xc6b   : > { %6175 = vmatprep.subr.bf16.mxu1 %v14448_v42  ;;  %v14505_v42 = vld [vmem:[#allocation17 + $0x1f4] ss:$8 sps:$4 sm:$0xff]  }
 0xc6e   : > { %6176 = vmatpush1.bf16.msra.mxu1 %v14446_v21  ;;  %v14503_v21 = vld [vmem:[#allocation17 + $0x1f0] ss:$8 sps:$4 sm:$0xff]  }
 0xc6f   : > { %6177 = vmatprep.subr.bf16.mxu1 %v14451_v20  ;;  %v14508_v20 = vld [vmem:[#allocation17 + $0x4] ss:$8 sps:$4 sm:$0xff]  }
 0xc72   : > { %6178 = vmatpush1.bf16.msra.mxu1 %v14449_v22  ;;  %v7076_v22 = vld [vmem:[#allocation16 + $0xc] sm:$0xf] }
 0xc73   : > { %6179 = vmatprep.subr.bf16.mxu1 %v14454_v3 }
 0xc76   : > { %6180 = vmatpush1.bf16.msra.mxu1 %v14452_v6 }
 0xc77   : > { %6181 = vmatprep.subr.bf16.mxu1 %v14457_v8 }
 0xc7a   : > { %6182 = vmatpush1.bf16.msra.mxu1 %v14455_v55 }
 0xc7d   : > { %6184 = vmatmul.mubr.bf16.vlgmr.msra.gmra.mrb[72].mxu1 %v5956_v45 }
 0xc7e   : > { %7112 = vmatprep.mubr.bf16.mxu1 %v15695_v0 }
 0xd50   : > { %v6185_v33 = vpop.f32.mrb[72].mxu1 }
 0xd51   : > { %v6210_v58 = vadd.f32 %v6203_v50, %v6185_v33  ;;  %v6187_v31 = vpop.f32.mrb[73].mxu1 }
 0xd52   : > { %v6211_v36 = vadd.f32 %v6207_v53, %v6187_v31  ;;  %v6189_v14 = vpop.f32.mrb[74].mxu1 }
 0xd53   : > { %v6218_v7 = vmul.f32 0.1, %v6210_v58  ;;  %v6212_v56 = vadd.f32 %v6203_v50, %v6189_v14  ;;  %v6191_v1 = vpop.f32.mrb[75].mxu1  ;;  %vm6214_vm9 = vcmp.ge.f32.partialorder %v6210_v58, 0.0  ;;  %v14511_v14 = vld [vmem:[#allocation17 + $0x14] ss:$8 sps:$4 sm:$0xff]  }
 0xd54   : > { %v6219_v59 = vmul.f32 0.1, %v6211_v36  ;;  %v6213_v47 = vadd.f32 %v6207_v53, %v6191_v1  ;;  %vm6215_vm11 = vcmp.ge.f32.partialorder %v6211_v36, 0.0  ;;  %v14514_v1 = vld [vmem:[#allocation17 + $0x24] ss:$8 sps:$4 sm:$0xff]  }
 0xd55   : > { %vm6216_vm12 = vcmp.ge.f32.partialorder %v6212_v56, 0.0  ;;  %v6220_v26 = vmul.f32 0.1, %v6212_v56  ;;  %v6222_v45 = vsel %vm6214_vm9, %v6210_v58, %v6218_v7  ;;  %v14506_v58 = vld [vmem:[#allocation17] ss:$8 sps:$4 sm:$0xff]   ;;  %vm10216_vm9 = vcmask 15360  }
 0xd56   : > { %vm6217_vm13 = vcmp.ge.f32.partialorder %v6213_v47, 0.0  ;;  %v6221_v40 = vmul.f32 0.1, %v6213_v47  ;;  %v6223_v37 = vsel %vm6215_vm11, %v6211_v36, %v6219_v59  ;;  %v14512_v59 = vld [vmem:[#allocation17 + $0x20] ss:$8 sps:$4 sm:$0xff]  }
 0xd57   : > { %v6224_v61 = vsel %vm6216_vm12, %v6212_v56, %v6220_v26  ;;  %v14509_v56 = vld [vmem:[#allocation17 + $0x10] ss:$8 sps:$4 sm:$0xff]  }
 0xd58   : > { %v16894_v63 = vpack.c.bf16 %v6224_v61, %v6222_v45  ;;  %v6225_v57 = vsel %vm6217_vm13, %v6213_v47, %v6221_v40  ;;  %v14517_v47 = vld [vmem:[#allocation17 + $0x34] ss:$8 sps:$4 sm:$0xff]   ;;  %v14515_v26 = vld [vmem:[#allocation17 + $0x30] ss:$8 sps:$4 sm:$0xff]   ;;  %v14520_v40 = vld [vmem:[#allocation17 + $0x44] ss:$8 sps:$4 sm:$0xff]  }
 0xd59   : > { %v16896_v23 = vpack.c.bf16 %v6225_v57, %v6223_v37  ;;  %v14518_v45 = vld [vmem:[#allocation17 + $0x40] ss:$8 sps:$4 sm:$0xff]   ;;  %v14523_v61 = vld [vmem:[#allocation17 + $0x54] ss:$8 sps:$4 sm:$0xff]   ;;  %v14521_v37 = vld [vmem:[#allocation17 + $0x50] ss:$8 sps:$4 sm:$0xff]  }
 0xd5a   : > { %v14526_v57 = vld [vmem:[#allocation17 + $0x64] ss:$8 sps:$4 sm:$0xff]   ;;  %vm11346_vm13 = vcmask 253952  }
 0xd5b   : > { %6233 = vmatprep.subr.bf16.mxu0 %v16896_v23  ;;  %7080 = vmatprep.subr.bf16.mxu1 %v16896_v23 }
 0xd5c   : > { %6234 = vmatpush1.bf16.msra.mxu0 %v16894_v63  ;;  %7081 = vmatpush1.bf16.msra.mxu1 %v16894_v63 }
 0xd5d   : > { %6313 = vmatprep.subr.bf16.mxu0 %v16896_v23 }
 0xd5f   : > { %12330 = vmatmul.mubr.msk.bf16.vlgmr.msra.gmra.mrb[56].mxu0 %vm6229_vm14, %v6228_v9  ;;  %12429 = vmatmul.mubr.msk.bf16.vlgmr.msra.gmra.mrb[80].mxu1 %vm6229_vm14, %v7076_v22  ;;  %v14524_v9 = vld [vmem:[#allocation17 + $0x60] ss:$8 sps:$4 sm:$0xff]   ;;  %v14569_v22 = vld [vmem:[#allocation17 + $0x250] ss:$8 sps:$4 sm:$0xff]  }
 0xd60   : > { %6314 = vmatpush1.bf16.msra.mxu0 %v16894_v63  ;;  %6345 = vmatprep.mubr.bf16.mxu0 %v15695_v0 }
 0xd61   : > { %6549 = vmatprep.subr.bf16.mxu0 %v14460_v38  ;;  %v14529_v38 = vld [vmem:[#allocation17 + $0x74] ss:$8 sps:$4 sm:$0xff]  }
 0xd67   : > { %12331 = vmatmul.mubr.msk.bf16.vlgmr.msra.gmra.mrb[60].mxu0 %vm6229_vm14, %v6309_v17  ;;  %v14527_v17 = vld [vmem:[#allocation17 + $0x70] ss:$8 sps:$4 sm:$0xff]  }
 0xd68   : > { %6550 = vmatpush1.bf16.msra.mxu0 %v14458_v43  ;;  %v14532_v43 = vld [vmem:[#allocation17 + $0x84] ss:$8 sps:$4 sm:$0xff]  }
 0xd69   : > { %6551 = vmatprep.subr.bf16.mxu0 %v14463_v5  ;;  %v14530_v5 = vld [vmem:[#allocation17 + $0x80] ss:$8 sps:$4 sm:$0xff]  }
 0xd6c   : > { %6552 = vmatpush1.bf16.msra.mxu0 %v14461_v4  ;;  %v14535_v4 = vld [vmem:[#allocation17 + $0x94] ss:$8 sps:$4 sm:$0xff]  }
 0xd6d   : > { %6553 = vmatprep.subr.bf16.mxu0 %v14466_v2  ;;  %v14533_v2 = vld [vmem:[#allocation17 + $0x90] ss:$8 sps:$4 sm:$0xff]  }
 0xd70   : > { %6554 = vmatpush1.bf16.msra.mxu0 %v14464_v24  ;;  %v14538_v24 = vld [vmem:[#allocation17 + $0xa4] ss:$8 sps:$4 sm:$0xff]  }
 0xd71   : > { %6555 = vmatprep.subr.bf16.mxu0 %v14469_v62  ;;  %v14536_v62 = vld [vmem:[#allocation17 + $0xa0] ss:$8 sps:$4 sm:$0xff]  }
 0xd74   : > { %6556 = vmatpush1.bf16.msra.mxu0 %v14467_v16  ;;  %v14541_v16 = vld [vmem:[#allocation17 + $0xb4] ss:$8 sps:$4 sm:$0xff]  }
 0xd75   : > { %6557 = vmatprep.subr.bf16.mxu0 %v14472_v27  ;;  %v14539_v27 = vld [vmem:[#allocation17 + $0xb0] ss:$8 sps:$4 sm:$0xff]  }
 0xd78   : > { %6558 = vmatpush1.bf16.msra.mxu0 %v14470_v35  ;;  %v14544_v35 = vld [vmem:[#allocation17 + $0xc4] ss:$8 sps:$4 sm:$0xff]  }
 0xd79   : > { %6559 = vmatprep.subr.bf16.mxu0 %v14475_v18  ;;  %v14542_v18 = vld [vmem:[#allocation17 + $0xc0] ss:$8 sps:$4 sm:$0xff]  }
 0xd7c   : > { %6560 = vmatpush1.bf16.msra.mxu0 %v14473_v15  ;;  %v14547_v15 = vld [vmem:[#allocation17 + $0xd4] ss:$8 sps:$4 sm:$0xff]  }
 0xd7d   : > { %6561 = vmatprep.subr.bf16.mxu0 %v14478_v19  ;;  %v14545_v19 = vld [vmem:[#allocation17 + $0xd0] ss:$8 sps:$4 sm:$0xff]  }
 0xd80   : > { %6562 = vmatpush1.bf16.msra.mxu0 %v14476_v10  ;;  %v14550_v10 = vld [vmem:[#allocation17 + $0xe4] ss:$8 sps:$4 sm:$0xff]  }
 0xd81   : > { %6563 = vmatprep.subr.bf16.mxu0 %v14481_v48  ;;  %v14548_v48 = vld [vmem:[#allocation17 + $0xe0] ss:$8 sps:$4 sm:$0xff]  }
 0xd84   : > { %6564 = vmatpush1.bf16.msra.mxu0 %v14479_v49  ;;  %v14553_v49 = vld [vmem:[#allocation17 + $0xf4] ss:$8 sps:$4 sm:$0xff]  }
 0xd85   : > { %6565 = vmatprep.subr.bf16.mxu0 %v14484_v13  ;;  %v14551_v13 = vld [vmem:[#allocation17 + $0xf0] ss:$8 sps:$4 sm:$0xff]  }
 0xd88   : > { %6566 = vmatpush1.bf16.msra.mxu0 %v14482_v30 }
 0xd89   : > { %6567 = vmatprep.subr.bf16.mxu0 %v14487_v60  ;;  %v14556_v60 = vld [vmem:[#allocation17 + $0x204] ss:$8 sps:$4 sm:$0xff]  }
 0xd8c   : > { %6568 = vmatpush1.bf16.msra.mxu0 %v14485_v34  ;;  %v14554_v34 = vld [vmem:[#allocation17 + $0x200] ss:$8 sps:$4 sm:$0xff]  }
 0xd8d   : > { %6569 = vmatprep.subr.bf16.mxu0 %v14490_v29  ;;  %v6792_v29 = vld [vmem:[#allocation16 + $0x8] sm:$0xf] }
 0xd90   : > { %6570 = vmatpush1.bf16.msra.mxu0 %v14488_v51  ;;  %v14559_v51 = vld [vmem:[#allocation17 + $0x214] ss:$8 sps:$4 sm:$0xff]  }
 0xd91   : > { %6571 = vmatprep.subr.bf16.mxu0 %v14493_v32  ;;  %v14557_v32 = vld [vmem:[#allocation17 + $0x210] ss:$8 sps:$4 sm:$0xff]  }
 0xd94   : > { %6572 = vmatpush1.bf16.msra.mxu0 %v14491_v12  ;;  %v14562_v12 = vld [vmem:[#allocation17 + $0x224] ss:$8 sps:$4 sm:$0xff]  }
 0xd95   : > { %6573 = vmatprep.subr.bf16.mxu0 %v14496_v25  ;;  %v14560_v25 = vld [vmem:[#allocation17 + $0x220] ss:$8 sps:$4 sm:$0xff]  }
 0xd98   : > { %6574 = vmatpush1.bf16.msra.mxu0 %v14494_v46  ;;  %v14565_v46 = vld [vmem:[#allocation17 + $0x234] ss:$8 sps:$4 sm:$0xff]  }
 0xd99   : > { %6575 = vmatprep.subr.bf16.mxu0 %v14499_v28  ;;  %v14563_v28 = vld [vmem:[#allocation17 + $0x230] ss:$8 sps:$4 sm:$0xff]  }
 0xd9c   : > { %6576 = vmatpush1.bf16.msra.mxu0 %v14497_v44  ;;  %v14568_v44 = vld [vmem:[#allocation17 + $0x244] ss:$8 sps:$4 sm:$0xff]  }
 0xd9d   : > { %6577 = vmatprep.subr.bf16.mxu0 %v14502_v39  ;;  %v14566_v39 = vld [vmem:[#allocation17 + $0x240] ss:$8 sps:$4 sm:$0xff]  }
 0xda0   : > { %6578 = vmatpush1.bf16.msra.mxu0 %v14500_v41  ;;  %v14571_v41 = vld [vmem:[#allocation17 + $0x254] ss:$8 sps:$4 sm:$0xff]  }
 0xda1   : > { %6579 = vmatprep.subr.bf16.mxu0 %v14505_v42  ;;  %v14602_v42 = vld [vmem:[#allocation17 + $0x300] ss:$8 sps:$4 sm:$0xff]  }
 0xda4   : > { %6580 = vmatpush1.bf16.msra.mxu0 %v14503_v21  ;;  %v14604_v21 = vld [vmem:[#allocation17 + $0x304] ss:$8 sps:$4 sm:$0xff]  }
 0xda5   : > { %6750 = vmatprep.subr.bf16.mxu0 %v14508_v20  ;;  %v14607_v20 = vld [vmem:[#allocation17 + $0x314] ss:$8 sps:$4 sm:$0xff]   ;;  %7316 = vmatprep.subr.bf16.mxu1 %v14604_v21 }
 0xda6   : > { %7317 = vmatpush1.bf16.msra.mxu1 %v14602_v42 }
 0xda7   : > { %7318 = vmatprep.subr.bf16.mxu1 %v14607_v20 }
 0xe32   : > { %v16908_v3 = vpop.f32.mrb[56].mxu0 }
 0xe33   : > { %v6269_v6 = vpop.f32.mrb[57].mxu0  ;;  %v6274_v30 = vpack.c.bf16 %v16908_v3, %v16908_v3  ;;  %v14605_v3 = vld [vmem:[#allocation17 + $0x310] ss:$8 sps:$4 sm:$0xff]  }
 0xe34   : > { %v6271_v8 = vpop.f32.mrb[58].mxu0  ;;  %v6275_v7 = vpack.c.bf16 %v6269_v6, %v6269_v6  ;;  %v14574_v6 = vld [vmem:[#allocation17 + $0x264] ss:$8 sps:$4 sm:$0xff]   ;;  %7319 = vmatpush1.bf16.msra.mxu1 %v14605_v3 }
 0xe35   : > { %v6272_v55 = vpop.f32.mrb[59].mxu0  ;;  %v14610_v8 = vld [vmem:[#allocation17 + $0x324] ss:$8 sps:$4 sm:$0xff]  }
 0xe36   : > { %v14572_v55 = vld [vmem:[#allocation17 + $0x260] ss:$8 sps:$4 sm:$0xff]   ;;  %7320 = vmatprep.subr.bf16.mxu1 %v14610_v8 }
 0xe3a   : > { %v6347_v11 = vpop.f32.mrb[60].mxu0 }
 0xe3b   : > { %v6349_v50 = vpop.f32.mrb[61].mxu0  ;;  %v6354_v31 = vpack.c.bf16 %v6347_v11, %v6347_v11  ;;  %v14608_v11 = vld [vmem:[#allocation17 + $0x320] ss:$8 sps:$4 sm:$0xff]  }
 0xe3c   : > { %v6355_v53 = vpack.c.bf16 %v6349_v50, %v6349_v50  ;;  %v6351_v33 = vpop.f32.mrb[62].mxu0  ;;  %v14577_v50 = vld [vmem:[#allocation17 + $0x274] ss:$8 sps:$4 sm:$0xff]   ;;  %7321 = vmatpush1.bf16.msra.mxu1 %v14608_v11 }
 0xe3d   : > { %v6352_v36 = vpop.f32.mrb[63].mxu0  ;;  %v14575_v33 = vld [vmem:[#allocation17 + $0x270] ss:$8 sps:$4 sm:$0xff]  }
 0xe3e   : > { %6581 = vmatprep.mubr.bf16.mxu0 %v6355_v53  ;;  %v14613_v53 = vld [vmem:[#allocation17 + $0x334] ss:$8 sps:$4 sm:$0xff]   ;;  %v14616_v36 = vld [vmem:[#allocation17 + $0x344] ss:$8 sps:$4 sm:$0xff]  }
 0xe3f   : > { %6582 = vmatmul.mubr.bf16.vlgmr.msra.gmra.mrb[64].mxu0 %v6354_v31  ;;  %v14580_v31 = vld [vmem:[#allocation17 + $0x284] ss:$8 sps:$4 sm:$0xff]   ;;  %7322 = vmatprep.subr.bf16.mxu1 %v14613_v53 }
 0xe40   : > { %6751 = vmatpush1.bf16.msra.mxu0 %v14506_v58  ;;  %6782 = vmatprep.mubr.bf16.mxu0 %v6275_v7  ;;  %v14611_v58 = vld [vmem:[#allocation17 + $0x330] ss:$8 sps:$4 sm:$0xff]   ;;  %v14614_v7 = vld [vmem:[#allocation17 + $0x340] ss:$8 sps:$4 sm:$0xff]  }
 0xe41   : > { %6752 = vmatprep.subr.bf16.mxu0 %v14511_v14  ;;  %v14578_v14 = vld [vmem:[#allocation17 + $0x280] ss:$8 sps:$4 sm:$0xff]   ;;  %7323 = vmatpush1.bf16.msra.mxu1 %v14611_v58 }
 0xe42   : > { %7324 = vmatprep.subr.bf16.mxu1 %v14616_v36 }
 0xe44   : > { %6753 = vmatpush1.bf16.msra.mxu0 %v14509_v56  ;;  %v14583_v56 = vld [vmem:[#allocation17 + $0x294] ss:$8 sps:$4 sm:$0xff]  }
 0xe45   : > { %6754 = vmatprep.subr.bf16.mxu0 %v14514_v1  ;;  %v14619_v1 = vld [vmem:[#allocation17 + $0x354] ss:$8 sps:$4 sm:$0xff]   ;;  %7325 = vmatpush1.bf16.msra.mxu1 %v14614_v7 }
 0xe46   : > { %7326 = vmatprep.subr.bf16.mxu1 %v14619_v1  ;;  %v7360_v7 = vld [vmem:[#allocation16 + $0x10] sm:$0xf] }
 0xe47   : > { %v14655_v1 = vld [vmem:[#allocation17 + $0x414] ss:$8 sps:$4 sm:$0xff]  }
 0xe48   : > { %6755 = vmatpush1.bf16.msra.mxu0 %v14512_v59  ;;  %v14581_v59 = vld [vmem:[#allocation17 + $0x290] ss:$8 sps:$4 sm:$0xff]  }
 0xe49   : > { %6756 = vmatprep.subr.bf16.mxu0 %v14517_v47  ;;  %v14617_v47 = vld [vmem:[#allocation17 + $0x350] ss:$8 sps:$4 sm:$0xff]  }
 0xe4a   : > { %7327 = vmatpush1.bf16.msra.mxu1 %v14617_v47  ;;  %v14658_v47 = vld [vmem:[#allocation17 + $0x424] ss:$8 sps:$4 sm:$0xff]  }
 0xe4c   : > { %6757 = vmatpush1.bf16.msra.mxu0 %v14515_v26  ;;  %v14586_v26 = vld [vmem:[#allocation17 + $0x2a4] ss:$8 sps:$4 sm:$0xff]  }
 0xe4d   : > { %6758 = vmatprep.subr.bf16.mxu0 %v14520_v40  ;;  %v14622_v40 = vld [vmem:[#allocation17 + $0x364] ss:$8 sps:$4 sm:$0xff]  }
 0xe4e   : > { %7328 = vmatprep.subr.bf16.mxu1 %v14622_v40  ;;  %v14661_v40 = vld [vmem:[#allocation17 + $0x434] ss:$8 sps:$4 sm:$0xff]  }
 0xe50   : > { %6759 = vmatpush1.bf16.msra.mxu0 %v14518_v45  ;;  %v14584_v45 = vld [vmem:[#allocation17 + $0x2a0] ss:$8 sps:$4 sm:$0xff]  }
 0xe51   : > { %6760 = vmatprep.subr.bf16.mxu0 %v14523_v61  ;;  %v14620_v61 = vld [vmem:[#allocation17 + $0x360] ss:$8 sps:$4 sm:$0xff]  }
 0xe52   : > { %7329 = vmatpush1.bf16.msra.mxu1 %v14620_v61  ;;  %v14662_v61 = vld [vmem:[#allocation17 + $0x440] ss:$8 sps:$4 sm:$0xff]  }
 0xe54   : > { %6761 = vmatpush1.bf16.msra.mxu0 %v14521_v37  ;;  %v14589_v37 = vld [vmem:[#allocation17 + $0x2b4] ss:$8 sps:$4 sm:$0xff]  }
 0xe55   : > { %6762 = vmatprep.subr.bf16.mxu0 %v14526_v57  ;;  %v14625_v57 = vld [vmem:[#allocation17 + $0x374] ss:$8 sps:$4 sm:$0xff]  }
 0xe56   : > { %7330 = vmatprep.subr.bf16.mxu1 %v14625_v57  ;;  %v14665_v57 = vld [vmem:[#allocation17 + $0x450] ss:$8 sps:$4 sm:$0xff]  }
 0xe58   : > { %6763 = vmatpush1.bf16.msra.mxu0 %v14524_v9  ;;  %v14587_v9 = vld [vmem:[#allocation17 + $0x2b0] ss:$8 sps:$4 sm:$0xff]  }
 0xe59   : > { %6764 = vmatprep.subr.bf16.mxu0 %v14529_v38  ;;  %v14623_v38 = vld [vmem:[#allocation17 + $0x370] ss:$8 sps:$4 sm:$0xff]  }
 0xe5a   : > { %7331 = vmatpush1.bf16.msra.mxu1 %v14623_v38  ;;  %v14668_v38 = vld [vmem:[#allocation17 + $0x460] ss:$8 sps:$4 sm:$0xff]  }
 0xe5c   : > { %6765 = vmatpush1.bf16.msra.mxu0 %v14527_v17  ;;  %v14592_v17 = vld [vmem:[#allocation17 + $0x2c4] ss:$8 sps:$4 sm:$0xff]  }
 0xe5d   : > { %6766 = vmatprep.subr.bf16.mxu0 %v14532_v43  ;;  %v14628_v43 = vld [vmem:[#allocation17 + $0x384] ss:$8 sps:$4 sm:$0xff]  }
 0xe5e   : > { %7332 = vmatprep.subr.bf16.mxu1 %v14628_v43  ;;  %v14671_v43 = vld [vmem:[#allocation17 + $0x470] ss:$8 sps:$4 sm:$0xff]  }
 0xe60   : > { %6767 = vmatpush1.bf16.msra.mxu0 %v14530_v5  ;;  %v14590_v5 = vld [vmem:[#allocation17 + $0x2c0] ss:$8 sps:$4 sm:$0xff]  }
 0xe61   : > { %6768 = vmatprep.subr.bf16.mxu0 %v14535_v4  ;;  %v14626_v4 = vld [vmem:[#allocation17 + $0x380] ss:$8 sps:$4 sm:$0xff]  }
 0xe62   : > { %7333 = vmatpush1.bf16.msra.mxu1 %v14626_v4  ;;  %v14674_v4 = vld [vmem:[#allocation17 + $0x480] ss:$8 sps:$4 sm:$0xff]  }
 0xe64   : > { %6769 = vmatpush1.bf16.msra.mxu0 %v14533_v2  ;;  %v14595_v2 = vld [vmem:[#allocation17 + $0x2d4] ss:$8 sps:$4 sm:$0xff]  }
 0xe65   : > { %6770 = vmatprep.subr.bf16.mxu0 %v14538_v24  ;;  %v14631_v24 = vld [vmem:[#allocation17 + $0x394] ss:$8 sps:$4 sm:$0xff]  }
 0xe66   : > { %7334 = vmatprep.subr.bf16.mxu1 %v14631_v24  ;;  %v14677_v24 = vld [vmem:[#allocation17 + $0x490] ss:$8 sps:$4 sm:$0xff]  }
 0xe68   : > { %6771 = vmatpush1.bf16.msra.mxu0 %v14536_v62  ;;  %v14593_v62 = vld [vmem:[#allocation17 + $0x2d0] ss:$8 sps:$4 sm:$0xff]  }
 0xe69   : > { %6772 = vmatprep.subr.bf16.mxu0 %v14541_v16  ;;  %v14629_v16 = vld [vmem:[#allocation17 + $0x390] ss:$8 sps:$4 sm:$0xff]  }
 0xe6a   : > { %7335 = vmatpush1.bf16.msra.mxu1 %v14629_v16  ;;  %v14680_v16 = vld [vmem:[#allocation17 + $0x4a0] ss:$8 sps:$4 sm:$0xff]  }
 0xe6c   : > { %6773 = vmatpush1.bf16.msra.mxu0 %v14539_v27  ;;  %v14598_v27 = vld [vmem:[#allocation17 + $0x2e4] ss:$8 sps:$4 sm:$0xff]  }
 0xe6d   : > { %6774 = vmatprep.subr.bf16.mxu0 %v14544_v35  ;;  %v14634_v35 = vld [vmem:[#allocation17 + $0x3a4] ss:$8 sps:$4 sm:$0xff]  }
 0xe6e   : > { %7336 = vmatprep.subr.bf16.mxu1 %v14634_v35  ;;  %v14683_v35 = vld [vmem:[#allocation17 + $0x4b0] ss:$8 sps:$4 sm:$0xff]  }
 0xe70   : > { %6775 = vmatpush1.bf16.msra.mxu0 %v14542_v18  ;;  %v14596_v18 = vld [vmem:[#allocation17 + $0x2e0] ss:$8 sps:$4 sm:$0xff]  }
 0xe71   : > { %6776 = vmatprep.subr.bf16.mxu0 %v14547_v15  ;;  %v14632_v15 = vld [vmem:[#allocation17 + $0x3a0] ss:$8 sps:$4 sm:$0xff]  }
 0xe72   : > { %7337 = vmatpush1.bf16.msra.mxu1 %v14632_v15  ;;  %v14686_v15 = vld [vmem:[#allocation17 + $0x4c0] ss:$8 sps:$4 sm:$0xff]  }
 0xe74   : > { %6777 = vmatpush1.bf16.msra.mxu0 %v14545_v19  ;;  %v14601_v19 = vld [vmem:[#allocation17 + $0x2f4] ss:$8 sps:$4 sm:$0xff]  }
 0xe75   : > { %6778 = vmatprep.subr.bf16.mxu0 %v14550_v10  ;;  %v14637_v10 = vld [vmem:[#allocation17 + $0x3b4] ss:$8 sps:$4 sm:$0xff]  }
 0xe76   : > { %7338 = vmatprep.subr.bf16.mxu1 %v14637_v10  ;;  %v14689_v10 = vld [vmem:[#allocation17 + $0x4d0] ss:$8 sps:$4 sm:$0xff]  }
 0xe78   : > { %6779 = vmatpush1.bf16.msra.mxu0 %v14548_v48  ;;  %v14599_v48 = vld [vmem:[#allocation17 + $0x2f0] ss:$8 sps:$4 sm:$0xff]  }
 0xe79   : > { %6780 = vmatprep.subr.bf16.mxu0 %v14553_v49  ;;  %v14635_v49 = vld [vmem:[#allocation17 + $0x3b0] ss:$8 sps:$4 sm:$0xff]  }
 0xe7a   : > { %7339 = vmatpush1.bf16.msra.mxu1 %v14635_v49 }
 0xe7c   : > { %6781 = vmatpush1.bf16.msra.mxu0 %v14551_v13  ;;  %v14640_v13 = vld [vmem:[#allocation17 + $0x3c4] ss:$8 sps:$4 sm:$0xff]  }
 0xe7d   : > { %6796 = vmatprep.subr.bf16.mxu0 %v16896_v23  ;;  %7340 = vmatprep.subr.bf16.mxu1 %v14640_v13  ;;  %v14692_v13 = vld [vmem:[#allocation17 + $0x4e0] ss:$8 sps:$4 sm:$0xff]  }
 0xe7f   : > { %6783 = vmatmul.mubr.bf16.vlgmr.msra.gmra.mrb[68].mxu0 %v6274_v30  ;;  %v14638_v30 = vld [vmem:[#allocation17 + $0x3c0] ss:$8 sps:$4 sm:$0xff]  }
 0xe80   : > { %6797 = vmatpush1.bf16.msra.mxu0 %v16894_v63  ;;  %6828 = vmatprep.mubr.bf16.mxu0 %v15695_v0 }
 0xe81   : > { %7032 = vmatprep.subr.bf16.mxu0 %v14556_v60  ;;  %7341 = vmatpush1.bf16.msra.mxu1 %v14638_v30  ;;  %v14643_v60 = vld [vmem:[#allocation17 + $0x3d4] ss:$8 sps:$4 sm:$0xff]   ;;  %v14694_v30 = vld [vmem:[#allocation17 + $0x4e4] ss:$8 sps:$4 sm:$0xff]  }
 0xe82   : > { %7342 = vmatprep.subr.bf16.mxu1 %v14643_v60 }
 0xe87   : > { %12396 = vmatmul.mubr.msk.bf16.vlgmr.msra.gmra.mrb[72].mxu0 %vm6229_vm14, %v6792_v29  ;;  %v14646_v29 = vld [vmem:[#allocation17 + $0x3e4] ss:$8 sps:$4 sm:$0xff]  }
 0xe88   : > { %7033 = vmatpush1.bf16.msra.mxu0 %v14554_v34  ;;  %v14641_v34 = vld [vmem:[#allocation17 + $0x3d0] ss:$8 sps:$4 sm:$0xff]  }
 0xe89   : > { %7034 = vmatprep.subr.bf16.mxu0 %v14559_v51  ;;  %7343 = vmatpush1.bf16.msra.mxu1 %v14641_v34  ;;  %v14644_v51 = vld [vmem:[#allocation17 + $0x3e0] ss:$8 sps:$4 sm:$0xff]  }
 0xe8a   : > { %7344 = vmatprep.subr.bf16.mxu1 %v14646_v29  ;;  %v14697_v29 = vld [vmem:[#allocation17 + $0x4f4] ss:$8 sps:$4 sm:$0xff]  }
 0xe8c   : > { %7035 = vmatpush1.bf16.msra.mxu0 %v14557_v32  ;;  %v7114_v32 = vpop.f32.mrb[80].mxu1 }
 0xe8d   : > { %7036 = vmatprep.subr.bf16.mxu0 %v14562_v12  ;;  %7345 = vmatpush1.bf16.msra.mxu1 %v14644_v51  ;;  %v14649_v12 = vld [vmem:[#allocation17 + $0x3f4] ss:$8 sps:$4 sm:$0xff]   ;;  %v14695_v51 = vld [vmem:[#allocation17 + $0x4f0] ss:$8 sps:$4 sm:$0xff]  }
 0xe8e   : > { %7346 = vmatprep.subr.bf16.mxu1 %v14649_v12 }
 0xe90   : > { %7037 = vmatpush1.bf16.msra.mxu0 %v14560_v25  ;;  %v7116_v25 = vpop.f32.mrb[81].mxu1 }
 0xe91   : > { %7038 = vmatprep.subr.bf16.mxu0 %v14565_v46  ;;  %v14647_v46 = vld [vmem:[#allocation17 + $0x3f0] ss:$8 sps:$4 sm:$0xff]  }
 0xe92   : > { %7347 = vmatpush1.bf16.msra.mxu1 %v14647_v46 }
 0xe94   : > { %7039 = vmatpush1.bf16.msra.mxu0 %v14563_v28  ;;  %v7121_v28 = vpack.c.bf16 %v7114_v32, %v7114_v32  ;;  %v14700_v32 = vld [vmem:[#allocation20 + $0x4] ss:$8 sps:$4 sm:$0xff]  }
 0xe95   : > { %7040 = vmatprep.subr.bf16.mxu0 %v14568_v44  ;;  %v7122_v44 = vpack.c.bf16 %v7116_v25, %v7116_v25 }
 0xe97   : > { %7348 = vmatprep.mubr.bf16.mxu1 %v7122_v44 }
 0xe98   : > { %7041 = vmatpush1.bf16.msra.mxu0 %v14566_v39  ;;  %v7118_v39 = vpop.f32.mrb[82].mxu1  ;;  %7349 = vmatmul.mubr.bf16.vlgmr.msra.gmra.mrb[84].mxu1 %v7121_v28 }
 0xe99   : > { %7042 = vmatprep.subr.bf16.mxu0 %v14571_v41  ;;  %7709 = vmatprep.mubr.bf16.mxu1 %v15695_v0 }
 0xe9c   : > { %7043 = vmatpush1.bf16.msra.mxu0 %v14569_v22 }
 0xe9d   : > { %7044 = vmatprep.subr.bf16.mxu0 %v14574_v6 }
 0xea0   : > { %7045 = vmatpush1.bf16.msra.mxu0 %v14572_v55 }
 0xea1   : > { %7046 = vmatprep.subr.bf16.mxu0 %v14577_v50 }
 0xea4   : > { %7047 = vmatpush1.bf16.msra.mxu0 %v14575_v33 }
 0xea5   : > { %7048 = vmatprep.subr.bf16.mxu0 %v14580_v31 }
 0xea8   : > { %7049 = vmatpush1.bf16.msra.mxu0 %v14578_v14  ;;  %v14652_v14 = vld [vmem:[#allocation17 + $0x404] ss:$8 sps:$4 sm:$0xff]  }
 0xea9   : > { %7050 = vmatprep.subr.bf16.mxu0 %v14583_v56  ;;  %v14650_v56 = vld [vmem:[#allocation17 + $0x400] ss:$8 sps:$4 sm:$0xff]  }
 0xeac   : > { %7051 = vmatpush1.bf16.msra.mxu0 %v14581_v59  ;;  %v14653_v59 = vld [vmem:[#allocation17 + $0x410] ss:$8 sps:$4 sm:$0xff]  }
 0xead   : > { %7052 = vmatprep.subr.bf16.mxu0 %v14586_v26  ;;  %v14656_v26 = vld [vmem:[#allocation17 + $0x420] ss:$8 sps:$4 sm:$0xff]  }
 0xeb0   : > { %7053 = vmatpush1.bf16.msra.mxu0 %v14584_v45  ;;  %v14659_v45 = vld [vmem:[#allocation17 + $0x430] ss:$8 sps:$4 sm:$0xff]  }
 0xeb1   : > { %7054 = vmatprep.subr.bf16.mxu0 %v14589_v37  ;;  %v14667_v37 = vld [vmem:[#allocation17 + $0x454] ss:$8 sps:$4 sm:$0xff]  }
 0xeb4   : > { %7055 = vmatpush1.bf16.msra.mxu0 %v14587_v9  ;;  %v14670_v9 = vld [vmem:[#allocation17 + $0x464] ss:$8 sps:$4 sm:$0xff]  }
 0xeb5   : > { %7056 = vmatprep.subr.bf16.mxu0 %v14592_v17  ;;  %v14673_v17 = vld [vmem:[#allocation17 + $0x474] ss:$8 sps:$4 sm:$0xff]  }
 0xeb8   : > { %7057 = vmatpush1.bf16.msra.mxu0 %v14590_v5  ;;  %v14676_v5 = vld [vmem:[#allocation17 + $0x484] ss:$8 sps:$4 sm:$0xff]  }
 0xeb9   : > { %7058 = vmatprep.subr.bf16.mxu0 %v14595_v2  ;;  %v14679_v2 = vld [vmem:[#allocation17 + $0x494] ss:$8 sps:$4 sm:$0xff]  }
 0xebc   : > { %7059 = vmatpush1.bf16.msra.mxu0 %v14593_v62  ;;  %v14682_v62 = vld [vmem:[#allocation17 + $0x4a4] ss:$8 sps:$4 sm:$0xff]  }
 0xebd   : > { %7060 = vmatprep.subr.bf16.mxu0 %v14598_v27  ;;  %v14685_v27 = vld [vmem:[#allocation17 + $0x4b4] ss:$8 sps:$4 sm:$0xff]  }
 0xec0   : > { %7061 = vmatpush1.bf16.msra.mxu0 %v14596_v18  ;;  %v14688_v18 = vld [vmem:[#allocation17 + $0x4c4] ss:$8 sps:$4 sm:$0xff]  }
 0xec1   : > { %7062 = vmatprep.subr.bf16.mxu0 %v14601_v19  ;;  %v14691_v19 = vld [vmem:[#allocation17 + $0x4d4] ss:$8 sps:$4 sm:$0xff]  }
 0xec4   : > { %7063 = vmatpush1.bf16.msra.mxu0 %v14599_v48 }
 0xec5   : > { %7364 = vmatprep.subr.bf16.mxu0 %v16896_v23  ;;  %v7119_v23 = vpop.f32.mrb[83].mxu1 }
 0xf12   : > { %v6583_v41 = vpop.f32.mrb[64].mxu0 }
 0xf13   : > { %v6585_v42 = vpop.f32.mrb[65].mxu0 }
 0xf14   : > { %v6587_v21 = vpop.f32.mrb[66].mxu0 }
 0xf15   : > { %v6588_v20 = vpop.f32.mrb[67].mxu0 }
 0xf52   : > { %v6784_v22 = vpop.f32.mrb[68].mxu0 }
 0xf53   : > { %v16918_v3 = vadd.f32 %v6784_v22, %v6583_v41  ;;  %v6786_v6 = vpop.f32.mrb[69].mxu0 }
 0xf54   : > { %v16920_v8 = vadd.f32 %v6786_v6, %v6585_v42  ;;  %v6788_v55 = vpop.f32.mrb[70].mxu0  ;;  %v14698_v6 = vld [vmem:[#allocation20] ss:$8 sps:$4 sm:$0xff]  }
 0xf55   : > { %v6789_v11 = vpop.f32.mrb[71].mxu0 }
 0xf5a   : > { %v6830_v50 = vpop.f32.mrb[72].mxu0 }
 0xf5b   : > { %v6832_v53 = vpop.f32.mrb[73].mxu0  ;;  %v6837_v31 = vpack.c.bf16 %v6830_v50, %v6830_v50  ;;  %v14703_v50 = vld [vmem:[#allocation20 + $0x14] ss:$8 sps:$4 sm:$0xff]  }
 0xf5c   : > { %v6838_v33 = vpack.c.bf16 %v6832_v53, %v6832_v53  ;;  %v6834_v58 = vpop.f32.mrb[74].mxu0  ;;  %v14704_v53 = vld [vmem:[#allocation20 + $0x20] ss:$8 sps:$4 sm:$0xff]  }
 0xf5d   : > { %v6835_v36 = vpop.f32.mrb[75].mxu0  ;;  %v14707_v58 = vld [vmem:[#allocation20 + $0x30] ss:$8 sps:$4 sm:$0xff]  }
 0xf5e   : > { %7064 = vmatprep.mubr.bf16.mxu0 %v6838_v33  ;;  %v14709_v33 = vld [vmem:[#allocation20 + $0x34] ss:$8 sps:$4 sm:$0xff]   ;;  %v14710_v36 = vld [vmem:[#allocation20 + $0x40] ss:$8 sps:$4 sm:$0xff]  }
 0xf5f   : > { %7065 = vmatmul.mubr.bf16.vlgmr.msra.gmra.mrb[76].mxu0 %v6837_v31  ;;  %v14712_v31 = vld [vmem:[#allocation20 + $0x44] ss:$8 sps:$4 sm:$0xff]  }
 0xf60   : > { %7365 = vmatpush1.bf16.msra.mxu0 %v16894_v63  ;;  %7396 = vmatprep.mubr.bf16.mxu0 %v15695_v0  ;;  %v14664_v63 = vld [vmem:[#allocation17 + $0x444] ss:$8 sps:$4 sm:$0xff]  }
 0xf61   : > { %7600 = vmatprep.subr.bf16.mxu0 %v14652_v14  ;;  %v14715_v14 = vld [vmem:[#allocation20 + $0x54] ss:$8 sps:$4 sm:$0xff]  }
 0xf67   : > { %12462 = vmatmul.mubr.msk.bf16.vlgmr.msra.gmra.mrb[80].mxu0 %vm6229_vm14, %v7360_v7  ;;  %v14713_v7 = vld [vmem:[#allocation20 + $0x50] ss:$8 sps:$4 sm:$0xff]  }
 0xf68   : > { %7601 = vmatpush1.bf16.msra.mxu0 %v14650_v56  ;;  %v14718_v56 = vld [vmem:[#allocation20 + $0x64] ss:$8 sps:$4 sm:$0xff]  }
 0xf69   : > { %7602 = vmatprep.subr.bf16.mxu0 %v14655_v1  ;;  %v14716_v1 = vld [vmem:[#allocation20 + $0x60] ss:$8 sps:$4 sm:$0xff]  }
 0xf6b   : > { %v7350_v48 = vpop.f32.mrb[84].mxu1 }
 0xf6c   : > { %7603 = vmatpush1.bf16.msra.mxu0 %v14653_v59  ;;  %v7352_v49 = vpop.f32.mrb[85].mxu1  ;;  %v14721_v59 = vld [vmem:[#allocation20 + $0x74] ss:$8 sps:$4 sm:$0xff]  }
 0xf6d   : > { %7604 = vmatprep.subr.bf16.mxu0 %v14658_v47  ;;  %v7354_v60 = vpop.f32.mrb[86].mxu1  ;;  %v14719_v47 = vld [vmem:[#allocation20 + $0x70] ss:$8 sps:$4 sm:$0xff]  }
 0xf6e   : > { %v7355_v34 = vpop.f32.mrb[87].mxu1 }
 0xf70   : > { %7605 = vmatpush1.bf16.msra.mxu0 %v14656_v26  ;;  %v14724_v26 = vld [vmem:[#allocation20 + $0x84] ss:$8 sps:$4 sm:$0xff]  }
 0xf71   : > { %7606 = vmatprep.subr.bf16.mxu0 %v14661_v40  ;;  %v14722_v40 = vld [vmem:[#allocation20 + $0x80] ss:$8 sps:$4 sm:$0xff]  }
 0xf74   : > { %7607 = vmatpush1.bf16.msra.mxu0 %v14659_v45  ;;  %v14727_v45 = vld [vmem:[#allocation20 + $0x94] ss:$8 sps:$4 sm:$0xff]  }
 0xf75   : > { %7608 = vmatprep.subr.bf16.mxu0 %v14664_v63  ;;  %v14725_v63 = vld [vmem:[#allocation20 + $0x90] ss:$8 sps:$4 sm:$0xff]  }
 0xf78   : > { %7609 = vmatpush1.bf16.msra.mxu0 %v14662_v61  ;;  %v14730_v61 = vld [vmem:[#allocation20 + $0xa4] ss:$8 sps:$4 sm:$0xff]  }
 0xf79   : > { %7610 = vmatprep.subr.bf16.mxu0 %v14667_v37  ;;  %v14728_v37 = vld [vmem:[#allocation20 + $0xa0] ss:$8 sps:$4 sm:$0xff]  }
 0xf7c   : > { %7611 = vmatpush1.bf16.msra.mxu0 %v14665_v57  ;;  %v14733_v57 = vld [vmem:[#allocation20 + $0xb4] ss:$8 sps:$4 sm:$0xff]  }
 0xf7d   : > { %7612 = vmatprep.subr.bf16.mxu0 %v14670_v9  ;;  %v14731_v9 = vld [vmem:[#allocation20 + $0xb0] ss:$8 sps:$4 sm:$0xff]  }
 0xf80   : > { %7613 = vmatpush1.bf16.msra.mxu0 %v14668_v38  ;;  %v14736_v38 = vld [vmem:[#allocation20 + $0xc4] ss:$8 sps:$4 sm:$0xff]  }
 0xf81   : > { %7614 = vmatprep.subr.bf16.mxu0 %v14673_v17  ;;  %v14734_v17 = vld [vmem:[#allocation20 + $0xc0] ss:$8 sps:$4 sm:$0xff]  }
 0xf84   : > { %7615 = vmatpush1.bf16.msra.mxu0 %v14671_v43  ;;  %v14739_v43 = vld [vmem:[#allocation20 + $0xd4] ss:$8 sps:$4 sm:$0xff]  }
 0xf85   : > { %7616 = vmatprep.subr.bf16.mxu0 %v14676_v5  ;;  %v14737_v5 = vld [vmem:[#allocation20 + $0xd0] ss:$8 sps:$4 sm:$0xff]  }
 0xf88   : > { %7617 = vmatpush1.bf16.msra.mxu0 %v14674_v4  ;;  %v14742_v4 = vld [vmem:[#allocation20 + $0xe4] ss:$8 sps:$4 sm:$0xff]  }
 0xf89   : > { %7618 = vmatprep.subr.bf16.mxu0 %v14679_v2  ;;  %v14740_v2 = vld [vmem:[#allocation20 + $0xe0] ss:$8 sps:$4 sm:$0xff]  }
 0xf8c   : > { %7619 = vmatpush1.bf16.msra.mxu0 %v14677_v24  ;;  %v14745_v24 = vld [vmem:[#allocation20 + $0xf4] ss:$8 sps:$4 sm:$0xff]  }
 0xf8d   : > { %7620 = vmatprep.subr.bf16.mxu0 %v14682_v62  ;;  %v14743_v62 = vld [vmem:[#allocation20 + $0xf0] ss:$8 sps:$4 sm:$0xff]  }
 0xf90   : > { %7621 = vmatpush1.bf16.msra.mxu0 %v14680_v16  ;;  %v7643_v16 = vld [vmem:[#allocation19] sm:$0x3] }
 0xf91   : > { %7622 = vmatprep.subr.bf16.mxu0 %v14685_v27  ;;  %v7648_v27 = vrot.slane %v7643_v16, %v16480_v52 }
 0xf94   : > { %7623 = vmatpush1.bf16.msra.mxu0 %v14683_v35 }
 0xf95   : > { %7624 = vmatprep.subr.bf16.mxu0 %v14688_v18  ;;  %v7652_v18 = vrot.slane %v7643_v16, %v16483_v54 }
 0xf98   : > { %7625 = vmatpush1.bf16.msra.mxu0 %v14686_v15 }
 0xf99   : > { %7626 = vmatprep.subr.bf16.mxu0 %v14691_v19 }
 0xf9c   : > { %7627 = vmatpush1.bf16.msra.mxu0 %v14689_v10 }
 0xf9d   : > { %7628 = vmatprep.subr.bf16.mxu0 %v14694_v30 }
 0xfa0   : > { %7629 = vmatpush1.bf16.msra.mxu0 %v14692_v13 }
 0xfa1   : > { %7630 = vmatprep.subr.bf16.mxu0 %v14697_v29 }
 0xfa4   : > { %7631 = vmatpush1.bf16.msra.mxu0 %v14695_v51 }
 0xfa5   : > { %8194 = vmatprep.subr.bf16.mxu0 %v14700_v32 }
0x1032   : > { %v7066_v12 = vpop.f32.mrb[76].mxu0 }
0x1033   : > { %v7073_v25 = vadd.f32 %v7066_v12, %v16918_v3  ;;  %v7068_v46 = vpop.f32.mrb[77].mxu0  ;;  %v14701_v3 = vld [vmem:[#allocation20 + $0x10] ss:$8 sps:$4 sm:$0xff]  }
0x1034   : > { %v7074_v28 = vadd.f32 %v7068_v46, %v16920_v8  ;;  %v7070_v44 = vpop.f32.mrb[78].mxu0  ;;  %v14706_v8 = vld [vmem:[#allocation20 + $0x24] ss:$8 sps:$4 sm:$0xff]   ;;  %v7665_v46 = vld [vmem:[%s17352_s3] sm:$0x3] }
0x1035   : > { %v16927_v39 = vadd.f32 %v7350_v48, %v7073_v25  ;;  %v7071_v23 = vpop.f32.mrb[79].mxu0  ;;  %v14746_v44 = vld [vmem:[#allocation20 + $0x100] ss:$8 sps:$4 sm:$0xff]  }
0x1036   : > { %v16929_v41 = vadd.f32 %v7352_v49, %v7074_v28  ;;  %v14748_v28 = vld [vmem:[#allocation20 + $0x104] ss:$8 sps:$4 sm:$0xff]   ;;  %v14751_v23 = vld [vmem:[#allocation20 + $0x114] ss:$8 sps:$4 sm:$0xff]  }
0x103a   : > { %v7398_v42 = vpop.f32.mrb[80].mxu0 }
0x103b   : > { %v7400_v21 = vpop.f32.mrb[81].mxu0  ;;  %v7405_v55 = vpack.c.bf16 %v7398_v42, %v7398_v42  ;;  %v14754_v42 = vld [vmem:[#allocation20 + $0x124] ss:$8 sps:$4 sm:$0xff]  }
0x103c   : > { %v7406_v20 = vpack.c.bf16 %v7400_v21, %v7400_v21  ;;  %v7402_v22 = vpop.f32.mrb[82].mxu0  ;;  %v14752_v21 = vld [vmem:[#allocation20 + $0x120] ss:$8 sps:$4 sm:$0xff]  }
0x103d   : > { %v7403_v11 = vpop.f32.mrb[83].mxu0  ;;  %v14755_v22 = vld [vmem:[#allocation20 + $0x130] ss:$8 sps:$4 sm:$0xff]  }
0x103e   : > { %7632 = vmatprep.mubr.bf16.mxu0 %v7406_v20  ;;  %v14757_v20 = vld [vmem:[#allocation20 + $0x134] ss:$8 sps:$4 sm:$0xff]  }
0x103f   : > { %7633 = vmatmul.mubr.bf16.vlgmr.msra.gmra.mrb[84].mxu0 %v7405_v55  ;;  %v14758_v55 = vld [vmem:[#allocation20 + $0x140] ss:$8 sps:$4 sm:$0xff]   ;;  %v14763_v11 = vld [vmem:[#allocation20 + $0x154] ss:$8 sps:$4 sm:$0xff]  }
0x1040   : > { %8195 = vmatpush1.bf16.msra.mxu0 %v14698_v6  ;;  %v14760_v6 = vld [vmem:[#allocation20 + $0x144] ss:$8 sps:$4 sm:$0xff]  }
0x1041   : > { %8196 = vmatprep.subr.bf16.mxu0 %v14703_v50  ;;  %v14761_v50 = vld [vmem:[#allocation20 + $0x150] ss:$8 sps:$4 sm:$0xff]  }
0x1044   : > { %8197 = vmatpush1.bf16.msra.mxu0 %v14701_v3  ;;  %v14766_v3 = vld [vmem:[#allocation20 + $0x164] ss:$8 sps:$4 sm:$0xff]  }
0x1045   : > { %8198 = vmatprep.subr.bf16.mxu0 %v14706_v8  ;;  %v14764_v8 = vld [vmem:[#allocation20 + $0x160] ss:$8 sps:$4 sm:$0xff]  }
0x1048   : > { %8199 = vmatpush1.bf16.msra.mxu0 %v14704_v53  ;;  %v14769_v53 = vld [vmem:[#allocation20 + $0x174] ss:$8 sps:$4 sm:$0xff]  }
0x1049   : > { %8200 = vmatprep.subr.bf16.mxu0 %v14709_v33  ;;  %v14767_v33 = vld [vmem:[#allocation20 + $0x170] ss:$8 sps:$4 sm:$0xff]  }
0x104c   : > { %8201 = vmatpush1.bf16.msra.mxu0 %v14707_v58  ;;  %v14772_v58 = vld [vmem:[#allocation20 + $0x184] ss:$8 sps:$4 sm:$0xff]  }
0x104d   : > { %8202 = vmatprep.subr.bf16.mxu0 %v14712_v31  ;;  %v14770_v31 = vld [vmem:[#allocation20 + $0x180] ss:$8 sps:$4 sm:$0xff]  }
0x1050   : > { %8203 = vmatpush1.bf16.msra.mxu0 %v14710_v36  ;;  %v14775_v36 = vld [vmem:[#allocation20 + $0x194] ss:$8 sps:$4 sm:$0xff]  }
0x1051   : > { %8204 = vmatprep.subr.bf16.mxu0 %v14715_v14  ;;  %v14773_v14 = vld [vmem:[#allocation20 + $0x190] ss:$8 sps:$4 sm:$0xff]  }
0x1054   : > { %8205 = vmatpush1.bf16.msra.mxu0 %v14713_v7  ;;  %v14778_v7 = vld [vmem:[#allocation20 + $0x1a4] ss:$8 sps:$4 sm:$0xff]  }
0x1055   : > { %8206 = vmatprep.subr.bf16.mxu0 %v14718_v56  ;;  %v14776_v56 = vld [vmem:[#allocation20 + $0x1a0] ss:$8 sps:$4 sm:$0xff]  }
0x1058   : > { %8207 = vmatpush1.bf16.msra.mxu0 %v14716_v1  ;;  %v14781_v1 = vld [vmem:[#allocation20 + $0x1b4] ss:$8 sps:$4 sm:$0xff]  }
0x1059   : > { %8208 = vmatprep.subr.bf16.mxu0 %v14721_v59  ;;  %v14779_v59 = vld [vmem:[#allocation20 + $0x1b0] ss:$8 sps:$4 sm:$0xff]  }
0x105c   : > { %8209 = vmatpush1.bf16.msra.mxu0 %v14719_v47  ;;  %v14784_v47 = vld [vmem:[#allocation20 + $0x1c4] ss:$8 sps:$4 sm:$0xff]  }
0x105d   : > { %8210 = vmatprep.subr.bf16.mxu0 %v14724_v26  ;;  %v14782_v26 = vld [vmem:[#allocation20 + $0x1c0] ss:$8 sps:$4 sm:$0xff]  }
0x1060   : > { %8211 = vmatpush1.bf16.msra.mxu0 %v14722_v40  ;;  %v14787_v40 = vld [vmem:[#allocation20 + $0x1d4] ss:$8 sps:$4 sm:$0xff]  }
0x1061   : > { %8212 = vmatprep.subr.bf16.mxu0 %v14727_v45  ;;  %v14785_v45 = vld [vmem:[#allocation20 + $0x1d0] ss:$8 sps:$4 sm:$0xff]  }
0x1064   : > { %8213 = vmatpush1.bf16.msra.mxu0 %v14725_v63  ;;  %v14790_v63 = vld [vmem:[#allocation20 + $0x1e4] ss:$8 sps:$4 sm:$0xff]  }
0x1065   : > { %8214 = vmatprep.subr.bf16.mxu0 %v14730_v61  ;;  %v14788_v61 = vld [vmem:[#allocation20 + $0x1e0] ss:$8 sps:$4 sm:$0xff]  }
0x1068   : > { %8215 = vmatpush1.bf16.msra.mxu0 %v14728_v37  ;;  %v14793_v37 = vld [vmem:[#allocation20 + $0x1f4] ss:$8 sps:$4 sm:$0xff]  }
0x1069   : > { %8216 = vmatprep.subr.bf16.mxu0 %v14733_v57  ;;  %v14791_v57 = vld [vmem:[#allocation20 + $0x1f0] ss:$8 sps:$4 sm:$0xff]  }
0x106c   : > { %8217 = vmatpush1.bf16.msra.mxu0 %v14731_v9 }
0x106d   : > { %8218 = vmatprep.subr.bf16.mxu0 %v14736_v38 }
0x1070   : > { %8219 = vmatpush1.bf16.msra.mxu0 %v14734_v17 }
0x1071   : > { %8220 = vmatprep.subr.bf16.mxu0 %v14739_v43 }
0x1074   : > { %8221 = vmatpush1.bf16.msra.mxu0 %v14737_v5 }
0x1075   : > { %8222 = vmatprep.subr.bf16.mxu0 %v14742_v4 }
0x1078   : > { %8223 = vmatpush1.bf16.msra.mxu0 %v14740_v2  ;;  %v14844_v2 = vld [vmem:[#allocation20 + $0x304] ss:$8 sps:$4 sm:$0xff]  }
0x1079   : > { %8224 = vmatprep.subr.bf16.mxu0 %v14745_v24 }
0x107c   : > { %8225 = vmatpush1.bf16.msra.mxu0 %v14743_v62 }
0x1112   : > { %v7634_v35 = vpop.f32.mrb[84].mxu0 }
0x1113   : > { %v7641_v15 = vadd.f32 %v7634_v35, %v16927_v39  ;;  %v7636_v19 = vpop.f32.mrb[85].mxu0  ;;  %v12497_v39 = vld [vmem:[%s17352_s3 + $0x2] sm:$0x3]  ;;  %v12599_v35 = vld [vmem:[%s17352_s3 + $0x6] sm:$0x3] }
0x1114   : > { %v7642_v10 = vadd.f32 %v7636_v19, %v16929_v41  ;;  %v7638_v48 = vpop.f32.mrb[86].mxu0  ;;  %v14749_v41 = vld [vmem:[#allocation20 + $0x110] ss:$8 sps:$4 sm:$0xff]   ;;  %v14796_v19 = vld [vmem:[#allocation20 + $0x204] ss:$8 sps:$4 sm:$0xff]  }
0x1115   : > { %v7655_v49 = vadd.f32 %v7648_v27, %v7641_v15  ;;  %v7639_v13 = vpop.f32.mrb[87].mxu0  ;;  %v14847_v48 = vld [vmem:[#allocation20 + $0x314] ss:$8 sps:$4 sm:$0xff]  }
0x1116   : > { %v7656_v30 = vadd.f32 %v7652_v18, %v7642_v10  ;;  %v14842_v10 = vld [vmem:[#allocation20 + $0x300] ss:$8 sps:$4 sm:$0xff]   ;;  %v14850_v13 = vld [vmem:[#allocation20 + $0x324] ss:$8 sps:$4 sm:$0xff]  }
0x1117   : > { %vm7657_vm15 = vcmp.ge.f32.partialorder %v7655_v49, 0.0  ;;  %v7659_v60 = vmul.f32 0.1, %v7655_v49 }
0x1118   : > { %vm7658_vm0 = vcmp.ge.f32.partialorder %v7656_v30, 0.0  ;;  %v7660_v34 = vmul.f32 0.1, %v7656_v30 }
0x1119   : > { %v7661_v29 = vsel %vm7657_vm15, %v7655_v49, %v7659_v60  ;;  %v14845_v49 = vld [vmem:[#allocation20 + $0x310] ss:$8 sps:$4 sm:$0xff]   ;;  %v12564_v60 = vld [vmem:[%s17352_s3 + $0x4] sm:$0x3] }
0x111a   : > { %v7663_v51 = vpack.c.bf16 %v7661_v29, %v7661_v29  ;;  %v7662_v32 = vsel %vm7658_vm0, %v7656_v30, %v7660_v34  ;;  %v14794_v30 = vld [vmem:[#allocation20 + $0x200] ss:$8 sps:$4 sm:$0xff]   ;;  %v14799_v34 = vld [vmem:[#allocation20 + $0x214] ss:$8 sps:$4 sm:$0xff]  }
0x111b   : > { %v16935_v12 = vpack.c.bf16 %v7662_v32, %v7662_v32  ;;  %v14848_v29 = vld [vmem:[#allocation20 + $0x320] ss:$8 sps:$4 sm:$0xff]   ;;  %v14797_v32 = vld [vmem:[#allocation20 + $0x210] ss:$8 sps:$4 sm:$0xff]  }
0x111c   : > { %v16938_v25 = vsel %vm7670_vm1, %v7663_v51, 0  ;;  %v14853_v51 = vld [vmem:[#allocation20 + $0x334] ss:$8 sps:$4 sm:$0xff]  }
0x111d   : > { %12495 = vmatprep.subr.msk.bf16.mxu1 %vm7670_vm1, %v16935_v12  ;;  %12600 = vmatprep.subr.msk.bf16.mxu0 %vm7670_vm1, %v16935_v12 }
0x111e   : > { %7678 = vmatpush1.bf16.msra.mxu1 %v16938_v25 }
0x111f   : > { %12498 = vmatprep.subr.msk.bf16.mxu1 %vm7670_vm1, %v16935_v12 }
0x1121   : > { %12496 = vmatmul.mubr.msk.bf16.vlgmr.msra.gmra.mrb[88].mxu1 %vm7666_vm2, %v7665_v46  ;;  %v14802_v46 = vld [vmem:[#allocation20 + $0x224] ss:$8 sps:$4 sm:$0xff]  }
0x1122   : > { %7758 = vmatpush1.bf16.msra.mxu1 %v16938_v25  ;;  %7789 = vmatprep.mubr.bf16.mxu1 %v15695_v0 }
0x1123   : > { %7993 = vmatprep.subr.bf16.mxu1 %v14748_v28  ;;  %v14851_v28 = vld [vmem:[#allocation20 + $0x330] ss:$8 sps:$4 sm:$0xff]  }
0x1129   : > { %12499 = vmatmul.mubr.msk.bf16.vlgmr.msra.gmra.mrb[92].mxu1 %vm7666_vm2, %v12497_v39  ;;  %v14800_v39 = vld [vmem:[#allocation20 + $0x220] ss:$8 sps:$4 sm:$0xff]  }
0x112a   : > { %7994 = vmatpush1.bf16.msra.mxu1 %v14746_v44  ;;  %v14856_v44 = vld [vmem:[#allocation20 + $0x344] ss:$8 sps:$4 sm:$0xff]  }
0x112b   : > { %7995 = vmatprep.subr.bf16.mxu1 %v14751_v23  ;;  %v14805_v23 = vld [vmem:[#allocation20 + $0x234] ss:$8 sps:$4 sm:$0xff]  }
0x112e   : > { %7996 = vmatpush1.bf16.msra.mxu1 %v14749_v41  ;;  %v14854_v41 = vld [vmem:[#allocation20 + $0x340] ss:$8 sps:$4 sm:$0xff]  }
0x112f   : > { %7997 = vmatprep.subr.bf16.mxu1 %v14754_v42  ;;  %v14859_v42 = vld [vmem:[#allocation20 + $0x354] ss:$8 sps:$4 sm:$0xff]  }
0x1132   : > { %7998 = vmatpush1.bf16.msra.mxu1 %v14752_v21  ;;  %v14803_v21 = vld [vmem:[#allocation20 + $0x230] ss:$8 sps:$4 sm:$0xff]  }
0x1133   : > { %7999 = vmatprep.subr.bf16.mxu1 %v14757_v20  ;;  %v14808_v20 = vld [vmem:[#allocation20 + $0x244] ss:$8 sps:$4 sm:$0xff]  }
0x1136   : > { %8000 = vmatpush1.bf16.msra.mxu1 %v14755_v22  ;;  %v14857_v22 = vld [vmem:[#allocation20 + $0x350] ss:$8 sps:$4 sm:$0xff]  }
0x1137   : > { %8001 = vmatprep.subr.bf16.mxu1 %v14760_v6  ;;  %v14862_v6 = vld [vmem:[#allocation20 + $0x364] ss:$8 sps:$4 sm:$0xff]  }
0x113a   : > { %8002 = vmatpush1.bf16.msra.mxu1 %v14758_v55  ;;  %v14806_v55 = vld [vmem:[#allocation20 + $0x240] ss:$8 sps:$4 sm:$0xff]  }
0x113b   : > { %8003 = vmatprep.subr.bf16.mxu1 %v14763_v11  ;;  %v14811_v11 = vld [vmem:[#allocation20 + $0x254] ss:$8 sps:$4 sm:$0xff]  }
0x113e   : > { %8004 = vmatpush1.bf16.msra.mxu1 %v14761_v50  ;;  %v14860_v50 = vld [vmem:[#allocation20 + $0x360] ss:$8 sps:$4 sm:$0xff]  }
0x113f   : > { %8005 = vmatprep.subr.bf16.mxu1 %v14766_v3  ;;  %v14865_v3 = vld [vmem:[#allocation20 + $0x374] ss:$8 sps:$4 sm:$0xff]  }
0x1142   : > { %8006 = vmatpush1.bf16.msra.mxu1 %v14764_v8  ;;  %v14809_v8 = vld [vmem:[#allocation20 + $0x250] ss:$8 sps:$4 sm:$0xff]  }
0x1143   : > { %8007 = vmatprep.subr.bf16.mxu1 %v14769_v53  ;;  %v14814_v53 = vld [vmem:[#allocation20 + $0x264] ss:$8 sps:$4 sm:$0xff]  }
0x1146   : > { %8008 = vmatpush1.bf16.msra.mxu1 %v14767_v33  ;;  %v14863_v33 = vld [vmem:[#allocation20 + $0x370] ss:$8 sps:$4 sm:$0xff]  }
0x1147   : > { %8009 = vmatprep.subr.bf16.mxu1 %v14772_v58  ;;  %v14868_v58 = vld [vmem:[#allocation20 + $0x384] ss:$8 sps:$4 sm:$0xff]  }
0x114a   : > { %8010 = vmatpush1.bf16.msra.mxu1 %v14770_v31  ;;  %v14812_v31 = vld [vmem:[#allocation20 + $0x260] ss:$8 sps:$4 sm:$0xff]  }
0x114b   : > { %8011 = vmatprep.subr.bf16.mxu1 %v14775_v36  ;;  %v14817_v36 = vld [vmem:[#allocation20 + $0x274] ss:$8 sps:$4 sm:$0xff]  }
0x114e   : > { %8012 = vmatpush1.bf16.msra.mxu1 %v14773_v14  ;;  %v14866_v14 = vld [vmem:[#allocation20 + $0x380] ss:$8 sps:$4 sm:$0xff]  }
0x114f   : > { %8013 = vmatprep.subr.bf16.mxu1 %v14778_v7  ;;  %v14871_v7 = vld [vmem:[#allocation20 + $0x394] ss:$8 sps:$4 sm:$0xff]  }
0x1152   : > { %8014 = vmatpush1.bf16.msra.mxu1 %v14776_v56  ;;  %v14815_v56 = vld [vmem:[#allocation20 + $0x270] ss:$8 sps:$4 sm:$0xff]  }
0x1153   : > { %8015 = vmatprep.subr.bf16.mxu1 %v14781_v1  ;;  %v14820_v1 = vld [vmem:[#allocation20 + $0x284] ss:$8 sps:$4 sm:$0xff]  }
0x1156   : > { %8016 = vmatpush1.bf16.msra.mxu1 %v14779_v59  ;;  %v14869_v59 = vld [vmem:[#allocation20 + $0x390] ss:$8 sps:$4 sm:$0xff]  }
0x1157   : > { %8017 = vmatprep.subr.bf16.mxu1 %v14784_v47  ;;  %v14874_v47 = vld [vmem:[#allocation20 + $0x3a4] ss:$8 sps:$4 sm:$0xff]  }
0x115a   : > { %8018 = vmatpush1.bf16.msra.mxu1 %v14782_v26  ;;  %v14818_v26 = vld [vmem:[#allocation20 + $0x280] ss:$8 sps:$4 sm:$0xff]  }
0x115b   : > { %8019 = vmatprep.subr.bf16.mxu1 %v14787_v40  ;;  %v14823_v40 = vld [vmem:[#allocation20 + $0x294] ss:$8 sps:$4 sm:$0xff]  }
0x115e   : > { %8020 = vmatpush1.bf16.msra.mxu1 %v14785_v45  ;;  %v14872_v45 = vld [vmem:[#allocation20 + $0x3a0] ss:$8 sps:$4 sm:$0xff]  }
0x115f   : > { %8021 = vmatprep.subr.bf16.mxu1 %v14790_v63  ;;  %v14821_v63 = vld [vmem:[#allocation20 + $0x290] ss:$8 sps:$4 sm:$0xff]  }
0x1162   : > { %8022 = vmatpush1.bf16.msra.mxu1 %v14788_v61  ;;  %v14826_v61 = vld [vmem:[#allocation20 + $0x2a4] ss:$8 sps:$4 sm:$0xff]  }
0x1163   : > { %8023 = vmatprep.subr.bf16.mxu1 %v14793_v37  ;;  %v14824_v37 = vld [vmem:[#allocation20 + $0x2a0] ss:$8 sps:$4 sm:$0xff]  }
0x1166   : > { %8024 = vmatpush1.bf16.msra.mxu1 %v14791_v57  ;;  %v14829_v57 = vld [vmem:[#allocation20 + $0x2b4] ss:$8 sps:$4 sm:$0xff]  }
0x1167   : > { %12565 = vmatprep.subr.msk.bf16.mxu1 %vm7670_vm1, %v16935_v12 }
0x11f4   : > { %v7711_v9 = vpop.f32.mrb[88].mxu1 }
0x11f5   : > { %v7713_v38 = vpop.f32.mrb[89].mxu1  ;;  %v7718_v5 = vpack.c.bf16 %v7711_v9, %v7711_v9  ;;  %v14827_v9 = vld [vmem:[#allocation20 + $0x2b0] ss:$8 sps:$4 sm:$0xff]  }
0x11f6   : > { %v7719_v17 = vpack.c.bf16 %v7713_v38, %v7713_v38  ;;  %v7715_v43 = vpop.f32.mrb[90].mxu1  ;;  %v14832_v38 = vld [vmem:[#allocation20 + $0x2c4] ss:$8 sps:$4 sm:$0xff]  }
0x11f7   : > { %v7716_v4 = vpop.f32.mrb[91].mxu1  ;;  %v14835_v43 = vld [vmem:[#allocation20 + $0x2d4] ss:$8 sps:$4 sm:$0xff]  }
0x11f8   : > { %8226 = vmatprep.mubr.bf16.mxu0 %v7719_v17  ;;  %v14830_v17 = vld [vmem:[#allocation20 + $0x2c0] ss:$8 sps:$4 sm:$0xff]   ;;  %v14838_v4 = vld [vmem:[#allocation20 + $0x2e4] ss:$8 sps:$4 sm:$0xff]  }
0x11f9   : > { %8227 = vmatmul.mubr.bf16.vlgmr.msra.gmra.mrb[88].mxu0 %v7718_v5  ;;  %v14833_v5 = vld [vmem:[#allocation20 + $0x2d0] ss:$8 sps:$4 sm:$0xff]  }
0x11fa   : > { %8525 = vmatpush1.bf16.msra.mxu0 %v16938_v25  ;;  %8556 = vmatprep.mubr.bf16.mxu0 %v15695_v0 }
0x11fb   : > { %8760 = vmatprep.subr.bf16.mxu0 %v14844_v2  ;;  %v14836_v2 = vld [vmem:[#allocation20 + $0x2e0] ss:$8 sps:$4 sm:$0xff]  }
0x11fc   : > { %v7791_v24 = vpop.f32.mrb[92].mxu1 }
0x11fd   : > { %v7793_v62 = vpop.f32.mrb[93].mxu1  ;;  %v7798_v18 = vpack.c.bf16 %v7791_v24, %v7791_v24  ;;  %v14841_v24 = vld [vmem:[#allocation20 + $0x2f4] ss:$8 sps:$4 sm:$0xff]  }
0x11fe   : > { %v7799_v16 = vpack.c.bf16 %v7793_v62, %v7793_v62  ;;  %v7795_v27 = vpop.f32.mrb[94].mxu1  ;;  %v14839_v62 = vld [vmem:[#allocation20 + $0x2f0] ss:$8 sps:$4 sm:$0xff]  }
0x11ff   : > { %v7796_v15 = vpop.f32.mrb[95].mxu1  ;;  %v14875_v27 = vld [vmem:[#allocation20 + $0x3b0] ss:$8 sps:$4 sm:$0xff]  }
0x1200   : > { %8025 = vmatprep.mubr.bf16.mxu1 %v7799_v16  ;;  %v14877_v16 = vld [vmem:[#allocation20 + $0x3b4] ss:$8 sps:$4 sm:$0xff]  }
0x1201   : > { %8026 = vmatmul.mubr.bf16.vlgmr.msra.gmra.mrb[96].mxu1 %v7798_v18  ;;  %12601 = vmatmul.mubr.msk.bf16.vlgmr.msra.gmra.mrb[92].mxu0 %vm7666_vm2, %v12599_v35  ;;  %v14880_v35 = vld [vmem:[#allocation20 + $0x3c4] ss:$8 sps:$4 sm:$0xff]   ;;  %v14878_v18 = vld [vmem:[#allocation20 + $0x3c0] ss:$8 sps:$4 sm:$0xff]   ;;  %v14883_v15 = vld [vmem:[#allocation20 + $0x3d4] ss:$8 sps:$4 sm:$0xff]  }
0x1202   : > { %8241 = vmatpush1.bf16.msra.mxu1 %v16938_v25  ;;  %8272 = vmatprep.mubr.bf16.mxu1 %v15695_v0 }
0x1203   : > { %8476 = vmatprep.subr.bf16.mxu1 %v14796_v19  ;;  %8761 = vmatpush1.bf16.msra.mxu0 %v14842_v10  ;;  %v14881_v19 = vld [vmem:[#allocation20 + $0x3d0] ss:$8 sps:$4 sm:$0xff]   ;;  %v14886_v10 = vld [vmem:[#allocation20 + $0x3e4] ss:$8 sps:$4 sm:$0xff]  }
0x1204   : > { %8762 = vmatprep.subr.bf16.mxu0 %v14847_v48  ;;  %v14884_v48 = vld [vmem:[#allocation20 + $0x3e0] ss:$8 sps:$4 sm:$0xff]  }
0x1207   : > { %8763 = vmatpush1.bf16.msra.mxu0 %v14845_v49  ;;  %v14889_v49 = vld [vmem:[#allocation20 + $0x3f4] ss:$8 sps:$4 sm:$0xff]  }
0x1208   : > { %8764 = vmatprep.subr.bf16.mxu0 %v14850_v13  ;;  %v14887_v13 = vld [vmem:[#allocation20 + $0x3f0] ss:$8 sps:$4 sm:$0xff]  }
0x1209   : > { %12566 = vmatmul.mubr.msk.bf16.vlgmr.msra.gmra.mrb[100].mxu1 %vm7666_vm2, %v12564_v60 }
0x120a   : > { %8477 = vmatpush1.bf16.msra.mxu1 %v14794_v30 }
0x120b   : > { %8478 = vmatprep.subr.bf16.mxu1 %v14799_v34  ;;  %8765 = vmatpush1.bf16.msra.mxu0 %v14848_v29 }
0x120c   : > { %8766 = vmatprep.subr.bf16.mxu0 %v14853_v51 }
0x120e   : > { %8479 = vmatpush1.bf16.msra.mxu1 %v14797_v32 }
0x120f   : > { %8480 = vmatprep.subr.bf16.mxu1 %v14802_v46  ;;  %8767 = vmatpush1.bf16.msra.mxu0 %v14851_v28 }
0x1210   : > { %8768 = vmatprep.subr.bf16.mxu0 %v14856_v44 }
0x1212   : > { %8481 = vmatpush1.bf16.msra.mxu1 %v14800_v39 }
0x1213   : > { %8482 = vmatprep.subr.bf16.mxu1 %v14805_v23  ;;  %8769 = vmatpush1.bf16.msra.mxu0 %v14854_v41 }
0x1214   : > { %8770 = vmatprep.subr.bf16.mxu0 %v14859_v42 }
0x1216   : > { %8483 = vmatpush1.bf16.msra.mxu1 %v14803_v21 }
0x1217   : > { %8484 = vmatprep.subr.bf16.mxu1 %v14808_v20  ;;  %8771 = vmatpush1.bf16.msra.mxu0 %v14857_v22 }
0x1218   : > { %8772 = vmatprep.subr.bf16.mxu0 %v14862_v6 }
0x121a   : > { %8485 = vmatpush1.bf16.msra.mxu1 %v14806_v55 }
0x121b   : > { %8486 = vmatprep.subr.bf16.mxu1 %v14811_v11  ;;  %8773 = vmatpush1.bf16.msra.mxu0 %v14860_v50 }
0x121c   : > { %8774 = vmatprep.subr.bf16.mxu0 %v14865_v3 }
0x121e   : > { %8487 = vmatpush1.bf16.msra.mxu1 %v14809_v8  ;;  %v14892_v8 = vld [vmem:[#allocation20 + $0x404] ss:$8 sps:$4 sm:$0xff]  }
0x121f   : > { %8488 = vmatprep.subr.bf16.mxu1 %v14814_v53  ;;  %8775 = vmatpush1.bf16.msra.mxu0 %v14863_v33  ;;  %v12634_v53 = vld [vmem:[%s17352_s3 + $0x8] sm:$0x3]  ;;  %v14890_v33 = vld [vmem:[#allocation20 + $0x400] ss:$8 sps:$4 sm:$0xff]  }
0x1220   : > { %8776 = vmatprep.subr.bf16.mxu0 %v14868_v58  ;;  %v14895_v58 = vld [vmem:[#allocation20 + $0x414] ss:$8 sps:$4 sm:$0xff]  }
0x1222   : > { %8489 = vmatpush1.bf16.msra.mxu1 %v14812_v31  ;;  %v14893_v31 = vld [vmem:[#allocation20 + $0x410] ss:$8 sps:$4 sm:$0xff]  }
0x1223   : > { %8490 = vmatprep.subr.bf16.mxu1 %v14817_v36  ;;  %8777 = vmatpush1.bf16.msra.mxu0 %v14866_v14  ;;  %v14898_v36 = vld [vmem:[#allocation20 + $0x424] ss:$8 sps:$4 sm:$0xff]   ;;  %v14896_v14 = vld [vmem:[#allocation20 + $0x420] ss:$8 sps:$4 sm:$0xff]  }
0x1224   : > { %8778 = vmatprep.subr.bf16.mxu0 %v14871_v7  ;;  %v14901_v7 = vld [vmem:[#allocation20 + $0x434] ss:$8 sps:$4 sm:$0xff]  }
0x1226   : > { %8491 = vmatpush1.bf16.msra.mxu1 %v14815_v56  ;;  %v14899_v56 = vld [vmem:[#allocation20 + $0x430] ss:$8 sps:$4 sm:$0xff]  }
0x1227   : > { %8492 = vmatprep.subr.bf16.mxu1 %v14820_v1  ;;  %8779 = vmatpush1.bf16.msra.mxu0 %v14869_v59  ;;  %v14902_v1 = vld [vmem:[#allocation20 + $0x440] ss:$8 sps:$4 sm:$0xff]   ;;  %v14907_v59 = vld [vmem:[#allocation20 + $0x454] ss:$8 sps:$4 sm:$0xff]  }
0x1228   : > { %8780 = vmatprep.subr.bf16.mxu0 %v14874_v47  ;;  %v14905_v47 = vld [vmem:[#allocation20 + $0x450] ss:$8 sps:$4 sm:$0xff]  }
0x122a   : > { %8493 = vmatpush1.bf16.msra.mxu1 %v14818_v26  ;;  %v14910_v26 = vld [vmem:[#allocation20 + $0x464] ss:$8 sps:$4 sm:$0xff]  }
0x122b   : > { %8494 = vmatprep.subr.bf16.mxu1 %v14823_v40  ;;  %8781 = vmatpush1.bf16.msra.mxu0 %v14872_v45  ;;  %v14908_v40 = vld [vmem:[#allocation20 + $0x460] ss:$8 sps:$4 sm:$0xff]   ;;  %v14913_v45 = vld [vmem:[#allocation20 + $0x474] ss:$8 sps:$4 sm:$0xff]  }
0x122c   : > { %8782 = vmatprep.subr.bf16.mxu0 %v14877_v16  ;;  %v14932_v16 = vld [vmem:[#allocation20 + $0x4e0] ss:$8 sps:$4 sm:$0xff]  }
0x122e   : > { %8495 = vmatpush1.bf16.msra.mxu1 %v14821_v63  ;;  %v14911_v63 = vld [vmem:[#allocation20 + $0x470] ss:$8 sps:$4 sm:$0xff]  }
0x122f   : > { %8496 = vmatprep.subr.bf16.mxu1 %v14826_v61  ;;  %8783 = vmatpush1.bf16.msra.mxu0 %v14875_v27  ;;  %v14916_v61 = vld [vmem:[#allocation20 + $0x484] ss:$8 sps:$4 sm:$0xff]  }
0x1230   : > { %8784 = vmatprep.subr.bf16.mxu0 %v14880_v35  ;;  %v14934_v27 = vld [vmem:[#allocation20 + $0x4e4] ss:$8 sps:$4 sm:$0xff]   ;;  %v14937_v35 = vld [vmem:[#allocation20 + $0x4f4] ss:$8 sps:$4 sm:$0xff]  }
0x1232   : > { %8497 = vmatpush1.bf16.msra.mxu1 %v14824_v37  ;;  %v14914_v37 = vld [vmem:[#allocation20 + $0x480] ss:$8 sps:$4 sm:$0xff]  }
0x1233   : > { %8498 = vmatprep.subr.bf16.mxu1 %v14829_v57  ;;  %8785 = vmatpush1.bf16.msra.mxu0 %v14878_v18  ;;  %v14919_v57 = vld [vmem:[#allocation20 + $0x494] ss:$8 sps:$4 sm:$0xff]   ;;  %v14935_v18 = vld [vmem:[#allocation20 + $0x4f0] ss:$8 sps:$4 sm:$0xff]  }
0x1234   : > { %8786 = vmatprep.subr.bf16.mxu0 %v14883_v15  ;;  %v14938_v15 = vld [vmem:[#allocation23 + $0x40] sm:$0xff]  }
0x1236   : > { %8499 = vmatpush1.bf16.msra.mxu1 %v14827_v9  ;;  %v14917_v9 = vld [vmem:[#allocation20 + $0x490] ss:$8 sps:$4 sm:$0xff]  }
0x1237   : > { %8500 = vmatprep.subr.bf16.mxu1 %v14832_v38  ;;  %8787 = vmatpush1.bf16.msra.mxu0 %v14881_v19  ;;  %v14922_v38 = vld [vmem:[#allocation20 + $0x4a4] ss:$8 sps:$4 sm:$0xff]  }
0x1238   : > { %8788 = vmatprep.subr.bf16.mxu0 %v14886_v10 }
0x123a   : > { %8501 = vmatpush1.bf16.msra.mxu1 %v14830_v17  ;;  %v14920_v17 = vld [vmem:[#allocation20 + $0x4a0] ss:$8 sps:$4 sm:$0xff]  }
0x123b   : > { %8502 = vmatprep.subr.bf16.mxu1 %v14835_v43  ;;  %8789 = vmatpush1.bf16.msra.mxu0 %v14884_v48  ;;  %v14925_v43 = vld [vmem:[#allocation20 + $0x4b4] ss:$8 sps:$4 sm:$0xff]  }
0x123c   : > { %8790 = vmatprep.subr.bf16.mxu0 %v14889_v49 }
0x123e   : > { %8503 = vmatpush1.bf16.msra.mxu1 %v14833_v5  ;;  %v14923_v5 = vld [vmem:[#allocation20 + $0x4b0] ss:$8 sps:$4 sm:$0xff]  }
0x123f   : > { %8504 = vmatprep.subr.bf16.mxu1 %v14838_v4  ;;  %8791 = vmatpush1.bf16.msra.mxu0 %v14887_v13  ;;  %v14928_v4 = vld [vmem:[#allocation20 + $0x4c4] ss:$8 sps:$4 sm:$0xff]  }
0x1242   : > { %8505 = vmatpush1.bf16.msra.mxu1 %v14836_v2  ;;  %v14926_v2 = vld [vmem:[#allocation20 + $0x4c0] ss:$8 sps:$4 sm:$0xff]  }
0x1243   : > { %8506 = vmatprep.subr.bf16.mxu1 %v14841_v24  ;;  %v14931_v24 = vld [vmem:[#allocation20 + $0x4d4] ss:$8 sps:$4 sm:$0xff]  }
0x1246   : > { %8507 = vmatpush1.bf16.msra.mxu1 %v14839_v62  ;;  %v14929_v62 = vld [vmem:[#allocation20 + $0x4d0] ss:$8 sps:$4 sm:$0xff]  }
0x1247   : > { %12635 = vmatprep.subr.msk.bf16.mxu1 %vm7670_vm1, %v16935_v12 }
0x12cc   : > { %v8228_v12 = vpop.f32.mrb[88].mxu0 }
0x12cd   : > { %v8230_v30 = vpop.f32.mrb[89].mxu0 }
0x12ce   : > { %v8232_v60 = vpop.f32.mrb[90].mxu0 }
0x12cf   : > { %v8233_v34 = vpop.f32.mrb[91].mxu0 }
0x12d4   : > { %v8027_v29 = vpop.f32.mrb[96].mxu1  ;;  %v8558_v51 = vpop.f32.mrb[92].mxu0 }
0x12d5   : > { %v16965_v32 = vadd.f32 %v8228_v12, %v8027_v29  ;;  %v8029_v46 = vpop.f32.mrb[97].mxu1  ;;  %v8565_v28 = vpack.c.bf16 %v8558_v51, %v8558_v51  ;;  %v8560_v44 = vpop.f32.mrb[93].mxu0 }
0x12d6   : > { %v16967_v39 = vadd.f32 %v8230_v30, %v8029_v46  ;;  %v8031_v23 = vpop.f32.mrb[98].mxu1  ;;  %v8566_v41 = vpack.c.bf16 %v8560_v44, %v8560_v44  ;;  %v8562_v42 = vpop.f32.mrb[94].mxu0 }
0x12d7   : > { %v8032_v21 = vpop.f32.mrb[99].mxu1  ;;  %v8563_v20 = vpop.f32.mrb[95].mxu0  ;;  %v14939_v42 = vld [vmem:[#allocation23] sm:$0xff]  }
0x12d8   : > { %8792 = vmatprep.mubr.bf16.mxu0 %v8566_v41 }
0x12d9   : > { %8793 = vmatmul.mubr.bf16.vlgmr.msra.gmra.mrb[96].mxu0 %v8565_v28 }
0x12da   : > { %9153 = vmatprep.mubr.bf16.mxu0 %v15695_v0 }
0x12dc   : > { %v8274_v22 = vpop.f32.mrb[100].mxu1 }
0x12dd   : > { %v8276_v6 = vpop.f32.mrb[101].mxu1  ;;  %v8281_v50 = vpack.c.bf16 %v8274_v22, %v8274_v22  ;;  %v14940_v22 = vld [vmem:[#allocation23 + $0x48] sm:$0xff]  }
0x12de   : > { %v8282_v55 = vpack.c.bf16 %v8276_v6, %v8276_v6  ;;  %v8278_v11 = vpop.f32.mrb[102].mxu1  ;;  %v14941_v6 = vld [vmem:[#allocation23 + $0x8] sm:$0xff]  }
0x12df   : > { %v8279_v3 = vpop.f32.mrb[103].mxu1  ;;  %v14945_v11 = vld [vmem:[#allocation23 + $0x18] sm:$0xff]  }
0x12e0   : > { %8508 = vmatprep.mubr.bf16.mxu1 %v8282_v55  ;;  %v14944_v55 = vld [vmem:[#allocation23 + $0x58] sm:$0xff]   ;;  %v14947_v3 = vld [vmem:[#allocation23 + $0x20] sm:$0xff]  }
0x12e1   : > { %8509 = vmatmul.mubr.bf16.vlgmr.msra.gmra.mrb[104].mxu1 %v8281_v50  ;;  %v14946_v50 = vld [vmem:[#allocation23 + $0x60] sm:$0xff]  }
0x12e2   : > { %8809 = vmatpush1.bf16.msra.mxu1 %v16938_v25  ;;  %8840 = vmatprep.mubr.bf16.mxu1 %v15695_v0  ;;  %v14904_v25 = vld [vmem:[#allocation20 + $0x444] ss:$8 sps:$4 sm:$0xff]  }
0x12e3   : > { %9044 = vmatprep.subr.bf16.mxu1 %v14892_v8  ;;  %v14948_v8 = vld [vmem:[#allocation23 + $0x68] sm:$0xff]  }
0x12e9   : > { %12636 = vmatmul.mubr.msk.bf16.vlgmr.msra.gmra.mrb[108].mxu1 %vm7666_vm2, %v12634_v53  ;;  %v14949_v53 = vld [vmem:[#allocation23 + $0x28] sm:$0xff]  }
0x12ea   : > { %9045 = vmatpush1.bf16.msra.mxu1 %v14890_v33  ;;  %v14950_v33 = vld [vmem:[#allocation23 + $0x70] sm:$0xff]  }
0x12eb   : > { %9046 = vmatprep.subr.bf16.mxu1 %v14895_v58  ;;  %v14951_v58 = vld [vmem:[#allocation23 + $0x30] sm:$0xff]  }
0x12ee   : > { %9047 = vmatpush1.bf16.msra.mxu1 %v14893_v31  ;;  %v14952_v31 = vld [vmem:[#allocation23 + $0x78] sm:$0xff]  }
0x12ef   : > { %9048 = vmatprep.subr.bf16.mxu1 %v14898_v36  ;;  %v14953_v36 = vld [vmem:[#allocation23 + $0x38] sm:$0xff]  }
0x12f2   : > { %9049 = vmatpush1.bf16.msra.mxu1 %v14896_v14  ;;  %v9087_v14 = vld [vmem:[#allocation22] sm:$0x3] }
0x12f3   : > { %9050 = vmatprep.subr.bf16.mxu1 %v14901_v7  ;;  %v9092_v7 = vrot.slane %v9087_v14, %v16480_v52 }
0x12f6   : > { %9051 = vmatpush1.bf16.msra.mxu1 %v14899_v56 }
0x12f7   : > { %9052 = vmatprep.subr.bf16.mxu1 %v14904_v25  ;;  %v9096_v25 = vrot.slane %v9087_v14, %v16483_v54  ;;  %v14978_v14 = vld [vmem:[#allocation23 + $0x160] sm:$0xff]  }
0x12fa   : > { %9053 = vmatpush1.bf16.msra.mxu1 %v14902_v1 }
0x12fb   : > { %9054 = vmatprep.subr.bf16.mxu1 %v14907_v59 }
0x12fe   : > { %9055 = vmatpush1.bf16.msra.mxu1 %v14905_v47 }
0x12ff   : > { %9056 = vmatprep.subr.bf16.mxu1 %v14910_v26 }
0x1302   : > { %9057 = vmatpush1.bf16.msra.mxu1 %v14908_v40 }
0x1303   : > { %9058 = vmatprep.subr.bf16.mxu1 %v14913_v45 }
0x1306   : > { %9059 = vmatpush1.bf16.msra.mxu1 %v14911_v63 }
0x1307   : > { %9060 = vmatprep.subr.bf16.mxu1 %v14916_v61 }
0x130a   : > { %9061 = vmatpush1.bf16.msra.mxu1 %v14914_v37 }
0x130b   : > { %9062 = vmatprep.subr.bf16.mxu1 %v14919_v57 }
0x130e   : > { %9063 = vmatpush1.bf16.msra.mxu1 %v14917_v9 }
0x130f   : > { %9064 = vmatprep.subr.bf16.mxu1 %v14922_v38 }
0x1312   : > { %9065 = vmatpush1.bf16.msra.mxu1 %v14920_v17  ;;  %v9109_v17 = vld [vmem:[%s17353_s10] sm:$0x1] }
0x1313   : > { %9066 = vmatprep.subr.bf16.mxu1 %v14925_v43  ;;  %v14954_v43 = vld [vmem:[#allocation23 + $0xc0] sm:$0xff]  }
0x1316   : > { %9067 = vmatpush1.bf16.msra.mxu1 %v14923_v5  ;;  %v12671_v5 = vld [vmem:[%s17353_s10 + $0x1] sm:$0x1] }
0x1317   : > { %9068 = vmatprep.subr.bf16.mxu1 %v14928_v4  ;;  %v14955_v4 = vld [vmem:[#allocation23 + $0x80] sm:$0xff]  }
0x131a   : > { %9069 = vmatpush1.bf16.msra.mxu1 %v14926_v2  ;;  %v14956_v2 = vld [vmem:[#allocation23 + $0xc8] sm:$0xff]  }
0x131b   : > { %9070 = vmatprep.subr.bf16.mxu1 %v14931_v24  ;;  %v14957_v24 = vld [vmem:[#allocation23 + $0x88] sm:$0xff]  }
0x131e   : > { %9071 = vmatpush1.bf16.msra.mxu1 %v14929_v62  ;;  %v14958_v62 = vld [vmem:[#allocation23 + $0xd0] sm:$0xff]  }
0x131f   : > { %9072 = vmatprep.subr.bf16.mxu1 %v14934_v27  ;;  %v14960_v27 = vld [vmem:[#allocation23 + $0xd8] sm:$0xff]  }
0x1322   : > { %9073 = vmatpush1.bf16.msra.mxu1 %v14932_v16  ;;  %v14959_v16 = vld [vmem:[#allocation23 + $0x90] sm:$0xff]  }
0x1323   : > { %9074 = vmatprep.subr.bf16.mxu1 %v14937_v35  ;;  %v14961_v35 = vld [vmem:[#allocation23 + $0x98] sm:$0xff]  }
0x1326   : > { %9075 = vmatpush1.bf16.msra.mxu1 %v14935_v18  ;;  %v14962_v18 = vld [vmem:[#allocation23 + $0xe0] sm:$0xff]  }
0x1327   : > { %12930 = vmatprep.subr.bf16.mxu1 %v14938_v15  ;;  %v14963_v15 = vld [vmem:[#allocation23 + $0xa0] sm:$0xff]  }
0x13ac   : > { %v8794_v19 = vpop.f32.mrb[96].mxu0 }
0x13ad   : > { %v8796_v10 = vpop.f32.mrb[97].mxu0 }
0x13ae   : > { %v8798_v48 = vpop.f32.mrb[98].mxu0 }
0x13af   : > { %v8799_v49 = vpop.f32.mrb[99].mxu0  ;;  %v14966_v48 = vld [vmem:[#allocation23 + $0xf0] sm:$0xff]  }
0x13b0   : > { %v14967_v49 = vld [vmem:[#allocation23 + $0xb0] sm:$0xff]  }
0x13b4   : > { %v8510_v13 = vpop.f32.mrb[104].mxu1 }
0x13b5   : > { %v8517_v12 = vadd.f32 %v8510_v13, %v16965_v32  ;;  %v8512_v30 = vpop.f32.mrb[105].mxu1  ;;  %v14942_v32 = vld [vmem:[#allocation23 + $0x50] sm:$0xff]   ;;  %v14968_v13 = vld [vmem:[#allocation23 + $0xf8] sm:$0xff]  }
0x13b6   : > { %v8518_v60 = vadd.f32 %v8512_v30, %v16967_v39  ;;  %v8514_v34 = vpop.f32.mrb[106].mxu1  ;;  %v14943_v39 = vld [vmem:[#allocation23 + $0x10] sm:$0xff]  }
0x13b7   : > { %v8801_v29 = vadd.f32 %v8794_v19, %v8517_v12  ;;  %v8515_v51 = vpop.f32.mrb[107].mxu1  ;;  %v14964_v19 = vld [vmem:[#allocation23 + $0xe8] sm:$0xff]   ;;  %v14969_v12 = vld [vmem:[#allocation23 + $0xb8] sm:$0xff]  }
0x13b8   : > { %v8802_v46 = vadd.f32 %v8796_v10, %v8518_v60  ;;  %v14965_v10 = vld [vmem:[#allocation23 + $0xa8] sm:$0xff]  }
0x13bc   : > { %v8842_v28 = vpop.f32.mrb[108].mxu1 }
0x13bd   : > { %v8844_v44 = vpop.f32.mrb[109].mxu1  ;;  %v8849_v21 = vpack.c.bf16 %v8842_v28, %v8842_v28  ;;  %v14986_v28 = vld [vmem:[#allocation23 + $0x1c0] sm:$0xff]  }
0x13be   : > { %v8850_v23 = vpack.c.bf16 %v8844_v44, %v8844_v44  ;;  %v8846_v41 = vpop.f32.mrb[110].mxu1 }
0x13bf   : > { %v8847_v20 = vpop.f32.mrb[111].mxu1 }
0x13c0   : > { %9076 = vmatprep.mubr.bf16.mxu1 %v8850_v23 }
0x13c1   : > { %9077 = vmatmul.mubr.bf16.vlgmr.msra.gmra.mrb[112].mxu1 %v8849_v21  ;;  %v12725_v21 = vld [vmem:[%s17353_s10 + $0x3] sm:$0x1] }
0x13c2   : > { %12931 = vmatpush3.bf16.msra.mxu1 %v14939_v42 }
0x13c3   : > { %12932 = vmatprep.subr.bf16.mxu1 %v14940_v22 }
0x13c6   : > { %12933 = vmatpush3.bf16.msra.mxu1 %v14941_v6  ;;  %v14970_v6 = vld [vmem:[#allocation23 + $0x140] sm:$0xff]  }
0x13c7   : > { %12934 = vmatprep.subr.bf16.mxu1 %v14942_v32  ;;  %v14987_v32 = vld [vmem:[#allocation23 + $0x180] sm:$0xff]  }
0x13ca   : > { %12935 = vmatpush3.bf16.msra.mxu1 %v14943_v39  ;;  %v14988_v39 = vld [vmem:[#allocation23 + $0x1c8] sm:$0xff]  }
0x13cb   : > { %12936 = vmatprep.subr.bf16.mxu1 %v14944_v55  ;;  %v14989_v55 = vld [vmem:[#allocation23 + $0x188] sm:$0xff]  }
0x13ce   : > { %12937 = vmatpush3.bf16.msra.mxu1 %v14945_v11  ;;  %v14990_v11 = vld [vmem:[#allocation23 + $0x1d0] sm:$0xff]  }
0x13cf   : > { %12938 = vmatprep.subr.bf16.mxu1 %v14946_v50  ;;  %v12706_v50 = vld [vmem:[%s17353_s10 + $0x2] sm:$0x1] }
0x13d2   : > { %12939 = vmatpush3.bf16.msra.mxu1 %v14947_v3  ;;  %v14971_v3 = vld [vmem:[#allocation23 + $0x100] sm:$0xff]  }
0x13d3   : > { %12940 = vmatprep.subr.bf16.mxu1 %v14948_v8  ;;  %v14972_v8 = vld [vmem:[#allocation23 + $0x148] sm:$0xff]  }
0x13d6   : > { %12941 = vmatpush3.bf16.msra.mxu1 %v14949_v53  ;;  %v14973_v53 = vld [vmem:[#allocation23 + $0x108] sm:$0xff]  }
0x13d7   : > { %12942 = vmatprep.subr.bf16.mxu1 %v14950_v33  ;;  %v14974_v33 = vld [vmem:[#allocation23 + $0x150] sm:$0xff]  }
0x13da   : > { %12943 = vmatpush3.bf16.msra.mxu1 %v14951_v58  ;;  %v14975_v58 = vld [vmem:[#allocation23 + $0x110] sm:$0xff]  }
0x13db   : > { %12944 = vmatprep.subr.bf16.mxu1 %v14952_v31  ;;  %v14976_v31 = vld [vmem:[#allocation23 + $0x158] sm:$0xff]  }
0x13de   : > { %12945 = vmatpush3.bf16.msra.mxu1 %v14953_v36  ;;  %v14977_v36 = vld [vmem:[#allocation23 + $0x118] sm:$0xff]  }
0x1494   : > { %v9078_v56 = vpop.f32.mrb[112].mxu1 }
0x1495   : > { %v9085_v1 = vadd.f32 %v9078_v56, %v8801_v29  ;;  %v9080_v59 = vpop.f32.mrb[113].mxu1  ;;  %v14980_v56 = vld [vmem:[#allocation23 + $0x168] sm:$0xff]  }
0x1496   : > { %v9086_v47 = vadd.f32 %v9080_v59, %v8802_v46  ;;  %v9082_v26 = vpop.f32.mrb[114].mxu1  ;;  %v14983_v59 = vld [vmem:[#allocation23 + $0x130] sm:$0xff]  }
0x1497   : > { %v9099_v40 = vadd.f32 %v9092_v7, %v9085_v1  ;;  %v9083_v45 = vpop.f32.mrb[115].mxu1  ;;  %v14979_v7 = vld [vmem:[#allocation23 + $0x120] sm:$0xff]   ;;  %v14982_v1 = vld [vmem:[#allocation23 + $0x170] sm:$0xff]   ;;  %v14985_v26 = vld [vmem:[#allocation23 + $0x138] sm:$0xff]  }
0x1498   : > { %v9100_v63 = vadd.f32 %v9096_v25, %v9086_v47  ;;  %v14981_v25 = vld [vmem:[#allocation23 + $0x128] sm:$0xff]   ;;  %v14984_v47 = vld [vmem:[#allocation23 + $0x178] sm:$0xff]  }
0x1499   : > { %vm9101_vm3 = vcmp.ge.f32.partialorder %v9099_v40, 0.0  ;;  %v9103_v61 = vmul.f32 0.1, %v9099_v40  ;;  %v14992_v45 = vld [vmem:[#allocation23 + $0x1d8] sm:$0xff]  }
0x149a   : > { %vm9102_vm4 = vcmp.ge.f32.partialorder %v9100_v63, 0.0  ;;  %v9104_v37 = vmul.f32 0.1, %v9100_v63 }
0x149b   : > { %v9105_v57 = vsel %vm9101_vm3, %v9099_v40, %v9103_v61  ;;  %v14991_v40 = vld [vmem:[#allocation23 + $0x190] sm:$0xff]   ;;  %v14994_v61 = vld [vmem:[#allocation23 + $0x1e0] sm:$0xff]  }
0x149c   : > { %v9107_v9 = vpack.c.bf16 %v9105_v57, %v9105_v57  ;;  %v9106_v52 = vsel %vm9102_vm4, %v9100_v63, %v9104_v37  ;;  %v14993_v63 = vld [vmem:[#allocation23 + $0x198] sm:$0xff]   ;;  %v14995_v37 = vld [vmem:[#allocation23 + $0x1a0] sm:$0xff]   ;;  %v14996_v57 = vld [vmem:[#allocation23 + $0x1e8] sm:$0xff]  }
0x149d   : > { %v16978_v38 = vpack.c.bf16 %v9106_v52, %v9106_v52  ;;  %v14998_v52 = vld [vmem:[#allocation23 + $0x1f0] sm:$0xff]  }
0x149e   : > { %v16981_v54 = vsel %vm9114_vm5, %v9107_v9, 0  ;;  %v14997_v9 = vld [vmem:[#allocation23 + $0x1a8] sm:$0xff]  }
0x149f   : > { %12669 = vmatprep.subr.msk.bf16.mxu0 %vm9114_vm5, %v16978_v38  ;;  %12726 = vmatprep.subr.msk.bf16.mxu1 %vm9114_vm5, %v16978_v38 }
0x14a0   : > { %9122 = vmatpush1.bf16.msra.mxu0 %v16981_v54 }
0x14a1   : > { %12672 = vmatprep.subr.msk.bf16.mxu0 %vm9114_vm5, %v16978_v38 }
0x14a3   : > { %12670 = vmatmul.mubr.msk.bf16.vlgmr.msra.gmra.mrb[100].mxu0 %vm9110_vm6, %v9109_v17  ;;  %v14999_v17 = vld [vmem:[#allocation23 + $0x1b0] sm:$0xff]  }
0x14a4   : > { %9202 = vmatpush1.bf16.msra.mxu0 %v16981_v54  ;;  %9233 = vmatprep.mubr.bf16.mxu0 %v15695_v0 }
0x14a5   : > { %12908 = vmatprep.subr.bf16.mxu0 %v14954_v43  ;;  %v15000_v43 = vld [vmem:[#allocation23 + $0x1f8] sm:$0xff]  }
0x14ab   : > { %12673 = vmatmul.mubr.msk.bf16.vlgmr.msra.gmra.mrb[104].mxu0 %vm9110_vm6, %v12671_v5 }
0x14ac   : > { %12909 = vmatpush3.bf16.msra.mxu0 %v14955_v4 }
0x14ad   : > { %12910 = vmatprep.subr.bf16.mxu0 %v14956_v2 }
0x14b0   : > { %12911 = vmatpush3.bf16.msra.mxu0 %v14957_v24 }
0x14b1   : > { %12912 = vmatprep.subr.bf16.mxu0 %v14958_v62 }
0x14b4   : > { %12913 = vmatpush3.bf16.msra.mxu0 %v14959_v16 }
0x14b5   : > { %12914 = vmatprep.subr.bf16.mxu0 %v14960_v27 }
0x14b8   : > { %12915 = vmatpush3.bf16.msra.mxu0 %v14961_v35 }
0x14b9   : > { %12916 = vmatprep.subr.bf16.mxu0 %v14962_v18 }
0x14bc   : > { %12917 = vmatpush3.bf16.msra.mxu0 %v14963_v15 }
0x14bd   : > { %12918 = vmatprep.subr.bf16.mxu0 %v14964_v19 }
0x14c0   : > { %12919 = vmatpush3.bf16.msra.mxu0 %v14965_v10 }
0x14c1   : > { %12920 = vmatprep.subr.bf16.mxu0 %v14966_v48 }
0x14c4   : > { %12921 = vmatpush3.bf16.msra.mxu0 %v14967_v49 }
0x14c5   : > { %12922 = vmatprep.subr.bf16.mxu0 %v14968_v13 }
0x14c8   : > { %12923 = vmatpush3.bf16.msra.mxu0 %v14969_v12 }
0x14c9   : > { %12707 = vmatprep.subr.msk.bf16.mxu0 %vm9114_vm5, %v16978_v38 }
0x1576   : > { %v9155_v30 = vpop.f32.mrb[100].mxu0 }
0x1577   : > { %v9157_v60 = vpop.f32.mrb[101].mxu0  ;;  %v9162_v51 = vpack.c.bf16 %v9155_v30, %v9155_v30 }
0x1578   : > { %v9163_v34 = vpack.c.bf16 %v9157_v60, %v9157_v60  ;;  %v9159_v29 = vpop.f32.mrb[102].mxu0 }
0x1579   : > { %v9160_v46 = vpop.f32.mrb[103].mxu0 }
0x157a   : > { %9541 = vmatprep.mubr.bf16.mxu1 %v9163_v34 }
0x157b   : > { %9542 = vmatmul.mubr.bf16.vlgmr.msra.gmra.mrb[116].mxu1 %v9162_v51 }
0x157c   : > { %9773 = vmatpush1.bf16.msra.mxu1 %v16981_v54  ;;  %9804 = vmatprep.mubr.bf16.mxu1 %v15695_v0 }
0x157d   : > { %12974 = vmatprep.subr.bf16.mxu1 %v14986_v28 }
0x157e   : > { %v9235_v44 = vpop.f32.mrb[104].mxu0 }
0x157f   : > { %v9237_v23 = vpop.f32.mrb[105].mxu0  ;;  %v9242_v20 = vpack.c.bf16 %v9235_v44, %v9235_v44  ;;  %v15002_v44 = vld [vmem:[#allocation23 + $0x240] sm:$0xff]  }
0x1580   : > { %v9243_v41 = vpack.c.bf16 %v9237_v23, %v9237_v23  ;;  %v9239_v42 = vpop.f32.mrb[106].mxu0  ;;  %v12744_v23 = vld [vmem:[%s17353_s10 + $0x4] sm:$0x1] }
0x1581   : > { %v9240_v22 = vpop.f32.mrb[107].mxu0  ;;  %v15004_v42 = vld [vmem:[#allocation23 + $0x248] sm:$0xff]  }
0x1582   : > { %9405 = vmatprep.mubr.bf16.mxu0 %v9243_v41  ;;  %v15003_v41 = vld [vmem:[#allocation23 + $0x200] sm:$0xff]   ;;  %v15007_v22 = vld [vmem:[#allocation23 + $0x210] sm:$0xff]  }
0x1583   : > { %9406 = vmatmul.mubr.bf16.vlgmr.msra.gmra.mrb[108].mxu0 %v9242_v20  ;;  %12727 = vmatmul.mubr.msk.bf16.vlgmr.msra.gmra.mrb[120].mxu1 %vm9110_vm6, %v12725_v21  ;;  %v15005_v21 = vld [vmem:[#allocation23 + $0x208] sm:$0xff]   ;;  %v15006_v20 = vld [vmem:[#allocation23 + $0x250] sm:$0xff]  }
0x1584   : > { %9555 = vmatpush1.bf16.msra.mxu0 %v16981_v54  ;;  %9586 = vmatprep.mubr.bf16.mxu0 %v15695_v0 }
0x1585   : > { %12952 = vmatprep.subr.bf16.mxu0 %v14970_v6  ;;  %12975 = vmatpush3.bf16.msra.mxu1 %v14987_v32  ;;  %v15008_v6 = vld [vmem:[#allocation23 + $0x258] sm:$0xff]  }
0x1586   : > { %12976 = vmatprep.subr.bf16.mxu1 %v14988_v39  ;;  %v15009_v32 = vld [vmem:[#allocation23 + $0x218] sm:$0xff]   ;;  %v15012_v39 = vld [vmem:[#allocation23 + $0x268] sm:$0xff]  }
0x1589   : > { %12977 = vmatpush3.bf16.msra.mxu1 %v14989_v55  ;;  %v15013_v55 = vld [vmem:[#allocation23 + $0x228] sm:$0xff]  }
0x158a   : > { %12978 = vmatprep.subr.bf16.mxu1 %v14990_v11  ;;  %v15014_v11 = vld [vmem:[#allocation23 + $0x270] sm:$0xff]  }
0x158b   : > { %12708 = vmatmul.mubr.msk.bf16.vlgmr.msra.gmra.mrb[112].mxu0 %vm9110_vm6, %v12706_v50  ;;  %v15015_v50 = vld [vmem:[#allocation23 + $0x230] sm:$0xff]  }
0x158c   : > { %12953 = vmatpush3.bf16.msra.mxu0 %v14971_v3  ;;  %v15016_v3 = vld [vmem:[#allocation23 + $0x278] sm:$0xff]  }
0x158d   : > { %12954 = vmatprep.subr.bf16.mxu0 %v14972_v8  ;;  %12979 = vmatpush3.bf16.msra.mxu1 %v14991_v40  ;;  %v15017_v8 = vld [vmem:[#allocation23 + $0x238] sm:$0xff]  }
0x158e   : > { %12980 = vmatprep.subr.bf16.mxu1 %v14992_v45 }
0x1590   : > { %12955 = vmatpush3.bf16.msra.mxu0 %v14973_v53 }
0x1591   : > { %12956 = vmatprep.subr.bf16.mxu0 %v14974_v33  ;;  %12981 = vmatpush3.bf16.msra.mxu1 %v14993_v63 }
0x1592   : > { %12982 = vmatprep.subr.bf16.mxu1 %v14994_v61 }
0x1594   : > { %12957 = vmatpush3.bf16.msra.mxu0 %v14975_v58 }
0x1595   : > { %12958 = vmatprep.subr.bf16.mxu0 %v14976_v31  ;;  %12983 = vmatpush3.bf16.msra.mxu1 %v14995_v37 }
0x1596   : > { %12984 = vmatprep.subr.bf16.mxu1 %v14996_v57  ;;  %v15696_v57 = vmov 0.0  }
0x1598   : > { %12959 = vmatpush3.bf16.msra.mxu0 %v14977_v36 }
0x1599   : > { %12960 = vmatprep.subr.bf16.mxu0 %v14978_v14  ;;  %12985 = vmatpush3.bf16.msra.mxu1 %v14997_v9  ;;  %v15020_v9 = vld [vmem:[%s17354_s28 + $0x40] sm:$0xff]  }
0x159a   : > { %12986 = vmatprep.subr.bf16.mxu1 %v14998_v52  ;;  %v15022_v52 = vld [vmem:[%s17354_s28 + $0x48] sm:$0xff]  }
0x159c   : > { %12961 = vmatpush3.bf16.msra.mxu0 %v14979_v7 }
0x159d   : > { %12962 = vmatprep.subr.bf16.mxu0 %v14980_v56  ;;  %12987 = vmatpush3.bf16.msra.mxu1 %v14999_v17  ;;  %v15024_v17 = vld [vmem:[%s17354_s28 + $0x50] sm:$0xff]  }
0x159e   : > { %12988 = vmatprep.subr.bf16.mxu1 %v15000_v43  ;;  %v15026_v43 = vld [vmem:[%s17354_s28 + $0x58] sm:$0xff]  }
0x15a0   : > { %12963 = vmatpush3.bf16.msra.mxu0 %v14981_v25 }
0x15a1   : > { %12964 = vmatprep.subr.bf16.mxu0 %v14982_v1 }
0x15a4   : > { %12965 = vmatpush3.bf16.msra.mxu0 %v14983_v59 }
0x15a5   : > { %12966 = vmatprep.subr.bf16.mxu0 %v14984_v47 }
0x15a8   : > { %12967 = vmatpush3.bf16.msra.mxu0 %v14985_v26 }
0x15a9   : > { %12745 = vmatprep.subr.msk.bf16.mxu0 %vm9114_vm5, %v16978_v38  ;;  %v15001_v38 = vld [vmem:[#allocation23 + $0x1b8] sm:$0xff]  }
0x15aa   : > { %12989 = vmatpush3.bf16.msra.mxu1 %v15001_v38  ;;  %v15028_v38 = vld [vmem:[%s17354_s28 + $0x60] sm:$0xff]  }
0x15ab   : > { %13118 = vmatprep.subr.bf16.mxu1 %v15696_v57 }
0x164e   : > { %v12946_v5 = vpop.f32.mrb[116].mxu1 }
0x164f   : > { %v12947_v4 = vpop.f32.mrb[117].mxu1 }
0x1650   : > { %v12948_v2 = vadd.f32 %v12947_v4, %v12946_v5  ;;  %v12949_v24 = vpop.f32.mrb[118].mxu1  ;;  %v15030_v5 = vld [vmem:[%s17354_s28 + $0x68] sm:$0xff]  }
0x1651   : > { %v12950_v62 = vpop.f32.mrb[119].mxu1 }
0x1656   : > { %v12924_v16 = vpop.f32.mrb[108].mxu0  ;;  %v9806_v27 = vpop.f32.mrb[120].mxu1 }
0x1657   : > { %v12925_v35 = vpop.f32.mrb[109].mxu0  ;;  %v9813_v18 = vpack.c.bf16 %v9806_v27, %v9806_v27  ;;  %v9808_v15 = vpop.f32.mrb[121].mxu1 }
0x1658   : > { %v12926_v19 = vadd.f32 %v12925_v35, %v12924_v16  ;;  %v12927_v10 = vpop.f32.mrb[110].mxu0  ;;  %v9814_v48 = vpack.c.bf16 %v9808_v15, %v9808_v15  ;;  %v9810_v49 = vpop.f32.mrb[122].mxu1  ;;  %v12763_v16 = vld [vmem:[#allocation25] ss:$0 sm:$0xff] }
0x1659   : > { %v12928_v13 = vpop.f32.mrb[111].mxu0  ;;  %v9811_v12 = vpop.f32.mrb[123].mxu1  ;;  %v10215_v49 = vld [vmem:[%s17355_s22] sm:$0x1]  ;;  %s11361_s22 = sshll.u32 %s1155_s18, 4  ;;  %s17217_s22 = int_to_ptr.vmem [resolvable:$true] %s11361_s22 }
0x165a   : > { %v9544_v30 = vadd.f32 %v12948_v2, %v12926_v19  ;;  %9976 = vmatprep.mubr.bf16.mxu1 %v9814_v48  ;;  %v12765_v13 = vld [vmem:[%s17356_s11 + $0x1] sm:$0x1]  ;;  %s15544_s3 = scalar_lea.vmem %s17217_s22, 16  ;;  %p15551_p4 = scmp.lt.s32.totalorder %s17217_s22, %s15549_s4 }
0x165b   : > { %9977 = vmatmul.mubr.bf16.vlgmr.msra.gmra.mrb[124].mxu1 %v9813_v18  ;;  %v15018_v12 = vld [vmem:[%s17354_s28] sm:$0xff]   ;;  %p15545_p12 = scmp.ne.s32.totalorder %s17217_s22, %s15544_s3  ;;  %p15552_p7 = scmp.lt.s32.totalorder %s15550_s5, %s15544_s3 }
0x165c   : > { %13120 = vmatprep.mubr.msk.bf16.mxu1 %vm15697_vm7, %v15696_v57 }
0x165d   : > { %p15546_p2 = pnand %p15545_p12, %p17359_p1  ;;  %p15553_p8 = por %p15552_p7, %p15551_p4 }
0x165e   : > { %v9588_v60 = vpop.f32.mrb[112].mxu0 }
0x165f   : > { %v9590_v34 = vpop.f32.mrb[113].mxu0  ;;  %v9595_v46 = vpack.c.bf16 %v9588_v60, %v9588_v60  ;;  %v15021_v60 = vld [vmem:[%s17354_s28 + $0x10] sm:$0xff]   ;;  %p15547_p3 = pneg %p15546_p2 }
0x1660   : > { %v9596_v29 = vpack.c.bf16 %v9590_v34, %v9590_v34  ;;  %v9592_v51 = vpop.f32.mrb[114].mxu0  ;;  %v15023_v34 = vld [vmem:[%s17354_s28 + $0x18] sm:$0xff]  }
0x1661   : > { %v9593_v28 = vpop.f32.mrb[115].mxu0  ;;  %v15027_v51 = vld [vmem:[%s17354_s28 + $0x28] sm:$0xff]   ;;  %p15554_p11 = pnand %p15553_p8, %p15547_p3 }
0x1662   : > { %9758 = vmatprep.mubr.bf16.mxu0 %v9596_v29  ;;  %v15025_v29 = vld [vmem:[%s17354_s28 + $0x20] sm:$0xff]   ;;  %v15031_v28 = vld [vmem:[%s17354_s28 + $0x38] sm:$0xff]  }
0x1663   : > { %9759 = vmatmul.mubr.bf16.vlgmr.msra.gmra.mrb[116].mxu0 %v9595_v46  ;;  %v15029_v46 = vld [vmem:[%s17354_s28 + $0x30] sm:$0xff]  }
0x1664   : > { %9991 = vmatpush1.bf16.msra.mxu0 %v16981_v54  ;;  %10022 = vmatprep.mubr.bf16.mxu0 %v15695_v0  ;;  %v15010_v54 = vld [vmem:[#allocation23 + $0x260] sm:$0xff]  }
0x1665   : > { %12996 = vmatprep.subr.bf16.mxu0 %v15002_v44  ;;  %v15011_v0 = vld [vmem:[#allocation23 + $0x220] sm:$0xff]   ;;  %v15032_v44 = vld [vmem:[%s17354_s28 + $0x70] sm:$0xff]  }
0x166b   : > { %12746 = vmatmul.mubr.msk.bf16.vlgmr.msra.gmra.mrb[120].mxu0 %vm9110_vm6, %v12744_v23  ;;  %v15033_v23 = vld [vmem:[%s17354_s28 + $0x78] sm:$0xff]  }
0x166c   : > { %12997 = vmatpush3.bf16.msra.mxu0 %v15003_v41 }
0x166d   : > { %12998 = vmatprep.subr.bf16.mxu0 %v15004_v42  ;;  %v15034_v42 = vld [vmem:[%s17354_s28 + $0x80] sm:$0xff]  }
0x1670   : > { %12999 = vmatpush3.bf16.msra.mxu0 %v15005_v21 }
0x1671   : > { %13000 = vmatprep.subr.bf16.mxu0 %v15006_v20 }
0x1674   : > { %13001 = vmatpush3.bf16.msra.mxu0 %v15007_v22 }
0x1675   : > { %13002 = vmatprep.subr.bf16.mxu0 %v15008_v6 }
0x1678   : > { %13003 = vmatpush3.bf16.msra.mxu0 %v15009_v32  ;;  %v15035_v32 = vld [vmem:[%s17354_s28 + $0x88] sm:$0xff]  }
0x1679   : > { %13004 = vmatprep.subr.bf16.mxu0 %v15010_v54 }
0x167c   : > { %13005 = vmatpush3.bf16.msra.mxu0 %v15011_v0 }
0x167d   : > { %13006 = vmatprep.subr.bf16.mxu0 %v15012_v39 }
0x1680   : > { %13007 = vmatpush3.bf16.msra.mxu0 %v15013_v55  ;;  %v15036_v55 = vld [vmem:[%s17354_s28 + $0x90] sm:$0xff]  }
0x1681   : > { %13008 = vmatprep.subr.bf16.mxu0 %v15014_v11 }
0x1684   : > { %13009 = vmatpush3.bf16.msra.mxu0 %v15015_v50 }
0x1685   : > { %13010 = vmatprep.subr.bf16.mxu0 %v15016_v3  ;;  %v12799_v3 = vld [vmem:[%s17356_s11 + $0x2] sm:$0x1] }
0x1688   : > { %13011 = vmatpush3.bf16.msra.mxu0 %v15017_v8  ;;  %v15037_v8 = vld [vmem:[%s17354_s28 + $0x98] sm:$0xff]  }
0x1689   : > { %13130 = vmatprep.subr.bf16.mxu0 %v15696_v57 }
0x172e   : > { %v12990_v53 = vpop.f32.mrb[124].mxu1 }
0x172f   : > { %v12991_v33 = vpop.f32.mrb[125].mxu1 }
0x1730   : > { %v12992_v58 = vadd.f32 %v12991_v33, %v12990_v53  ;;  %v12993_v31 = vpop.f32.mrb[126].mxu1  ;;  %v15038_v53 = vld [vmem:[%s17354_s28 + $0xa0] sm:$0xff]   ;;  %v15039_v33 = vld [vmem:[%s17354_s28 + $0xa8] sm:$0xff]  }
0x1731   : > { %v12994_v36 = vpop.f32.mrb[127].mxu1  ;;  %v15041_v31 = vld [vmem:[%s17354_s28 + $0xb8] sm:$0xff]  }
0x1736   : > { %v12968_v14 = vpop.f32.mrb[116].mxu0 }
0x1737   : > { %v12969_v7 = vpop.f32.mrb[117].mxu0 }
0x1738   : > { %v12970_v56 = vadd.f32 %v12969_v7, %v12968_v14  ;;  %v12971_v25 = vpop.f32.mrb[118].mxu0 }
0x1739   : > { %v12972_v1 = vpop.f32.mrb[119].mxu0 }
0x173a   : > { %v9766_v59 = vadd.f32 %v12970_v56, %v9544_v30  ;;  %v15019_v30 = vld [vmem:[%s17354_s28 + $0x8] sm:$0xff]  }
0x173c   : > { %v9984_v47 = vadd.f32 %v12992_v58, %v9766_v59  ;;  %v15040_v58 = vld [vmem:[%s17354_s28 + $0xb0] sm:$0xff]  }
0x173e   : > { %v10024_v26 = vpop.f32.mrb[120].mxu0 }
0x173f   : > { %v10026_v40 = vpop.f32.mrb[121].mxu0  ;;  %v10031_v61 = vpack.c.bf16 %v10024_v26, %v10024_v26 }
0x1740   : > { %v10032_v45 = vpack.c.bf16 %v10026_v40, %v10026_v40  ;;  %v10028_v63 = vpop.f32.mrb[122].mxu0 }
0x1741   : > { %v10029_v37 = vpop.f32.mrb[123].mxu0 }
0x1742   : > { %10194 = vmatprep.mubr.bf16.mxu0 %v10032_v45 }
0x1743   : > { %10195 = vmatmul.mubr.bf16.vlgmr.msra.gmra.mrb[124].mxu0 %v10031_v61 }
0x1744   : > { %13146 = vmatprep.mubr.msk.bf16.mxu0 %vm15697_vm7, %v15696_v57  ;;  %13131 = vmatpush3.bf16.msra.mxu0 %v15020_v9  ;;  %v15042_v9 = vld [vmem:[%s17357_s1] sm:$0xff]  }
0x1745   : > { %13132 = vmatprep.subr.bf16.mxu0 %v15696_v57 }
0x1748   : > { %13133 = vmatpush3.bf16.msra.mxu0 %v15022_v52  ;;  %v15043_v52 = vld [vmem:[%s17357_s1 + $0x8] sm:$0xff]  }
0x1749   : > { %13134 = vmatprep.subr.bf16.mxu0 %v15696_v57 }
0x174c   : > { %13135 = vmatpush3.bf16.msra.mxu0 %v15024_v17  ;;  %v15045_v17 = vld [vmem:[%s17357_s1 + $0x10] sm:$0xff]  }
0x174d   : > { %13136 = vmatprep.subr.bf16.mxu0 %v15696_v57 }
0x1750   : > { %13137 = vmatpush3.bf16.msra.mxu0 %v15026_v43  ;;  %v15047_v43 = vld [vmem:[%s17357_s1 + $0x18] sm:$0xff]  }
0x1751   : > { %13138 = vmatprep.subr.bf16.mxu0 %v15696_v57 }
0x1754   : > { %13139 = vmatpush3.bf16.msra.mxu0 %v15028_v38  ;;  %v15049_v38 = vld [vmem:[%s17357_s1 + $0x20] sm:$0xff]  }
0x1755   : > { %13140 = vmatprep.subr.bf16.mxu0 %v15696_v57 }
0x1758   : > { %13141 = vmatpush3.bf16.msra.mxu0 %v15030_v5  ;;  %v15051_v5 = vld [vmem:[%s17357_s1 + $0x28] sm:$0xff]  }
0x1759   : > { %13142 = vmatprep.subr.bf16.mxu0 %v15696_v57 }
0x175c   : > { %13143 = vmatpush3.bf16.msra.mxu0 %v15032_v44  ;;  %v15056_v44 = vld [vmem:[%s17357_s1 + $0x70] sm:$0xff]  }
0x175d   : > { %13144 = vmatprep.subr.bf16.mxu0 %v15696_v57 }
0x1760   : > { %13145 = vmatpush3.bf16.msra.mxu0 %v15033_v23  ;;  %v15057_v23 = vld [vmem:[%s17357_s1 + $0x78] sm:$0xff]  }
0x1761   : > { %13170 = vmatprep.subr.bf16.mxu0 %v15696_v57 }
0x1816   : > { %v13012_v4 = vpop.f32.mrb[124].mxu0 }
0x1817   : > { %v13013_v2 = vpop.f32.mrb[125].mxu0 }
0x1818   : > { %v13014_v24 = vadd.f32 %v13013_v2, %v13012_v4  ;;  %v13015_v62 = vpop.f32.mrb[126].mxu0  ;;  %v15053_v4 = vld [vmem:[%s17357_s1 + $0x30] sm:$0xff]  }
0x1819   : > { %v13016_v27 = vpop.f32.mrb[127].mxu0 }
0x181a   : > { %v10202_v35 = vadd.f32 %v13014_v24, %v9984_v47  ;;  %v12825_v24 = vld [vmem:[#allocation26] ss:$0 sm:$0xff] }
0x181c   : > { %v10210_v18 = vadd.f32 %v12763_v16, %v10202_v35 }
0x181e   : > { %v10212_v15 = vmul.f32 0.1, %v10210_v18  ;;  %vm10211_vm8 = vcmp.ge.f32.partialorder %v10210_v18, 0.0 }
0x1820   : > { %v17030_v19 = vsel %vm10211_vm8, %v10210_v18, %v10212_v15 }
0x1821   : > { %v10214_v10 = vpack.c.bf16 %v17030_v19, %v17030_v19 }
0x1823   : > { %v10222_v48 = vsel %vm10220_vm10, %v10214_v10, 0 }
0x1824   : > { %13119 = vmatpush3.bf16.msra.mxu1 %v10222_v48 }
0x1825   : > { %13124 = vmatprep.subr.bf16.mxu1 %v15696_v57 }
0x1827   : > { %13121 = vmatmul.mubr.msk.bf16.vlgmr.msra.gmra.mrb[128].mxu1 %vm10216_vm9, %v10215_v49 }
0x1828   : > { %13125 = vmatpush3.bf16.msra.mxu1 %v10222_v48  ;;  %13126 = vmatprep.mubr.msk.bf16.mxu1 %vm15697_vm7, %v15696_v57 }
0x1829   : > { %13150 = vmatprep.subr.bf16.mxu1 %v15696_v57 }
0x182f   : > { %13127 = vmatmul.mubr.msk.bf16.vlgmr.msra.gmra.mrb[132].mxu1 %vm10216_vm9, %v12765_v13  ;;  %v10684_v13 = vld [vmem:[%s17358_s23] sm:$0x1] }
0x1830   : > { %13151 = vmatpush3.bf16.msra.mxu1 %v15018_v12  ;;  %13166 = vmatprep.mubr.msk.bf16.mxu1 %vm15697_vm7, %v15696_v57  ;;  %v12827_v12 = vld [vmem:[%s17358_s23 + $0x1] sm:$0x1] }
0x1831   : > { %13152 = vmatprep.subr.bf16.mxu1 %v15696_v57 }
0x1834   : > { %13153 = vmatpush3.bf16.msra.mxu1 %v15019_v30  ;;  %v15044_v30 = vld [vmem:[%s17357_s1 + $0x40] sm:$0xff]  }
0x1835   : > { %13154 = vmatprep.subr.bf16.mxu1 %v15696_v57 }
0x1838   : > { %13155 = vmatpush3.bf16.msra.mxu1 %v15021_v60  ;;  %v15046_v60 = vld [vmem:[%s17357_s1 + $0x48] sm:$0xff]  }
0x1839   : > { %13156 = vmatprep.subr.bf16.mxu1 %v15696_v57 }
0x183c   : > { %13157 = vmatpush3.bf16.msra.mxu1 %v15023_v34  ;;  %v15048_v34 = vld [vmem:[%s17357_s1 + $0x50] sm:$0xff]  }
0x183d   : > { %13158 = vmatprep.subr.bf16.mxu1 %v15696_v57 }
0x1840   : > { %13159 = vmatpush3.bf16.msra.mxu1 %v15025_v29  ;;  %v15050_v29 = vld [vmem:[%s17357_s1 + $0x58] sm:$0xff]  }
0x1841   : > { %13160 = vmatprep.subr.bf16.mxu1 %v15696_v57 }
0x1844   : > { %13161 = vmatpush3.bf16.msra.mxu1 %v15027_v51  ;;  %v15052_v51 = vld [vmem:[%s17357_s1 + $0x60] sm:$0xff]  }
0x1845   : > { %13162 = vmatprep.subr.bf16.mxu1 %v15696_v57 }
0x1848   : > { %13163 = vmatpush3.bf16.msra.mxu1 %v15029_v46  ;;  %v15054_v46 = vld [vmem:[%s17357_s1 + $0x68] sm:$0xff]  }
0x1849   : > { %13164 = vmatprep.subr.bf16.mxu1 %v15696_v57 }
0x184c   : > { %13165 = vmatpush3.bf16.msra.mxu1 %v15031_v28  ;;  %v15055_v28 = vld [vmem:[%s17357_s1 + $0x38] sm:$0xff]  }
0x184d   : > { %13176 = vmatprep.subr.bf16.mxu1 %v15696_v57 }
0x18fa   : > { %v10258_v41 = vpop.f32.mrb[128].mxu1 }
0x18fb   : > { %v10264_v21 = vpack.c.bf16 %v10258_v41, %v10258_v41  ;;  %v13122_v20 = vpop.f32.mrb[129].mxu1 }
0x18fc   : > { %v10261_v22 = vpop.f32.mrb[130].mxu1 }
0x18fd   : > { %v13123_v6 = vpop.f32.mrb[131].mxu1  ;;  %13167 = vmatmul.mubr.bf16.vlgmr.msra.gmra.mrb[136].mxu1 %v10264_v21 }
0x18fe   : > { %13177 = vmatpush3.bf16.msra.mxu1 %v15034_v42  ;;  %13192 = vmatprep.mubr.msk.bf16.mxu1 %vm15697_vm7, %v15696_v57 }
0x18ff   : > { %13178 = vmatprep.subr.bf16.mxu1 %v15696_v57 }
0x1902   : > { %v10320_v54 = vpop.f32.mrb[132].mxu1  ;;  %13179 = vmatpush3.bf16.msra.mxu1 %v15035_v32 }
0x1903   : > { %v10326_v0 = vpack.c.bf16 %v10320_v54, %v10320_v54  ;;  %v13128_v39 = vpop.f32.mrb[133].mxu1  ;;  %13180 = vmatprep.subr.bf16.mxu1 %v15696_v57 }
0x1904   : > { %v10323_v11 = vpop.f32.mrb[134].mxu1 }
0x1905   : > { %v13129_v50 = vpop.f32.mrb[135].mxu1  ;;  %13147 = vmatmul.mubr.bf16.vlgmr.msra.gmra.mrb[128].mxu0 %v10326_v0  ;;  %v15058_v11 = vld [vmem:[%s17357_s1 + $0x80] sm:$0xff]  }
0x1906   : > { %13171 = vmatpush3.bf16.msra.mxu0 %v10222_v48  ;;  %13172 = vmatprep.mubr.msk.bf16.mxu0 %vm15697_vm7, %v15696_v57  ;;  %v15059_v50 = vld [vmem:[%s17357_s1 + $0x88] sm:$0xff]  }
0x1907   : > { %13181 = vmatpush3.bf16.msra.mxu1 %v15036_v55  ;;  %13196 = vmatprep.subr.bf16.mxu0 %v15696_v57  ;;  %v12861_v55 = vld [vmem:[%s17358_s23 + $0x2] sm:$0x1] }
0x1908   : > { %13182 = vmatprep.subr.bf16.mxu1 %v15696_v57 }
0x190b   : > { %13183 = vmatpush3.bf16.msra.mxu1 %v15037_v8  ;;  %v15061_v8 = vld [vmem:[%s17357_s1 + $0x98] sm:$0xff]  }
0x190c   : > { %13184 = vmatprep.subr.bf16.mxu1 %v15696_v57 }
0x190d   : > { %13173 = vmatmul.mubr.msk.bf16.vlgmr.msra.gmra.mrb[132].mxu0 %vm10216_vm9, %v12799_v3  ;;  %v15060_v3 = vld [vmem:[%s17357_s1 + $0x90] sm:$0xff]  }
0x190e   : > { %13198 = vmatprep.mubr.msk.bf16.mxu0 %vm15697_vm7, %v15696_v57 }
0x190f   : > { %13185 = vmatpush3.bf16.msra.mxu1 %v15038_v53  ;;  %v15062_v53 = vld [vmem:[%s17357_s1 + $0xa0] sm:$0xff]  }
0x1910   : > { %13186 = vmatprep.subr.bf16.mxu1 %v15696_v57 }
0x1913   : > { %13187 = vmatpush3.bf16.msra.mxu1 %v15039_v33  ;;  %v15063_v33 = vld [vmem:[%s17357_s1 + $0xa8] sm:$0xff]  }
0x1914   : > { %13188 = vmatprep.subr.bf16.mxu1 %v15696_v57 }
0x1917   : > { %13189 = vmatpush3.bf16.msra.mxu1 %v15040_v58  ;;  %v15064_v58 = vld [vmem:[%s17357_s1 + $0xb0] sm:$0xff]  }
0x1918   : > { %13190 = vmatprep.subr.bf16.mxu1 %v15696_v57 }
0x191b   : > { %13191 = vmatpush3.bf16.msra.mxu1 %v15041_v31  ;;  %v15065_v31 = vld [vmem:[%s17357_s1 + $0xb8] sm:$0xff]   ;;  %s17215_s1 = scalar_lea.hbm %s15858_s9, %s12904_s15 }
0x191c   : > { %13228 = vmatprep.subr.bf16.mxu1 %v15696_v57 }
0x19d0   : > { %v10514_v36 = vpop.f32.mrb[136].mxu1 }
0x19d1   : > { %v13168_v14 = vpop.f32.mrb[137].mxu1 }
0x19d2   : > { %v10517_v7 = vpop.f32.mrb[138].mxu1 }
0x19d3   : > { %v13169_v56 = vpop.f32.mrb[139].mxu1 }
0x19d8   : > { %v10426_v25 = vpop.f32.mrb[128].mxu0 }
0x19d9   : > { %v10515_v1 = vadd.f32 %v10514_v36, %v10426_v25  ;;  %v13148_v59 = vpop.f32.mrb[129].mxu0 }
0x19da   : > { %v10429_v47 = vpop.f32.mrb[130].mxu0 }
0x19db   : > { %v13149_v26 = vpop.f32.mrb[131].mxu0 }
0x19e0   : > { %v10559_v40 = vpop.f32.mrb[132].mxu0 }
0x19e1   : > { %v10565_v45 = vpack.c.bf16 %v10559_v40, %v10559_v40  ;;  %v13174_v63 = vpop.f32.mrb[133].mxu0 }
0x19e2   : > { %v10562_v61 = vpop.f32.mrb[134].mxu0 }
0x19e3   : > { %v13175_v37 = vpop.f32.mrb[135].mxu0  ;;  %13193 = vmatmul.mubr.bf16.vlgmr.msra.gmra.mrb[140].mxu1 %v10565_v45 }
0x19e4   : > { %13244 = vmatprep.mubr.msk.bf16.mxu1 %vm15697_vm7, %v15696_v57  ;;  %13229 = vmatpush3.bf16.msra.mxu1 %v15042_v9  ;;  %v11168_v9 = vld [vmem:[%s15848_s24] sm:$0xff] }
0x19e5   : > { %13230 = vmatprep.subr.bf16.mxu1 %v15696_v57 }
0x19e8   : > { %13231 = vmatpush3.bf16.msra.mxu1 %v15043_v52  ;;  %v11169_v52 = vld [vmem:[%s15848_s24 + $0x8] sm:$0xff] }
0x19e9   : > { %13232 = vmatprep.subr.bf16.mxu1 %v15696_v57 }
0x19ec   : > { %13233 = vmatpush3.bf16.msra.mxu1 %v15045_v17  ;;  %v15698_v17 = vmov 0.0|0.0  }
0x19ed   : > { %13234 = vmatprep.subr.bf16.mxu1 %v15696_v57 }
0x19f0   : > { %13235 = vmatpush3.bf16.msra.mxu1 %v15047_v43  ;;  %v13345_v43 = vpack.c.bf16 %v11169_v52, %v11168_v9  ;;  %v12898_v9 = vld [vmem:[%s15848_s24 + $0xd0] sm:$0xff]  ;;  %v12899_v52 = vld [vmem:[%s15848_s24 + $0xd8] sm:$0xff] }
0x19f1   : > { %13236 = vmatprep.subr.bf16.mxu1 %v15696_v57 }
0x19f4   : > { %13237 = vmatpush3.bf16.msra.mxu1 %v15049_v38 }
0x19f5   : > { %13238 = vmatprep.subr.bf16.mxu1 %v15696_v57 }
0x19f8   : > { %13239 = vmatpush3.bf16.msra.mxu1 %v15051_v5  ;;  %v12887_v5 = vld [vmem:[#allocation28] ss:$0 sm:$0xff] }
0x19f9   : > { %13240 = vmatprep.subr.bf16.mxu1 %v15696_v57 }
0x19fc   : > { %13241 = vmatpush3.bf16.msra.mxu1 %v15053_v4 }
0x19fd   : > { %13242 = vmatprep.subr.bf16.mxu1 %v15696_v57 }
0x1a00   : > { %13243 = vmatpush3.bf16.msra.mxu1 %v15055_v28 }
0x1a01   : > { %13344 = vmatprep.subr.bf16.mxu1 %v15698_v17 }
0x1ab6   : > { %v10665_v2 = vpop.f32.mrb[140].mxu1 }
0x1ab7   : > { %v10671_v62 = vadd.f32 %v10665_v2, %v10515_v1  ;;  %v13194_v16 = vpop.f32.mrb[141].mxu1 }
0x1ab8   : > { %v10668_v27 = vpop.f32.mrb[142].mxu1 }
0x1ab9   : > { %v10679_v35 = vadd.f32 %v12825_v24, %v10671_v62  ;;  %v13195_v18 = vpop.f32.mrb[143].mxu1 }
0x1abb   : > { %vm10680_vm11 = vcmp.ge.f32.partialorder %v10679_v35, 0.0  ;;  %v10681_v15 = vmul.f32 0.2, %v10679_v35 }
0x1abd   : > { %v10682_v10 = vsel %vm10680_vm11, %v10679_v35, %v10681_v15 }
0x1abe   : > { %v10683_v48 = vpack.c.bf16 %v10682_v10, %v10682_v10 }
0x1ac0   : > { %v10689_v49 = vsel %vm10220_vm10, %v10683_v48, 0  ;;  %v11170_v48 = vld [vmem:[%s15848_s24 + $0x10] sm:$0xff] }
0x1ac1   : > { %13197 = vmatpush3.bf16.msra.mxu0 %v10689_v49 }
0x1ac2   : > { %13202 = vmatprep.subr.bf16.mxu0 %v15696_v57 }
0x1ac4   : > { %13199 = vmatmul.mubr.msk.bf16.vlgmr.msra.gmra.mrb[136].mxu0 %vm10216_vm9, %v10684_v13 }
0x1ac5   : > { %13203 = vmatpush3.bf16.msra.mxu0 %v10689_v49  ;;  %13204 = vmatprep.mubr.msk.bf16.mxu0 %vm15697_vm7, %v15696_v57 }
0x1ac6   : > { %13208 = vmatprep.subr.bf16.mxu0 %v15696_v57 }
0x1acc   : > { %13205 = vmatmul.mubr.msk.bf16.vlgmr.msra.gmra.mrb[140].mxu0 %vm10216_vm9, %v12827_v12  ;;  %v11172_v12 = vld [vmem:[%s15848_s24 + $0x20] sm:$0xff] }
0x1acd   : > { %13209 = vmatpush3.bf16.msra.mxu0 %v15044_v30  ;;  %13224 = vmatprep.mubr.msk.bf16.mxu0 %vm15697_vm7, %v15696_v57 }
0x1ace   : > { %13210 = vmatprep.subr.bf16.mxu0 %v15696_v57 }
0x1ad1   : > { %13211 = vmatpush3.bf16.msra.mxu0 %v15046_v60  ;;  %v11174_v60 = vld [vmem:[%s15848_s24 + $0x30] sm:$0xff] }
0x1ad2   : > { %13212 = vmatprep.subr.bf16.mxu0 %v15696_v57 }
0x1ad5   : > { %13213 = vmatpush3.bf16.msra.mxu0 %v15048_v34  ;;  %v11175_v34 = vld [vmem:[%s15848_s24 + $0x38] sm:$0xff] }
0x1ad6   : > { %13214 = vmatprep.subr.bf16.mxu0 %v15696_v57 }
0x1ad9   : > { %13215 = vmatpush3.bf16.msra.mxu0 %v15050_v29  ;;  %v13354_v29 = vpack.c.bf16 %v11175_v34, %v11174_v60 }
0x1ada   : > { %13216 = vmatprep.subr.bf16.mxu0 %v15696_v57 }
0x1add   : > { %13217 = vmatpush3.bf16.msra.mxu0 %v15052_v51  ;;  %v11176_v51 = vld [vmem:[%s15848_s24 + $0x40] sm:$0xff] }
0x1ade   : > { %13218 = vmatprep.subr.bf16.mxu0 %v15696_v57 }
0x1ae1   : > { %13219 = vmatpush3.bf16.msra.mxu0 %v15054_v46  ;;  %v11177_v46 = vld [vmem:[%s15848_s24 + $0x48] sm:$0xff] }
0x1ae2   : > { %13220 = vmatprep.subr.bf16.mxu0 %v15696_v57  ;;  %v13357_v28 = vpack.c.bf16 %v11177_v46, %v11176_v51 }
0x1ae5   : > { %13221 = vmatpush3.bf16.msra.mxu0 %v15056_v44  ;;  %v11178_v44 = vld [vmem:[%s15848_s24 + $0x50] sm:$0xff] }
0x1ae6   : > { %13222 = vmatprep.subr.bf16.mxu0 %v15696_v57 }
0x1ae9   : > { %13223 = vmatpush3.bf16.msra.mxu0 %v15057_v23  ;;  %v11179_v23 = vld [vmem:[%s15848_s24 + $0x58] sm:$0xff] }
0x1aea   : > { %13248 = vmatprep.subr.bf16.mxu0 %v15696_v57 }
0x1b97   : > { %v10725_v41 = vpop.f32.mrb[136].mxu0 }
0x1b98   : > { %v10731_v42 = vpack.c.bf16 %v10725_v41, %v10725_v41  ;;  %v13200_v21 = vpop.f32.mrb[137].mxu0  ;;  %v13360_v41 = vpack.c.bf16 %v11179_v23, %v11178_v44 }
0x1b99   : > { %v10728_v20 = vpop.f32.mrb[138].mxu0  ;;  %v11181_v21 = vld [vmem:[%s15848_s24 + $0x68] sm:$0xff] }
0x1b9a   : > { %v13201_v22 = vpop.f32.mrb[139].mxu0  ;;  %13245 = vmatmul.mubr.bf16.vlgmr.msra.gmra.mrb[144].mxu1 %v10731_v42  ;;  %v11180_v42 = vld [vmem:[%s15848_s24 + $0x60] sm:$0xff] }
0x1b9b   : > { %13306 = vmatprep.mubr.msk.f32.mxu1 %vm15697_vm7, %v15696_v57  ;;  %13346 = vmatpush3.bf16.msra.mxu1 %v13345_v43  ;;  %v13363_v20 = vpack.c.bf16 %v11181_v21, %v11180_v42  ;;  %v11182_v22 = vld [vmem:[%s15848_s24 + $0x70] sm:$0xff]  ;;  %v13384_v43 = vpack.c.bf16 %v12899_v52, %v12898_v9 }
0x1b9c   : > { %13347 = vmatprep.subr.bf16.mxu1 %v15698_v17 }
0x1b9f   : > { %v10787_v6 = vpop.f32.mrb[140].mxu0 }
0x1ba0   : > { %v10793_v32 = vpack.c.bf16 %v10787_v6, %v10787_v6  ;;  %v13206_v54 = vpop.f32.mrb[141].mxu0  ;;  %v11183_v6 = vld [vmem:[%s15848_s24 + $0x78] sm:$0xff] }
0x1ba1   : > { %v10790_v0 = vpop.f32.mrb[142].mxu0 }
0x1ba2   : > { %13225 = vmatmul.mubr.bf16.vlgmr.msra.gmra.mrb[144].mxu0 %v10793_v32  ;;  %v13207_v39 = vpop.f32.mrb[143].mxu0  ;;  %v13366_v32 = vpack.c.bf16 %v11183_v6, %v11182_v22 }
0x1ba3   : > { %13249 = vmatpush3.bf16.msra.mxu0 %v10689_v49  ;;  %13250 = vmatprep.mubr.msk.bf16.mxu0 %vm15697_vm7, %v15696_v57  ;;  %v11171_v49 = vld [vmem:[%s15848_s24 + $0x18] sm:$0xff] }
0x1ba4   : > { %13254 = vmatprep.subr.bf16.mxu0 %v15696_v57  ;;  %v13348_v13 = vpack.c.bf16 %v11171_v49, %v11170_v48 }
0x1ba6   : > { %13349 = vmatpush3.bf16.msra.mxu1 %v13348_v13 }
0x1ba7   : > { %13350 = vmatprep.subr.bf16.mxu1 %v15698_v17 }
0x1baa   : > { %13251 = vmatmul.mubr.msk.bf16.vlgmr.msra.gmra.mrb[148].mxu0 %vm10216_vm9, %v12861_v55 }
0x1bab   : > { %13255 = vmatpush3.bf16.msra.mxu0 %v15058_v11  ;;  %13270 = vmatprep.mubr.msk.bf16.mxu0 %vm15697_vm7, %v15696_v57 }
0x1bac   : > { %13256 = vmatprep.subr.bf16.mxu0 %v15696_v57 }
0x1baf   : > { %13257 = vmatpush3.bf16.msra.mxu0 %v15059_v50 }
0x1bb0   : > { %13258 = vmatprep.subr.bf16.mxu0 %v15696_v57 }
0x1bb3   : > { %13259 = vmatpush3.bf16.msra.mxu0 %v15060_v3 }
0x1bb4   : > { %13260 = vmatprep.subr.bf16.mxu0 %v15696_v57 }
0x1bb7   : > { %13261 = vmatpush3.bf16.msra.mxu0 %v15061_v8 }
0x1bb8   : > { %13262 = vmatprep.subr.bf16.mxu0 %v15696_v57 }
0x1bbb   : > { %13263 = vmatpush3.bf16.msra.mxu0 %v15062_v53 }
0x1bbc   : > { %13264 = vmatprep.subr.bf16.mxu0 %v15696_v57 }
0x1bbf   : > { %13265 = vmatpush3.bf16.msra.mxu0 %v15063_v33 }
0x1bc0   : > { %13266 = vmatprep.subr.bf16.mxu0 %v15696_v57 }
0x1bc3   : > { %13267 = vmatpush3.bf16.msra.mxu0 %v15064_v58  ;;  %v12888_v58 = vld [vmem:[%s15848_s24 + $0x80] sm:$0xff] }
0x1bc4   : > { %13268 = vmatprep.subr.bf16.mxu0 %v15696_v57 }
0x1bc7   : > { %13269 = vmatpush3.bf16.msra.mxu0 %v15065_v31  ;;  %v12889_v31 = vld [vmem:[%s15848_s24 + $0x88] sm:$0xff] }
0x1c6d   : > { %v10981_v36 = vpop.f32.mrb[144].mxu1 }
0x1c6e   : > { %v13246_v14 = vpop.f32.mrb[145].mxu1 }
0x1c6f   : > { %v10984_v7 = vpop.f32.mrb[146].mxu1  ;;  %v13369_v14 = vpack.c.bf16 %v12889_v31, %v12888_v58 }
0x1c70   : > { %v13247_v56 = vpop.f32.mrb[147].mxu1 }
0x1c71   : > { %v12890_v56 = vld [vmem:[%s15848_s24 + $0x90] sm:$0xff] }
0x1c75   : > { %v10893_v25 = vpop.f32.mrb[144].mxu0 }
0x1c76   : > { %v10982_v1 = vadd.f32 %v10981_v36, %v10893_v25  ;;  %v13226_v59 = vpop.f32.mrb[145].mxu0  ;;  %v12891_v25 = vld [vmem:[%s15848_s24 + $0x98] sm:$0xff] }
0x1c77   : > { %v10896_v47 = vpop.f32.mrb[146].mxu0  ;;  %v12892_v59 = vld [vmem:[%s15848_s24 + $0xa0] sm:$0xff] }
0x1c78   : > { %v13227_v26 = vpop.f32.mrb[147].mxu0  ;;  %v12893_v47 = vld [vmem:[%s15848_s24 + $0xa8] sm:$0xff] }
0x1c79   : > { %v13375_v26 = vpack.c.bf16 %v12893_v47, %v12892_v59 }
0x1c7d   : > { %v11026_v40 = vpop.f32.mrb[148].mxu0 }
0x1c7e   : > { %v11032_v45 = vpack.c.bf16 %v11026_v40, %v11026_v40  ;;  %v13252_v63 = vpop.f32.mrb[149].mxu0  ;;  %v12894_v40 = vld [vmem:[%s15848_s24 + $0xb0] sm:$0xff] }
0x1c7f   : > { %v11029_v61 = vpop.f32.mrb[150].mxu0 }
0x1c80   : > { %13271 = vmatmul.mubr.bf16.vlgmr.msra.gmra.mrb[152].mxu0 %v11032_v45  ;;  %v13253_v37 = vpop.f32.mrb[151].mxu0  ;;  %v12895_v45 = vld [vmem:[%s15848_s24 + $0xb8] sm:$0xff]  ;;  %v12897_v61 = vld [vmem:[%s15848_s24 + $0xc8] sm:$0xff] }
0x1c81   : > { %v13378_v63 = vpack.c.bf16 %v12895_v45, %v12894_v40 }
0x1d53   : > { %v11132_v38 = vpop.f32.mrb[152].mxu0 }
0x1d54   : > { %v11138_v4 = vadd.f32 %v11132_v38, %v10982_v1  ;;  %v13272_v2 = vpop.f32.mrb[153].mxu0  ;;  %v13372_v1 = vpack.c.bf16 %v12891_v25, %v12890_v56  ;;  %v12900_v38 = vld [vmem:[%s15848_s24 + $0xe0] sm:$0xff] }
0x1d55   : > { %v11135_v24 = vpop.f32.mrb[154].mxu0  ;;  %v12902_v2 = vld [vmem:[%s15848_s24 + $0xf0] sm:$0xff] }
0x1d56   : > { %v11146_v62 = vadd.f32 %v12887_v5, %v11138_v4  ;;  %v13273_v16 = vpop.f32.mrb[155].mxu0  ;;  %v12901_v5 = vld [vmem:[%s15848_s24 + $0xe8] sm:$0xff]  ;;  %v12903_v24 = vld [vmem:[%s15848_s24 + $0xf8] sm:$0xff] }
0x1d57   : > { %v13387_v4 = vpack.c.bf16 %v12901_v5, %v12900_v38 }
0x1d58   : > { %v11147_v27 = vadd.f32 %v11146_v62, %v17030_v19  ;;  %v11173_v19 = vld [vmem:[%s15848_s24 + $0x28] sm:$0xff]  ;;  %v13390_v62 = vpack.c.bf16 %v12903_v24, %v12902_v2 }
0x1d59   : > { %v13351_v30 = vpack.c.bf16 %v11173_v19, %v11172_v12 }
0x1d5a   : > { %vm11148_vm12 = vcmp.ge.f32.partialorder %v11147_v27, 0.0  ;;  %v11149_v35 = vmul.f32 0.2, %v11147_v27 }
0x1d5b   : > { %13352 = vmatpush3.bf16.msra.mxu1 %v13351_v30 }
0x1d5c   : > { %v11150_v18 = vsel %vm11148_vm12, %v11147_v27, %v11149_v35  ;;  %13353 = vmatprep.subr.bf16.mxu1 %v15698_v17  ;;  %v11167_v27 = vld [vmem:[%s15853_s17] sm:$0x1] }
0x1d5d   : > { %v11151_v15 = vmul.f32 %v11150_v18, %v11150_v18 }
0x1d5f   : > { %v11152_v10 = vsel %vm9114_vm5, %v11151_v15, 0.0  ;;  %13355 = vmatpush3.bf16.msra.mxu1 %v13354_v29 }
0x1d60   : > { %11153 = vadd.xlane.f32.xlu0 %v11152_v10  ;;  %13356 = vmatprep.subr.bf16.mxu1 %v15698_v17 }
0x1d63   : > { %13358 = vmatpush3.bf16.msra.mxu1 %v13357_v28 }
0x1d64   : > { %13359 = vmatprep.subr.bf16.mxu1 %v15698_v17 }
0x1d67   : > { %13361 = vmatpush3.bf16.msra.mxu1 %v13360_v41 }
0x1d68   : > { %13362 = vmatprep.subr.bf16.mxu1 %v15698_v17 }
0x1d6b   : > { %13364 = vmatpush3.bf16.msra.mxu1 %v13363_v20 }
0x1d6c   : > { %13365 = vmatprep.subr.bf16.mxu1 %v15698_v17 }
0x1d6f   : > { %13367 = vmatpush3.bf16.msra.mxu1 %v13366_v32 }
0x1d70   : > { %13368 = vmatprep.subr.bf16.mxu1 %v15698_v17 }
0x1ded   : > { %v11154_v54 = vpop.xlane.xlu0 %11153 }
0x1dee   : > { %v11155_v0 = vsel %vm9114_vm5, %v11154_v54, 0.0 }
0x1def   : > { %v11156_v39 = vrot.slane %v11155_v0, 4 }
0x1df1   : > { %v11157_v55 = vadd.f32 %v11156_v39, %v11155_v0 }
0x1df3   : > { %v11158_v11 = vrot.slane %v11157_v55, 2 }
0x1df5   : > { %v11159_v50 = vadd.f32 %v11158_v11, %v11157_v55 }
0x1df7   : > { %v11160_v3 = vrot.slane %v11159_v50, 1 }
0x1df9   : > { %v11161_v8 = vadd.f32 %v11160_v3, %v11159_v50 }
0x1dfb   : > { %v11163_v53 = vmul.f32 0.00390625, %v11161_v8 }
0x1dfd   : > { %v11164_v33 = vadd.f32 1e-06, %v11163_v53 }
0x1dff   : > { %15066 = vrsqrt.f32 %v11164_v33 }
0x1e09   : > { %v15067_v36 = vpop.eup %15066 }
0x1e0a   : > { %v11166_v7 = vmul.f32 %v15067_v36, %v11150_v18 }
0x1e0c   : > { %13307 = vmatmul.mubr.f32.vlgmr.msra.gmra.mrb[148].mxu1 %v11166_v7  ;;  %v11273_v16 = vrot.slane %v11166_v7, 1 }
0x1e0d   : > { %13370 = vmatpush3.bf16.msra.mxu1 %v13369_v14  ;;  %13341 = vmatprep.mubr.msk.f32.mxu1 %vm15697_vm7, %v15696_v57  ;;  %v12896_v57 = vld [vmem:[%s15848_s24 + $0xc0] sm:$0xff] }
0x1e0e   : > { %13371 = vmatprep.subr.bf16.mxu1 %v15698_v17  ;;  %v13381_v37 = vpack.c.bf16 %v12897_v61, %v12896_v57 }
0x1e11   : > { %13373 = vmatpush3.bf16.msra.mxu1 %v13372_v1 }
0x1e12   : > { %13374 = vmatprep.subr.bf16.mxu1 %v15698_v17 }
0x1e15   : > { %13376 = vmatpush3.bf16.msra.mxu1 %v13375_v26 }
0x1e16   : > { %13377 = vmatprep.subr.bf16.mxu1 %v15698_v17 }
0x1e19   : > { %13379 = vmatpush3.bf16.msra.mxu1 %v13378_v63 }
0x1e1a   : > { %13380 = vmatprep.subr.bf16.mxu1 %v15698_v17 }
0x1e1d   : > { %13382 = vmatpush3.bf16.msra.mxu1 %v13381_v37 }
0x1e1e   : > { %13383 = vmatprep.subr.bf16.mxu1 %v15698_v17 }
0x1e21   : > { %13385 = vmatpush3.bf16.msra.mxu1 %v13384_v43 }
0x1e22   : > { %13386 = vmatprep.subr.bf16.mxu1 %v15698_v17 }
0x1e25   : > { %13388 = vmatpush3.bf16.msra.mxu1 %v13387_v4 }
0x1e26   : > { %13389 = vmatprep.subr.bf16.mxu1 %v15698_v17 }
0x1e29   : > { %13391 = vmatpush3.bf16.msra.mxu1 %v13390_v62 }
0x1e2c   : > { %13342 = vmatmul.mubr.f32.vlgmr.msra.gmra.mrb[148].mxu1 %v11273_v16 }
0x1eff   : > { %v11341_v35 = vpop.f32.mrb[148].mxu1 }
0x1f00   : > { %v13392_v18 = vadd.f32 %v11341_v35, %v11167_v27  ;;  %v13343_v15 = vpop.f32.mrb[149].mxu1 }
0x1f02   : > { %11347 = vst.msk [vmem:[%s1155_s18] sm:$0x1] %vm11346_vm13, %v13392_v18 }
0x1f03   : > { %15557 = shalt.err (!%p15554_p11)
}
0x1f04   : > { %s15558_s26 = scalar_lea.hbm %s17215_s1, 16  ;;  %s15562_s15 = scalar_lea.hbm %s15858_s9, 32 }
0x1f05   : > { %p15559_p13 = scmp.ne.s32.totalorder %s17215_s1, %s15558_s26  ;;  %p15563_p0 = scmp.lt.u32.totalorder %s17215_s1, %s15858_s9 }
0x1f06   : > { %p15564_p9 = scmp.lt.u32.totalorder %s15562_s15, %s15558_s26  ;;  %p15566_p12 = scmp.lt.u32.totalorder %s15558_s26, %s17215_s1 }
0x1f07   : > { %p15560_p6 = pnand %p15559_p13, %p17359_p1 }
0x1f08   : > { %p15565_p10 = por %p15564_p9, %p15563_p0 }
0x1f09   : > { %p15561_p5 = pneg %p15560_p6 }
0x1f0a   : > { %p15567_p2 = por %p15566_p12, %p15565_p10 }
0x1f0c   : > { %p15568_p3 = pnand %p15567_p2, %p15561_p5 }
0x1f0e   : > { %15571 = shalt.err (!%p15568_p3)
}
0x1f0f   : > { %13543 = dma.vmem_to_hbm [thread:$0]  (%p17359_p1), %s17217_s22, 16, %s17215_s1, %s11349_s2  }
0x1f10 PF: > { %s17360_s4 = sld [smem:[#allocation59_spill]]  ;;  %s17361_s5 = sld [smem:[#allocation57_spill]] }
0x1f11   : > { %s17362_s3 = sld [smem:[#allocation62_spill]] }
0x1f16   : > { %p13635_p4 = scmp.ge.s32.totalorder %s17360_s4, 2  ;;  %s11373_s18 = sand.u32 1, %s17361_s5  }
0x1f17   : > { %p17363_p7 = scmp.ne.s32.totalorder %s17362_s3, 0  ;;  %s11374_s0 = scalar_lea.sflag [#allocation4], %s11373_s18 }
0x1f19   : > { %p13598_p8 = pnand %p13635_p4, %p17363_p7 }
0x1f1b   : > { %15625 = dma.done.wait (!%p13598_p8), %s11374_s0, 16  }
0x1f1c   : > { %15627 = vsyncadd (!%p13598_p8), %s11374_s0, 4294967280  ;;  %s17364_s22 = sld [smem:[#allocation60_spill]]  ;;  %s17365_s26 = sld [smem:[#allocation58_spill]] }
0x1f1d   : > { %s17366_s18 = sld [smem:[#allocation61_spill]]  ;;  %s17367_s15 = smov %s15634_s16 }
0x1f22   : > { %p80_p11 = scmp.ge.s32.totalorder %s17364_s22, 4   ;;  %s17368_s16 = smov %s17365_s26 }
0x1f24   :  { %82 = sbr.rel (!%p80_p11) target bundleno = 65 (0x41), region = 331 }
0x1f2b   :  { %11378 = vsyncpa [#allocation3], 1 }
0x1f2c   :  { %11380 = vsyncpa [#allocation3 + $0x1], 1 }
0x1f2d   :  { %11381 = vsyncpa [#allocation6], 1 }
0x1f2e   :  { %11382 = vsyncpa [#allocation9], 1 }
0x1f2f   :  { %11383 = vsyncpa [#allocation12], 1 }
0x1f30   :  { %11384 = vsyncpa [#allocation15], 1 }
0x1f31   :  { %11385 = vsyncpa [#allocation18], 1 }
0x1f32   :  { %11386 = vsyncpa [#allocation21], 1 }
0x1f33   :  { %11387 = vsyncpa [#allocation24], 1 }
0x1f34   :  { %11388 = vsyncpa [#allocation27], 1 }
0x1f35   :  { %11389 = vsyncpa [#allocation4], 1 }
0x1f36   :  { %11391 = vsyncpa [#allocation4 + $0x1], 1 }

</bundles_post_ra>
